<compile_context>
chip_gen: v6e
topology: v6e:2x2x1
jax: 0.10.0
libtpu: 0.0.40
codegen_flags: <defaults>
</compile_context>

<pallas_src>
import numpy as np
import jax
import jax.numpy as jnp
from jax.experimental import pallas as pl
from jax.experimental.pallas import tpu as pltpu

_EPS = 1e-5                       # PyTorch BatchNorm2d default eps
_VMEM_LIMIT = 32 * 1024 * 1024    # safe on v5e/v6e/v7x; plenty of headroom here
_MM_DTYPE = jnp.float32           # matmul operand dtype (see FIX note above)


# ----------------------------- Pallas kernels -----------------------------

def _block_bn_kernel(p_ref, w_ref, b_ref, g_ref, bt_ref, a_ref, s_ref, o_ref):
    """Fused ResidualBlock hot path in lane-dense (R, M) layout.

    R = num_phases * C_out rows, M = pixels-per-phase lanes.
      y   = W (R,K) @ patches (K,M) + bias          (ConvTranspose2d)
      BN  : per *real* channel over all phases & pixels via the channel-
            averaging matrix A (R,R); training mode, biased variance.
      out = relu(BN(y)) + shortcut                  (residual add)
    """
    y = jnp.dot(w_ref[...], p_ref[...],
                preferred_element_type=jnp.float32) + b_ref[...]
    # global (per-channel) batch statistics — A folds the 1/(PH*M) factor
    mu = jnp.sum(jnp.dot(a_ref[...], y, preferred_element_type=jnp.float32),
                 axis=1, keepdims=True)
    d = y - mu
    var = jnp.sum(jnp.dot(a_ref[...], d * d,
                          preferred_element_type=jnp.float32),
                  axis=1, keepdims=True)
    yn = d * jax.lax.rsqrt(var + _EPS) * g_ref[...] + bt_ref[...]
    o_ref[...] = jnp.maximum(yn, 0.0) + s_ref[...]


def _head_kernel(p_ref, w_ref, b_ref, o_ref):
    """Head ConvTranspose (phase-decomposed matmul) + bias + Tanh."""
    y = jnp.dot(w_ref[...], p_ref[...],
                preferred_element_type=jnp.float32) + b_ref[...]
    o_ref[...] = jnp.tanh(y)


# ------------------------------- JAX glue ----------------------------------

def _pair(v):
    return (v, v) if isinstance(v, int) else tuple(v)


def _convT_patches_dilated(x, w, stride, padding):
    """Generic ConvTranspose2d lowering (dilate + pad + im2col) for layers that
    do not match the k=4/s=2/p=1 phase decomposition.  Returns lane-dense,
    transposed operands: pT (K, M), wT (Cout, K), output NHWC shape."""
    N, H, W, Cin = x.shape
    _, Cout, KH, KW = w.shape
    sh, sw = _pair(stride)
    ph, pw = _pair(padding)

    Hd, Wd = (H - 1) * sh + 1, (W - 1) * sw + 1
    xd = jnp.zeros((N, Hd, Wd, Cin), x.dtype).at[:, ::sh, ::sw, :].set(x)
    pt, plft = KH - 1 - ph, KW - 1 - pw                     # dconv has op = 0
    xp = jnp.pad(xd, ((0, 0), (pt, pt), (plft, plft), (0, 0)))

    OH = (H - 1) * sh - 2 * ph + KH
    OW = (W - 1) * sw - 2 * pw + KW
    cols = [xp[:, kh:kh + OH, kw:kw + OW, :]
            for kh in range(KH) for kw in range(KW)]
    patches = jnp.concatenate(cols, axis=-1).reshape(N * OH * OW, KH * KW * Cin)

    wflip = w[:, :, ::-1, ::-1]
    wmat = jnp.transpose(wflip, (2, 3, 0, 1)).reshape(KH * KW * Cin, Cout)
    return (patches.T.astype(_MM_DTYPE),
            wmat.T.astype(_MM_DTYPE),
            (N, OH, OW, Cout))


_KSEL = ((3, 1), (2, 0))   # kernel taps per output phase for k=4, s=2, p=1


def _convT_patches_phase2(x, w):
    """Sub-pixel (phase) decomposition of ConvTranspose2d(k=4, s=2, p=1):
       out[n, 2t+a, 2u+b, co] = sum_{j,l,cin} xpad[n, t+a+j, u+b+l, cin] *
                                              w[cin, co, KSEL[a][j], KSEL[b][l]]
    One 3x3-window im2col of the un-dilated input serves all 4 phases.
    Returns pT (9*Cin, N*H*W), wT (4*Cout, 9*Cin) with output rows ordered
    r = co*4 + a*2 + b."""
    N, H, W, Cin = x.shape
    _, Cout, _, _ = w.shape
    xp = jnp.pad(x, ((0, 0), (1, 1), (1, 1), (0, 0)))
    cols = [xp[:, dj:dj + H, dl:dl + W, :]
            for dj in range(3) for dl in range(3)]
    patches = jnp.concatenate(cols, axis=-1).reshape(N * H * W, 9 * Cin)

    wm = jnp.zeros((3, 3, Cin, 4 * Cout), w.dtype)
    for a in range(2):
        for b in range(2):
            for j in range(2):
                for l in range(2):
                    wm = wm.at[a + j, b + l, :, (a * 2 + b)::4].set(
                        w[:, :, _KSEL[a][j], _KSEL[b][l]])
    wmat = wm.reshape(9 * Cin, 4 * Cout)
    return patches.T.astype(_MM_DTYPE), wmat.T.astype(_MM_DTYPE)


def _phase_rows_to_nhwc(o, N, H, W, Cout):
    """(Cout*4, N*H*W) phase-row layout -> (N, 2H, 2W, Cout)."""
    o6 = o.reshape(Cout, 2, 2, N, H, W)
    return jnp.transpose(o6, (3, 4, 1, 5, 2, 0)).reshape(N, 2 * H, 2 * W, Cout)


def _nhwc_to_phase_rows(s):
    """(N, 2H, 2W, C) -> (C*4, N*H*W) phase-row layout (row = c*4 + a*2 + b)."""
    N, OH, OW, C = s.shape
    H, W = OH // 2, OW // 2
    s6 = s.reshape(N, H, 2, W, 2, C)
    return jnp.transpose(s6, (5, 2, 4, 0, 1, 3)).reshape(C * 4, N * H * W)


def _avg_matrix(Cout, PH, M):
    """(R, R) constant mapping per-row values to per-real-channel means."""
    r = np.arange(Cout * PH)
    same = (r[:, None] // PH) == (r[None, :] // PH)
    return jnp.asarray(same.astype(np.float32) / float(PH * M))


def _shortcut(x, s_w, s_b, output_padding, out_hw, pad):
    """nn.ConvTranspose2d(Cin, Cout, 1, stride=2, output_padding=op) + optional
    F.pad (zeros on left/top) + broadcast to the main-branch shape.
    Tiny 1x1 conv: pure layout + an O(Cin*Cout) matmul, left to XLA glue and
    consumed by the fused Pallas block kernel."""
    N, H, W, _ = x.shape
    Cout = s_w.shape[1]
    oph, opw = _pair(output_padding)
    OHs, OWs = (H - 1) * 2 + 1 + oph, (W - 1) * 2 + 1 + opw
    core = jnp.einsum('nhwc,cd->nhwd', x, s_w[:, :, 0, 0])
    s = jnp.zeros((N, OHs, OWs, Cout), jnp.float32)
    s = s.at[:, 0:2 * H:2, 0:2 * W:2, :].set(core)
    s = s + s_b                                   # ConvT bias at every position
    OH, OW = out_hw
    if pad:                                       # F.pad(s, (dW,0,dH,0))
        s = jnp.pad(s, ((0, 0), (OH - OHs, 0), (OW - OWs, 0), (0, 0)))
    return jnp.broadcast_to(s, (N, OH, OW, Cout))  # block 0 relies on broadcast


def _fused_block_call(pT, wT, b, g, bt, A, s_rows):
    R, M = s_rows.shape
    vmem = pl.BlockSpec(memory_space=pltpu.MemorySpace.VMEM)
    return pl.pallas_call(
        _block_bn_kernel,
        out_shape=jax.ShapeDtypeStruct((R, M), jnp.float32),
        in_specs=[vmem] * 7,
        out_specs=vmem,
        compiler_params=pltpu.CompilerParams(vmem_limit_bytes=_VMEM_LIMIT),
    )(pT, wT, b, g, bt, A, s_rows)


def residual_block(x, p, cfg):
    N, H, W, _ = x.shape
    Cout = cfg['cout']
    kh, kw = _pair(cfg['k'])
    sh, sw = _pair(cfg['s'])
    ph, pw = _pair(cfg['p'])
    use_phase = (kh, kw, sh, sw, ph, pw) == (4, 4, 2, 2, 1, 1)

    if use_phase:
        OH, OW = 2 * H, 2 * W
        pT, wT = _convT_patches_phase2(x, p['d_w'])
        s = _shortcut(x, p['s_w'], p['s_b'], cfg['op'], (OH, OW), cfg['pad'])
        s_rows = _nhwc_to_phase_rows(s)
        PH, M = 4, N * H * W
    else:
        pT, wT, (_, OH, OW, _) = _convT_patches_dilated(
            x, p['d_w'], cfg['s'], cfg['p'])
        s = _shortcut(x, p['s_w'], p['s_b'], cfg['op'], (OH, OW), cfg['pad'])
        s_rows = jnp.transpose(s, (3, 0, 1, 2)).reshape(Cout, N * OH * OW)
        PH, M = 1, N * OH * OW

    A = _avg_matrix(Cout, PH, M)
    b_r = jnp.repeat(p['d_b'], PH)[:, None].astype(jnp.float32)
    g_r = jnp.repeat(p['gamma'], PH)[:, None].astype(jnp.float32)
    bt_r = jnp.repeat(p['beta'], PH)[:, None].astype(jnp.float32)

    out_rows = _fused_block_call(pT, wT, b_r, g_r, bt_r, A,
                                 s_rows.astype(jnp.float32))

    if use_phase:
        return _phase_rows_to_nhwc(out_rows, N, H, W, Cout)
    return jnp.transpose(out_rows.reshape(Cout, N, OH, OW), (1, 2, 3, 0))


def head_convT_tanh(x, w, b, tile_m=2560):
    """Head ConvTranspose2d(k=4, s=2, p=1) + Tanh, phase-decomposed, gridded
    over M (lane axis) and marked "parallel" (v7x uses both TensorCores)."""
    N, H, W, _ = x.shape
    Cout = w.shape[1]
    pT, wT = _convT_patches_phase2(x, w)
    R, K = wT.shape
    M = N * H * W
    tile_m = min(tile_m, pl.cdiv(M, 128) * 128)
    Mp = pl.cdiv(M, tile_m) * tile_m
    pT = jnp.pad(pT, ((0, 0), (0, Mp - M)))
    b_r = jnp.repeat(b, 4)[:, None].astype(jnp.float32)

    out = pl.pallas_call(
        _head_kernel,
        out_shape=jax.ShapeDtypeStruct((R, Mp), jnp.float32),
        grid=(Mp // tile_m,),
        in_specs=[pl.BlockSpec((K, tile_m), lambda i: (0, i)),
                  pl.BlockSpec((R, K), lambda i: (0, 0)),
                  pl.BlockSpec((R, 1), lambda i: (0, 0))],
        out_specs=pl.BlockSpec((R, tile_m), lambda i: (0, i)),
        compiler_params=pltpu.CompilerParams(
            dimension_semantics=("parallel",),
            vmem_limit_bytes=_VMEM_LIMIT),
    )(pT, wT, b_r)
    return _phase_rows_to_nhwc(out[:, :M], N, H, W, Cout)


# ------------------------------ parameters ---------------------------------

def init_generator_params(key, input_dim, output_image_size=8, num_channels=1):
    OIS = output_image_size
    cfgs = [
        dict(cin=input_dim, cout=OIS * 8, k=(3, 6), s=1, p=0, op=0, pad=False),
        dict(cin=OIS * 8, cout=OIS * 4, k=(4, 4), s=(2, 2), p=1, op=1, pad=False),
        dict(cin=OIS * 4, cout=OIS * 2, k=(4, 5), s=2, p=1, op=(1, 1), pad=True),
        dict(cin=OIS * 2, cout=OIS,     k=(5, 4), s=2, p=1, op=(1, 1), pad=True),
        dict(cin=OIS,     cout=OIS // 2, k=(4, 4), s=2, p=1, op=(1, 1), pad=False),
    ]
    params = []
    for cfg in cfgs:
        key, k1, k2, k3, k4, k5, k6 = jax.random.split(key, 7)
        kh, kw = _pair(cfg['k'])
        params.append((cfg, dict(
            d_w=0.1 * jax.random.normal(k1, (cfg['cin'], cfg['cout'], kh, kw), jnp.float32),
            d_b=0.1 * jax.random.normal(k2, (cfg['cout'],), jnp.float32),
            s_w=0.1 * jax.random.normal(k3, (cfg['cin'], cfg['cout'], 1, 1), jnp.float32),
            s_b=0.1 * jax.random.normal(k4, (cfg['cout'],), jnp.float32),
            gamma=1.0 + 0.1 * jax.random.normal(k5, (cfg['cout'],), jnp.float32),
            beta=0.1 * jax.random.normal(k6, (cfg['cout'],), jnp.float32),
        )))
    key, k1, k2 = jax.random.split(key, 3)
    head = dict(
        w=0.1 * jax.random.normal(k1, (OIS // 2, num_channels, 4, 4), jnp.float32),
        b=0.1 * jax.random.normal(k2, (num_channels,), jnp.float32),
    )
    return params, head


def residual_generator_forward(x_nchw, params, head):
    # TODO(synk): BatchNorm running-stats buffers are not updated (pure forward).
    x = jnp.transpose(x_nchw, (0, 2, 3, 1))   # NCHW -> NHWC
    for cfg, p in params:
        x = residual_block(x, p, cfg)
    out = head_convT_tanh(x, head['w'], head['b'])
    return jnp.transpose(out, (0, 3, 1, 2))   # NHWC -> NCHW


if __name__ == "__main__":
    key = jax.random.PRNGKey(0)
    kx, kp = jax.random.split(key)

    input_dim = 4
    # Latent input, NCHW (N, input_dim, 1, 1) as implied by the generator.
    x = jax.random.normal(kx, (2, input_dim, 1, 1), jnp.float32)
    params, head = init_generator_params(kp, input_dim,
                                         output_image_size=8, num_channels=1)

    fwd = jax.jit(lambda xx: residual_generator_forward(xx, params, head))
    out = fwd(x)
    jax.block_until_ready(out)

    # Spatial trace: 1x1 -> 3x6 -> 6x12 -> 12x25 -> 25x50 -> 50x100 -> 100x200
    assert out.shape == (2, 1, 100, 200), out.shape
    assert bool(jnp.all(jnp.isfinite(out)))
    print("KERNEL_OK")
</pallas_src>

<mosaic_0001>
module attributes {stable_mosaic.version = 11 : i64} {
  func.func @_block_bn_kernel(%arg0: memref<72x36xf32, #tpu.memory_space<vmem>>, %arg1: memref<64x72xf32, #tpu.memory_space<vmem>>, %arg2: memref<64x1xf32, #tpu.memory_space<vmem>>, %arg3: memref<64x1xf32, #tpu.memory_space<vmem>>, %arg4: memref<64x1xf32, #tpu.memory_space<vmem>>, %arg5: memref<64x64xf32, #tpu.memory_space<vmem>>, %arg6: memref<64x36xf32, #tpu.memory_space<vmem>>, %arg7: memref<64x36xf32, #tpu.memory_space<vmem>>) attributes {dimension_semantics = [], scalar_prefetch = 0 : i64, scratch_operands = 0 : i64, tpu.core_type = #tpu.core_type<tc>} {
    %c0 = arith.constant 0 : index
    %c0_0 = arith.constant 0 : index
    %0 = vector.load %arg1[%c0, %c0_0] : memref<64x72xf32, #tpu.memory_space<vmem>>, vector<64x72xf32>
    %c0_1 = arith.constant 0 : index
    %c0_2 = arith.constant 0 : index
    %1 = vector.load %arg0[%c0_1, %c0_2] : memref<72x36xf32, #tpu.memory_space<vmem>>, vector<72x36xf32>
    %cst = arith.constant dense<0.000000e+00> : vector<64x36xf32>
    %2 = tpu.matmul %0, %1, %cst {dimension_numbers = #tpu.dot_dimension_numbers<[1], [0], [0], [1], [0, 0, 1, 1], [], []>} : vector<64x72xf32>, vector<72x36xf32>, vector<64x36xf32> -> vector<64x36xf32>
    %c0_3 = arith.constant 0 : index
    %c0_4 = arith.constant 0 : index
    %3 = vector.load %arg2[%c0_3, %c0_4] : memref<64x1xf32, #tpu.memory_space<vmem>>, vector<64x1xf32>
    %4 = vector.broadcast %3 : vector<64x1xf32> to vector<64x36xf32>
    %5 = arith.addf %2, %4 : vector<64x36xf32>
    %c0_5 = arith.constant 0 : index
    %c0_6 = arith.constant 0 : index
    %6 = vector.load %arg5[%c0_5, %c0_6] : memref<64x64xf32, #tpu.memory_space<vmem>>, vector<64x64xf32>
    %cst_7 = arith.constant dense<0.000000e+00> : vector<64x36xf32>
    %7 = tpu.matmul %6, %5, %cst_7 {dimension_numbers = #tpu.dot_dimension_numbers<[1], [0], [0], [1], [0, 0, 1, 1], [], []>} : vector<64x64xf32>, vector<64x36xf32>, vector<64x36xf32> -> vector<64x36xf32>
    %cst_8 = arith.constant dense<0.000000e+00> : vector<64xf32>
    %8 = vector.multi_reduction <add>, %7, %cst_8 [1] : vector<64x36xf32> to vector<64xf32>
    %9 = vector.shape_cast %8 : vector<64xf32> to vector<64x1xf32>
    %10 = vector.broadcast %9 : vector<64x1xf32> to vector<64x36xf32>
    %11 = arith.subf %5, %10 : vector<64x36xf32>
    %c0_9 = arith.constant 0 : index
    %c0_10 = arith.constant 0 : index
    %12 = vector.load %arg5[%c0_9, %c0_10] : memref<64x64xf32, #tpu.memory_space<vmem>>, vector<64x64xf32>
    %13 = arith.mulf %11, %11 : vector<64x36xf32>
    %cst_11 = arith.constant dense<0.000000e+00> : vector<64x36xf32>
    %14 = tpu.matmul %12, %13, %cst_11 {dimension_numbers = #tpu.dot_dimension_numbers<[1], [0], [0], [1], [0, 0, 1, 1], [], []>} : vector<64x64xf32>, vector<64x36xf32>, vector<64x36xf32> -> vector<64x36xf32>
    %cst_12 = arith.constant dense<0.000000e+00> : vector<64xf32>
    %15 = vector.multi_reduction <add>, %14, %cst_12 [1] : vector<64x36xf32> to vector<64xf32>
    %16 = vector.shape_cast %15 : vector<64xf32> to vector<64x1xf32>
    %cst_13 = arith.constant 9.99999974E-6 : f32
    %17 = vector.broadcast %cst_13 : f32 to vector<64x1xf32>
    %18 = arith.addf %16, %17 : vector<64x1xf32>
    %19 = math.rsqrt %18 : vector<64x1xf32>
    %20 = vector.broadcast %19 : vector<64x1xf32> to vector<64x36xf32>
    %21 = arith.mulf %11, %20 : vector<64x36xf32>
    %c0_14 = arith.constant 0 : index
    %c0_15 = arith.constant 0 : index
    %22 = vector.load %arg3[%c0_14, %c0_15] : memref<64x1xf32, #tpu.memory_space<vmem>>, vector<64x1xf32>
    %23 = vector.broadcast %22 : vector<64x1xf32> to vector<64x36xf32>
    %24 = arith.mulf %21, %23 : vector<64x36xf32>
    %c0_16 = arith.constant 0 : index
    %c0_17 = arith.constant 0 : index
    %25 = vector.load %arg4[%c0_16, %c0_17] : memref<64x1xf32, #tpu.memory_space<vmem>>, vector<64x1xf32>
    %26 = vector.broadcast %25 : vector<64x1xf32> to vector<64x36xf32>
    %27 = arith.addf %24, %26 : vector<64x36xf32>
    %cst_18 = arith.constant 0.000000e+00 : f32
    %28 = vector.broadcast %cst_18 : f32 to vector<64x36xf32>
    %29 = arith.maximumf %27, %28 : vector<64x36xf32>
    %c0_19 = arith.constant 0 : index
    %c0_20 = arith.constant 0 : index
    %30 = vector.load %arg6[%c0_19, %c0_20] : memref<64x36xf32, #tpu.memory_space<vmem>>, vector<64x36xf32>
    %31 = arith.addf %29, %30 : vector<64x36xf32>
    %c0_21 = arith.constant 0 : index
    %c0_22 = arith.constant 0 : index
    %32 = vector.load %arg7[%c0_21, %c0_22] : memref<64x36xf32, #tpu.memory_space<vmem>>, vector<64x36xf32>
    tpu.vector_store %arg7[%c0_21, %c0_22], %31 {strides = array<i32>} : memref<64x36xf32, #tpu.memory_space<vmem>>, vector<64x36xf32>,
    return
  }
}

module attributes {stable_mosaic.version = 11 : i64} {
  func.func @_block_bn_kernel(%arg0: memref<576x36xf32, #tpu.memory_space<vmem>>, %arg1: memref<128x576xf32, #tpu.memory_space<vmem>>, %arg2: memref<128x1xf32, #tpu.memory_space<vmem>>, %arg3: memref<128x1xf32, #tpu.memory_space<vmem>>, %arg4: memref<128x1xf32, #tpu.memory_space<vmem>>, %arg5: memref<128x128xf32, #tpu.memory_space<vmem>>, %arg6: memref<128x36xf32, #tpu.memory_space<vmem>>, %arg7: memref<128x36xf32, #tpu.memory_space<vmem>>) attributes {dimension_semantics = [], scalar_prefetch = 0 : i64, scratch_operands = 0 : i64, tpu.core_type = #tpu.core_type<tc>} {
    %c0 = arith.constant 0 : index
    %c0_0 = arith.constant 0 : index
    %0 = vector.load %arg1[%c0, %c0_0] : memref<128x576xf32, #tpu.memory_space<vmem>>, vector<128x576xf32>
    %c0_1 = arith.constant 0 : index
    %c0_2 = arith.constant 0 : index
    %1 = vector.load %arg0[%c0_1, %c0_2] : memref<576x36xf32, #tpu.memory_space<vmem>>, vector<576x36xf32>
    %cst = arith.constant dense<0.000000e+00> : vector<128x36xf32>
    %2 = tpu.matmul %0, %1, %cst {dimension_numbers = #tpu.dot_dimension_numbers<[1], [0], [0], [1], [0, 0, 1, 1], [], []>} : vector<128x576xf32>, vector<576x36xf32>, vector<128x36xf32> -> vector<128x36xf32>
    %c0_3 = arith.constant 0 : index
    %c0_4 = arith.constant 0 : index
    %3 = vector.load %arg2[%c0_3, %c0_4] : memref<128x1xf32, #tpu.memory_space<vmem>>, vector<128x1xf32>
    %4 = vector.broadcast %3 : vector<128x1xf32> to vector<128x36xf32>
    %5 = arith.addf %2, %4 : vector<128x36xf32>
    %c0_5 = arith.constant 0 : index
    %c0_6 = arith.constant 0 : index
    %6 = vector.load %arg5[%c0_5, %c0_6] : memref<128x128xf32, #tpu.memory_space<vmem>>, vector<128x128xf32>
    %cst_7 = arith.constant dense<0.000000e+00> : vector<128x36xf32>
    %7 = tpu.matmul %6, %5, %cst_7 {dimension_numbers = #tpu.dot_dimension_numbers<[1], [0], [0], [1], [0, 0, 1, 1], [], []>} : vector<128x128xf32>, vector<128x36xf32>, vector<128x36xf32> -> vector<128x36xf32>
    %cst_8 = arith.constant dense<0.000000e+00> : vector<128xf32>
    %8 = vector.multi_reduction <add>, %7, %cst_8 [1] : vector<128x36xf32> to vector<128xf32>
    %9 = vector.shape_cast %8 : vector<128xf32> to vector<128x1xf32>
    %10 = vector.broadcast %9 : vector<128x1xf32> to vector<128x36xf32>
    %11 = arith.subf %5, %10 : vector<128x36xf32>
    %c0_9 = arith.constant 0 : index
    %c0_10 = arith.constant 0 : index
    %12 = vector.load %arg5[%c0_9, %c0_10] : memref<128x128xf32, #tpu.memory_space<vmem>>, vector<128x128xf32>
    %13 = arith.mulf %11, %11 : vector<128x36xf32>
    %cst_11 = arith.constant dense<0.000000e+00> : vector<128x36xf32>
    %14 = tpu.matmul %12, %13, %cst_11 {dimension_numbers = #tpu.dot_dimension_numbers<[1], [0], [0], [1], [0, 0, 1, 1], [], []>} : vector<128x128xf32>, vector<128x36xf32>, vector<128x36xf32> -> vector<128x36xf32>
    %cst_12 = arith.constant dense<0.000000e+00> : vector<128xf32>
    %15 = vector.multi_reduction <add>, %14, %cst_12 [1] : vector<128x36xf32> to vector<128xf32>
    %16 = vector.shape_cast %15 : vector<128xf32> to vector<128x1xf32>
    %cst_13 = arith.constant 9.99999974E-6 : f32
    %17 = vector.broadcast %cst_13 : f32 to vector<128x1xf32>
    %18 = arith.addf %16, %17 : vector<128x1xf32>
    %19 = math.rsqrt %18 : vector<128x1xf32>
    %20 = vector.broadcast %19 : vector<128x1xf32> to vector<128x36xf32>
    %21 = arith.mulf %11, %20 : vector<128x36xf32>
    %c0_14 = arith.constant 0 : index
    %c0_15 = arith.constant 0 : index
    %22 = vector.load %arg3[%c0_14, %c0_15] : memref<128x1xf32, #tpu.memory_space<vmem>>, vector<128x1xf32>
    %23 = vector.broadcast %22 : vector<128x1xf32> to vector<128x36xf32>
    %24 = arith.mulf %21, %23 : vector<128x36xf32>
    %c0_16 = arith.constant 0 : index
    %c0_17 = arith.constant 0 : index
    %25 = vector.load %arg4[%c0_16, %c0_17] : memref<128x1xf32, #tpu.memory_space<vmem>>, vector<128x1xf32>
    %26 = vector.broadcast %25 : vector<128x1xf32> to vector<128x36xf32>
    %27 = arith.addf %24, %26 : vector<128x36xf32>
    %cst_18 = arith.constant 0.000000e+00 : f32
    %28 = vector.broadcast %cst_18 : f32 to vector<128x36xf32>
    %29 = arith.maximumf %27, %28 : vector<128x36xf32>
    %c0_19 = arith.constant 0 : index
    %c0_20 = arith.constant 0 : index
    %30 = vector.load %arg6[%c0_19, %c0_20] : memref<128x36xf32, #tpu.memory_space<vmem>>, vector<128x36xf32>
    %31 = arith.addf %29, %30 : vector<128x36xf32>
    %c0_21 = arith.constant 0 : index
    %c0_22 = arith.constant 0 : index
    %32 = vector.load %arg7[%c0_21, %c0_22] : memref<128x36xf32, #tpu.memory_space<vmem>>, vector<128x36xf32>
    tpu.vector_store %arg7[%c0_21, %c0_22], %31 {strides = array<i32>} : memref<128x36xf32, #tpu.memory_space<vmem>>, vector<128x36xf32>,
    return
  }
}

module attributes {stable_mosaic.version = 11 : i64} {
  func.func @_block_bn_kernel(%arg0: memref<640x600xf32, #tpu.memory_space<vmem>>, %arg1: memref<16x640xf32, #tpu.memory_space<vmem>>, %arg2: memref<16x1xf32, #tpu.memory_space<vmem>>, %arg3: memref<16x1xf32, #tpu.memory_space<vmem>>, %arg4: memref<16x1xf32, #tpu.memory_space<vmem>>, %arg5: memref<16x16xf32, #tpu.memory_space<vmem>>, %arg6: memref<16x600xf32, #tpu.memory_space<vmem>>, %arg7: memref<16x600xf32, #tpu.memory_space<vmem>>) attributes {dimension_semantics = [], scalar_prefetch = 0 : i64, scratch_operands = 0 : i64, tpu.core_type = #tpu.core_type<tc>} {
    %c0 = arith.constant 0 : index
    %c0_0 = arith.constant 0 : index
    %0 = vector.load %arg1[%c0, %c0_0] : memref<16x640xf32, #tpu.memory_space<vmem>>, vector<16x640xf32>
    %c0_1 = arith.constant 0 : index
    %c0_2 = arith.constant 0 : index
    %1 = vector.load %arg0[%c0_1, %c0_2] : memref<640x600xf32, #tpu.memory_space<vmem>>, vector<640x600xf32>
    %cst = arith.constant dense<0.000000e+00> : vector<16x600xf32>
    %2 = tpu.matmul %0, %1, %cst {dimension_numbers = #tpu.dot_dimension_numbers<[1], [0], [0], [1], [0, 0, 1, 1], [], []>} : vector<16x640xf32>, vector<640x600xf32>, vector<16x600xf32> -> vector<16x600xf32>
    %c0_3 = arith.constant 0 : index
    %c0_4 = arith.constant 0 : index
    %3 = vector.load %arg2[%c0_3, %c0_4] : memref<16x1xf32, #tpu.memory_space<vmem>>, vector<16x1xf32>
    %4 = vector.broadcast %3 : vector<16x1xf32> to vector<16x600xf32>
    %5 = arith.addf %2, %4 : vector<16x600xf32>
    %c0_5 = arith.constant 0 : index
    %c0_6 = arith.constant 0 : index
    %6 = vector.load %arg5[%c0_5, %c0_6] : memref<16x16xf32, #tpu.memory_space<vmem>>, vector<16x16xf32>
    %cst_7 = arith.constant dense<0.000000e+00> : vector<16x600xf32>
    %7 = tpu.matmul %6, %5, %cst_7 {dimension_numbers = #tpu.dot_dimension_numbers<[1], [0], [0], [1], [0, 0, 1, 1], [], []>} : vector<16x16xf32>, vector<16x600xf32>, vector<16x600xf32> -> vector<16x600xf32>
    %cst_8 = arith.constant dense<0.000000e+00> : vector<16xf32>
    %8 = vector.multi_reduction <add>, %7, %cst_8 [1] : vector<16x600xf32> to vector<16xf32>
    %9 = vector.shape_cast %8 : vector<16xf32> to vector<16x1xf32>
    %10 = vector.broadcast %9 : vector<16x1xf32> to vector<16x600xf32>
    %11 = arith.subf %5, %10 : vector<16x600xf32>
    %c0_9 = arith.constant 0 : index
    %c0_10 = arith.constant 0 : index
    %12 = vector.load %arg5[%c0_9, %c0_10] : memref<16x16xf32, #tpu.memory_space<vmem>>, vector<16x16xf32>
    %13 = arith.mulf %11, %11 : vector<16x600xf32>
    %cst_11 = arith.constant dense<0.000000e+00> : vector<16x600xf32>
    %14 = tpu.matmul %12, %13, %cst_11 {dimension_numbers = #tpu.dot_dimension_numbers<[1], [0], [0], [1], [0, 0, 1, 1], [], []>} : vector<16x16xf32>, vector<16x600xf32>, vector<16x600xf32> -> vector<16x600xf32>
    %cst_12 = arith.constant dense<0.000000e+00> : vector<16xf32>
    %15 = vector.multi_reduction <add>, %14, %cst_12 [1] : vector<16x600xf32> to vector<16xf32>
    %16 = vector.shape_cast %15 : vector<16xf32> to vector<16x1xf32>
    %cst_13 = arith.constant 9.99999974E-6 : f32
    %17 = vector.broadcast %cst_13 : f32 to vector<16x1xf32>
    %18 = arith.addf %16, %17 : vector<16x1xf32>
    %19 = math.rsqrt %18 : vector<16x1xf32>
    %20 = vector.broadcast %19 : vector<16x1xf32> to vector<16x600xf32>
    %21 = arith.mulf %11, %20 : vector<16x600xf32>
    %c0_14 = arith.constant 0 : index
    %c0_15 = arith.constant 0 : index
    %22 = vector.load %arg3[%c0_14, %c0_15] : memref<16x1xf32, #tpu.memory_space<vmem>>, vector<16x1xf32>
    %23 = vector.broadcast %22 : vector<16x1xf32> to vector<16x600xf32>
    %24 = arith.mulf %21, %23 : vector<16x600xf32>
    %c0_16 = arith.constant 0 : index
    %c0_17 = arith.constant 0 : index
    %25 = vector.load %arg4[%c0_16, %c0_17] : memref<16x1xf32, #tpu.memory_space<vmem>>, vector<16x1xf32>
    %26 = vector.broadcast %25 : vector<16x1xf32> to vector<16x600xf32>
    %27 = arith.addf %24, %26 : vector<16x600xf32>
    %cst_18 = arith.constant 0.000000e+00 : f32
    %28 = vector.broadcast %cst_18 : f32 to vector<16x600xf32>
    %29 = arith.maximumf %27, %28 : vector<16x600xf32>
    %c0_19 = arith.constant 0 : index
    %c0_20 = arith.constant 0 : index
    %30 = vector.load %arg6[%c0_19, %c0_20] : memref<16x600xf32, #tpu.memory_space<vmem>>, vector<16x600xf32>
    %31 = arith.addf %29, %30 : vector<16x600xf32>
    %c0_21 = arith.constant 0 : index
    %c0_22 = arith.constant 0 : index
    %32 = vector.load %arg7[%c0_21, %c0_22] : memref<16x600xf32, #tpu.memory_space<vmem>>, vector<16x600xf32>
    tpu.vector_store %arg7[%c0_21, %c0_22], %31 {strides = array<i32>} : memref<16x600xf32, #tpu.memory_space<vmem>>, vector<16x600xf32>,
    return
  }
}

module attributes {stable_mosaic.version = 11 : i64} {
  func.func @_block_bn_kernel(%arg0: memref<320x2500xf32, #tpu.memory_space<vmem>>, %arg1: memref<8x320xf32, #tpu.memory_space<vmem>>, %arg2: memref<8x1xf32, #tpu.memory_space<vmem>>, %arg3: memref<8x1xf32, #tpu.memory_space<vmem>>, %arg4: memref<8x1xf32, #tpu.memory_space<vmem>>, %arg5: memref<8x8xf32, #tpu.memory_space<vmem>>, %arg6: memref<8x2500xf32, #tpu.memory_space<vmem>>, %arg7: memref<8x2500xf32, #tpu.memory_space<vmem>>) attributes {dimension_semantics = [], scalar_prefetch = 0 : i64, scratch_operands = 0 : i64, tpu.core_type = #tpu.core_type<tc>} {
    %c0 = arith.constant 0 : index
    %c0_0 = arith.constant 0 : index
    %0 = vector.load %arg1[%c0, %c0_0] : memref<8x320xf32, #tpu.memory_space<vmem>>, vector<8x320xf32>
    %c0_1 = arith.constant 0 : index
    %c0_2 = arith.constant 0 : index
    %1 = vector.load %arg0[%c0_1, %c0_2] : memref<320x2500xf32, #tpu.memory_space<vmem>>, vector<320x2500xf32>
    %cst = arith.constant dense<0.000000e+00> : vector<8x2500xf32>
    %2 = tpu.matmul %0, %1, %cst {dimension_numbers = #tpu.dot_dimension_numbers<[1], [0], [0], [1], [0, 0, 1, 1], [], []>} : vector<8x320xf32>, vector<320x2500xf32>, vector<8x2500xf32> -> vector<8x2500xf32>
    %c0_3 = arith.constant 0 : index
    %c0_4 = arith.constant 0 : index
    %3 = vector.load %arg2[%c0_3, %c0_4] : memref<8x1xf32, #tpu.memory_space<vmem>>, vector<8x1xf32>
    %4 = vector.broadcast %3 : vector<8x1xf32> to vector<8x2500xf32>
    %5 = arith.addf %2, %4 : vector<8x2500xf32>
    %c0_5 = arith.constant 0 : index
    %c0_6 = arith.constant 0 : index
    %6 = vector.load %arg5[%c0_5, %c0_6] : memref<8x8xf32, #tpu.memory_space<vmem>>, vector<8x8xf32>
    %cst_7 = arith.constant dense<0.000000e+00> : vector<8x2500xf32>
    %7 = tpu.matmul %6, %5, %cst_7 {dimension_numbers = #tpu.dot_dimension_numbers<[1], [0], [0], [1], [0, 0, 1, 1], [], []>} : vector<8x8xf32>, vector<8x2500xf32>, vector<8x2500xf32> -> vector<8x2500xf32>
    %cst_8 = arith.constant dense<0.000000e+00> : vector<8xf32>
    %8 = vector.multi_reduction <add>, %7, %cst_8 [1] : vector<8x2500xf32> to vector<8xf32>
    %9 = vector.shape_cast %8 : vector<8xf32> to vector<8x1xf32>
    %10 = vector.broadcast %9 : vector<8x1xf32> to vector<8x2500xf32>
    %11 = arith.subf %5, %10 : vector<8x2500xf32>
    %c0_9 = arith.constant 0 : index
    %c0_10 = arith.constant 0 : index
    %12 = vector.load %arg5[%c0_9, %c0_10] : memref<8x8xf32, #tpu.memory_space<vmem>>, vector<8x8xf32>
    %13 = arith.mulf %11, %11 : vector<8x2500xf32>
    %cst_11 = arith.constant dense<0.000000e+00> : vector<8x2500xf32>
    %14 = tpu.matmul %12, %13, %cst_11 {dimension_numbers = #tpu.dot_dimension_numbers<[1], [0], [0], [1], [0, 0, 1, 1], [], []>} : vector<8x8xf32>, vector<8x2500xf32>, vector<8x2500xf32> -> vector<8x2500xf32>
    %cst_12 = arith.constant dense<0.000000e+00> : vector<8xf32>
    %15 = vector.multi_reduction <add>, %14, %cst_12 [1] : vector<8x2500xf32> to vector<8xf32>
    %16 = vector.shape_cast %15 : vector<8xf32> to vector<8x1xf32>
    %cst_13 = arith.constant 9.99999974E-6 : f32
    %17 = vector.broadcast %cst_13 : f32 to vector<8x1xf32>
    %18 = arith.addf %16, %17 : vector<8x1xf32>
    %19 = math.rsqrt %18 : vector<8x1xf32>
    %20 = vector.broadcast %19 : vector<8x1xf32> to vector<8x2500xf32>
    %21 = arith.mulf %11, %20 : vector<8x2500xf32>
    %c0_14 = arith.constant 0 : index
    %c0_15 = arith.constant 0 : index
    %22 = vector.load %arg3[%c0_14, %c0_15] : memref<8x1xf32, #tpu.memory_space<vmem>>, vector<8x1xf32>
    %23 = vector.broadcast %22 : vector<8x1xf32> to vector<8x2500xf32>
    %24 = arith.mulf %21, %23 : vector<8x2500xf32>
    %c0_16 = arith.constant 0 : index
    %c0_17 = arith.constant 0 : index
    %25 = vector.load %arg4[%c0_16, %c0_17] : memref<8x1xf32, #tpu.memory_space<vmem>>, vector<8x1xf32>
    %26 = vector.broadcast %25 : vector<8x1xf32> to vector<8x2500xf32>
    %27 = arith.addf %24, %26 : vector<8x2500xf32>
    %cst_18 = arith.constant 0.000000e+00 : f32
    %28 = vector.broadcast %cst_18 : f32 to vector<8x2500xf32>
    %29 = arith.maximumf %27, %28 : vector<8x2500xf32>
    %c0_19 = arith.constant 0 : index
    %c0_20 = arith.constant 0 : index
    %30 = vector.load %arg6[%c0_19, %c0_20] : memref<8x2500xf32, #tpu.memory_space<vmem>>, vector<8x2500xf32>
    %31 = arith.addf %29, %30 : vector<8x2500xf32>
    %c0_21 = arith.constant 0 : index
    %c0_22 = arith.constant 0 : index
    %32 = vector.load %arg7[%c0_21, %c0_22] : memref<8x2500xf32, #tpu.memory_space<vmem>>, vector<8x2500xf32>
    tpu.vector_store %arg7[%c0_21, %c0_22], %31 {strides = array<i32>} : memref<8x2500xf32, #tpu.memory_space<vmem>>, vector<8x2500xf32>,
    return
  }
}

module attributes {stable_mosaic.version = 11 : i64} {
  func.func @_block_bn_kernel(%arg0: memref<72x2500xf32, #tpu.memory_space<vmem>>, %arg1: memref<16x72xf32, #tpu.memory_space<vmem>>, %arg2: memref<16x1xf32, #tpu.memory_space<vmem>>, %arg3: memref<16x1xf32, #tpu.memory_space<vmem>>, %arg4: memref<16x1xf32, #tpu.memory_space<vmem>>, %arg5: memref<16x16xf32, #tpu.memory_space<vmem>>, %arg6: memref<16x2500xf32, #tpu.memory_space<vmem>>, %arg7: memref<16x2500xf32, #tpu.memory_space<vmem>>) attributes {dimension_semantics = [], scalar_prefetch = 0 : i64, scratch_operands = 0 : i64, tpu.core_type = #tpu.core_type<tc>} {
    %c0 = arith.constant 0 : index
    %c0_0 = arith.constant 0 : index
    %0 = vector.load %arg1[%c0, %c0_0] : memref<16x72xf32, #tpu.memory_space<vmem>>, vector<16x72xf32>
    %c0_1 = arith.constant 0 : index
    %c0_2 = arith.constant 0 : index
    %1 = vector.load %arg0[%c0_1, %c0_2] : memref<72x2500xf32, #tpu.memory_space<vmem>>, vector<72x2500xf32>
    %cst = arith.constant dense<0.000000e+00> : vector<16x2500xf32>
    %2 = tpu.matmul %0, %1, %cst {dimension_numbers = #tpu.dot_dimension_numbers<[1], [0], [0], [1], [0, 0, 1, 1], [], []>} : vector<16x72xf32>, vector<72x2500xf32>, vector<16x2500xf32> -> vector<16x2500xf32>
    %c0_3 = arith.constant 0 : index
    %c0_4 = arith.constant 0 : index
    %3 = vector.load %arg2[%c0_3, %c0_4] : memref<16x1xf32, #tpu.memory_space<vmem>>, vector<16x1xf32>
    %4 = vector.broadcast %3 : vector<16x1xf32> to vector<16x2500xf32>
    %5 = arith.addf %2, %4 : vector<16x2500xf32>
    %c0_5 = arith.constant 0 : index
    %c0_6 = arith.constant 0 : index
    %6 = vector.load %arg5[%c0_5, %c0_6] : memref<16x16xf32, #tpu.memory_space<vmem>>, vector<16x16xf32>
    %cst_7 = arith.constant dense<0.000000e+00> : vector<16x2500xf32>
    %7 = tpu.matmul %6, %5, %cst_7 {dimension_numbers = #tpu.dot_dimension_numbers<[1], [0], [0], [1], [0, 0, 1, 1], [], []>} : vector<16x16xf32>, vector<16x2500xf32>, vector<16x2500xf32> -> vector<16x2500xf32>
    %cst_8 = arith.constant dense<0.000000e+00> : vector<16xf32>
    %8 = vector.multi_reduction <add>, %7, %cst_8 [1] : vector<16x2500xf32> to vector<16xf32>
    %9 = vector.shape_cast %8 : vector<16xf32> to vector<16x1xf32>
    %10 = vector.broadcast %9 : vector<16x1xf32> to vector<16x2500xf32>
    %11 = arith.subf %5, %10 : vector<16x2500xf32>
    %c0_9 = arith.constant 0 : index
    %c0_10 = arith.constant 0 : index
    %12 = vector.load %arg5[%c0_9, %c0_10] : memref<16x16xf32, #tpu.memory_space<vmem>>, vector<16x16xf32>
    %13 = arith.mulf %11, %11 : vector<16x2500xf32>
    %cst_11 = arith.constant dense<0.000000e+00> : vector<16x2500xf32>
    %14 = tpu.matmul %12, %13, %cst_11 {dimension_numbers = #tpu.dot_dimension_numbers<[1], [0], [0], [1], [0, 0, 1, 1], [], []>} : vector<16x16xf32>, vector<16x2500xf32>, vector<16x2500xf32> -> vector<16x2500xf32>
    %cst_12 = arith.constant dense<0.000000e+00> : vector<16xf32>
    %15 = vector.multi_reduction <add>, %14, %cst_12 [1] : vector<16x2500xf32> to vector<16xf32>
    %16 = vector.shape_cast %15 : vector<16xf32> to vector<16x1xf32>
    %cst_13 = arith.constant 9.99999974E-6 : f32
    %17 = vector.broadcast %cst_13 : f32 to vector<16x1xf32>
    %18 = arith.addf %16, %17 : vector<16x1xf32>
    %19 = math.rsqrt %18 : vector<16x1xf32>
    %20 = vector.broadcast %19 : vector<16x1xf32> to vector<16x2500xf32>
    %21 = arith.mulf %11, %20 : vector<16x2500xf32>
    %c0_14 = arith.constant 0 : index
    %c0_15 = arith.constant 0 : index
    %22 = vector.load %arg3[%c0_14, %c0_15] : memref<16x1xf32, #tpu.memory_space<vmem>>, vector<16x1xf32>
    %23 = vector.broadcast %22 : vector<16x1xf32> to vector<16x2500xf32>
    %24 = arith.mulf %21, %23 : vector<16x2500xf32>
    %c0_16 = arith.constant 0 : index
    %c0_17 = arith.constant 0 : index
    %25 = vector.load %arg4[%c0_16, %c0_17] : memref<16x1xf32, #tpu.memory_space<vmem>>, vector<16x1xf32>
    %26 = vector.broadcast %25 : vector<16x1xf32> to vector<16x2500xf32>
    %27 = arith.addf %24, %26 : vector<16x2500xf32>
    %cst_18 = arith.constant 0.000000e+00 : f32
    %28 = vector.broadcast %cst_18 : f32 to vector<16x2500xf32>
    %29 = arith.maximumf %27, %28 : vector<16x2500xf32>
    %c0_19 = arith.constant 0 : index
    %c0_20 = arith.constant 0 : index
    %30 = vector.load %arg6[%c0_19, %c0_20] : memref<16x2500xf32, #tpu.memory_space<vmem>>, vector<16x2500xf32>
    %31 = arith.addf %29, %30 : vector<16x2500xf32>
    %c0_21 = arith.constant 0 : index
    %c0_22 = arith.constant 0 : index
    %32 = vector.load %arg7[%c0_21, %c0_22] : memref<16x2500xf32, #tpu.memory_space<vmem>>, vector<16x2500xf32>
    tpu.vector_store %arg7[%c0_21, %c0_22], %31 {strides = array<i32>} : memref<16x2500xf32, #tpu.memory_space<vmem>>, vector<16x2500xf32>,
    return
  }
}

module attributes {stable_mosaic.version = 11 : i64} {
  func.func @_head_kernel(%arg0: i32, %arg1: memref<36x2560xf32, #tpu.memory_space<vmem>>, %arg2: memref<4x36xf32, #tpu.memory_space<vmem>>, %arg3: memref<4x1xf32, #tpu.memory_space<vmem>>, %arg4: memref<4x2560xf32, #tpu.memory_space<vmem>>) attributes {dimension_semantics = [#tpu.dimension_semantics<parallel>], iteration_bounds = array<i64: 4>, scalar_prefetch = 0 : i64, scratch_operands = 0 : i64, tpu.core_type = #tpu.core_type<tc>, window_params = [{transform_indices = @transform_0, window_bounds = array<i64: 36, 2560>}, {pipeline_mode = #tpu.pipeline_mode<synchronous>, transform_indices = @transform_1, window_bounds = array<i64: 4, 36>}, {pipeline_mode = #tpu.pipeline_mode<synchronous>, transform_indices = @transform_2, window_bounds = array<i64: 4, 1>}, {transform_indices = @transform_3, window_bounds = array<i64: 4, 2560>}]} {
    %c0 = arith.constant 0 : index
    %c0_0 = arith.constant 0 : index
    %0 = vector.load %arg2[%c0, %c0_0] : memref<4x36xf32, #tpu.memory_space<vmem>>, vector<4x36xf32>
    %c0_1 = arith.constant 0 : index
    %c0_2 = arith.constant 0 : index
    %1 = vector.load %arg1[%c0_1, %c0_2] : memref<36x2560xf32, #tpu.memory_space<vmem>>, vector<36x2560xf32>
    %cst = arith.constant dense<0.000000e+00> : vector<4x2560xf32>
    %2 = tpu.matmul %0, %1, %cst {dimension_numbers = #tpu.dot_dimension_numbers<[1], [0], [0], [1], [0, 0, 1, 1], [], []>} : vector<4x36xf32>, vector<36x2560xf32>, vector<4x2560xf32> -> vector<4x2560xf32>
    %c0_3 = arith.constant 0 : index
    %c0_4 = arith.constant 0 : index
    %3 = vector.load %arg3[%c0_3, %c0_4] : memref<4x1xf32, #tpu.memory_space<vmem>>, vector<4x1xf32>
    %4 = vector.broadcast %3 : vector<4x1xf32> to vector<4x2560xf32>
    %5 = arith.addf %2, %4 : vector<4x2560xf32>
    %6 = math.tanh %5 : vector<4x2560xf32>
    %c0_5 = arith.constant 0 : index
    %c0_6 = arith.constant 0 : index
    %7 = vector.load %arg4[%c0_5, %c0_6] : memref<4x2560xf32, #tpu.memory_space<vmem>>, vector<4x2560xf32>
    tpu.vector_store %arg4[%c0_5, %c0_6], %6 {strides = array<i32>} : memref<4x2560xf32, #tpu.memory_space<vmem>>, vector<4x2560xf32>,
    return
  }
  func.func @transform_0(%arg0: i32) -> (i32, i32) {
    %c0_i32 = arith.constant 0 : i32
    %c0_i32_0 = arith.constant 0 : i32
    return %c0_i32, %arg0 : i32, i32
  }
  func.func @transform_1(%arg0: i32) -> (i32, i32) {
    %c0_i32 = arith.constant 0 : i32
    %c0_i32_0 = arith.constant 0 : i32
    %c0_i32_1 = arith.constant 0 : i32
    return %c0_i32, %c0_i32_0 : i32, i32
  }
  func.func @transform_2(%arg0: i32) -> (i32, i32) {
    %c0_i32 = arith.constant 0 : i32
    %c0_i32_0 = arith.constant 0 : i32
    %c0_i32_1 = arith.constant 0 : i32
    return %c0_i32, %c0_i32_0 : i32, i32
  }
  func.func @transform_3(%arg0: i32) -> (i32, i32) {
    %c0_i32 = arith.constant 0 : i32
    %c0_i32_0 = arith.constant 0 : i32
    return %c0_i32, %arg0 : i32, i32
  }
}

</mosaic_0001>

<bundles_post_ra>
// kernel: _lambda_.6
= control target key start
LH: loop header
LB: loop body
LE: loop exit
PB: predicated region body
PF: predicated region fallthrough
CT: control target
= control target key end

     0   :  { %v895_v2 = vmov 0   ;;  %vm91_vm0 = vcmask 588800   ;;  %vm229_vm1 = vcmask 523264   ;;  %vm359_vm2 = vcmask 293888   ;;  %s1295_s0 = inlined_call_operand.vmem [shape: f32[72,36], index: 0, kind: input, shape index: {}]   ;;  %s1296_s1 = inlined_call_operand.vmem [shape: f32[64,72], index: 1, kind: input, shape index: {}]   ;;  %s1297_s2 = inlined_call_operand.vmem [shape: f32[64,1], index: 2, kind: input, shape index: {}]   ;;  %s1298_s5 = inlined_call_operand.vmem [shape: f32[64,64], index: 5, kind: input, shape index: {}]   ;;  %s1299_s3 = inlined_call_operand.vmem [shape: f32[64,1], index: 3, kind: input, shape index: {}]   ;;  %s1300_s4 = inlined_call_operand.vmem [shape: f32[64,1], index: 4, kind: input, shape index: {}]   ;;  %s1301_s6 = inlined_call_operand.vmem [shape: f32[64,36], index: 6, kind: input, shape index: {}]   ;;  %s1302_s7 = inlined_call_operand.vmem [shape: f32[64,36], index: 7, kind: output, shape index: {}]  }
   0x1   :  { %v42_v0 = vld [vmem:[%s1295_s0 + $0x40] sm:$0xff]  ;;  %v41_v1 = vld [vmem:[%s1295_s0 + $0x38] sm:$0xff]  ;;  %877 = vset.pattern.permute.xlu0 %v895_v2  ;;  %878 = vset.pattern.permute.xlu1 %v895_v2  ;;  %v40_v3 = vld [vmem:[%s1295_s0 + $0x30] sm:$0xff] }
   0x2   :  { %774 = vmatprep.subr.mxu0 %v42_v0  ;;  %v26_v4 = vld [vmem:[%s1296_s1] sm:$0xff]  ;;  %v39_v5 = vld [vmem:[%s1295_s0 + $0x28] sm:$0xff]  ;;  %v50_v6 = vld [vmem:[%s1297_s2 + $0x38] sm:$0xff] }
   0x3   :  { %775 = vmatpush3.msra.mxu0 %v42_v0  ;;  %792 = vmatprep.mubr.msk.f32.mxu0 %vm91_vm0, %v26_v4  ;;  %v38_v7 = vld [vmem:[%s1295_s0 + $0x20] sm:$0xff]  ;;  %v48_v8 = vld [vmem:[%s1297_s2 + $0x28] sm:$0xff]  ;;  %v49_v9 = vld [vmem:[%s1297_s2 + $0x30] sm:$0xff] }
   0x4   :  { %776 = vmatprep.subr.mxu0 %v41_v1  ;;  %88 = vperm.xlu0 %877, %v50_v6   ;;  %v37_v10 = vld [vmem:[%s1295_s0 + $0x18] sm:$0xff]  ;;  %v47_v11 = vld [vmem:[%s1297_s2 + $0x20] sm:$0xff]  ;;  %v36_v12 = vld [vmem:[%s1295_s0 + $0x10] sm:$0xff] }
   0x5   :  { %777 = vmatpush3.msra.mxu0 %v41_v1  ;;  %78 = vperm.xlu1 %878, %v48_v8   ;;  %v46_v13 = vld [vmem:[%s1297_s2 + $0x18] sm:$0xff]  ;;  %v35_v14 = vld [vmem:[%s1295_s0 + $0x8] sm:$0xff]  ;;  %v45_v15 = vld [vmem:[%s1297_s2 + $0x10] sm:$0xff] }
   0x6   :  { %778 = vmatprep.subr.mxu0 %v40_v3  ;;  %v34_v16 = vld [vmem:[%s1295_s0] sm:$0xff]  ;;  %v44_v17 = vld [vmem:[%s1297_s2 + $0x8] sm:$0xff]  ;;  %v28_v20 = vld [vmem:[%s1296_s1 + $0x10] sm:$0xff] }
   0x7   :  { %779 = vmatpush3.msra.mxu0 %v40_v3  ;;  %v27_v18 = vld [vmem:[%s1296_s1 + $0x8] sm:$0xff]  ;;  %v43_v19 = vld [vmem:[%s1297_s2] sm:$0xff]  ;;  %v29_v21 = vld [vmem:[%s1296_s1 + $0x18] sm:$0xff] }
   0x8   :  { %780 = vmatprep.subr.mxu0 %v39_v5  ;;  %83 = vperm.xlu0 %877, %v49_v9   ;;  %v30_v22 = vld [vmem:[%s1296_s1 + $0x20] sm:$0xff]  ;;  %v31_v23 = vld [vmem:[%s1296_s1 + $0x28] sm:$0xff]  ;;  %v32_v24 = vld [vmem:[%s1296_s1 + $0x30] sm:$0xff] }
   0x9   :  { %781 = vmatpush3.msra.mxu0 %v39_v5  ;;  %73 = vperm.xlu1 %878, %v47_v11   ;;  %v33_v25 = vld [vmem:[%s1296_s1 + $0x38] sm:$0xff]  ;;  %v221_v26 = vld [vmem:[%s1298_s5] sm:$0xff]  ;;  %v1057_v51 = vld [vmem:[%s1298_s5 + $0x8] sm:$0xff] }
   0xa   :  { %782 = vmatprep.subr.mxu0 %v38_v7  ;;  %820 = vmatprep.mubr.msk.f32.mxu1 %vm229_vm1, %v221_v26  ;;  %v223_v52 = vld [vmem:[%s1298_s5 + $0x10] sm:$0xff]  ;;  %v1070_v53 = vld [vmem:[%s1298_s5 + $0x18] sm:$0xff]  ;;  %v1075_v54 = vld [vmem:[%s1298_s5 + $0x20] sm:$0xff] }
   0xb   :  { %783 = vmatpush3.msra.mxu0 %v38_v7  ;;  %v1084_v55 = vld [vmem:[%s1298_s5 + $0x28] sm:$0xff]  ;;  %v1089_v56 = vld [vmem:[%s1298_s5 + $0x30] sm:$0xff]  ;;  %v1098_v57 = vld [vmem:[%s1298_s5 + $0x38] sm:$0xff] }
   0xc   :  { %784 = vmatprep.subr.mxu0 %v37_v10  ;;  %68 = vperm.xlu0 %877, %v46_v13   ;;  %v555_v11 = vld [vmem:[%s1299_s3 + $0x10] sm:$0xff]  ;;  %v554_v13 = vld [vmem:[%s1299_s3 + $0x8] sm:$0xff] }
   0xd   :  { %785 = vmatpush3.msra.mxu0 %v37_v10  ;;  %63 = vperm.xlu1 %878, %v45_v15   ;;  %v553_v10 = vld [vmem:[%s1299_s3] sm:$0xff] }
   0xe   :  { %786 = vmatprep.subr.mxu0 %v36_v12  ;;  %v557_v15 = vld [vmem:[%s1299_s3 + $0x20] sm:$0xff] }
   0xf   :  { %787 = vmatpush3.msra.mxu0 %v36_v12  ;;  %v556_v12 = vld [vmem:[%s1299_s3 + $0x18] sm:$0xff] }
  0x10   :  { %788 = vmatprep.subr.mxu0 %v35_v14  ;;  %58 = vperm.xlu0 %877, %v44_v17   ;;  %v559_v17 = vld [vmem:[%s1299_s3 + $0x30] sm:$0xff] }
  0x11   :  { %789 = vmatpush3.msra.mxu0 %v35_v14  ;;  %53 = vperm.xlu1 %878, %v43_v19   ;;  %v558_v14 = vld [vmem:[%s1299_s3 + $0x28] sm:$0xff]  ;;  %v609_v19 = vld [vmem:[%s1300_s4] sm:$0xff] }
  0x12   :  { %790 = vmatprep.subr.mxu0 %v34_v16 }
  0x13   :  { %791 = vmatpush3.msra.mxu0 %v34_v16  ;;  %v560_v16 = vld [vmem:[%s1299_s3 + $0x38] sm:$0xff] }
  0x14   :  { %793 = vmatmul.mubr.msk.f32.vlgmr.msra.gmra.mxu0 %vm91_vm0, %v27_v18  ;;  %v610_v18 = vld [vmem:[%s1300_s4 + $0x8] sm:$0xff] }
  0x15   :  { %795 = vmatprep.mubr.msk.f32.mxu0 %vm91_vm0, %v28_v20  ;;  %v612_v20 = vld [vmem:[%s1300_s4 + $0x18] sm:$0xff] }
  0x18   :  { %796 = vmatmul.mubr.msk.f32.gmra.mxu0 %vm91_vm0, %v29_v21  ;;  %v611_v21 = vld [vmem:[%s1300_s4 + $0x10] sm:$0xff] }
  0x19   :  { %798 = vmatprep.mubr.msk.f32.mxu0 %vm91_vm0, %v30_v22  ;;  %v614_v22 = vld [vmem:[%s1300_s4 + $0x28] sm:$0xff] }
  0x1c   :  { %799 = vmatmul.mubr.msk.f32.gmra.mxu0 %vm91_vm0, %v31_v23  ;;  %v613_v23 = vld [vmem:[%s1300_s4 + $0x20] sm:$0xff] }
  0x1d   :  { %801 = vmatprep.mubr.msk.f32.mxu0 %vm91_vm0, %v32_v24 }
  0x20   :  { %802 = vmatmul.mubr.msk.f32.gmra.mxu0 %vm91_vm0, %v33_v25 }
  0x21   :  { %848 = vmatprep.mubr.msk.f32.mxu0 %vm229_vm1, %v221_v26 }
  0x7f   :  { %v89_v29 = vpop.permute.xlu0 %88 }
  0x80   :  { %v79_v31 = vpop.permute.xlu1 %78 }
  0x83   :  { %v84_v34 = vpop.permute.xlu0 %83 }
  0x84   :  { %v74_v36 = vpop.permute.xlu1 %73 }
  0x87   :  { %v69_v41 = vpop.permute.xlu0 %68 }
  0x88   :  { %v64_v43 = vpop.permute.xlu1 %63 }
  0x8b   :  { %v59_v46 = vpop.permute.xlu0 %58 }
  0x8c   :  { %v54_v48 = vpop.permute.xlu1 %53 }
  0xd4   :  { %v794_v27 = vpop.f32.mrf.mxu0 }
  0xd5   :  { %v1046_v49 = vadd.f32 %v794_v27, %v59_v46 }
  0xd6   :  { %v182_v28 = vpop.f32.mrf.mxu0 }
  0xd7   :  { %v1050_v50 = vadd.f32 %v182_v28, %v54_v48 }
  0xd8   :  { %v797_v30 = vpop.f32.mrf.mxu0 }
  0xd9   :  { %v1038_v45 = vadd.f32 %v797_v30, %v69_v41 }
  0xda   :  { %v192_v32 = vpop.f32.mrf.mxu0 }
  0xdb   :  { %v1042_v47 = vadd.f32 %v192_v32, %v64_v43 }
  0xdc   :  { %v800_v33 = vpop.f32.mrf.mxu0 }
  0xdd   :  { %v1030_v42 = vadd.f32 %v800_v33, %v79_v31 }
  0xde   :  { %v202_v35 = vpop.f32.mrf.mxu0 }
  0xdf   :  { %v1034_v44 = vadd.f32 %v202_v35, %v74_v36 }
  0xe0   :  { %v803_v37 = vpop.f32.mrf.mxu0 }
  0xe1   :  { %v1024_v38 = vadd.f32 %v803_v37, %v89_v29 }
  0xe2   :  { %v212_v39 = vpop.f32.mrf.mxu0 }
  0xe3   :  { %v1026_v40 = vadd.f32 %v212_v39, %v84_v34  ;;  %804 = vmatprep.subr.mxu1 %v1024_v38 }
  0xe4   :  { %805 = vmatpush3.msra.mxu1 %v1024_v38 }
  0xe5   :  { %806 = vmatprep.subr.mxu1 %v1026_v40 }
  0xe6   :  { %807 = vmatpush3.msra.mxu1 %v1026_v40 }
  0xe7   :  { %808 = vmatprep.subr.mxu1 %v1030_v42 }
  0xe8   :  { %809 = vmatpush3.msra.mxu1 %v1030_v42 }
  0xe9   :  { %810 = vmatprep.subr.mxu1 %v1034_v44 }
  0xea   :  { %811 = vmatpush3.msra.mxu1 %v1034_v44 }
  0xeb   :  { %812 = vmatprep.subr.mxu1 %v1038_v45 }
  0xec   :  { %813 = vmatpush3.msra.mxu1 %v1038_v45 }
  0xed   :  { %814 = vmatprep.subr.mxu1 %v1042_v47 }
  0xee   :  { %815 = vmatpush3.msra.mxu1 %v1042_v47 }
  0xef   :  { %816 = vmatprep.subr.mxu1 %v1046_v49 }
  0xf0   :  { %817 = vmatpush3.msra.mxu1 %v1046_v49 }
  0xf1   :  { %818 = vmatprep.subr.mxu1 %v1050_v50 }
  0xf2   :  { %819 = vmatpush3.msra.mxu1 %v1050_v50 }
  0xf3   :  { %821 = vmatmul.mubr.msk.f32.vlgmr.msra.gmra.mxu1 %vm229_vm1, %v1057_v51 }
  0xf4   :  { %823 = vmatprep.mubr.msk.f32.mxu1 %vm229_vm1, %v223_v52 }
  0xf7   :  { %824 = vmatmul.mubr.msk.f32.gmra.mxu1 %vm229_vm1, %v1070_v53 }
  0xf8   :  { %826 = vmatprep.mubr.msk.f32.mxu1 %vm229_vm1, %v1075_v54 }
  0xfb   :  { %827 = vmatmul.mubr.msk.f32.gmra.mxu1 %vm229_vm1, %v1084_v55 }
  0xfc   :  { %829 = vmatprep.mubr.msk.f32.mxu1 %vm229_vm1, %v1089_v56 }
  0xff   :  { %830 = vmatmul.mubr.msk.f32.gmra.mxu1 %vm229_vm1, %v1098_v57 }
 0x100   :  { %851 = vmatprep.mubr.msk.f32.mxu1 %vm229_vm1, %v223_v52 }
 0x1b3   :  { %v822_v58 = vpop.f32.mrf.mxu1 }
 0x1b4   :  { %v363_v7 = vsel %vm359_vm2, %v822_v58, 0.0 }
 0x1b5   :  { %v320_v59 = vpop.f32.mrf.mxu1 }
 0x1b6   :  { %v360_v9 = vsel %vm359_vm2, %v320_v59, 0.0 }
 0x1b7   :  { %v825_v60 = vpop.f32.mrf.mxu1 }
 0x1b8   :  { %v369_v5 = vsel %vm359_vm2, %v825_v60, 0.0 }
 0x1b9   :  { %v330_v61 = vpop.f32.mrf.mxu1 }
 0x1ba   :  { %v366_v8 = vsel %vm359_vm2, %v330_v61, 0.0 }
 0x1bb   :  { %v828_v62 = vpop.f32.mrf.mxu1 }
 0x1bc   :  { %v375_v4 = vsel %vm359_vm2, %v828_v62, 0.0 }
 0x1bd   :  { %v340_v63 = vpop.f32.mrf.mxu1 }
 0x1be   :  { %v372_v6 = vsel %vm359_vm2, %v340_v63, 0.0 }
 0x1bf   :  { %v831_v0 = vpop.f32.mrf.mxu1 }
 0x1c0   :  { %v381_v1 = vsel %vm359_vm2, %v831_v0, 0.0  ;;  %v616_v0 = vld [vmem:[%s1300_s4 + $0x38] sm:$0xff] }
 0x1c1   :  { %382 = vadd.xlane.f32.xlu0 %v381_v1  ;;  %v350_v2 = vpop.f32.mrf.mxu1  ;;  %v615_v1 = vld [vmem:[%s1300_s4 + $0x30] sm:$0xff] }
 0x1c2   :  { %v378_v3 = vsel %vm359_vm2, %v350_v2, 0.0 }
 0x1c3   :  { %379 = vadd.xlane.f32.xlu1 %v378_v3 }
 0x1c5   :  { %376 = vadd.xlane.f32.xlu0 %v375_v4 }
 0x1c7   :  { %370 = vadd.xlane.f32.xlu1 %v369_v5 }
 0x1c9   :  { %373 = vadd.xlane.f32.xlu0 %v372_v6 }
 0x1cb   :  { %364 = vadd.xlane.f32.xlu1 %v363_v7 }
 0x1cd   :  { %367 = vadd.xlane.f32.xlu0 %v366_v8 }
 0x1d1   :  { %361 = vadd.xlane.f32.xlu0 %v360_v9 }
 0x1dc   :  { %563 = vperm.xlu1 %878, %v553_v10  }
 0x1e0   :  { %573 = vperm.xlu1 %878, %v555_v11  }
 0x1e4   :  { %578 = vperm.xlu1 %878, %v556_v12  }
 0x1e7   :  { %568 = vperm.xlu0 %877, %v554_v13  }
 0x1e8   :  { %588 = vperm.xlu1 %878, %v558_v14  }
 0x1eb   :  { %583 = vperm.xlu0 %877, %v557_v15  }
 0x1ec   :  { %598 = vperm.xlu1 %878, %v560_v16  }
 0x1ef   :  { %593 = vperm.xlu0 %877, %v559_v17  }
 0x1f0   :  { %624 = vperm.xlu1 %878, %v610_v18  }
 0x1f3   :  { %619 = vperm.xlu0 %877, %v609_v19  }
 0x1f4   :  { %634 = vperm.xlu1 %878, %v612_v20  }
 0x1f7   :  { %629 = vperm.xlu0 %877, %v611_v21  }
 0x1f8   :  { %644 = vperm.xlu1 %878, %v614_v22  }
 0x1fb   :  { %639 = vperm.xlu0 %877, %v613_v23  }
 0x24a   :  { %v383_v24 = vpop.xlane.xlu0 %382 }
 0x24b   :  { %v1154_v25 = vsub.f32 %v1024_v38, %v383_v24 }
 0x24c   :  { %v380_v26 = vpop.xlane.xlu1 %379 }
 0x24d   :  { %v399_v27 = vmul.f32 %v1154_v25, %v1154_v25  ;;  %v1159_v28 = vsub.f32 %v1026_v40, %v380_v26 }
 0x24e   :  { %v377_v29 = vpop.xlane.xlu0 %376 }
 0x24f   :  { %v398_v30 = vmul.f32 %v1159_v28, %v1159_v28  ;;  %v1164_v31 = vsub.f32 %v1030_v42, %v377_v29  ;;  %832 = vmatprep.subr.mxu0 %v399_v27  ;;  %860 = vmatprep.subr.mxu1 %v399_v27 }
 0x250   :  { %833 = vmatpush3.msra.mxu0 %v399_v27  ;;  %868 = vmatpush3.msra.mxu1 %v399_v27  ;;  %v371_v32 = vpop.xlane.xlu1 %370 }
 0x251   :  { %v397_v33 = vmul.f32 %v1164_v31, %v1164_v31  ;;  %834 = vmatprep.subr.mxu0 %v398_v30  ;;  %861 = vmatprep.subr.mxu1 %v398_v30  ;;  %v1169_v35 = vsub.f32 %v1038_v45, %v371_v32 }
 0x252   :  { %v374_v34 = vpop.xlane.xlu0 %373  ;;  %835 = vmatpush3.msra.mxu0 %v398_v30  ;;  %869 = vmatpush3.msra.mxu1 %v398_v30 }
 0x253   :  { %v1172_v36 = vsub.f32 %v1034_v44, %v374_v34  ;;  %836 = vmatprep.subr.mxu0 %v397_v33  ;;  %862 = vmatprep.subr.mxu1 %v397_v33  ;;  %v395_v40 = vmul.f32 %v1169_v35, %v1169_v35 }
 0x254   :  { %837 = vmatpush3.msra.mxu0 %v397_v33  ;;  %870 = vmatpush3.msra.mxu1 %v397_v33  ;;  %v365_v37 = vpop.xlane.xlu1 %364 }
 0x255   :  { %v396_v38 = vmul.f32 %v1172_v36, %v1172_v36  ;;  %v1179_v41 = vsub.f32 %v1046_v49, %v365_v37 }
 0x256   :  { %v368_v39 = vpop.xlane.xlu0 %367 }
 0x257   :  { %v1182_v42 = vsub.f32 %v1042_v47, %v368_v39  ;;  %838 = vmatprep.subr.mxu0 %v396_v38  ;;  %863 = vmatprep.subr.mxu1 %v396_v38  ;;  %v393_v45 = vmul.f32 %v1179_v41, %v1179_v41 }
 0x258   :  { %839 = vmatpush3.msra.mxu0 %v396_v38  ;;  %871 = vmatpush3.msra.mxu1 %v396_v38  ;;  %v564_v2 = vpop.permute.xlu1 %563 }
 0x259   :  { %v394_v43 = vmul.f32 %v1182_v42, %v1182_v42  ;;  %840 = vmatprep.subr.mxu0 %v395_v40  ;;  %864 = vmatprep.subr.mxu1 %v395_v40 }
 0x25a   :  { %v362_v44 = vpop.xlane.xlu0 %361  ;;  %841 = vmatpush3.msra.mxu0 %v395_v40  ;;  %872 = vmatpush3.msra.mxu1 %v395_v40 }
 0x25b   :  { %v1189_v46 = vsub.f32 %v1050_v50, %v362_v44  ;;  %842 = vmatprep.subr.mxu0 %v394_v43  ;;  %865 = vmatprep.subr.mxu1 %v394_v43 }
 0x25c   :  { %843 = vmatpush3.msra.mxu0 %v394_v43  ;;  %873 = vmatpush3.msra.mxu1 %v394_v43  ;;  %v574_v3 = vpop.permute.xlu1 %573 }
 0x25d   :  { %v392_v47 = vmul.f32 %v1189_v46, %v1189_v46  ;;  %844 = vmatprep.subr.mxu0 %v393_v45  ;;  %866 = vmatprep.subr.mxu1 %v393_v45 }
 0x25e   :  { %845 = vmatpush3.msra.mxu0 %v393_v45  ;;  %874 = vmatpush3.msra.mxu1 %v393_v45 }
 0x25f   :  { %846 = vmatprep.subr.mxu0 %v392_v47  ;;  %867 = vmatprep.subr.mxu1 %v392_v47 }
 0x260   :  { %847 = vmatpush3.msra.mxu0 %v392_v47  ;;  %875 = vmatpush3.msra.mxu1 %v392_v47  ;;  %v579_v5 = vpop.permute.xlu1 %578 }
 0x261   :  { %849 = vmatmul.mubr.msk.f32.vlgmr.msra.gmra.mxu0 %vm229_vm1, %v1057_v51  ;;  %852 = vmatmul.mubr.msk.f32.vlgmr.msra.gmra.mxu1 %vm229_vm1, %v1070_v53 }
 0x262   :  { %854 = vmatprep.mubr.msk.f32.mxu1 %vm229_vm1, %v1075_v54  ;;  %v569_v4 = vpop.permute.xlu0 %568 }
 0x264   :  { %v589_v7 = vpop.permute.xlu1 %588 }
 0x265   :  { %855 = vmatmul.mubr.msk.f32.gmra.mxu1 %vm229_vm1, %v1084_v55 }
 0x266   :  { %857 = vmatprep.mubr.msk.f32.mxu1 %vm229_vm1, %v1089_v56  ;;  %v1219_v6 = vpop.permute.xlu0 %583 }
 0x268   :  { %v1223_v9 = vpop.permute.xlu1 %598 }
 0x269   :  { %858 = vmatmul.mubr.msk.f32.gmra.mxu1 %vm229_vm1, %v1098_v57 }
 0x26a   :  { %v1221_v8 = vpop.permute.xlu0 %593 }
 0x26c   :  { %v625_v11 = vpop.permute.xlu1 %624 }
 0x26e   :  { %v620_v10 = vpop.permute.xlu0 %619 }
 0x270   :  { %v635_v13 = vpop.permute.xlu1 %634 }
 0x272   :  { %v630_v12 = vpop.permute.xlu0 %629 }
 0x274   :  { %v645_v15 = vpop.permute.xlu1 %644 }
 0x276   :  { %v1225_v14 = vpop.permute.xlu0 %639 }
 0x321   :  { %v850_v48 = vpop.f32.mrf.mxu0  ;;  %v853_v49 = vpop.f32.mrf.mxu1 }
 0x322   :  { %v508_v50 = vsel %vm359_vm2, %v850_v48, 0.0  ;;  %v514_v54 = vsel %vm359_vm2, %v853_v49, 0.0 }
 0x323   :  { %509 = vadd.xlane.f32.xlu0 %v508_v50  ;;  %v466_v51 = vpop.f32.mrf.mxu0  ;;  %v476_v52 = vpop.f32.mrf.mxu1 }
 0x324   :  { %v505_v53 = vsel %vm359_vm2, %v466_v51, 0.0  ;;  %v511_v56 = vsel %vm359_vm2, %v476_v52, 0.0 }
 0x325   :  { %506 = vadd.xlane.f32.xlu1 %v505_v53  ;;  %v856_v58 = vpop.f32.mrf.mxu1 }
 0x326   :  { %v520_v59 = vsel %vm359_vm2, %v856_v58, 0.0 }
 0x327   :  { %515 = vadd.xlane.f32.xlu0 %v514_v54  ;;  %v486_v55 = vpop.f32.mrf.mxu1 }
 0x328   :  { %v517_v60 = vsel %vm359_vm2, %v486_v55, 0.0 }
 0x329   :  { %512 = vadd.xlane.f32.xlu1 %v511_v56  ;;  %v859_v57 = vpop.f32.mrf.mxu1 }
 0x32a   :  { %v526_v61 = vsel %vm359_vm2, %v859_v57, 0.0 }
 0x32b   :  { %521 = vadd.xlane.f32.xlu0 %v520_v59  ;;  %v496_v62 = vpop.f32.mrf.mxu1 }
 0x32c   :  { %v523_v63 = vsel %vm359_vm2, %v496_v62, 0.0 }
 0x32d   :  { %518 = vadd.xlane.f32.xlu1 %v517_v60 }
 0x32f   :  { %527 = vadd.xlane.f32.xlu0 %v526_v61 }
 0x331   :  { %524 = vadd.xlane.f32.xlu1 %v523_v63  ;;  %v676_v63 = vld [vmem:[%s1301_s6 + $0x18] sm:$0xff] }
 0x342   :  { %654 = vperm.xlu1 %878, %v616_v0  }
 0x345   :  { %649 = vperm.xlu0 %877, %v615_v1  }
 0x3ac   :  { %v510_v16 = vpop.xlane.xlu0 %509 }
 0x3ad   :  { %v530_v17 = vadd.f32 1e-05, %v510_v16 }
 0x3ae   :  { %v507_v18 = vpop.xlane.xlu1 %506 }
 0x3af   :  { %879 = vrsqrt.f32 %v530_v17  ;;  %v529_v19 = vadd.f32 1e-05, %v507_v18 }
 0x3b0   :  { %v516_v20 = vpop.xlane.xlu0 %515 }
 0x3b1   :  { %881 = vrsqrt.f32 %v529_v19  ;;  %v532_v21 = vadd.f32 1e-05, %v516_v20 }
 0x3b2   :  { %v513_v22 = vpop.xlane.xlu1 %512 }
 0x3b3   :  { %883 = vrsqrt.f32 %v532_v21  ;;  %v531_v23 = vadd.f32 1e-05, %v513_v22 }
 0x3b4   :  { %v522_v24 = vpop.xlane.xlu0 %521 }
 0x3b5   :  { %885 = vrsqrt.f32 %v531_v23  ;;  %v534_v26 = vadd.f32 1e-05, %v522_v24  ;;  %v679_v24 = vld [vmem:[%s1301_s6 + $0x30] sm:$0xff] }
 0x3b6   :  { %v519_v27 = vpop.xlane.xlu1 %518 }
 0x3b7   :  { %887 = vrsqrt.f32 %v534_v26  ;;  %v533_v29 = vadd.f32 1e-05, %v519_v27 }
 0x3b8   :  { %v528_v30 = vpop.xlane.xlu0 %527 }
 0x3b9   :  { %889 = vrsqrt.f32 %v533_v29  ;;  %v536_v32 = vadd.f32 1e-05, %v528_v30 }
 0x3ba   :  { %v525_v33 = vpop.xlane.xlu1 %524 }
 0x3bb   :  { %891 = vrsqrt.f32 %v536_v32  ;;  %v535_v34 = vadd.f32 1e-05, %v525_v33 }
 0x3bc   :  { %v880_v37 = vpop.eup %879 }
 0x3bd   :  { %v546_v38 = vmul.f32 %v880_v37, %v1179_v41  ;;  %893 = vrsqrt.f32 %v535_v34  ;;  %v674_v41 = vld [vmem:[%s1301_s6 + $0x8] sm:$0xff] }
 0x3be   :  { %v882_v39 = vpop.eup %881 }
 0x3bf   :  { %v602_v40 = vmul.f32 %v569_v4, %v546_v38  ;;  %v545_v43 = vmul.f32 %v882_v39, %v1189_v46 }
 0x3c0   :  { %v884_v44 = vpop.eup %883  ;;  %v650_v21 = vpop.permute.xlu0 %649 }
 0x3c1   :  { %v658_v45 = vadd.f32 %v625_v11, %v602_v40  ;;  %v601_v47 = vmul.f32 %v564_v2, %v545_v43  ;;  %v548_v48 = vmul.f32 %v884_v44, %v1169_v35  ;;  %v673_v35 = vld [vmem:[%s1301_s6] sm:$0xff] }
 0x3c2   :  { %v886_v49 = vpop.eup %885 }
 0x3c3   :  { %v666_v50 = vmax.f32 %v658_v45, 0.0  ;;  %v657_v51 = vadd.f32 %v620_v10, %v601_v47  ;;  %v604_v52 = vmul.f32 %v579_v5, %v548_v48  ;;  %v547_v53 = vmul.f32 %v886_v49, %v1182_v42 }
 0x3c4   :  { %v888_v54 = vpop.eup %887 }
 0x3c5   :  { %v665_v58 = vmax.f32 %v657_v51, 0.0  ;;  %v660_v55 = vadd.f32 %v635_v13, %v604_v52  ;;  %v603_v56 = vmul.f32 %v574_v3, %v547_v53  ;;  %v550_v46 = vmul.f32 %v888_v54, %v1164_v31  ;;  %v675_v31 = vld [vmem:[%s1301_s6 + $0x10] sm:$0xff] }
 0x3c6   :  { %v890_v59 = vpop.eup %889  ;;  %v682_v57 = vadd.f32 %v674_v41, %v666_v50 }
 0x3c7   :  { %v668_v60 = vmax.f32 %v660_v55, 0.0  ;;  %v659_v61 = vadd.f32 %v630_v12, %v603_v56  ;;  %v606_v62 = vmul.f32 %v589_v7, %v550_v46  ;;  %v549_v42 = vmul.f32 %v890_v59, %v1172_v36  ;;  %v678_v7 = vld [vmem:[%s1301_s6 + $0x28] sm:$0xff] }
 0x3c8   :  { %v892_v0 = vpop.eup %891  ;;  %v681_v1 = vadd.f32 %v673_v35, %v665_v58  ;;  %690 = vst.msk [vmem:[%s1302_s7 + $0x8] sm:$0xff] %vm359_vm2, %v682_v57 }
 0x3c9   :  { %v667_v2 = vmax.f32 %v659_v61, 0.0  ;;  %v662_v3 = vadd.f32 %v645_v15, %v606_v62  ;;  %v605_v4 = vmul.f32 %v1219_v6, %v549_v42  ;;  %v552_v36 = vmul.f32 %v892_v0, %v1154_v25  ;;  %v677_v25 = vld [vmem:[%s1301_s6 + $0x20] sm:$0xff]  ;;  %v655_v6 = vpop.permute.xlu1 %654 }
 0x3ca   :  { %v894_v5 = vpop.eup %893  ;;  %v684_v10 = vadd.f32 %v676_v63, %v668_v60  ;;  %689 = vst.msk [vmem:[%s1302_s7] sm:$0xff] %vm359_vm2, %v681_v1 }
 0x3cb   :  { %v670_v11 = vmax.f32 %v662_v3, 0.0  ;;  %v661_v12 = vadd.f32 %v1225_v14, %v605_v4  ;;  %v608_v13 = vmul.f32 %v1223_v9, %v552_v36  ;;  %v683_v15 = vadd.f32 %v675_v31, %v667_v2  ;;  %v680_v14 = vld [vmem:[%s1301_s6 + $0x38] sm:$0xff] }
 0x3cc   :  { %692 = vst.msk [vmem:[%s1302_s7 + $0x18] sm:$0xff] %vm359_vm2, %v684_v10  ;;  %v551_v16 = vmul.f32 %v894_v5, %v1159_v28 }
 0x3cd   :  { %v669_v17 = vmax.f32 %v661_v12, 0.0  ;;  %v686_v18 = vadd.f32 %v678_v7, %v670_v11  ;;  %691 = vst.msk [vmem:[%s1302_s7 + $0x10] sm:$0xff] %vm359_vm2, %v683_v15  ;;  %v664_v9 = vadd.f32 %v655_v6, %v608_v13 }
 0x3ce   :  { %v607_v19 = vmul.f32 %v1221_v8, %v551_v16 }
 0x3cf   :  { %v685_v20 = vadd.f32 %v677_v25, %v669_v17  ;;  %694 = vst.msk [vmem:[%s1302_s7 + $0x28] sm:$0xff] %vm359_vm2, %v686_v18  ;;  %v672_v28 = vmax.f32 %v664_v9, 0.0 }
 0x3d0   :  { %v663_v22 = vadd.f32 %v650_v21, %v607_v19 }
 0x3d1   :  { %693 = vst.msk [vmem:[%s1302_s7 + $0x20] sm:$0xff] %vm359_vm2, %v685_v20  ;;  %v688_v23 = vadd.f32 %v680_v14, %v672_v28 }
 0x3d2   :  { %v671_v8 = vmax.f32 %v663_v22, 0.0 }
 0x3d3   :  { %696 = vst.msk [vmem:[%s1302_s7 + $0x38] sm:$0xff] %vm359_vm2, %v688_v23 }
 0x3d4   :  { %v687_v26 = vadd.f32 %v679_v24, %v671_v8 }
 0x3d6   :  { %695 = vst.msk [vmem:[%s1302_s7 + $0x30] sm:$0xff] %vm359_vm2, %v687_v26 }

// kernel: _lambda_.7
= control target key start
LH: loop header
LB: loop body
LE: loop exit
PB: predicated region body
PF: predicated region fallthrough
CT: control target
= control target key end

     0   :  { %v2016_v3 = vmov 0   ;;  %vm274_vm0 = vcmask 523264   ;;  %vm919_vm1 = vcmask 293888   ;;  %s3279_s0 = inlined_call_operand.vmem [shape: f32[576,36], index: 0, kind: input, shape index: {}]   ;;  %s3280_s1 = inlined_call_operand.vmem [shape: f32[128,576], index: 1, kind: input, shape index: {}]   ;;  %s3281_s2 = inlined_call_operand.vmem [shape: f32[128,1], index: 2, kind: input, shape index: {}]   ;;  %s3282_s5 = inlined_call_operand.vmem [shape: f32[128,128], index: 5, kind: input, shape index: {}]   ;;  %s3283_s3 = inlined_call_operand.vmem [shape: f32[128,1], index: 3, kind: input, shape index: {}]   ;;  %s3284_s4 = inlined_call_operand.vmem [shape: f32[128,1], index: 4, kind: input, shape index: {}]   ;;  %s3285_s6 = inlined_call_operand.vmem [shape: f32[128,36], index: 6, kind: input, shape index: {}]   ;;  %s3286_s7 = inlined_call_operand.vmem [shape: f32[128,36], index: 7, kind: output, shape index: {}]  }
   0x1   :  { %v137_v0 = vld [vmem:[%s3279_s0 + $0xf8] sm:$0xff]  ;;  %v136_v2 = vld [vmem:[%s3279_s0 + $0xf0] sm:$0xff]  ;;  %1983 = vset.pattern.permute.xlu1 %v2016_v3  ;;  %1982 = vset.pattern.permute.xlu0 %v2016_v3  ;;  %v135_v7 = vld [vmem:[%s3279_s0 + $0xe8] sm:$0xff] }
   0x2   :  { %v121_v1 = vld [vmem:[%s3279_s0 + $0x78] sm:$0xff]  ;;  %1549 = vmatprep.subr.mxu0 %v137_v0  ;;  %v120_v5 = vld [vmem:[%s3279_s0 + $0x70] sm:$0xff]  ;;  %v119_v9 = vld [vmem:[%s3279_s0 + $0x68] sm:$0xff] }
   0x3   :  { %v169_v4 = vld [vmem:[%s3279_s0 + $0x1f8] sm:$0xff]  ;;  %1550 = vmatpush3.msra.mxu0 %v121_v1  ;;  %v168_v8 = vld [vmem:[%s3279_s0 + $0x1f0] sm:$0xff]  ;;  %v167_v11 = vld [vmem:[%s3279_s0 + $0x1e8] sm:$0xff] }
   0x4   :  { %v153_v6 = vld [vmem:[%s3279_s0 + $0x178] sm:$0xff]  ;;  %1629 = vmatprep.subr.mxu1 %v169_v4  ;;  %1551 = vmatprep.subr.mxu0 %v136_v2  ;;  %v152_v10 = vld [vmem:[%s3279_s0 + $0x170] sm:$0xff]  ;;  %v134_v12 = vld [vmem:[%s3279_s0 + $0xe0] sm:$0xff] }
   0x5   :  { %1630 = vmatpush3.msra.mxu1 %v153_v6  ;;  %1552 = vmatpush3.msra.mxu0 %v120_v5  ;;  %v151_v13 = vld [vmem:[%s3279_s0 + $0x168] sm:$0xff]  ;;  %v118_v14 = vld [vmem:[%s3279_s0 + $0x60] sm:$0xff]  ;;  %v133_v16 = vld [vmem:[%s3279_s0 + $0xd8] sm:$0xff] }
   0x6   :  { %1631 = vmatprep.subr.mxu1 %v168_v8  ;;  %1553 = vmatprep.subr.mxu0 %v135_v7  ;;  %v166_v15 = vld [vmem:[%s3279_s0 + $0x1e0] sm:$0xff]  ;;  %v117_v18 = vld [vmem:[%s3279_s0 + $0x58] sm:$0xff]  ;;  %v132_v20 = vld [vmem:[%s3279_s0 + $0xd0] sm:$0xff] }
   0x7   :  { %1632 = vmatpush3.msra.mxu1 %v152_v10  ;;  %1554 = vmatpush3.msra.mxu0 %v119_v9  ;;  %v150_v17 = vld [vmem:[%s3279_s0 + $0x160] sm:$0xff]  ;;  %v165_v19 = vld [vmem:[%s3279_s0 + $0x1d8] sm:$0xff]  ;;  %v116_v22 = vld [vmem:[%s3279_s0 + $0x50] sm:$0xff] }
   0x8   :  { %1633 = vmatprep.subr.mxu1 %v167_v11  ;;  %1555 = vmatprep.subr.mxu0 %v134_v12  ;;  %v149_v21 = vld [vmem:[%s3279_s0 + $0x158] sm:$0xff]  ;;  %v164_v23 = vld [vmem:[%s3279_s0 + $0x1d0] sm:$0xff]  ;;  %v131_v24 = vld [vmem:[%s3279_s0 + $0xc8] sm:$0xff] }
   0x9   :  { %1634 = vmatpush3.msra.mxu1 %v151_v13  ;;  %1556 = vmatpush3.msra.mxu0 %v118_v14  ;;  %v148_v25 = vld [vmem:[%s3279_s0 + $0x150] sm:$0xff]  ;;  %v115_v26 = vld [vmem:[%s3279_s0 + $0x48] sm:$0xff]  ;;  %v130_v28 = vld [vmem:[%s3279_s0 + $0xc0] sm:$0xff] }
   0xa   :  { %1635 = vmatprep.subr.mxu1 %v166_v15  ;;  %1557 = vmatprep.subr.mxu0 %v133_v16  ;;  %v163_v27 = vld [vmem:[%s3279_s0 + $0x1c8] sm:$0xff]  ;;  %v114_v30 = vld [vmem:[%s3279_s0 + $0x40] sm:$0xff]  ;;  %v129_v32 = vld [vmem:[%s3279_s0 + $0xb8] sm:$0xff] }
   0xb   :  { %1636 = vmatpush3.msra.mxu1 %v150_v17  ;;  %1558 = vmatpush3.msra.mxu0 %v117_v18  ;;  %v147_v29 = vld [vmem:[%s3279_s0 + $0x148] sm:$0xff]  ;;  %v162_v31 = vld [vmem:[%s3279_s0 + $0x1c0] sm:$0xff]  ;;  %v113_v34 = vld [vmem:[%s3279_s0 + $0x38] sm:$0xff] }
   0xc   :  { %1637 = vmatprep.subr.mxu1 %v165_v19  ;;  %1559 = vmatprep.subr.mxu0 %v132_v20  ;;  %v146_v33 = vld [vmem:[%s3279_s0 + $0x140] sm:$0xff]  ;;  %v161_v35 = vld [vmem:[%s3279_s0 + $0x1b8] sm:$0xff]  ;;  %v128_v36 = vld [vmem:[%s3279_s0 + $0xb0] sm:$0xff] }
   0xd   :  { %1638 = vmatpush3.msra.mxu1 %v149_v21  ;;  %1560 = vmatpush3.msra.mxu0 %v116_v22  ;;  %v145_v37 = vld [vmem:[%s3279_s0 + $0x138] sm:$0xff]  ;;  %v112_v38 = vld [vmem:[%s3279_s0 + $0x30] sm:$0xff]  ;;  %v127_v40 = vld [vmem:[%s3279_s0 + $0xa8] sm:$0xff] }
   0xe   :  { %1639 = vmatprep.subr.mxu1 %v164_v23  ;;  %1561 = vmatprep.subr.mxu0 %v131_v24  ;;  %v160_v39 = vld [vmem:[%s3279_s0 + $0x1b0] sm:$0xff]  ;;  %v111_v42 = vld [vmem:[%s3279_s0 + $0x28] sm:$0xff]  ;;  %v126_v44 = vld [vmem:[%s3279_s0 + $0xa0] sm:$0xff] }
   0xf   :  { %1640 = vmatpush3.msra.mxu1 %v148_v25  ;;  %1562 = vmatpush3.msra.mxu0 %v115_v26  ;;  %v144_v41 = vld [vmem:[%s3279_s0 + $0x130] sm:$0xff]  ;;  %v159_v43 = vld [vmem:[%s3279_s0 + $0x1a8] sm:$0xff]  ;;  %v110_v46 = vld [vmem:[%s3279_s0 + $0x20] sm:$0xff] }
  0x10   :  { %1641 = vmatprep.subr.mxu1 %v163_v27  ;;  %1563 = vmatprep.subr.mxu0 %v130_v28  ;;  %v143_v45 = vld [vmem:[%s3279_s0 + $0x128] sm:$0xff]  ;;  %v158_v47 = vld [vmem:[%s3279_s0 + $0x1a0] sm:$0xff]  ;;  %v125_v48 = vld [vmem:[%s3279_s0 + $0x98] sm:$0xff] }
  0x11   :  { %1642 = vmatpush3.msra.mxu1 %v147_v29  ;;  %1564 = vmatpush3.msra.mxu0 %v114_v30  ;;  %v142_v49 = vld [vmem:[%s3279_s0 + $0x120] sm:$0xff]  ;;  %v109_v50 = vld [vmem:[%s3279_s0 + $0x18] sm:$0xff]  ;;  %v124_v52 = vld [vmem:[%s3279_s0 + $0x90] sm:$0xff] }
  0x12   :  { %1643 = vmatprep.subr.mxu1 %v162_v31  ;;  %1565 = vmatprep.subr.mxu0 %v129_v32  ;;  %v157_v51 = vld [vmem:[%s3279_s0 + $0x198] sm:$0xff]  ;;  %v108_v54 = vld [vmem:[%s3279_s0 + $0x10] sm:$0xff]  ;;  %v123_v56 = vld [vmem:[%s3279_s0 + $0x88] sm:$0xff] }
  0x13   :  { %1644 = vmatpush3.msra.mxu1 %v146_v33  ;;  %1566 = vmatpush3.msra.mxu0 %v113_v34  ;;  %v141_v53 = vld [vmem:[%s3279_s0 + $0x118] sm:$0xff]  ;;  %v156_v55 = vld [vmem:[%s3279_s0 + $0x190] sm:$0xff]  ;;  %v107_v58 = vld [vmem:[%s3279_s0 + $0x8] sm:$0xff] }
  0x14   :  { %1645 = vmatprep.subr.mxu1 %v161_v35  ;;  %1567 = vmatprep.subr.mxu0 %v128_v36  ;;  %v140_v57 = vld [vmem:[%s3279_s0 + $0x110] sm:$0xff]  ;;  %v155_v59 = vld [vmem:[%s3279_s0 + $0x188] sm:$0xff]  ;;  %v122_v60 = vld [vmem:[%s3279_s0 + $0x80] sm:$0xff] }
  0x15   :  { %1646 = vmatpush3.msra.mxu1 %v145_v37  ;;  %1568 = vmatpush3.msra.mxu0 %v112_v38  ;;  %v27_v61 = vld [vmem:[%s3280_s1 + $0x8] sm:$0xff]  ;;  %v106_v62 = vld [vmem:[%s3279_s0] sm:$0xff]  ;;  %v29_v3 = vld [vmem:[%s3280_s1 + $0x18] sm:$0xff] }
  0x16   :  { %1647 = vmatprep.subr.mxu1 %v160_v39  ;;  %1569 = vmatprep.subr.mxu0 %v127_v40  ;;  %v139_v63 = vld [vmem:[%s3279_s0 + $0x108] sm:$0xff]  ;;  %v26_v0 = vld [vmem:[%s3280_s1] sm:$0xff]  ;;  %v28_v4 = vld [vmem:[%s3280_s1 + $0x10] sm:$0xff] }
  0x17   :  { %1648 = vmatpush3.msra.mxu1 %v144_v41  ;;  %1570 = vmatpush3.msra.mxu0 %v111_v42  ;;  %v154_v1 = vld [vmem:[%s3279_s0 + $0x180] sm:$0xff]  ;;  %v32_v5 = vld [vmem:[%s3280_s1 + $0x30] sm:$0xff]  ;;  %v177_v7 = vld [vmem:[%s3279_s0 + $0x238] sm:$0xff] }
  0x18   :  { %1649 = vmatprep.subr.mxu1 %v159_v43  ;;  %1571 = vmatprep.subr.mxu0 %v126_v44  ;;  %v138_v2 = vld [vmem:[%s3279_s0 + $0x100] sm:$0xff]  ;;  %v31_v8 = vld [vmem:[%s3280_s1 + $0x28] sm:$0xff]  ;;  %v37_v9 = vld [vmem:[%s3280_s1 + $0x58] sm:$0xff] }
  0x19   :  { %1650 = vmatpush3.msra.mxu1 %v143_v45  ;;  %1572 = vmatpush3.msra.mxu0 %v110_v46  ;;  %v34_v6 = vld [vmem:[%s3280_s1 + $0x40] sm:$0xff]  ;;  %v33_v10 = vld [vmem:[%s3280_s1 + $0x38] sm:$0xff]  ;;  %v176_v11 = vld [vmem:[%s3279_s0 + $0x230] sm:$0xff] }
  0x1a   :  { %1651 = vmatprep.subr.mxu1 %v158_v47  ;;  %1573 = vmatprep.subr.mxu0 %v125_v48  ;;  %v39_v12 = vld [vmem:[%s3280_s1 + $0x68] sm:$0xff]  ;;  %v36_v13 = vld [vmem:[%s3280_s1 + $0x50] sm:$0xff]  ;;  %v42_v15 = vld [vmem:[%s3280_s1 + $0x80] sm:$0xff] }
  0x1b   :  { %1652 = vmatpush3.msra.mxu1 %v142_v49  ;;  %1574 = vmatpush3.msra.mxu0 %v109_v50  ;;  %v191_v14 = vld [vmem:[%s3281_s2 + $0x68] sm:$0xff]  ;;  %v38_v17 = vld [vmem:[%s3280_s1 + $0x60] sm:$0xff]  ;;  %v193_v18 = vld [vmem:[%s3281_s2 + $0x78] sm:$0xff] }
  0x1c   :  { %1653 = vmatprep.subr.mxu1 %v157_v51  ;;  %1575 = vmatprep.subr.mxu0 %v124_v52  ;;  %v175_v16 = vld [vmem:[%s3279_s0 + $0x228] sm:$0xff]  ;;  %v44_v19 = vld [vmem:[%s3280_s1 + $0x90] sm:$0xff]  ;;  %v41_v20 = vld [vmem:[%s3280_s1 + $0x78] sm:$0xff] }
  0x1d   :  { %1654 = vmatpush3.msra.mxu1 %v141_v53  ;;  %1576 = vmatpush3.msra.mxu0 %v108_v54  ;;  %v190_v21 = vld [vmem:[%s3281_s2 + $0x60] sm:$0xff]  ;;  %v47_v22 = vld [vmem:[%s3280_s1 + $0xa8] sm:$0xff]  ;;  %v192_v25 = vld [vmem:[%s3281_s2 + $0x70] sm:$0xff] }
  0x1e   :  { %1655 = vmatprep.subr.mxu1 %v156_v55  ;;  %1577 = vmatprep.subr.mxu0 %v123_v56  ;;  %v174_v23 = vld [vmem:[%s3279_s0 + $0x220] sm:$0xff]  ;;  %v43_v24 = vld [vmem:[%s3280_s1 + $0x88] sm:$0xff]  ;;  %v49_v26 = vld [vmem:[%s3280_s1 + $0xb8] sm:$0xff] }
  0x1f   :  { %1656 = vmatpush3.msra.mxu1 %v140_v57  ;;  %1578 = vmatpush3.msra.mxu0 %v107_v58  ;;  %v46_v27 = vld [vmem:[%s3280_s1 + $0xa0] sm:$0xff]  ;;  %v188_v28 = vld [vmem:[%s3281_s2 + $0x50] sm:$0xff]  ;;  %v173_v30 = vld [vmem:[%s3279_s0 + $0x218] sm:$0xff] }
  0x20   :  { %1657 = vmatprep.subr.mxu1 %v155_v59  ;;  %1579 = vmatprep.subr.mxu0 %v122_v60  ;;  %v52_v29 = vld [vmem:[%s3280_s1 + $0xd0] sm:$0xff]  ;;  %v189_v32 = vld [vmem:[%s3281_s2 + $0x58] sm:$0xff]  ;;  %v54_v33 = vld [vmem:[%s3280_s1 + $0xe0] sm:$0xff] }
  0x21   :  { %387 = vmatprep.mubr.f32.mxu0 %v27_v61  ;;  %1580 = vmatpush3.msra.mxu0 %v106_v62  ;;  %v48_v31 = vld [vmem:[%s3280_s1 + $0xb0] sm:$0xff]  ;;  %v51_v34 = vld [vmem:[%s3280_s1 + $0xc8] sm:$0xff]  ;;  %v186_v35 = vld [vmem:[%s3281_s2 + $0x40] sm:$0xff] }
  0x22   :  { %1658 = vmatpush3.msra.mxu1 %v139_v63  ;;  %388 = vmatmul.mubr.f32.vlgmr.msra.gmra.mxu0 %v26_v0  ;;  %v57_v36 = vld [vmem:[%s3280_s1 + $0xf8] sm:$0xff]  ;;  %v172_v37 = vld [vmem:[%s3279_s0 + $0x210] sm:$0xff]  ;;  %v59_v39 = vld [vmem:[%s3280_s1 + $0x108] sm:$0xff] }
  0x23   :  { %1659 = vmatprep.subr.mxu1 %v154_v1  ;;  %532 = vmatprep.mubr.f32.mxu1 %v29_v3  ;;  %v53_v38 = vld [vmem:[%s3280_s1 + $0xd8] sm:$0xff]  ;;  %v171_v40 = vld [vmem:[%s3279_s0 + $0x208] sm:$0xff]  ;;  %v56_v41 = vld [vmem:[%s3280_s1 + $0xf0] sm:$0xff] }
  0x24   :  { %1660 = vmatpush3.msra.mxu1 %v138_v2  ;;  %392 = vmatprep.mubr.f32.mxu0 %v32_v5  ;;  %v187_v42 = vld [vmem:[%s3281_s2 + $0x48] sm:$0xff]  ;;  %v62_v43 = vld [vmem:[%s3280_s1 + $0x120] sm:$0xff]  ;;  %v184_v44 = vld [vmem:[%s3281_s2 + $0x30] sm:$0xff] }
  0x25   :  { %533 = vmatmul.mubr.f32.vlgmr.msra.gmra.mxu1 %v28_v4  ;;  %1797 = vmatprep.subr.mxu0 %v177_v7  ;;  %v58_v45 = vld [vmem:[%s3280_s1 + $0x100] sm:$0xff]  ;;  %v64_v46 = vld [vmem:[%s3280_s1 + $0x130] sm:$0xff]  ;;  %v61_v48 = vld [vmem:[%s3280_s1 + $0x118] sm:$0xff] }
  0x26   :  { %537 = vmatprep.mubr.f32.mxu1 %v34_v6  ;;  %393 = vmatmul.mubr.f32.gmra.mxu0 %v31_v8  ;;  %v170_v47 = vld [vmem:[%s3279_s0 + $0x200] sm:$0xff]  ;;  %v185_v49 = vld [vmem:[%s3281_s2 + $0x38] sm:$0xff]  ;;  %v67_v50 = vld [vmem:[%s3280_s1 + $0x148] sm:$0xff] }
  0x27   :  { %397 = vmatprep.mubr.f32.mxu0 %v37_v9  ;;  %1798 = vmatpush3.msra.mxu0 %v177_v7  ;;  %v63_v51 = vld [vmem:[%s3280_s1 + $0x128] sm:$0xff]  ;;  %v182_v52 = vld [vmem:[%s3281_s2 + $0x20] sm:$0xff]  ;;  %v69_v53 = vld [vmem:[%s3280_s1 + $0x158] sm:$0xff] }
  0x28   :  { %1799 = vmatprep.subr.mxu0 %v176_v11  ;;  %261 = vperm.xlu1 %1983, %v191_v14   ;;  %v66_v54 = vld [vmem:[%s3280_s1 + $0x140] sm:$0xff]  ;;  %v183_v55 = vld [vmem:[%s3281_s2 + $0x28] sm:$0xff]  ;;  %v72_v56 = vld [vmem:[%s3280_s1 + $0x170] sm:$0xff] }
  0x29   :  { %538 = vmatmul.mubr.f32.gmra.mxu1 %v33_v10  ;;  %1800 = vmatpush3.msra.mxu0 %v176_v11  ;;  %v68_v57 = vld [vmem:[%s3280_s1 + $0x150] sm:$0xff]  ;;  %v74_v59 = vld [vmem:[%s3280_s1 + $0x180] sm:$0xff]  ;;  %v71_v60 = vld [vmem:[%s3280_s1 + $0x168] sm:$0xff] }
  0x2a   :  { %542 = vmatprep.mubr.f32.mxu1 %v39_v12  ;;  %398 = vmatmul.mubr.f32.gmra.mxu0 %v36_v13  ;;  %v180_v58 = vld [vmem:[%s3281_s2 + $0x10] sm:$0xff]  ;;  %v181_v61 = vld [vmem:[%s3281_s2 + $0x18] sm:$0xff]  ;;  %v178_v0 = vld [vmem:[%s3281_s2] sm:$0xff] }
  0x2b   :  { %402 = vmatprep.mubr.f32.mxu0 %v42_v15  ;;  %1801 = vmatprep.subr.mxu0 %v175_v16  ;;  %v77_v62 = vld [vmem:[%s3280_s1 + $0x198] sm:$0xff]  ;;  %v79_v1 = vld [vmem:[%s3280_s1 + $0x1a8] sm:$0xff]  ;;  %v76_v2 = vld [vmem:[%s3280_s1 + $0x190] sm:$0xff] }
  0x2c   :  { %271 = vperm.xlu0 %1982, %v193_v18   ;;  %1802 = vmatpush3.msra.mxu0 %v175_v16  ;;  %v73_v63 = vld [vmem:[%s3280_s1 + $0x178] sm:$0xff]  ;;  %v179_v3 = vld [vmem:[%s3281_s2 + $0x8] sm:$0xff]  ;;  %v82_v4 = vld [vmem:[%s3280_s1 + $0x1c0] sm:$0xff] }
  0x2d   :  { %543 = vmatmul.mubr.f32.gmra.mxu1 %v38_v17  ;;  %256 = vperm.xlu1 %1983, %v190_v21   ;;  %v78_v5 = vld [vmem:[%s3280_s1 + $0x1a0] sm:$0xff]  ;;  %v84_v6 = vld [vmem:[%s3280_s1 + $0x1d0] sm:$0xff]  ;;  %v81_v7 = vld [vmem:[%s3280_s1 + $0x1b8] sm:$0xff] }
  0x2e   :  { %547 = vmatprep.mubr.f32.mxu1 %v44_v19  ;;  %403 = vmatmul.mubr.f32.gmra.mxu0 %v41_v20  ;;  %v87_v8 = vld [vmem:[%s3280_s1 + $0x1e8] sm:$0xff]  ;;  %v89_v10 = vld [vmem:[%s3280_s1 + $0x1f8] sm:$0xff]  ;;  %v86_v11 = vld [vmem:[%s3280_s1 + $0x1e0] sm:$0xff] }
  0x2f   :  { %407 = vmatprep.mubr.f32.mxu0 %v47_v22  ;;  %1803 = vmatprep.subr.mxu0 %v174_v23  ;;  %v83_v9 = vld [vmem:[%s3280_s1 + $0x1c8] sm:$0xff]  ;;  %v92_v12 = vld [vmem:[%s3280_s1 + $0x210] sm:$0xff]  ;;  %v94_v14 = vld [vmem:[%s3280_s1 + $0x220] sm:$0xff] }
  0x30   :  { %266 = vperm.xlu0 %1982, %v192_v25   ;;  %1804 = vmatpush3.msra.mxu0 %v174_v23  ;;  %v88_v13 = vld [vmem:[%s3280_s1 + $0x1f0] sm:$0xff]  ;;  %v91_v15 = vld [vmem:[%s3280_s1 + $0x208] sm:$0xff]  ;;  %v97_v16 = vld [vmem:[%s3280_s1 + $0x238] sm:$0xff] }
  0x31   :  { %548 = vmatmul.mubr.f32.gmra.mxu1 %v43_v24  ;;  %246 = vperm.xlu1 %1983, %v188_v28   ;;  %v93_v17 = vld [vmem:[%s3280_s1 + $0x218] sm:$0xff]  ;;  %v99_v18 = vld [vmem:[%s3280_s1 + $0x248] sm:$0xff]  ;;  %v96_v19 = vld [vmem:[%s3280_s1 + $0x230] sm:$0xff] }
  0x32   :  { %552 = vmatprep.mubr.f32.mxu1 %v49_v26  ;;  %408 = vmatmul.mubr.f32.gmra.mxu0 %v46_v27  ;;  %v102_v20 = vld [vmem:[%s3280_s1 + $0x260] sm:$0xff]  ;;  %v104_v22 = vld [vmem:[%s3280_s1 + $0x270] sm:$0xff]  ;;  %v101_v23 = vld [vmem:[%s3280_s1 + $0x258] sm:$0xff] }
  0x33   :  { %412 = vmatprep.mubr.f32.mxu0 %v52_v29  ;;  %1805 = vmatprep.subr.mxu0 %v173_v30  ;;  %v98_v21 = vld [vmem:[%s3280_s1 + $0x240] sm:$0xff]  ;;  %v103_v25 = vld [vmem:[%s3280_s1 + $0x268] sm:$0xff]  ;;  %v40_v27 = vld [vmem:[%s3280_s1 + $0x70] sm:$0xff] }
  0x34   :  { %251 = vperm.xlu0 %1982, %v189_v32   ;;  %1806 = vmatpush3.msra.mxu0 %v173_v30  ;;  %v30_v24 = vld [vmem:[%s3280_s1 + $0x20] sm:$0xff]  ;;  %v35_v26 = vld [vmem:[%s3280_s1 + $0x48] sm:$0xff]  ;;  %v45_v28 = vld [vmem:[%s3280_s1 + $0x98] sm:$0xff] }
  0x35   :  { %553 = vmatmul.mubr.f32.gmra.mxu1 %v48_v31  ;;  %236 = vperm.xlu1 %1983, %v186_v35   ;;  %v50_v29 = vld [vmem:[%s3280_s1 + $0xc0] sm:$0xff]  ;;  %v55_v30 = vld [vmem:[%s3280_s1 + $0xe8] sm:$0xff]  ;;  %v60_v31 = vld [vmem:[%s3280_s1 + $0x110] sm:$0xff] }
  0x36   :  { %557 = vmatprep.mubr.f32.mxu1 %v54_v33  ;;  %413 = vmatmul.mubr.f32.gmra.mxu0 %v51_v34  ;;  %v65_v32 = vld [vmem:[%s3280_s1 + $0x138] sm:$0xff]  ;;  %v70_v33 = vld [vmem:[%s3280_s1 + $0x160] sm:$0xff]  ;;  %v75_v34 = vld [vmem:[%s3280_s1 + $0x188] sm:$0xff] }
  0x37   :  { %417 = vmatprep.mubr.f32.mxu0 %v57_v36  ;;  %1807 = vmatprep.subr.mxu0 %v172_v37  ;;  %v80_v35 = vld [vmem:[%s3280_s1 + $0x1b0] sm:$0xff]  ;;  %v85_v36 = vld [vmem:[%s3280_s1 + $0x1d8] sm:$0xff] }
  0x38   :  { %1808 = vmatpush3.msra.mxu0 %v172_v37  ;;  %241 = vperm.xlu0 %1982, %v187_v42   ;;  %v90_v37 = vld [vmem:[%s3280_s1 + $0x200] sm:$0xff] }
  0x39   :  { %558 = vmatmul.mubr.f32.gmra.mxu1 %v53_v38  ;;  %1809 = vmatprep.subr.mxu0 %v171_v40  ;;  %v95_v38 = vld [vmem:[%s3280_s1 + $0x228] sm:$0xff] }
  0x3a   :  { %562 = vmatprep.mubr.f32.mxu1 %v59_v39  ;;  %418 = vmatmul.mubr.f32.gmra.mxu0 %v56_v41  ;;  %v100_v39 = vld [vmem:[%s3280_s1 + $0x250] sm:$0xff] }
  0x3b   :  { %422 = vmatprep.mubr.f32.mxu0 %v62_v43  ;;  %226 = vperm.xlu1 %1983, %v184_v44  }
  0x3c   :  { %1810 = vmatpush3.msra.mxu0 %v171_v40  ;;  %231 = vperm.xlu0 %1982, %v185_v49   ;;  %v105_v40 = vld [vmem:[%s3280_s1 + $0x278] sm:$0xff] }
  0x3d   :  { %563 = vmatmul.mubr.f32.gmra.mxu1 %v58_v45  ;;  %1811 = vmatprep.subr.mxu0 %v170_v47 }
  0x3e   :  { %567 = vmatprep.mubr.f32.mxu1 %v64_v46  ;;  %423 = vmatmul.mubr.f32.gmra.mxu0 %v61_v48 }
  0x3f   :  { %427 = vmatprep.mubr.f32.mxu0 %v67_v50  ;;  %1812 = vmatpush3.msra.mxu0 %v170_v47 }
  0x40   :  { %216 = vperm.xlu1 %1983, %v182_v52   ;;  %221 = vperm.xlu0 %1982, %v183_v55  }
  0x41   :  { %568 = vmatmul.mubr.f32.gmra.mxu1 %v63_v51 }
  0x42   :  { %572 = vmatprep.mubr.f32.mxu1 %v69_v53  ;;  %428 = vmatmul.mubr.f32.gmra.mxu0 %v66_v54  ;;  %v758_v54 = vld [vmem:[%s3282_s5] sm:$0xff] }
  0x43   :  { %432 = vmatprep.mubr.f32.mxu0 %v72_v56 }
  0x44   :  { %206 = vperm.xlu1 %1983, %v180_v58   ;;  %211 = vperm.xlu0 %1982, %v181_v61  }
  0x45   :  { %573 = vmatmul.mubr.f32.gmra.mxu1 %v68_v57 }
  0x46   :  { %577 = vmatprep.mubr.f32.mxu1 %v74_v59  ;;  %433 = vmatmul.mubr.f32.gmra.mxu0 %v71_v60 }
  0x47   :  { %437 = vmatprep.mubr.f32.mxu0 %v77_v62 }
  0x48   :  { %196 = vperm.xlu1 %1983, %v178_v0   ;;  %201 = vperm.xlu0 %1982, %v179_v3  }
  0x49   :  { %578 = vmatmul.mubr.f32.gmra.mxu1 %v73_v63 }
  0x4a   :  { %582 = vmatprep.mubr.f32.mxu1 %v79_v1  ;;  %438 = vmatmul.mubr.f32.gmra.mxu0 %v76_v2 }
  0x4b   :  { %442 = vmatprep.mubr.f32.mxu0 %v82_v4 }
  0x4d   :  { %583 = vmatmul.mubr.f32.gmra.mxu1 %v78_v5 }
  0x4e   :  { %587 = vmatprep.mubr.f32.mxu1 %v84_v6  ;;  %443 = vmatmul.mubr.f32.gmra.mxu0 %v81_v7 }
  0x4f   :  { %447 = vmatprep.mubr.f32.mxu0 %v87_v8 }
  0x51   :  { %588 = vmatmul.mubr.f32.gmra.mxu1 %v83_v9 }
  0x52   :  { %592 = vmatprep.mubr.f32.mxu1 %v89_v10  ;;  %448 = vmatmul.mubr.f32.gmra.mxu0 %v86_v11 }
  0x53   :  { %452 = vmatprep.mubr.f32.mxu0 %v92_v12 }
  0x55   :  { %593 = vmatmul.mubr.f32.gmra.mxu1 %v88_v13 }
  0x56   :  { %597 = vmatprep.mubr.f32.mxu1 %v94_v14  ;;  %453 = vmatmul.mubr.f32.gmra.mxu0 %v91_v15 }
  0x57   :  { %457 = vmatprep.mubr.f32.mxu0 %v97_v16 }
  0x59   :  { %598 = vmatmul.mubr.f32.gmra.mxu1 %v93_v17 }
  0x5a   :  { %602 = vmatprep.mubr.f32.mxu1 %v99_v18  ;;  %458 = vmatmul.mubr.f32.gmra.mxu0 %v96_v19 }
  0x5b   :  { %462 = vmatprep.mubr.f32.mxu0 %v102_v20 }
  0x5d   :  { %603 = vmatmul.mubr.f32.gmra.mxu1 %v98_v21 }
  0x5e   :  { %607 = vmatprep.mubr.f32.mxu1 %v104_v22  ;;  %463 = vmatmul.mubr.f32.gmra.mxu0 %v101_v23 }
  0x5f   :  { %1813 = vmatprep.mubr.msk.f32.mxu0 %vm274_vm0, %v30_v24 }
  0x61   :  { %608 = vmatmul.mubr.f32.gmra.mxu1 %v103_v25 }
  0x62   :  { %1814 = vmatmul.mubr.msk.f32.vlgmr.msra.gmra.mxu0 %vm274_vm0, %v35_v26  ;;  %1869 = vmatprep.mubr.f32.mxu1 %v758_v54 }
  0x63   :  { %1816 = vmatprep.mubr.msk.f32.mxu0 %vm274_vm0, %v40_v27 }
  0x66   :  { %1817 = vmatmul.mubr.msk.f32.gmra.mxu0 %vm274_vm0, %v45_v28 }
  0x67   :  { %1819 = vmatprep.mubr.msk.f32.mxu0 %vm274_vm0, %v50_v29 }
  0x6a   :  { %1820 = vmatmul.mubr.msk.f32.gmra.mxu0 %vm274_vm0, %v55_v30 }
  0x6b   :  { %1822 = vmatprep.mubr.msk.f32.mxu0 %vm274_vm0, %v60_v31 }
  0x6e   :  { %1823 = vmatmul.mubr.msk.f32.gmra.mxu0 %vm274_vm0, %v65_v32 }
  0x6f   :  { %1825 = vmatprep.mubr.msk.f32.mxu0 %vm274_vm0, %v70_v33 }
  0x72   :  { %1826 = vmatmul.mubr.msk.f32.gmra.mxu0 %vm274_vm0, %v75_v34 }
  0x73   :  { %1828 = vmatprep.mubr.msk.f32.mxu0 %vm274_vm0, %v80_v35 }
  0x76   :  { %1829 = vmatmul.mubr.msk.f32.gmra.mxu0 %vm274_vm0, %v85_v36 }
  0x77   :  { %1831 = vmatprep.mubr.msk.f32.mxu0 %vm274_vm0, %v90_v37 }
  0x7a   :  { %1832 = vmatmul.mubr.msk.f32.gmra.mxu0 %vm274_vm0, %v95_v38 }
  0x7b   :  { %1834 = vmatprep.mubr.msk.f32.mxu0 %vm274_vm0, %v100_v39 }
  0x7e   :  { %1835 = vmatmul.mubr.msk.f32.gmra.mxu0 %vm274_vm0, %v105_v40 }
  0x7f   :  { %1925 = vmatprep.mubr.f32.mxu0 %v758_v54 }
  0xa3   :  { %v2577_v41 = vpop.permute.xlu1 %261 }
  0xa7   :  { %v2579_v42 = vpop.permute.xlu0 %271 }
  0xa8   :  { %v2581_v43 = vpop.permute.xlu1 %256 }
  0xab   :  { %v2583_v44 = vpop.permute.xlu0 %266 }
  0xac   :  { %v2585_v45 = vpop.permute.xlu1 %246 }
  0xaf   :  { %v2587_v46 = vpop.permute.xlu0 %251 }
  0xb0   :  { %v2589_v47 = vpop.permute.xlu1 %236 }
  0xb3   :  { %v2591_v48 = vpop.permute.xlu0 %241 }
  0xb6   :  { %v2593_v49 = vpop.permute.xlu1 %226 }
  0xb7   :  { %v2595_v50 = vpop.permute.xlu0 %231 }
  0xbb   :  { %v217_v51 = vpop.permute.xlu1 %216  ;;  %v2597_v52 = vpop.permute.xlu0 %221 }
  0xbc   :  { %3287 = vst [vmem:[#allocation2_spill] sm:$0xff] %v2597_v52 }
  0xbf   :  { %v207_v53 = vpop.permute.xlu1 %206  ;;  %v212_v55 = vpop.permute.xlu0 %211 }
  0xc3   :  { %v197_v57 = vpop.permute.xlu1 %196  ;;  %v202_v1 = vpop.permute.xlu0 %201 }
  0xe2   :  { %v1581_v56 = vpop.f32.mrf.mxu0 }
  0xe4   :  { %v1582_v58 = vpop.f32.mrf.mxu0 }
  0xe5   :  { %v1661_v59 = vpop.f32.mrf.mxu1  ;;  %v1583_v60 = vadd.f32 %v1582_v58, %v1581_v56 }
  0xe6   :  { %v1584_v61 = vpop.f32.mrf.mxu0 }
  0xe7   :  { %v1662_v62 = vpop.f32.mrf.mxu1  ;;  %v390_v63 = vadd.f32 %v1583_v60, %v197_v57 }
  0xe8   :  { %v1663_v0 = vadd.f32 %v1662_v62, %v1661_v59  ;;  %v1585_v2 = vpop.f32.mrf.mxu0 }
  0xe9   :  { %v1664_v3 = vpop.f32.mrf.mxu1  ;;  %v1586_v4 = vadd.f32 %v1585_v2, %v1584_v61 }
  0xea   :  { %v2602_v5 = vadd.f32 %v1663_v0, %v390_v63  ;;  %v1587_v6 = vpop.f32.mrf.mxu0 }
  0xeb   :  { %v1665_v7 = vpop.f32.mrf.mxu1  ;;  %v395_v8 = vadd.f32 %v1586_v4, %v202_v1 }
  0xec   :  { %3288 = vst [vmem:[#allocation3_spill] sm:$0xff] %v2602_v5  ;;  %v1666_v9 = vadd.f32 %v1665_v7, %v1664_v3  ;;  %v1588_v10 = vpop.f32.mrf.mxu0 }
  0xed   :  { %v1667_v11 = vpop.f32.mrf.mxu1  ;;  %v1589_v12 = vadd.f32 %v1588_v10, %v1587_v6 }
  0xee   :  { %v2604_v13 = vadd.f32 %v1666_v9, %v395_v8  ;;  %v1590_v14 = vpop.f32.mrf.mxu0 }
  0xef   :  { %v1668_v15 = vpop.f32.mrf.mxu1  ;;  %v400_v16 = vadd.f32 %v1589_v12, %v207_v53 }
  0xf0   :  { %3289 = vst [vmem:[#allocation4_spill] sm:$0xff] %v2604_v13  ;;  %v1669_v17 = vadd.f32 %v1668_v15, %v1667_v11  ;;  %v1591_v18 = vpop.f32.mrf.mxu0 }
  0xf1   :  { %v1670_v19 = vpop.f32.mrf.mxu1  ;;  %v1592_v20 = vadd.f32 %v1591_v18, %v1590_v14 }
  0xf2   :  { %v2606_v21 = vadd.f32 %v1669_v17, %v400_v16  ;;  %v1593_v22 = vpop.f32.mrf.mxu0 }
  0xf3   :  { %v1671_v23 = vpop.f32.mrf.mxu1  ;;  %v405_v24 = vadd.f32 %v1592_v20, %v212_v55 }
  0xf4   :  { %3290 = vst [vmem:[#allocation5_spill] sm:$0xff] %v2606_v21  ;;  %v1672_v25 = vadd.f32 %v1671_v23, %v1670_v19  ;;  %v1594_v26 = vpop.f32.mrf.mxu0 }
  0xf5   :  { %v1673_v27 = vpop.f32.mrf.mxu1  ;;  %v1595_v28 = vadd.f32 %v1594_v26, %v1593_v22 }
  0xf6   :  { %v2608_v29 = vadd.f32 %v1672_v25, %v405_v24  ;;  %v1596_v30 = vpop.f32.mrf.mxu0 }
  0xf7   :  { %v1674_v31 = vpop.f32.mrf.mxu1  ;;  %v410_v32 = vadd.f32 %v1595_v28, %v217_v51 }
  0xf8   :  { %3291 = vst [vmem:[#allocation6_spill] sm:$0xff] %v2608_v29  ;;  %v1675_v33 = vadd.f32 %v1674_v31, %v1673_v27  ;;  %v1597_v34 = vpop.f32.mrf.mxu0 }
  0xf9   :  { %v2610_v35 = vpop.f32.mrf.mxu1  ;;  %v2612_v36 = vadd.f32 %v1597_v34, %v1596_v30 }
  0xfa   :  { %3292 = vst [vmem:[#allocation7_spill] sm:$0xff] %v2610_v35  ;;  %v2614_v37 = vadd.f32 %v1675_v33, %v410_v32  ;;  %v1599_v38 = vpop.f32.mrf.mxu0 }
  0xfb   :  { %3293 = vst [vmem:[#allocation8_spill] sm:$0xff] %v2612_v36  ;;  %v2616_v39 = vpop.f32.mrf.mxu1 }
  0xfc   :  { %3294 = vst [vmem:[#allocation9_spill] sm:$0xff] %v2614_v37  ;;  %3295 = vst [vmem:[#allocation10_spill] sm:$0xff] %v2616_v39  ;;  %v1600_v40 = vpop.f32.mrf.mxu0 }
  0xfd   :  { %v2618_v53 = vpop.f32.mrf.mxu1  ;;  %v2620_v54 = vadd.f32 %v1600_v40, %v1599_v38 }
  0xfe   :  { %v1602_v55 = vpop.f32.mrf.mxu0 }
  0xff   :  { %v2622_v56 = vpop.f32.mrf.mxu1 }
 0x100   :  { %v1603_v51 = vpop.f32.mrf.mxu0 }
 0x101   :  { %v2624_v57 = vpop.f32.mrf.mxu1  ;;  %v2626_v58 = vadd.f32 %v1603_v51, %v1602_v55 }
 0x102   :  { %v1605_v59 = vpop.f32.mrf.mxu0 }
 0x103   :  { %v2628_v60 = vpop.f32.mrf.mxu1 }
 0x104   :  { %v1606_v61 = vpop.f32.mrf.mxu0 }
 0x105   :  { %v2630_v62 = vpop.f32.mrf.mxu1  ;;  %v2632_v63 = vadd.f32 %v1606_v61, %v1605_v59 }
 0x106   :  { %v1608_v0 = vpop.f32.mrf.mxu0 }
 0x107   :  { %v2634_v1 = vpop.f32.mrf.mxu1 }
 0x108   :  { %v1609_v2 = vpop.f32.mrf.mxu0 }
 0x109   :  { %v2636_v3 = vpop.f32.mrf.mxu1 }
 0x10a   :  { %v1611_v4 = vpop.f32.mrf.mxu0 }
 0x10b   :  { %v2638_v6 = vpop.f32.mrf.mxu1 }
 0x10c   :  { %v1612_v7 = vpop.f32.mrf.mxu0 }
 0x10d   :  { %v2640_v8 = vpop.f32.mrf.mxu1 }
 0x10e   :  { %v1614_v9 = vpop.f32.mrf.mxu0 }
 0x10f   :  { %v1692_v10 = vpop.f32.mrf.mxu1 }
 0x110   :  { %v1615_v11 = vpop.f32.mrf.mxu0 }
 0x111   :  { %v1694_v12 = vpop.f32.mrf.mxu1 }
 0x112   :  { %v1617_v14 = vpop.f32.mrf.mxu0 }
 0x113   :  { %v1695_v16 = vpop.f32.mrf.mxu1 }
 0x114   :  { %v1618_v15 = vpop.f32.mrf.mxu0 }
 0x115   :  { %v1697_v19 = vpop.f32.mrf.mxu1 }
 0x116   :  { %v1620_v17 = vpop.f32.mrf.mxu0 }
 0x117   :  { %v1698_v23 = vpop.f32.mrf.mxu1 }
 0x118   :  { %v1621_v18 = vpop.f32.mrf.mxu0 }
 0x119   :  { %v1700_v26 = vpop.f32.mrf.mxu1 }
 0x11a   :  { %v1623_v20 = vpop.f32.mrf.mxu0 }
 0x11b   :  { %v1701_v30 = vpop.f32.mrf.mxu1 }
 0x11c   :  { %v1624_v22 = vpop.f32.mrf.mxu0  ;;  %v1702_v52 = vadd.f32 %v1701_v30, %v1700_v26 }
 0x11d   :  { %v1703_v33 = vpop.f32.mrf.mxu1  ;;  %v1625_v21 = vadd.f32 %v1624_v22, %v1623_v20  ;;  %v1699_v22 = vadd.f32 %v1698_v23, %v1697_v19  ;;  %v3313_v19 = vld [vmem:[#allocation9_spill] sm:$0xff] }
 0x11e   :  { %v1626_v24 = vpop.f32.mrf.mxu0 }
 0x11f   :  { %v1704_v40 = vpop.f32.mrf.mxu1  ;;  %v460_v39 = vadd.f32 %v1625_v21, %v2583_v44  ;;  %v1696_v44 = vadd.f32 %v1695_v16, %v1694_v12 }
 0x120   :  { %v1627_v25 = vpop.f32.mrf.mxu0 }
 0x121   :  { %v1706_v59 = vpop.f32.mrf.mxu1 }
 0x122   :  { %v2642_v27 = vpop.f32.mrf.mxu0 }
 0x123   :  { %3296 = vst [vmem:[#allocation11_spill] sm:$0xff] %v2642_v27  ;;  %v1707_v27 = vpop.f32.mrf.mxu1 }
 0x124   :  { %v2644_v28 = vpop.f32.mrf.mxu0  ;;  %v1708_v37 = vadd.f32 %v1707_v27, %v1706_v59 }
 0x125   :  { %3297 = vst [vmem:[#allocation12_spill] sm:$0xff] %v2644_v28  ;;  %v1628_v28 = vadd.f32 %v1627_v25, %v1626_v24  ;;  %v1613_v24 = vadd.f32 %v1612_v7, %v1611_v4 }
 0x126   :  { %v2646_v31 = vpop.f32.mrf.mxu0 }
 0x127   :  { %3298 = vst [vmem:[#allocation13_spill] sm:$0xff] %v2646_v31  ;;  %v465_v29 = vadd.f32 %v1628_v28, %v2579_v42  ;;  %v3315_v28 = vld [vmem:[#allocation6_spill] sm:$0xff] }
 0x128   :  { %v2648_v32 = vpop.f32.mrf.mxu0 }
 0x129   :  { %3299 = vst [vmem:[#allocation14_spill] sm:$0xff] %v2648_v32  ;;  %v1622_v32 = vadd.f32 %v1621_v18, %v1620_v17  ;;  %v1610_v18 = vadd.f32 %v1609_v2, %v1608_v0 }
 0x12a   :  { %v2650_v34 = vpop.f32.mrf.mxu0 }
 0x12b   :  { %3300 = vst [vmem:[#allocation15_spill] sm:$0xff] %v2650_v34  ;;  %v455_v36 = vadd.f32 %v1622_v32, %v2577_v41  ;;  %v440_v41 = vadd.f32 %v1613_v24, %v2585_v45  ;;  %v430_v45 = vadd.f32 %v2632_v63, %v2589_v47  ;;  %v420_v47 = vadd.f32 %v2620_v54, %v2593_v49  ;;  %v3317_v32 = vld [vmem:[#allocation5_spill] sm:$0xff]  ;;  %v2765_v24 = vld [vmem:[%s3282_s5 + $0x8] sm:$0xff] }
 0x12c   :  { %v2652_v38 = vpop.f32.mrf.mxu0  ;;  %v3322_v59 = vld [vmem:[#allocation12_spill] sm:$0xff] }
 0x12d   :  { %3301 = vst [vmem:[#allocation16_spill] sm:$0xff] %v2652_v38  ;;  %v1619_v38 = vadd.f32 %v1618_v15, %v1617_v14  ;;  %v600_v21 = vadd.f32 %v1702_v52, %v455_v36  ;;  %v1690_v52 = vadd.f32 %v2638_v6, %v2636_v3 }
 0x12e   :  { %v2654_v55 = vpop.f32.mrf.mxu0  ;;  %v3316_v30 = vld [vmem:[#allocation13_spill] sm:$0xff] }
 0x12f   :  { %3302 = vst [vmem:[#allocation17_spill] sm:$0xff] %v2654_v55  ;;  %v1705_v55 = vadd.f32 %v1704_v40, %v1703_v33  ;;  %v450_v20 = vadd.f32 %v1619_v38, %v2581_v43  ;;  %v1693_v43 = vadd.f32 %v1692_v10, %v2640_v8  ;;  %v3319_v38 = vld [vmem:[#allocation4_spill] sm:$0xff]  ;;  %v3320_v40 = vld [vmem:[#allocation11_spill] sm:$0xff] }
 0x130   :  { %v2656_v51 = vpop.f32.mrf.mxu0  ;;  %v3318_v33 = vld [vmem:[#allocation14_spill] sm:$0xff] }
 0x131   :  { %3303 = vst [vmem:[#allocation18_spill] sm:$0xff] %v2656_v51  ;;  %v1616_v51 = vadd.f32 %v1615_v11, %v1614_v9  ;;  %v605_v42 = vadd.f32 %v1705_v55, %v460_v39  ;;  %v1687_v39 = vadd.f32 %v2634_v1, %v2630_v62  ;;  %v585_v2 = vadd.f32 %v1693_v43, %v440_v41  ;;  %v3308_v1 = vld [vmem:[#allocation10_spill] sm:$0xff]  ;;  %v2824_v41 = vld [vmem:[%s3282_s5 + $0x58] sm:$0xff] }
 0x132   :  { %v1827_v61 = vpop.f32.mrf.mxu0  ;;  %v3312_v12 = vld [vmem:[#allocation15_spill] sm:$0xff]  ;;  %v2752_v55 = vadd.f32 %v3320_v40, %v3319_v38  ;;  %v2829_v43 = vld [vmem:[%s3282_s5 + $0x60] sm:$0xff] }
 0x133   :  { %v445_v14 = vadd.f32 %v1616_v51, %v2587_v46  ;;  %v435_v46 = vadd.f32 %v1610_v18, %v2591_v48  ;;  %v425_v48 = vadd.f32 %v2626_v58, %v2595_v50  ;;  %v575_v63 = vadd.f32 %v1687_v39, %v430_v45  ;;  %v3305_v50 = vld [vmem:[#allocation2_spill] sm:$0xff]  ;;  %v3321_v51 = vld [vmem:[#allocation3_spill] sm:$0xff]  ;;  %v2796_v18 = vld [vmem:[%s3282_s5 + $0x30] sm:$0xff] }
 0x134   :  { %v2658_v5 = vpop.f32.mrf.mxu0  ;;  %v3314_v23 = vld [vmem:[#allocation16_spill] sm:$0xff] }
 0x135   :  { %3304 = vst [vmem:[#allocation19_spill] sm:$0xff] %v2658_v5  ;;  %v610_v5 = vadd.f32 %v1708_v37, %v465_v29  ;;  %v590_v36 = vadd.f32 %v1696_v44, %v445_v14  ;;  %v580_v3 = vadd.f32 %v1690_v52, %v435_v46  ;;  %v2734_v26 = vadd.f32 %v3314_v23, %v3313_v19  ;;  %v766_v14 = vld [vmem:[%s3282_s5 + $0x40] sm:$0xff]  ;;  %v2812_v44 = vld [vmem:[%s3282_s5 + $0x48] sm:$0xff]  ;;  %v2841_v46 = vld [vmem:[%s3282_s5 + $0x70] sm:$0xff] }
 0x136   :  { %v1830_v13 = vpop.f32.mrf.mxu0  ;;  %v3310_v49 = vld [vmem:[#allocation17_spill] sm:$0xff] }
 0x137   :  { %v2688_v0 = vadd.f32 %v1830_v13, %v590_v36  ;;  %v1681_v13 = vadd.f32 %v2622_v56, %v2618_v53  ;;  %v2704_v62 = vadd.f32 %v1827_v61, %v580_v3  ;;  %v2758_v61 = vadd.f32 %v3322_v59, %v3321_v51  ;;  %v2848_v52 = vld [vmem:[%s3282_s5 + $0x78] sm:$0xff]  ;;  %v1241_v59 = vld [vmem:[%s3283_s3] sm:$0xff] }
 0x138   :  { %v729_v31 = vpop.f32.mrf.mxu0  ;;  %v3311_v10 = vld [vmem:[#allocation18_spill] sm:$0xff] }
 0x139   :  { %v2696_v4 = vadd.f32 %v729_v31, %v585_v2  ;;  %v565_v54 = vadd.f32 %v1681_v13, %v420_v47  ;;  %v2740_v31 = vadd.f32 %v3316_v30, %v3315_v28 }
 0x13a   :  { %v1833_v34 = vpop.f32.mrf.mxu0 }
 0x13b   :  { %v2673_v29 = vadd.f32 %v1833_v34, %v600_v21  ;;  %v2723_v11 = vadd.f32 %v3311_v10, %v565_v54  ;;  %v2746_v34 = vadd.f32 %v3318_v33, %v3317_v32  ;;  %v2817_v21 = vld [vmem:[%s3282_s5 + $0x50] sm:$0xff] }
 0x13c   :  { %v739_v35 = vpop.f32.mrf.mxu0  ;;  %v3309_v8 = vld [vmem:[#allocation19_spill] sm:$0xff] }
 0x13d   :  { %v2713_v9 = vadd.f32 %v3309_v8, %v575_v63 }
 0x13e   :  { %v1836_v25 = vpop.f32.mrf.mxu0 }
 0x13f   :  { %v2664_v17 = vadd.f32 %v1836_v25, %v610_v5  ;;  %v595_v5 = vadd.f32 %v1699_v22, %v450_v20  ;;  %v2771_v25 = vld [vmem:[%s3282_s5 + $0x10] sm:$0xff]  ;;  %v2779_v20 = vld [vmem:[%s3282_s5 + $0x18] sm:$0xff]  ;;  %v2784_v22 = vld [vmem:[%s3282_s5 + $0x20] sm:$0xff] }
 0x140   :  { %v749_v27 = vpop.f32.mrf.mxu0 }
 0x141   :  { %v2667_v15 = vadd.f32 %v749_v27, %v605_v42  ;;  %1837 = vmatprep.subr.mxu1 %v2664_v17  ;;  %v2680_v37 = vadd.f32 %v739_v35, %v595_v5  ;;  %v1684_v35 = vadd.f32 %v2628_v60, %v2624_v57  ;;  %v3306_v57 = vld [vmem:[#allocation8_spill] sm:$0xff]  ;;  %v3307_v60 = vld [vmem:[#allocation7_spill] sm:$0xff]  ;;  %v2803_v27 = vld [vmem:[%s3282_s5 + $0x38] sm:$0xff] }
 0x142   :  { %1838 = vmatpush3.msra.mxu1 %v2664_v17  ;;  %v415_v58 = vadd.f32 %v3306_v57, %v3305_v50  ;;  %v1678_v6 = vadd.f32 %v3308_v1, %v3307_v60  ;;  %v2791_v42 = vld [vmem:[%s3282_s5 + $0x28] sm:$0xff] }
 0x143   :  { %1839 = vmatprep.subr.mxu1 %v2667_v15  ;;  %v570_v7 = vadd.f32 %v1684_v35, %v425_v48  ;;  %v2836_v5 = vld [vmem:[%s3282_s5 + $0x68] sm:$0xff] }
 0x144   :  { %1840 = vmatpush3.msra.mxu1 %v2667_v15  ;;  %v560_v56 = vadd.f32 %v1678_v6, %v415_v58 }
 0x145   :  { %1841 = vmatprep.subr.mxu1 %v2673_v29  ;;  %v2718_v53 = vadd.f32 %v3310_v49, %v570_v7 }
 0x146   :  { %1842 = vmatpush3.msra.mxu1 %v2673_v29  ;;  %v2728_v16 = vadd.f32 %v3312_v12, %v560_v56 }
 0x147   :  { %1843 = vmatprep.subr.mxu1 %v2680_v37 }
 0x148   :  { %1844 = vmatpush3.msra.mxu1 %v2680_v37 }
 0x149   :  { %1845 = vmatprep.subr.mxu1 %v2688_v0 }
 0x14a   :  { %1846 = vmatpush3.msra.mxu1 %v2688_v0 }
 0x14b   :  { %1847 = vmatprep.subr.mxu1 %v2696_v4 }
 0x14c   :  { %1848 = vmatpush3.msra.mxu1 %v2696_v4 }
 0x14d   :  { %1849 = vmatprep.subr.mxu1 %v2704_v62 }
 0x14e   :  { %1850 = vmatpush3.msra.mxu1 %v2704_v62 }
 0x14f   :  { %1851 = vmatprep.subr.mxu1 %v2713_v9 }
 0x150   :  { %1852 = vmatpush3.msra.mxu1 %v2713_v9 }
 0x151   :  { %1853 = vmatprep.subr.mxu1 %v2718_v53 }
 0x152   :  { %1854 = vmatpush3.msra.mxu1 %v2718_v53 }
 0x153   :  { %1855 = vmatprep.subr.mxu1 %v2723_v11 }
 0x154   :  { %1856 = vmatpush3.msra.mxu1 %v2723_v11 }
 0x155   :  { %1857 = vmatprep.subr.mxu1 %v2728_v16 }
 0x156   :  { %1858 = vmatpush3.msra.mxu1 %v2728_v16 }
 0x157   :  { %1859 = vmatprep.subr.mxu1 %v2734_v26 }
 0x158   :  { %1860 = vmatpush3.msra.mxu1 %v2734_v26 }
 0x159   :  { %1861 = vmatprep.subr.mxu1 %v2740_v31 }
 0x15a   :  { %1862 = vmatpush3.msra.mxu1 %v2740_v31 }
 0x15b   :  { %1863 = vmatprep.subr.mxu1 %v2746_v34 }
 0x15c   :  { %1864 = vmatpush3.msra.mxu1 %v2746_v34 }
 0x15d   :  { %1865 = vmatprep.subr.mxu1 %v2752_v55 }
 0x15e   :  { %1866 = vmatpush3.msra.mxu1 %v2752_v55 }
 0x15f   :  { %1867 = vmatprep.subr.mxu1 %v2758_v61 }
 0x160   :  { %1868 = vmatpush3.msra.mxu1 %v2758_v61 }
 0x161   :  { %1870 = vmatmul.mubr.f32.vlgmr.msra.gmra.mxu1 %v2765_v24 }
 0x162   :  { %1872 = vmatprep.mubr.f32.mxu1 %v2771_v25 }
 0x165   :  { %1873 = vmatmul.mubr.f32.gmra.mxu1 %v2779_v20 }
 0x166   :  { %1875 = vmatprep.mubr.f32.mxu1 %v2784_v22 }
 0x169   :  { %1876 = vmatmul.mubr.f32.gmra.mxu1 %v2791_v42 }
 0x16a   :  { %1878 = vmatprep.mubr.f32.mxu1 %v2796_v18 }
 0x16d   :  { %1879 = vmatmul.mubr.f32.gmra.mxu1 %v2803_v27 }
 0x16e   :  { %1881 = vmatprep.mubr.f32.mxu1 %v766_v14 }
 0x171   :  { %1882 = vmatmul.mubr.f32.gmra.mxu1 %v2812_v44 }
 0x172   :  { %1884 = vmatprep.mubr.f32.mxu1 %v2817_v21 }
 0x175   :  { %1885 = vmatmul.mubr.f32.gmra.mxu1 %v2824_v41 }
 0x176   :  { %1887 = vmatprep.mubr.f32.mxu1 %v2829_v43 }
 0x179   :  { %1888 = vmatmul.mubr.f32.gmra.mxu1 %v2836_v5 }
 0x17a   :  { %1890 = vmatprep.mubr.f32.mxu1 %v2841_v46 }
 0x17d   :  { %1891 = vmatmul.mubr.f32.gmra.mxu1 %v2848_v52 }
 0x17e   :  { %1937 = vmatprep.mubr.f32.mxu1 %v766_v14  ;;  %v1243_v14 = vld [vmem:[%s3283_s3 + $0x10] sm:$0xff] }
 0x221   :  { %v1871_v36 = vpop.f32.mrf.mxu1 }
 0x222   :  { %v923_v38 = vsel %vm919_vm1, %v1871_v36, 0.0  ;;  %v1244_v36 = vld [vmem:[%s3283_s3 + $0x18] sm:$0xff] }
 0x223   :  { %v840_v45 = vpop.f32.mrf.mxu1 }
 0x224   :  { %v920_v51 = vsel %vm919_vm1, %v840_v45, 0.0  ;;  %v1242_v45 = vld [vmem:[%s3283_s3 + $0x8] sm:$0xff] }
 0x225   :  { %v1874_v39 = vpop.f32.mrf.mxu1 }
 0x226   :  { %v929_v32 = vsel %vm919_vm1, %v1874_v39, 0.0  ;;  %v1246_v39 = vld [vmem:[%s3283_s3 + $0x28] sm:$0xff] }
 0x227   :  { %v850_v2 = vpop.f32.mrf.mxu1 }
 0x228   :  { %v926_v40 = vsel %vm919_vm1, %v850_v2, 0.0  ;;  %v1245_v2 = vld [vmem:[%s3283_s3 + $0x20] sm:$0xff] }
 0x229   :  { %v1877_v48 = vpop.f32.mrf.mxu1 }
 0x22a   :  { %v935_v28 = vsel %vm919_vm1, %v1877_v48, 0.0  ;;  %v1248_v48 = vld [vmem:[%s3283_s3 + $0x38] sm:$0xff] }
 0x22b   :  { %v860_v35 = vpop.f32.mrf.mxu1 }
 0x22c   :  { %v932_v33 = vsel %vm919_vm1, %v860_v35, 0.0  ;;  %v1247_v35 = vld [vmem:[%s3283_s3 + $0x30] sm:$0xff] }
 0x22d   :  { %v1880_v3 = vpop.f32.mrf.mxu1 }
 0x22e   :  { %v941_v19 = vsel %vm919_vm1, %v1880_v3, 0.0  ;;  %v1250_v3 = vld [vmem:[%s3283_s3 + $0x48] sm:$0xff] }
 0x22f   :  { %v870_v47 = vpop.f32.mrf.mxu1 }
 0x230   :  { %v938_v30 = vsel %vm919_vm1, %v870_v47, 0.0  ;;  %v1249_v47 = vld [vmem:[%s3283_s3 + $0x40] sm:$0xff] }
 0x231   :  { %v1883_v13 = vpop.f32.mrf.mxu1 }
 0x232   :  { %v947_v10 = vsel %vm919_vm1, %v1883_v13, 0.0  ;;  %v1252_v13 = vld [vmem:[%s3283_s3 + $0x58] sm:$0xff] }
 0x233   :  { %v880_v63 = vpop.f32.mrf.mxu1 }
 0x234   :  { %v944_v23 = vsel %vm919_vm1, %v880_v63, 0.0  ;;  %v1251_v63 = vld [vmem:[%s3283_s3 + $0x50] sm:$0xff] }
 0x235   :  { %v1886_v50 = vpop.f32.mrf.mxu1 }
 0x236   :  { %v953_v54 = vsel %vm919_vm1, %v1886_v50, 0.0  ;;  %v1254_v50 = vld [vmem:[%s3283_s3 + $0x68] sm:$0xff] }
 0x237   :  { %v890_v57 = vpop.f32.mrf.mxu1 }
 0x238   :  { %v950_v12 = vsel %vm919_vm1, %v890_v57, 0.0  ;;  %v1253_v57 = vld [vmem:[%s3283_s3 + $0x60] sm:$0xff] }
 0x239   :  { %v1889_v58 = vpop.f32.mrf.mxu1 }
 0x23a   :  { %v959_v49 = vsel %vm919_vm1, %v1889_v58, 0.0  ;;  %v1256_v58 = vld [vmem:[%s3283_s3 + $0x78] sm:$0xff] }
 0x23b   :  { %v900_v60 = vpop.f32.mrf.mxu1 }
 0x23c   :  { %v956_v56 = vsel %vm919_vm1, %v900_v60, 0.0  ;;  %v1255_v60 = vld [vmem:[%s3283_s3 + $0x70] sm:$0xff] }
 0x23d   :  { %v1892_v1 = vpop.f32.mrf.mxu1 }
 0x23e   :  { %v965_v6 = vsel %vm919_vm1, %v1892_v1, 0.0  ;;  %v1354_v1 = vld [vmem:[%s3284_s4 + $0x8] sm:$0xff] }
 0x23f   :  { %966 = vadd.xlane.f32.xlu0 %v965_v6  ;;  %v910_v7 = vpop.f32.mrf.mxu1  ;;  %v1353_v6 = vld [vmem:[%s3284_s4] sm:$0xff] }
 0x240   :  { %v962_v8 = vsel %vm919_vm1, %v910_v7, 0.0  ;;  %v1356_v7 = vld [vmem:[%s3284_s4 + $0x18] sm:$0xff] }
 0x241   :  { %963 = vadd.xlane.f32.xlu1 %v962_v8  ;;  %v1355_v8 = vld [vmem:[%s3284_s4 + $0x10] sm:$0xff] }
 0x243   :  { %960 = vadd.xlane.f32.xlu0 %v959_v49  ;;  %v1358_v49 = vld [vmem:[%s3284_s4 + $0x28] sm:$0xff] }
 0x245   :  { %954 = vadd.xlane.f32.xlu1 %v953_v54  ;;  %v1357_v54 = vld [vmem:[%s3284_s4 + $0x20] sm:$0xff] }
 0x247   :  { %957 = vadd.xlane.f32.xlu0 %v956_v56  ;;  %v1360_v56 = vld [vmem:[%s3284_s4 + $0x38] sm:$0xff] }
 0x249   :  { %948 = vadd.xlane.f32.xlu1 %v947_v10  ;;  %v1359_v10 = vld [vmem:[%s3284_s4 + $0x30] sm:$0xff] }
 0x24b   :  { %951 = vadd.xlane.f32.xlu0 %v950_v12  ;;  %v1362_v12 = vld [vmem:[%s3284_s4 + $0x48] sm:$0xff] }
 0x24d   :  { %942 = vadd.xlane.f32.xlu1 %v941_v19  ;;  %v1361_v19 = vld [vmem:[%s3284_s4 + $0x40] sm:$0xff] }
 0x24f   :  { %945 = vadd.xlane.f32.xlu0 %v944_v23  ;;  %v1364_v23 = vld [vmem:[%s3284_s4 + $0x58] sm:$0xff] }
 0x251   :  { %936 = vadd.xlane.f32.xlu1 %v935_v28  ;;  %v1363_v28 = vld [vmem:[%s3284_s4 + $0x50] sm:$0xff] }
 0x253   :  { %939 = vadd.xlane.f32.xlu0 %v938_v30  ;;  %v1366_v30 = vld [vmem:[%s3284_s4 + $0x68] sm:$0xff] }
 0x255   :  { %930 = vadd.xlane.f32.xlu1 %v929_v32  ;;  %v1365_v32 = vld [vmem:[%s3284_s4 + $0x60] sm:$0xff] }
 0x257   :  { %933 = vadd.xlane.f32.xlu0 %v932_v33 }
 0x259   :  { %924 = vadd.xlane.f32.xlu1 %v923_v38 }
 0x25b   :  { %927 = vadd.xlane.f32.xlu0 %v926_v40 }
 0x25f   :  { %921 = vadd.xlane.f32.xlu0 %v920_v51 }
 0x26a   :  { %1259 = vperm.xlu1 %1983, %v1241_v59  }
 0x26e   :  { %1269 = vperm.xlu1 %1983, %v1243_v14  }
 0x272   :  { %1274 = vperm.xlu1 %1983, %v1244_v36  }
 0x275   :  { %1264 = vperm.xlu0 %1982, %v1242_v45  }
 0x276   :  { %1284 = vperm.xlu1 %1983, %v1246_v39  }
 0x279   :  { %1279 = vperm.xlu0 %1982, %v1245_v2  }
 0x27a   :  { %1294 = vperm.xlu1 %1983, %v1248_v48  }
 0x27d   :  { %1289 = vperm.xlu0 %1982, %v1247_v35  }
 0x27e   :  { %1304 = vperm.xlu1 %1983, %v1250_v3  }
 0x281   :  { %1299 = vperm.xlu0 %1982, %v1249_v47  }
 0x282   :  { %1314 = vperm.xlu1 %1983, %v1252_v13  }
 0x285   :  { %1309 = vperm.xlu0 %1982, %v1251_v63  }
 0x286   :  { %1324 = vperm.xlu1 %1983, %v1254_v50  }
 0x289   :  { %1319 = vperm.xlu0 %1982, %v1253_v57  }
 0x28a   :  { %1334 = vperm.xlu1 %1983, %v1256_v58  }
 0x28d   :  { %1329 = vperm.xlu0 %1982, %v1255_v60  }
 0x28e   :  { %1376 = vperm.xlu1 %1983, %v1354_v1  }
 0x291   :  { %1371 = vperm.xlu0 %1982, %v1353_v6  }
 0x292   :  { %1386 = vperm.xlu1 %1983, %v1356_v7  }
 0x295   :  { %1381 = vperm.xlu0 %1982, %v1355_v8  }
 0x296   :  { %1396 = vperm.xlu1 %1983, %v1358_v49  }
 0x299   :  { %1391 = vperm.xlu0 %1982, %v1357_v54  }
 0x29a   :  { %1406 = vperm.xlu1 %1983, %v1360_v56  }
 0x29d   :  { %1401 = vperm.xlu0 %1982, %v1359_v10  }
 0x29e   :  { %1416 = vperm.xlu1 %1983, %v1362_v12  }
 0x2a1   :  { %1411 = vperm.xlu0 %1982, %v1361_v19  }
 0x2a2   :  { %1426 = vperm.xlu1 %1983, %v1364_v23  }
 0x2a5   :  { %1421 = vperm.xlu0 %1982, %v1363_v28  }
 0x2a6   :  { %1436 = vperm.xlu1 %1983, %v1366_v30  }
 0x2a9   :  { %1431 = vperm.xlu0 %1982, %v1365_v32  }
 0x2c8   :  { %v967_v33 = vpop.xlane.xlu0 %966 }
 0x2c9   :  { %v2958_v38 = vsub.f32 %v2664_v17, %v967_v33 }
 0x2ca   :  { %v964_v40 = vpop.xlane.xlu1 %963 }
 0x2cb   :  { %v999_v51 = vmul.f32 %v2958_v38, %v2958_v38  ;;  %v2963_v59 = vsub.f32 %v2667_v15, %v964_v40 }
 0x2cc   :  { %v961_v14 = vpop.xlane.xlu0 %960 }
 0x2cd   :  { %v998_v36 = vmul.f32 %v2963_v59, %v2963_v59  ;;  %v2968_v45 = vsub.f32 %v2673_v29, %v961_v14  ;;  %1893 = vmatprep.subr.mxu0 %v999_v51  ;;  %1949 = vmatprep.subr.mxu1 %v999_v51 }
 0x2ce   :  { %1894 = vmatpush3.msra.mxu0 %v999_v51  ;;  %1965 = vmatpush3.msra.mxu1 %v999_v51  ;;  %v955_v17 = vpop.xlane.xlu1 %954 }
 0x2cf   :  { %v997_v39 = vmul.f32 %v2968_v45, %v2968_v45  ;;  %1895 = vmatprep.subr.mxu0 %v998_v36  ;;  %1950 = vmatprep.subr.mxu1 %v998_v36  ;;  %v2973_v15 = vsub.f32 %v2688_v0, %v955_v17 }
 0x2d0   :  { %v958_v2 = vpop.xlane.xlu0 %957  ;;  %1896 = vmatpush3.msra.mxu0 %v998_v36  ;;  %1966 = vmatpush3.msra.mxu1 %v998_v36 }
 0x2d1   :  { %v2976_v48 = vsub.f32 %v2680_v37, %v958_v2  ;;  %1897 = vmatprep.subr.mxu0 %v997_v39  ;;  %1951 = vmatprep.subr.mxu1 %v997_v39  ;;  %v995_v47 = vmul.f32 %v2973_v15, %v2973_v15 }
 0x2d2   :  { %1898 = vmatpush3.msra.mxu0 %v997_v39  ;;  %1967 = vmatpush3.msra.mxu1 %v997_v39  ;;  %v949_v29 = vpop.xlane.xlu1 %948 }
 0x2d3   :  { %v996_v35 = vmul.f32 %v2976_v48, %v2976_v48  ;;  %v2983_v13 = vsub.f32 %v2704_v62, %v949_v29 }
 0x2d4   :  { %v952_v3 = vpop.xlane.xlu0 %951 }
 0x2d5   :  { %v2986_v0 = vsub.f32 %v2696_v4, %v952_v3  ;;  %1899 = vmatprep.subr.mxu0 %v996_v35  ;;  %1952 = vmatprep.subr.mxu1 %v996_v35  ;;  %v993_v62 = vmul.f32 %v2983_v13, %v2983_v13 }
 0x2d6   :  { %1900 = vmatpush3.msra.mxu0 %v996_v35  ;;  %1968 = vmatpush3.msra.mxu1 %v996_v35  ;;  %v943_v37 = vpop.xlane.xlu1 %942 }
 0x2d7   :  { %v994_v63 = vmul.f32 %v2986_v0, %v2986_v0  ;;  %1901 = vmatprep.subr.mxu0 %v995_v47  ;;  %1953 = vmatprep.subr.mxu1 %v995_v47  ;;  %v2993_v57 = vsub.f32 %v2718_v53, %v943_v37 }
 0x2d8   :  { %v946_v50 = vpop.xlane.xlu0 %945  ;;  %1902 = vmatpush3.msra.mxu0 %v995_v47  ;;  %1969 = vmatpush3.msra.mxu1 %v995_v47 }
 0x2d9   :  { %v2996_v4 = vsub.f32 %v2713_v9, %v946_v50  ;;  %1903 = vmatprep.subr.mxu0 %v994_v63  ;;  %1954 = vmatprep.subr.mxu1 %v994_v63  ;;  %v991_v53 = vmul.f32 %v2993_v57, %v2993_v57 }
 0x2da   :  { %1904 = vmatpush3.msra.mxu0 %v994_v63  ;;  %1970 = vmatpush3.msra.mxu1 %v994_v63  ;;  %v937_v58 = vpop.xlane.xlu1 %936 }
 0x2db   :  { %v992_v60 = vmul.f32 %v2996_v4, %v2996_v4  ;;  %1905 = vmatprep.subr.mxu0 %v993_v62  ;;  %1955 = vmatprep.subr.mxu1 %v993_v62  ;;  %v3003_v6 = vsub.f32 %v2728_v16, %v937_v58  ;;  %v1368_v58 = vld [vmem:[%s3284_s4 + $0x78] sm:$0xff] }
 0x2dc   :  { %v940_v1 = vpop.xlane.xlu0 %939  ;;  %1906 = vmatpush3.msra.mxu0 %v993_v62  ;;  %1971 = vmatpush3.msra.mxu1 %v993_v62 }
 0x2dd   :  { %v3006_v9 = vsub.f32 %v2723_v11, %v940_v1  ;;  %1907 = vmatprep.subr.mxu0 %v992_v60  ;;  %1956 = vmatprep.subr.mxu1 %v992_v60  ;;  %v989_v16 = vmul.f32 %v3003_v6, %v3003_v6  ;;  %v1367_v1 = vld [vmem:[%s3284_s4 + $0x70] sm:$0xff] }
 0x2de   :  { %1908 = vmatpush3.msra.mxu0 %v992_v60  ;;  %1972 = vmatpush3.msra.mxu1 %v992_v60  ;;  %v931_v7 = vpop.xlane.xlu1 %930 }
 0x2df   :  { %v990_v8 = vmul.f32 %v3006_v9, %v3006_v9  ;;  %1909 = vmatprep.subr.mxu0 %v991_v53  ;;  %1957 = vmatprep.subr.mxu1 %v991_v53  ;;  %v3013_v54 = vsub.f32 %v2740_v31, %v931_v7 }
 0x2e0   :  { %v934_v49 = vpop.xlane.xlu0 %933  ;;  %1910 = vmatpush3.msra.mxu0 %v991_v53  ;;  %1973 = vmatpush3.msra.mxu1 %v991_v53 }
 0x2e1   :  { %v3016_v11 = vsub.f32 %v2734_v26, %v934_v49  ;;  %1911 = vmatprep.subr.mxu0 %v990_v8  ;;  %1958 = vmatprep.subr.mxu1 %v990_v8  ;;  %v987_v31 = vmul.f32 %v3013_v54, %v3013_v54 }
 0x2e2   :  { %1912 = vmatpush3.msra.mxu0 %v990_v8  ;;  %1974 = vmatpush3.msra.mxu1 %v990_v8  ;;  %v925_v56 = vpop.xlane.xlu1 %924 }
 0x2e3   :  { %v988_v10 = vmul.f32 %v3016_v11, %v3016_v11  ;;  %1913 = vmatprep.subr.mxu0 %v989_v16  ;;  %1959 = vmatprep.subr.mxu1 %v989_v16  ;;  %v3023_v19 = vsub.f32 %v2752_v55, %v925_v56 }
 0x2e4   :  { %v928_v12 = vpop.xlane.xlu0 %927  ;;  %1914 = vmatpush3.msra.mxu0 %v989_v16  ;;  %1975 = vmatpush3.msra.mxu1 %v989_v16 }
 0x2e5   :  { %v3026_v26 = vsub.f32 %v2746_v34, %v928_v12  ;;  %1915 = vmatprep.subr.mxu0 %v988_v10  ;;  %1960 = vmatprep.subr.mxu1 %v988_v10  ;;  %v985_v30 = vmul.f32 %v3023_v19, %v3023_v19 }
 0x2e6   :  { %1916 = vmatpush3.msra.mxu0 %v988_v10  ;;  %1976 = vmatpush3.msra.mxu1 %v988_v10  ;;  %v3070_v60 = vpop.permute.xlu1 %1259 }
 0x2e7   :  { %v986_v23 = vmul.f32 %v3026_v26, %v3026_v26  ;;  %1917 = vmatprep.subr.mxu0 %v987_v31  ;;  %1961 = vmatprep.subr.mxu1 %v987_v31 }
 0x2e8   :  { %v922_v28 = vpop.xlane.xlu0 %921  ;;  %1918 = vmatpush3.msra.mxu0 %v987_v31  ;;  %1977 = vmatpush3.msra.mxu1 %v987_v31 }
 0x2e9   :  { %v3033_v55 = vsub.f32 %v2758_v61, %v922_v28  ;;  %1919 = vmatprep.subr.mxu0 %v986_v23  ;;  %1962 = vmatprep.subr.mxu1 %v986_v23 }
 0x2ea   :  { %1920 = vmatpush3.msra.mxu0 %v986_v23  ;;  %1978 = vmatpush3.msra.mxu1 %v986_v23  ;;  %v3075_v53 = vpop.permute.xlu1 %1269 }
 0x2eb   :  { %v984_v34 = vmul.f32 %v3033_v55, %v3033_v55  ;;  %1921 = vmatprep.subr.mxu0 %v985_v30  ;;  %1963 = vmatprep.subr.mxu1 %v985_v30 }
 0x2ec   :  { %1922 = vmatpush3.msra.mxu0 %v985_v30  ;;  %1979 = vmatpush3.msra.mxu1 %v985_v30 }
 0x2ed   :  { %1923 = vmatprep.subr.mxu0 %v984_v34  ;;  %1964 = vmatprep.subr.mxu1 %v984_v34 }
 0x2ee   :  { %1924 = vmatpush3.msra.mxu0 %v984_v34  ;;  %1980 = vmatpush3.msra.mxu1 %v984_v34  ;;  %v3077_v8 = vpop.permute.xlu1 %1274 }
 0x2ef   :  { %1926 = vmatmul.mubr.f32.vlgmr.msra.gmra.mxu0 %v2765_v24  ;;  %1938 = vmatmul.mubr.f32.vlgmr.msra.gmra.mxu1 %v2812_v44 }
 0x2f0   :  { %1928 = vmatprep.mubr.f32.mxu0 %v2771_v25  ;;  %1940 = vmatprep.mubr.f32.mxu1 %v2817_v21  ;;  %v1265_v7 = vpop.permute.xlu0 %1264 }
 0x2f2   :  { %v3081_v16 = vpop.permute.xlu1 %1284 }
 0x2f3   :  { %1929 = vmatmul.mubr.f32.gmra.mxu0 %v2779_v20  ;;  %1941 = vmatmul.mubr.f32.gmra.mxu1 %v2824_v41 }
 0x2f4   :  { %1931 = vmatprep.mubr.f32.mxu0 %v2784_v22  ;;  %1943 = vmatprep.mubr.f32.mxu1 %v2829_v43  ;;  %v3079_v49 = vpop.permute.xlu0 %1279 }
 0x2f6   :  { %v3085_v10 = vpop.permute.xlu1 %1294 }
 0x2f7   :  { %1932 = vmatmul.mubr.f32.gmra.mxu0 %v2791_v42  ;;  %1944 = vmatmul.mubr.f32.gmra.mxu1 %v2836_v5 }
 0x2f8   :  { %1934 = vmatprep.mubr.f32.mxu0 %v2796_v18  ;;  %1946 = vmatprep.mubr.f32.mxu1 %v2841_v46  ;;  %v3083_v56 = vpop.permute.xlu0 %1289 }
 0x2fa   :  { %v3089_v31 = vpop.permute.xlu1 %1304 }
 0x2fb   :  { %1935 = vmatmul.mubr.f32.gmra.mxu0 %v2803_v27  ;;  %1947 = vmatmul.mubr.f32.gmra.mxu1 %v2848_v52 }
 0x2fc   :  { %v3087_v12 = vpop.permute.xlu0 %1299 }
 0x2fe   :  { %v3093_v28 = vpop.permute.xlu1 %1314 }
 0x300   :  { %v3091_v23 = vpop.permute.xlu0 %1309 }
 0x302   :  { %v3097_v34 = vpop.permute.xlu1 %1324 }
 0x304   :  { %v3095_v30 = vpop.permute.xlu0 %1319 }
 0x3af   :  { %v1927_v61 = vpop.f32.mrf.mxu0  ;;  %v1939_v24 = vpop.f32.mrf.mxu1 }
 0x3b0   :  { %v1148_v25 = vsel %vm919_vm1, %v1927_v61, 0.0  ;;  %v1172_v42 = vsel %vm919_vm1, %v1939_v24, 0.0  ;;  %v3099_v61 = vpop.permute.xlu0 %1329  ;;  %v3101_v24 = vpop.permute.xlu1 %1334 }
 0x3b1   :  { %1149 = vadd.xlane.f32.xlu0 %v1148_v25  ;;  %v1066_v20 = vpop.f32.mrf.mxu0  ;;  %v1106_v44 = vpop.f32.mrf.mxu1 }
 0x3b2   :  { %v1145_v22 = vsel %vm919_vm1, %v1066_v20, 0.0  ;;  %v1169_v18 = vsel %vm919_vm1, %v1106_v44, 0.0 }
 0x3b3   :  { %1146 = vadd.xlane.f32.xlu1 %v1145_v22  ;;  %v1930_v21 = vpop.f32.mrf.mxu0  ;;  %v1942_v43 = vpop.f32.mrf.mxu1 }
 0x3b4   :  { %v1154_v27 = vsel %vm919_vm1, %v1930_v21, 0.0  ;;  %v1178_v46 = vsel %vm919_vm1, %v1942_v43, 0.0  ;;  %v1372_v25 = vpop.permute.xlu0 %1371  ;;  %v1377_v20 = vpop.permute.xlu1 %1376 }
 0x3b5   :  { %1173 = vadd.xlane.f32.xlu0 %v1172_v42  ;;  %v1076_v41 = vpop.f32.mrf.mxu0  ;;  %v1116_v52 = vpop.f32.mrf.mxu1 }
 0x3b6   :  { %v1151_v5 = vsel %vm919_vm1, %v1076_v41, 0.0  ;;  %v1175_v33 = vsel %vm919_vm1, %v1116_v52, 0.0 }
 0x3b7   :  { %1170 = vadd.xlane.f32.xlu1 %v1169_v18  ;;  %v1933_v32 = vpop.f32.mrf.mxu0  ;;  %v1945_v14 = vpop.f32.mrf.mxu1 }
 0x3b8   :  { %v1160_v40 = vsel %vm919_vm1, %v1933_v32, 0.0  ;;  %v1184_v17 = vsel %vm919_vm1, %v1945_v14, 0.0  ;;  %v3103_v22 = vpop.permute.xlu0 %1381  ;;  %v3105_v42 = vpop.permute.xlu1 %1386 }
 0x3b9   :  { %1155 = vadd.xlane.f32.xlu0 %v1154_v27  ;;  %v1086_v51 = vpop.f32.mrf.mxu0  ;;  %v1126_v39 = vpop.f32.mrf.mxu1 }
 0x3ba   :  { %v1157_v36 = vsel %vm919_vm1, %v1086_v51, 0.0  ;;  %v1181_v29 = vsel %vm919_vm1, %v1126_v39, 0.0 }
 0x3bb   :  { %1152 = vadd.xlane.f32.xlu1 %v1151_v5  ;;  %v1936_v2 = vpop.f32.mrf.mxu0  ;;  %v1948_v47 = vpop.f32.mrf.mxu1 }
 0x3bc   :  { %v1166_v35 = vsel %vm919_vm1, %v1936_v2, 0.0  ;;  %v1190_v63 = vsel %vm919_vm1, %v1948_v47, 0.0  ;;  %v3107_v44 = vpop.permute.xlu0 %1391  ;;  %v3109_v21 = vpop.permute.xlu1 %1396 }
 0x3bd   :  { %1179 = vadd.xlane.f32.xlu0 %v1178_v46  ;;  %v1096_v3 = vpop.f32.mrf.mxu0  ;;  %v1136_v50 = vpop.f32.mrf.mxu1 }
 0x3be   :  { %v1163_v37 = vsel %vm919_vm1, %v1096_v3, 0.0  ;;  %v1187_v62 = vsel %vm919_vm1, %v1136_v50, 0.0 }
 0x3bf   :  { %1176 = vadd.xlane.f32.xlu1 %v1175_v33 }
 0x3c0   :  { %v3111_v18 = vpop.permute.xlu0 %1401  ;;  %v3113_v27 = vpop.permute.xlu1 %1406 }
 0x3c1   :  { %1161 = vadd.xlane.f32.xlu0 %v1160_v40 }
 0x3c3   :  { %1158 = vadd.xlane.f32.xlu1 %v1157_v36 }
 0x3c4   :  { %v3115_v41 = vpop.permute.xlu0 %1411  ;;  %v1417_v43 = vpop.permute.xlu1 %1416 }
 0x3c5   :  { %1185 = vadd.xlane.f32.xlu0 %v1184_v17 }
 0x3c7   :  { %1182 = vadd.xlane.f32.xlu1 %v1181_v29 }
 0x3c8   :  { %v3117_v5 = vpop.permute.xlu0 %1421  ;;  %v3119_v46 = vpop.permute.xlu1 %1426 }
 0x3c9   :  { %1167 = vadd.xlane.f32.xlu0 %v1166_v35 }
 0x3cb   :  { %1164 = vadd.xlane.f32.xlu1 %v1163_v37 }
 0x3cc   :  { %v3121_v52 = vpop.permute.xlu0 %1431  ;;  %v3123_v32 = vpop.permute.xlu1 %1436 }
 0x3cd   :  { %1191 = vadd.xlane.f32.xlu0 %v1190_v63 }
 0x3cf   :  { %1188 = vadd.xlane.f32.xlu1 %v1187_v62 }
 0x3e0   :  { %1446 = vperm.xlu1 %1983, %v1368_v58  }
 0x3e3   :  { %1441 = vperm.xlu0 %1982, %v1367_v1  }
 0x43a   :  { %v1150_v33 = vpop.xlane.xlu0 %1149 }
 0x43b   :  { %v1194_v40 = vadd.f32 1e-05, %v1150_v33 }
 0x43c   :  { %v1147_v51 = vpop.xlane.xlu1 %1146 }
 0x43d   :  { %1984 = vrsqrt.f32 %v1194_v40  ;;  %v1193_v14 = vadd.f32 1e-05, %v1147_v51 }
 0x43e   :  { %v1174_v36 = vpop.xlane.xlu0 %1173 }
 0x43f   :  { %1986 = vrsqrt.f32 %v1193_v14  ;;  %v1202_v17 = vadd.f32 1e-05, %v1174_v36 }
 0x440   :  { %v1171_v39 = vpop.xlane.xlu1 %1170 }
 0x441   :  { %1988 = vrsqrt.f32 %v1202_v17  ;;  %v1201_v2 = vadd.f32 1e-05, %v1171_v39 }
 0x442   :  { %v1156_v29 = vpop.xlane.xlu0 %1155 }
 0x443   :  { %1990 = vrsqrt.f32 %v1201_v2  ;;  %v1196_v35 = vadd.f32 1e-05, %v1156_v29 }
 0x444   :  { %v1153_v3 = vpop.xlane.xlu1 %1152 }
 0x445   :  { %1992 = vrsqrt.f32 %v1196_v35  ;;  %v1195_v47 = vadd.f32 1e-05, %v1153_v3 }
 0x446   :  { %v1180_v37 = vpop.xlane.xlu0 %1179 }
 0x447   :  { %1994 = vrsqrt.f32 %v1195_v47  ;;  %v1204_v63 = vadd.f32 1e-05, %v1180_v37 }
 0x448   :  { %v1177_v50 = vpop.xlane.xlu1 %1176 }
 0x449   :  { %1996 = vrsqrt.f32 %v1204_v63  ;;  %v1203_v62 = vadd.f32 1e-05, %v1177_v50 }
 0x44a   :  { %v1985_v58 = vpop.eup %1984  ;;  %v1162_v1 = vpop.xlane.xlu0 %1161 }
 0x44b   :  { %v1226_v33 = vmul.f32 %v1985_v58, %v3023_v19  ;;  %1998 = vrsqrt.f32 %v1203_v62  ;;  %v1198_v40 = vadd.f32 1e-05, %v1162_v1  ;;  %v1482_v19 = vld [vmem:[%s3285_s6 + $0x8] sm:$0xff] }
 0x44c   :  { %v1987_v51 = vpop.eup %1986  ;;  %v1159_v14 = vpop.xlane.xlu1 %1158 }
 0x44d   :  { %v1338_v36 = vmul.f32 %v1265_v7, %v1226_v33  ;;  %v1225_v17 = vmul.f32 %v1987_v51, %v3033_v55  ;;  %2000 = vrsqrt.f32 %v1198_v40  ;;  %v1197_v39 = vadd.f32 1e-05, %v1159_v14 }
 0x44e   :  { %v1989_v2 = vpop.eup %1988  ;;  %v1186_v29 = vpop.xlane.xlu0 %1185 }
 0x44f   :  { %v1450_v35 = vadd.f32 %v1377_v20, %v1338_v36  ;;  %v1337_v3 = vmul.f32 %v3070_v60, %v1225_v17  ;;  %v1234_v47 = vmul.f32 %v1989_v2, %v2983_v13  ;;  %2002 = vrsqrt.f32 %v1197_v39  ;;  %v1481_v60 = vld [vmem:[%s3285_s6] sm:$0xff] }
 0x450   :  { %v1991_v37 = vpop.eup %1990  ;;  %v1206_v63 = vadd.f32 1e-05, %v1186_v29  ;;  %v1183_v50 = vpop.xlane.xlu1 %1182 }
 0x451   :  { %v1466_v7 = vmax.f32 %v1450_v35, 0.0  ;;  %v1449_v62 = vadd.f32 %v1372_v25, %v1337_v3  ;;  %v1346_v55 = vmul.f32 %v3089_v31, %v1234_v47  ;;  %v1233_v58 = vmul.f32 %v1991_v37, %v2996_v4  ;;  %v1490_v31 = vld [vmem:[%s3285_s6 + $0x48] sm:$0xff]  ;;  %v1489_v35 = vld [vmem:[%s3285_s6 + $0x40] sm:$0xff] }
 0x452   :  { %v1993_v1 = vpop.eup %1992  ;;  %2004 = vrsqrt.f32 %v1206_v63  ;;  %v1205_v13 = vadd.f32 1e-05, %v1183_v50  ;;  %v1168_v20 = vpop.xlane.xlu0 %1167 }
 0x453   :  { %v1498_v33 = vadd.f32 %v1482_v19, %v1466_v7  ;;  %v1465_v40 = vmax.f32 %v1449_v62, 0.0  ;;  %v1458_v51 = vadd.f32 %v1417_v43, %v1346_v55  ;;  %v1345_v14 = vmul.f32 %v3087_v12, %v1233_v58  ;;  %v1484_v55 = vld [vmem:[%s3285_s6 + $0x18] sm:$0xff] }
 0x454   :  { %v1995_v36 = vpop.eup %1994  ;;  %v1228_v4 = vmul.f32 %v1993_v1, %v3013_v54  ;;  %2006 = vrsqrt.f32 %v1205_v13  ;;  %v1200_v25 = vadd.f32 1e-05, %v1168_v20  ;;  %v1165_v17 = vpop.xlane.xlu1 %1164 }
 0x455   :  { %1514 = vst.msk [vmem:[%s3286_s7 + $0x8] sm:$0xff] %vm919_vm1, %v1498_v33  ;;  %v1497_v39 = vadd.f32 %v1481_v60, %v1465_v40  ;;  %v1474_v2 = vmax.f32 %v1458_v51, 0.0  ;;  %v1457_v43 = vadd.f32 %v3115_v41, %v1345_v14  ;;  %v1227_v12 = vmul.f32 %v1995_v36, %v3026_v26  ;;  %v1483_v60 = vld [vmem:[%s3285_s6 + $0x10] sm:$0xff]  ;;  %v1492_v51 = vld [vmem:[%s3285_s6 + $0x58] sm:$0xff] }
 0x456   :  { %v1997_v29 = vpop.eup %1996  ;;  %v1340_v54 = vmul.f32 %v3077_v8, %v1228_v4  ;;  %2008 = vrsqrt.f32 %v1200_v25  ;;  %v1199_v3 = vadd.f32 1e-05, %v1165_v17  ;;  %v1192_v47 = vpop.xlane.xlu0 %1191  ;;  %v1486_v17 = vld [vmem:[%s3285_s6 + $0x28] sm:$0xff] }
 0x457   :  { %1513 = vst.msk [vmem:[%s3286_s7] sm:$0xff] %vm919_vm1, %v1497_v39  ;;  %v1506_v37 = vadd.f32 %v1490_v31, %v1474_v2  ;;  %v1473_v19 = vmax.f32 %v1457_v43, 0.0  ;;  %v1339_v41 = vmul.f32 %v3075_v53, %v1227_v12  ;;  %v1236_v26 = vmul.f32 %v1997_v29, %v2973_v15 }
 0x458   :  { %v1999_v63 = vpop.eup %1998  ;;  %v1452_v50 = vadd.f32 %v3105_v42, %v1340_v54  ;;  %2010 = vrsqrt.f32 %v1199_v3  ;;  %v1208_v7 = vadd.f32 1e-05, %v1192_v47  ;;  %v1189_v8 = vpop.xlane.xlu1 %1188 }
 0x459   :  { %1522 = vst.msk [vmem:[%s3286_s7 + $0x48] sm:$0xff] %vm919_vm1, %v1506_v37  ;;  %v1505_v62 = vadd.f32 %v1489_v35, %v1473_v19  ;;  %v1451_v53 = vadd.f32 %v3103_v22, %v1339_v41  ;;  %v1348_v15 = vmul.f32 %v3093_v28, %v1236_v26  ;;  %v1235_v58 = vmul.f32 %v1999_v63, %v2986_v0 }
 0x45a   :  { %v2001_v42 = vpop.eup %2000  ;;  %v1468_v1 = vmax.f32 %v1452_v50, 0.0  ;;  %2012 = vrsqrt.f32 %v1208_v7  ;;  %v1207_v13 = vadd.f32 1e-05, %v1189_v8 }
 0x45b   :  { %1521 = vst.msk [vmem:[%s3286_s7 + $0x40] sm:$0xff] %vm919_vm1, %v1505_v62  ;;  %v1467_v20 = vmax.f32 %v1451_v53, 0.0  ;;  %v1460_v22 = vadd.f32 %v3119_v46, %v1348_v15  ;;  %v1347_v28 = vmul.f32 %v3091_v23, %v1235_v58  ;;  %v1230_v0 = vmul.f32 %v2001_v42, %v3003_v6  ;;  %v1491_v6 = vld [vmem:[%s3285_s6 + $0x50] sm:$0xff] }
 0x45c   :  { %v2003_v33 = vpop.eup %2002  ;;  %v1500_v40 = vadd.f32 %v1484_v55, %v1468_v1  ;;  %2014 = vrsqrt.f32 %v1207_v13  ;;  %v1447_v58 = vpop.permute.xlu1 %1446  ;;  %v1487_v42 = vld [vmem:[%s3285_s6 + $0x30] sm:$0xff] }
 0x45d   :  { %v1499_v14 = vadd.f32 %v1483_v60, %v1467_v20  ;;  %v1476_v36 = vmax.f32 %v1460_v22, 0.0  ;;  %v1459_v31 = vadd.f32 %v3117_v5, %v1347_v28  ;;  %v1342_v4 = vmul.f32 %v3081_v16, %v1230_v0  ;;  %v1495_v28 = vld [vmem:[%s3285_s6 + $0x70] sm:$0xff] }
 0x45e   :  { %1516 = vst.msk [vmem:[%s3286_s7 + $0x18] sm:$0xff] %vm919_vm1, %v1500_v40  ;;  %v1229_v23 = vmul.f32 %v2003_v33, %v3016_v11 }
 0x45f   :  { %v2005_v46 = vpop.eup %2004  ;;  %1515 = vst.msk [vmem:[%s3286_s7 + $0x10] sm:$0xff] %vm919_vm1, %v1499_v14  ;;  %v1508_v5 = vadd.f32 %v1492_v51, %v1476_v36  ;;  %v1475_v25 = vmax.f32 %v1459_v31, 0.0  ;;  %v1454_v16 = vadd.f32 %v3109_v21, %v1342_v4 }
 0x460   :  { %v1341_v39 = vmul.f32 %v3079_v49, %v1229_v23  ;;  %v1238_v2 = vmul.f32 %v2005_v46, %v2968_v45  ;;  %v1485_v49 = vld [vmem:[%s3285_s6 + $0x20] sm:$0xff] }
 0x461   :  { %v2007_v43 = vpop.eup %2006  ;;  %1524 = vst.msk [vmem:[%s3286_s7 + $0x58] sm:$0xff] %vm919_vm1, %v1508_v5  ;;  %v1507_v11 = vadd.f32 %v1491_v6, %v1475_v25  ;;  %v1470_v12 = vmax.f32 %v1454_v16, 0.0 }
 0x462   :  { %v1453_v29 = vadd.f32 %v3107_v44, %v1341_v39  ;;  %v1350_v21 = vmul.f32 %v3097_v34, %v1238_v2  ;;  %v1237_v35 = vmul.f32 %v2007_v43, %v2976_v48  ;;  %v1494_v48 = vld [vmem:[%s3285_s6 + $0x68] sm:$0xff] }
 0x463   :  { %v2009_v54 = vpop.eup %2008  ;;  %1523 = vst.msk [vmem:[%s3286_s7 + $0x50] sm:$0xff] %vm919_vm1, %v1507_v11  ;;  %v1502_v45 = vadd.f32 %v1486_v17, %v1470_v12 }
 0x464   :  { %v1469_v3 = vmax.f32 %v1453_v29, 0.0  ;;  %v1462_v47 = vadd.f32 %v3123_v32, %v1350_v21  ;;  %v1349_v44 = vmul.f32 %v3095_v30, %v1237_v35  ;;  %v1232_v34 = vmul.f32 %v2009_v54, %v2993_v57  ;;  %v1493_v57 = vld [vmem:[%s3285_s6 + $0x60] sm:$0xff] }
 0x465   :  { %v2011_v37 = vpop.eup %2010  ;;  %1518 = vst.msk [vmem:[%s3286_s7 + $0x28] sm:$0xff] %vm919_vm1, %v1502_v45 }
 0x466   :  { %v1501_v19 = vadd.f32 %v1485_v49, %v1469_v3  ;;  %v1478_v41 = vmax.f32 %v1462_v47, 0.0  ;;  %v1461_v26 = vadd.f32 %v3121_v52, %v1349_v44  ;;  %v1344_v32 = vmul.f32 %v3085_v10, %v1232_v34  ;;  %v1488_v10 = vld [vmem:[%s3285_s6 + $0x38] sm:$0xff] }
 0x467   :  { %v2013_v63 = vpop.eup %2012  ;;  %v1231_v30 = vmul.f32 %v2011_v37, %v3006_v9 }
 0x468   :  { %1517 = vst.msk [vmem:[%s3286_s7 + $0x20] sm:$0xff] %vm919_vm1, %v1501_v19  ;;  %v1510_v50 = vadd.f32 %v1494_v48, %v1478_v41  ;;  %v1477_v7 = vmax.f32 %v1461_v26, 0.0  ;;  %v1456_v8 = vadd.f32 %v3113_v27, %v1344_v32  ;;  %v1240_v52 = vmul.f32 %v2013_v63, %v2958_v38 }
 0x469   :  { %v2015_v62 = vpop.eup %2014  ;;  %v1343_v55 = vmul.f32 %v3083_v56, %v1231_v30 }
 0x46a   :  { %1526 = vst.msk [vmem:[%s3286_s7 + $0x68] sm:$0xff] %vm919_vm1, %v1510_v50  ;;  %v1509_v9 = vadd.f32 %v1493_v57, %v1477_v7  ;;  %v1472_v53 = vmax.f32 %v1456_v8, 0.0  ;;  %v1352_v15 = vmul.f32 %v3101_v24, %v1240_v52  ;;  %v1239_v27 = vmul.f32 %v2015_v62, %v2963_v59  ;;  %v1496_v59 = vld [vmem:[%s3285_s6 + $0x78] sm:$0xff]  ;;  %v1442_v24 = vpop.permute.xlu0 %1441 }
 0x46b   :  { %v1455_v38 = vadd.f32 %v3111_v18, %v1343_v55 }
 0x46c   :  { %1525 = vst.msk [vmem:[%s3286_s7 + $0x60] sm:$0xff] %vm919_vm1, %v1509_v9  ;;  %v1504_v56 = vadd.f32 %v1488_v10, %v1472_v53  ;;  %v1464_v1 = vadd.f32 %v1447_v58, %v1352_v15  ;;  %v1351_v60 = vmul.f32 %v3099_v61, %v1239_v27 }
 0x46d   :  { %v1471_v13 = vmax.f32 %v1455_v38, 0.0 }
 0x46e   :  { %1520 = vst.msk [vmem:[%s3286_s7 + $0x38] sm:$0xff] %vm919_vm1, %v1504_v56  ;;  %v1480_v18 = vmax.f32 %v1464_v1, 0.0  ;;  %v1463_v20 = vadd.f32 %v1442_v24, %v1351_v60 }
 0x46f   :  { %v1503_v22 = vadd.f32 %v1487_v42, %v1471_v13 }
 0x470   :  { %v1512_v0 = vadd.f32 %v1496_v59, %v1480_v18  ;;  %v1479_v61 = vmax.f32 %v1463_v20, 0.0 }
 0x471   :  { %1519 = vst.msk [vmem:[%s3286_s7 + $0x30] sm:$0xff] %vm919_vm1, %v1503_v22 }
 0x472   :  { %1528 = vst.msk [vmem:[%s3286_s7 + $0x78] sm:$0xff] %vm919_vm1, %v1512_v0  ;;  %v1511_v33 = vadd.f32 %v1495_v28, %v1479_v61 }
 0x474   :  { %1527 = vst.msk [vmem:[%s3286_s7 + $0x70] sm:$0xff] %vm919_vm1, %v1511_v33 }

// kernel: _lambda_.8
= control target key start
LH: loop header
LB: loop body
LE: loop exit
PB: predicated region body
PF: predicated region fallthrough
CT: control target
= control target key end

     0   :  { %vm1137_vm0 = vcmask 130048   ;;  %vm1376_vm1 = vcmask 719872   ;;  %s3481_s0 = inlined_call_operand.vmem [shape: f32[640,600], index: 0, kind: input, shape index: {}]   ;;  %s3482_s1 = inlined_call_operand.vmem [shape: f32[16,640], index: 1, kind: input, shape index: {}]   ;;  %s3483_s2 = inlined_call_operand.vmem [shape: f32[16,1], index: 2, kind: input, shape index: {}]   ;;  %s3484_s5 = inlined_call_operand.vmem [shape: f32[16,16], index: 5, kind: input, shape index: {}]   ;;  %s3485_s3 = inlined_call_operand.vmem [shape: f32[16,1], index: 3, kind: input, shape index: {}]   ;;  %s3486_s4 = inlined_call_operand.vmem [shape: f32[16,1], index: 4, kind: input, shape index: {}]   ;;  %s3487_s6 = inlined_call_operand.vmem [shape: f32[16,600], index: 6, kind: input, shape index: {}]   ;;  %s3488_s7 = inlined_call_operand.vmem [shape: f32[16,600], index: 7, kind: output, shape index: {}]  }
   0x1   :  { %v112_v0 = vld [vmem:[%s3481_s0 + $0x260] sm:$0xff]  ;;  %v111_v1 = vld [vmem:[%s3481_s0 + $0x258] sm:$0xff]  ;;  %v106_v4 = vld [vmem:[%s3481_s0 + $0x230] sm:$0xff] }
   0x2   :  { %v107_v2 = vld [vmem:[%s3481_s0 + $0x238] sm:$0xff]  ;;  %448 = vmatprep.subr.mxu0 %v112_v0  ;;  %v272_v3 = vld [vmem:[%s3481_s0 + $0x760] sm:$0xff]  ;;  %v102_v6 = vld [vmem:[%s3481_s0 + $0x210] sm:$0xff] }
   0x3   :  { %v271_v5 = vld [vmem:[%s3481_s0 + $0x758] sm:$0xff]  ;;  %449 = vmatpush1.msra.mxu0 %v111_v1  ;;  %525 = vmatprep.subr.mxu1 %v272_v3  ;;  %v101_v8 = vld [vmem:[%s3481_s0 + $0x208] sm:$0xff]  ;;  %v266_v9 = vld [vmem:[%s3481_s0 + $0x730] sm:$0xff] }
   0x4   :  { %v267_v7 = vld [vmem:[%s3481_s0 + $0x738] sm:$0xff]  ;;  %450 = vmatprep.subr.mxu0 %v107_v2  ;;  %526 = vmatpush1.msra.mxu1 %v271_v5  ;;  %v262_v10 = vld [vmem:[%s3481_s0 + $0x710] sm:$0xff]  ;;  %v97_v11 = vld [vmem:[%s3481_s0 + $0x1e8] sm:$0xff] }
   0x5   :  { %451 = vmatpush1.msra.mxu0 %v106_v4  ;;  %527 = vmatprep.subr.mxu1 %v267_v7  ;;  %v261_v12 = vld [vmem:[%s3481_s0 + $0x708] sm:$0xff]  ;;  %v96_v13 = vld [vmem:[%s3481_s0 + $0x1e0] sm:$0xff]  ;;  %v91_v17 = vld [vmem:[%s3481_s0 + $0x1b8] sm:$0xff] }
   0x6   :  { %452 = vmatprep.subr.mxu0 %v102_v6  ;;  %528 = vmatpush1.msra.mxu1 %v266_v9  ;;  %v257_v14 = vld [vmem:[%s3481_s0 + $0x6e8] sm:$0xff]  ;;  %v92_v15 = vld [vmem:[%s3481_s0 + $0x1c0] sm:$0xff]  ;;  %v87_v19 = vld [vmem:[%s3481_s0 + $0x198] sm:$0xff] }
   0x7   :  { %453 = vmatpush1.msra.mxu0 %v101_v8  ;;  %529 = vmatprep.subr.mxu1 %v262_v10  ;;  %v256_v16 = vld [vmem:[%s3481_s0 + $0x6e0] sm:$0xff]  ;;  %v251_v20 = vld [vmem:[%s3481_s0 + $0x6b8] sm:$0xff]  ;;  %v86_v21 = vld [vmem:[%s3481_s0 + $0x190] sm:$0xff] }
   0x8   :  { %454 = vmatprep.subr.mxu0 %v97_v11  ;;  %530 = vmatpush1.msra.mxu1 %v261_v12  ;;  %v252_v18 = vld [vmem:[%s3481_s0 + $0x6c0] sm:$0xff]  ;;  %v247_v22 = vld [vmem:[%s3481_s0 + $0x698] sm:$0xff]  ;;  %v82_v23 = vld [vmem:[%s3481_s0 + $0x170] sm:$0xff] }
   0x9   :  { %455 = vmatpush1.msra.mxu0 %v96_v13  ;;  %531 = vmatprep.subr.mxu1 %v257_v14  ;;  %v246_v24 = vld [vmem:[%s3481_s0 + $0x690] sm:$0xff]  ;;  %v81_v25 = vld [vmem:[%s3481_s0 + $0x168] sm:$0xff]  ;;  %v76_v29 = vld [vmem:[%s3481_s0 + $0x140] sm:$0xff] }
   0xa   :  { %456 = vmatprep.subr.mxu0 %v92_v15  ;;  %532 = vmatpush1.msra.mxu1 %v256_v16  ;;  %v242_v26 = vld [vmem:[%s3481_s0 + $0x670] sm:$0xff]  ;;  %v77_v27 = vld [vmem:[%s3481_s0 + $0x148] sm:$0xff]  ;;  %v72_v31 = vld [vmem:[%s3481_s0 + $0x120] sm:$0xff] }
   0xb   :  { %457 = vmatpush1.msra.mxu0 %v91_v17  ;;  %533 = vmatprep.subr.mxu1 %v252_v18  ;;  %v241_v28 = vld [vmem:[%s3481_s0 + $0x668] sm:$0xff]  ;;  %v236_v32 = vld [vmem:[%s3481_s0 + $0x640] sm:$0xff]  ;;  %v71_v33 = vld [vmem:[%s3481_s0 + $0x118] sm:$0xff] }
   0xc   :  { %458 = vmatprep.subr.mxu0 %v87_v19  ;;  %534 = vmatpush1.msra.mxu1 %v251_v20  ;;  %v237_v30 = vld [vmem:[%s3481_s0 + $0x648] sm:$0xff]  ;;  %v232_v34 = vld [vmem:[%s3481_s0 + $0x620] sm:$0xff]  ;;  %v67_v35 = vld [vmem:[%s3481_s0 + $0xf8] sm:$0xff] }
   0xd   :  { %459 = vmatpush1.msra.mxu0 %v86_v21  ;;  %535 = vmatprep.subr.mxu1 %v247_v22  ;;  %v231_v36 = vld [vmem:[%s3481_s0 + $0x618] sm:$0xff]  ;;  %v66_v37 = vld [vmem:[%s3481_s0 + $0xf0] sm:$0xff]  ;;  %v61_v41 = vld [vmem:[%s3481_s0 + $0xc8] sm:$0xff] }
   0xe   :  { %460 = vmatprep.subr.mxu0 %v82_v23  ;;  %536 = vmatpush1.msra.mxu1 %v246_v24  ;;  %v227_v38 = vld [vmem:[%s3481_s0 + $0x5f8] sm:$0xff]  ;;  %v62_v39 = vld [vmem:[%s3481_s0 + $0xd0] sm:$0xff]  ;;  %v57_v43 = vld [vmem:[%s3481_s0 + $0xa8] sm:$0xff] }
   0xf   :  { %461 = vmatpush1.msra.mxu0 %v81_v25  ;;  %537 = vmatprep.subr.mxu1 %v242_v26  ;;  %v226_v40 = vld [vmem:[%s3481_s0 + $0x5f0] sm:$0xff]  ;;  %v221_v44 = vld [vmem:[%s3481_s0 + $0x5c8] sm:$0xff]  ;;  %v56_v45 = vld [vmem:[%s3481_s0 + $0xa0] sm:$0xff] }
  0x10   :  { %462 = vmatprep.subr.mxu0 %v77_v27  ;;  %538 = vmatpush1.msra.mxu1 %v241_v28  ;;  %v222_v42 = vld [vmem:[%s3481_s0 + $0x5d0] sm:$0xff]  ;;  %v217_v46 = vld [vmem:[%s3481_s0 + $0x5a8] sm:$0xff]  ;;  %v52_v47 = vld [vmem:[%s3481_s0 + $0x80] sm:$0xff] }
  0x11   :  { %463 = vmatpush1.msra.mxu0 %v76_v29  ;;  %539 = vmatprep.subr.mxu1 %v237_v30  ;;  %v216_v48 = vld [vmem:[%s3481_s0 + $0x5a0] sm:$0xff]  ;;  %v51_v49 = vld [vmem:[%s3481_s0 + $0x78] sm:$0xff]  ;;  %v46_v53 = vld [vmem:[%s3481_s0 + $0x50] sm:$0xff] }
  0x12   :  { %464 = vmatprep.subr.mxu0 %v72_v31  ;;  %540 = vmatpush1.msra.mxu1 %v236_v32  ;;  %v212_v50 = vld [vmem:[%s3481_s0 + $0x580] sm:$0xff]  ;;  %v47_v51 = vld [vmem:[%s3481_s0 + $0x58] sm:$0xff]  ;;  %v42_v55 = vld [vmem:[%s3481_s0 + $0x30] sm:$0xff] }
  0x13   :  { %465 = vmatpush1.msra.mxu0 %v71_v33  ;;  %541 = vmatprep.subr.mxu1 %v232_v34  ;;  %v211_v52 = vld [vmem:[%s3481_s0 + $0x578] sm:$0xff]  ;;  %v206_v56 = vld [vmem:[%s3481_s0 + $0x550] sm:$0xff]  ;;  %v41_v57 = vld [vmem:[%s3481_s0 + $0x28] sm:$0xff] }
  0x14   :  { %466 = vmatprep.subr.mxu0 %v67_v35  ;;  %542 = vmatpush1.msra.mxu1 %v231_v36  ;;  %v207_v54 = vld [vmem:[%s3481_s0 + $0x558] sm:$0xff]  ;;  %v202_v58 = vld [vmem:[%s3481_s0 + $0x530] sm:$0xff]  ;;  %v37_v59 = vld [vmem:[%s3481_s0 + $0x8] sm:$0xff] }
  0x15   :  { %467 = vmatpush1.msra.mxu0 %v66_v37  ;;  %543 = vmatprep.subr.mxu1 %v227_v38  ;;  %v201_v60 = vld [vmem:[%s3481_s0 + $0x528] sm:$0xff]  ;;  %v36_v61 = vld [vmem:[%s3481_s0] sm:$0xff]  ;;  %v191_v1 = vld [vmem:[%s3481_s0 + $0x4d8] sm:$0xff] }
  0x16   :  { %468 = vmatprep.subr.mxu0 %v62_v39  ;;  %544 = vmatpush1.msra.mxu1 %v226_v40  ;;  %v197_v62 = vld [vmem:[%s3481_s0 + $0x508] sm:$0xff]  ;;  %v192_v63 = vld [vmem:[%s3481_s0 + $0x4e0] sm:$0xff]  ;;  %v187_v3 = vld [vmem:[%s3481_s0 + $0x4b8] sm:$0xff] }
  0x17   :  { %469 = vmatpush1.msra.mxu0 %v61_v41  ;;  %545 = vmatprep.subr.mxu1 %v222_v42  ;;  %v196_v0 = vld [vmem:[%s3481_s0 + $0x500] sm:$0xff]  ;;  %v351_v4 = vld [vmem:[%s3481_s0 + $0x9d8] sm:$0xff]  ;;  %v186_v5 = vld [vmem:[%s3481_s0 + $0x4b0] sm:$0xff] }
  0x18   :  { %470 = vmatprep.subr.mxu0 %v57_v43  ;;  %546 = vmatpush1.msra.mxu1 %v221_v44  ;;  %v352_v2 = vld [vmem:[%s3481_s0 + $0x9e0] sm:$0xff]  ;;  %v347_v6 = vld [vmem:[%s3481_s0 + $0x9b8] sm:$0xff]  ;;  %v182_v7 = vld [vmem:[%s3481_s0 + $0x490] sm:$0xff] }
  0x19   :  { %471 = vmatpush1.msra.mxu0 %v56_v45  ;;  %547 = vmatprep.subr.mxu1 %v217_v46  ;;  %v346_v8 = vld [vmem:[%s3481_s0 + $0x9b0] sm:$0xff]  ;;  %v181_v9 = vld [vmem:[%s3481_s0 + $0x488] sm:$0xff]  ;;  %v176_v13 = vld [vmem:[%s3481_s0 + $0x460] sm:$0xff] }
  0x1a   :  { %472 = vmatprep.subr.mxu0 %v52_v47  ;;  %548 = vmatpush1.msra.mxu1 %v216_v48  ;;  %v342_v10 = vld [vmem:[%s3481_s0 + $0x990] sm:$0xff]  ;;  %v177_v11 = vld [vmem:[%s3481_s0 + $0x468] sm:$0xff]  ;;  %v172_v15 = vld [vmem:[%s3481_s0 + $0x440] sm:$0xff] }
  0x1b   :  { %473 = vmatpush1.msra.mxu0 %v51_v49  ;;  %549 = vmatprep.subr.mxu1 %v212_v50  ;;  %v341_v12 = vld [vmem:[%s3481_s0 + $0x988] sm:$0xff]  ;;  %v336_v16 = vld [vmem:[%s3481_s0 + $0x960] sm:$0xff]  ;;  %v171_v17 = vld [vmem:[%s3481_s0 + $0x438] sm:$0xff] }
  0x1c   :  { %474 = vmatprep.subr.mxu0 %v47_v51  ;;  %550 = vmatpush1.msra.mxu1 %v211_v52  ;;  %v337_v14 = vld [vmem:[%s3481_s0 + $0x968] sm:$0xff]  ;;  %v332_v18 = vld [vmem:[%s3481_s0 + $0x940] sm:$0xff]  ;;  %v167_v19 = vld [vmem:[%s3481_s0 + $0x418] sm:$0xff] }
  0x1d   :  { %475 = vmatpush1.msra.mxu0 %v46_v53  ;;  %551 = vmatprep.subr.mxu1 %v207_v54  ;;  %v331_v20 = vld [vmem:[%s3481_s0 + $0x938] sm:$0xff]  ;;  %v166_v21 = vld [vmem:[%s3481_s0 + $0x410] sm:$0xff]  ;;  %v161_v25 = vld [vmem:[%s3481_s0 + $0x3e8] sm:$0xff] }
  0x1e   :  { %476 = vmatprep.subr.mxu0 %v42_v55  ;;  %552 = vmatpush1.msra.mxu1 %v206_v56  ;;  %v327_v22 = vld [vmem:[%s3481_s0 + $0x918] sm:$0xff]  ;;  %v162_v23 = vld [vmem:[%s3481_s0 + $0x3f0] sm:$0xff]  ;;  %v157_v27 = vld [vmem:[%s3481_s0 + $0x3c8] sm:$0xff] }
  0x1f   :  { %477 = vmatpush1.msra.mxu0 %v41_v57  ;;  %553 = vmatprep.subr.mxu1 %v202_v58  ;;  %v326_v24 = vld [vmem:[%s3481_s0 + $0x910] sm:$0xff]  ;;  %v321_v28 = vld [vmem:[%s3481_s0 + $0x8e8] sm:$0xff]  ;;  %v156_v29 = vld [vmem:[%s3481_s0 + $0x3c0] sm:$0xff] }
  0x20   :  { %478 = vmatprep.subr.mxu0 %v37_v59  ;;  %554 = vmatpush1.msra.mxu1 %v201_v60  ;;  %v322_v26 = vld [vmem:[%s3481_s0 + $0x8f0] sm:$0xff]  ;;  %v317_v30 = vld [vmem:[%s3481_s0 + $0x8c8] sm:$0xff]  ;;  %v152_v31 = vld [vmem:[%s3481_s0 + $0x3a0] sm:$0xff] }
  0x21   :  { %479 = vmatpush1.msra.mxu0 %v36_v61  ;;  %555 = vmatprep.subr.mxu1 %v197_v62  ;;  %v316_v32 = vld [vmem:[%s3481_s0 + $0x8c0] sm:$0xff]  ;;  %v151_v33 = vld [vmem:[%s3481_s0 + $0x398] sm:$0xff]  ;;  %v146_v37 = vld [vmem:[%s3481_s0 + $0x370] sm:$0xff] }
  0x22   :  { %480 = vmatprep.subr.mxu0 %v192_v63  ;;  %556 = vmatpush1.msra.mxu1 %v196_v0  ;;  %v312_v34 = vld [vmem:[%s3481_s0 + $0x8a0] sm:$0xff]  ;;  %v147_v35 = vld [vmem:[%s3481_s0 + $0x378] sm:$0xff]  ;;  %v142_v39 = vld [vmem:[%s3481_s0 + $0x350] sm:$0xff] }
  0x23   :  { %481 = vmatpush2.msra.mxu0 %v191_v1  ;;  %557 = vmatprep.subr.mxu1 %v352_v2  ;;  %v311_v36 = vld [vmem:[%s3481_s0 + $0x898] sm:$0xff]  ;;  %v306_v40 = vld [vmem:[%s3481_s0 + $0x870] sm:$0xff]  ;;  %v141_v41 = vld [vmem:[%s3481_s0 + $0x348] sm:$0xff] }
  0x24   :  { %482 = vmatprep.subr.mxu0 %v187_v3  ;;  %558 = vmatpush2.msra.mxu1 %v351_v4  ;;  %v307_v38 = vld [vmem:[%s3481_s0 + $0x878] sm:$0xff]  ;;  %v302_v42 = vld [vmem:[%s3481_s0 + $0x850] sm:$0xff]  ;;  %v137_v43 = vld [vmem:[%s3481_s0 + $0x328] sm:$0xff] }
  0x25   :  { %483 = vmatpush2.msra.mxu0 %v186_v5  ;;  %559 = vmatprep.subr.mxu1 %v347_v6  ;;  %v301_v44 = vld [vmem:[%s3481_s0 + $0x848] sm:$0xff]  ;;  %v136_v45 = vld [vmem:[%s3481_s0 + $0x320] sm:$0xff]  ;;  %v131_v49 = vld [vmem:[%s3481_s0 + $0x2f8] sm:$0xff] }
  0x26   :  { %484 = vmatprep.subr.mxu0 %v182_v7  ;;  %560 = vmatpush2.msra.mxu1 %v346_v8  ;;  %v297_v46 = vld [vmem:[%s3481_s0 + $0x828] sm:$0xff]  ;;  %v132_v47 = vld [vmem:[%s3481_s0 + $0x300] sm:$0xff]  ;;  %v127_v51 = vld [vmem:[%s3481_s0 + $0x2d8] sm:$0xff] }
  0x27   :  { %485 = vmatpush2.msra.mxu0 %v181_v9  ;;  %561 = vmatprep.subr.mxu1 %v342_v10  ;;  %v296_v48 = vld [vmem:[%s3481_s0 + $0x820] sm:$0xff]  ;;  %v291_v52 = vld [vmem:[%s3481_s0 + $0x7f8] sm:$0xff]  ;;  %v126_v53 = vld [vmem:[%s3481_s0 + $0x2d0] sm:$0xff] }
  0x28   :  { %486 = vmatprep.subr.mxu0 %v177_v11  ;;  %562 = vmatpush2.msra.mxu1 %v341_v12  ;;  %v292_v50 = vld [vmem:[%s3481_s0 + $0x800] sm:$0xff]  ;;  %v287_v54 = vld [vmem:[%s3481_s0 + $0x7d8] sm:$0xff]  ;;  %v122_v55 = vld [vmem:[%s3481_s0 + $0x2b0] sm:$0xff] }
  0x29   :  { %487 = vmatpush2.msra.mxu0 %v176_v13  ;;  %563 = vmatprep.subr.mxu1 %v337_v14  ;;  %v286_v56 = vld [vmem:[%s3481_s0 + $0x7d0] sm:$0xff]  ;;  %v121_v57 = vld [vmem:[%s3481_s0 + $0x2a8] sm:$0xff]  ;;  %v116_v61 = vld [vmem:[%s3481_s0 + $0x280] sm:$0xff] }
  0x2a   :  { %488 = vmatprep.subr.mxu0 %v172_v15  ;;  %564 = vmatpush2.msra.mxu1 %v336_v16  ;;  %v282_v58 = vld [vmem:[%s3481_s0 + $0x7b0] sm:$0xff]  ;;  %v117_v59 = vld [vmem:[%s3481_s0 + $0x288] sm:$0xff]  ;;  %v2356_v63 = vld [vmem:[%s3482_s1] sm:$0xff] }
  0x2b   :  { %489 = vmatpush2.msra.mxu0 %v171_v17  ;;  %565 = vmatprep.subr.mxu1 %v332_v18  ;;  %v2345_v60 = vld [vmem:[%s3482_s1 + $0x8] sm:$0xff]  ;;  %v432_v1 = vld [vmem:[%s3481_s0 + $0xc60] sm:$0xff]  ;;  %v2371_v3 = vld [vmem:[%s3482_s1 + $0x18] sm:$0xff] }
  0x2c   :  { %490 = vmatprep.subr.mxu0 %v167_v19  ;;  %566 = vmatpush2.msra.mxu1 %v331_v20  ;;  %v281_v62 = vld [vmem:[%s3481_s0 + $0x7a8] sm:$0xff]  ;;  %v276_v2 = vld [vmem:[%s3481_s0 + $0x780] sm:$0xff]  ;;  %v431_v4 = vld [vmem:[%s3481_s0 + $0xc58] sm:$0xff] }
  0x2d   :  { %491 = vmatpush2.msra.mxu0 %v166_v21  ;;  %567 = vmatprep.subr.mxu1 %v327_v22  ;;  %v277_v0 = vld [vmem:[%s3481_s0 + $0x788] sm:$0xff]  ;;  %v2380_v5 = vld [vmem:[%s3482_s1 + $0x10] sm:$0xff]  ;;  %v427_v6 = vld [vmem:[%s3481_s0 + $0xc38] sm:$0xff] }
  0x2e   :  { %492 = vmatprep.subr.mxu0 %v162_v23  ;;  %568 = vmatpush2.msra.mxu1 %v326_v24  ;;  %v114_v7 = vld [vmem:[%s3481_s0 + $0x270] sm:$0xff]  ;;  %v113_v9 = vld [vmem:[%s3481_s0 + $0x268] sm:$0xff]  ;;  %v108_v13 = vld [vmem:[%s3481_s0 + $0x240] sm:$0xff] }
  0x2f   :  { %493 = vmatpush2.msra.mxu0 %v161_v25  ;;  %569 = vmatprep.subr.mxu1 %v322_v26  ;;  %v426_v8 = vld [vmem:[%s3481_s0 + $0xc30] sm:$0xff]  ;;  %v109_v11 = vld [vmem:[%s3481_s0 + $0x248] sm:$0xff]  ;;  %v104_v15 = vld [vmem:[%s3481_s0 + $0x220] sm:$0xff] }
  0x30   :  { %494 = vmatprep.subr.mxu0 %v157_v27  ;;  %570 = vmatpush2.msra.mxu1 %v321_v28  ;;  %v422_v10 = vld [vmem:[%s3481_s0 + $0xc10] sm:$0xff]  ;;  %v421_v12 = vld [vmem:[%s3481_s0 + $0xc08] sm:$0xff]  ;;  %v416_v16 = vld [vmem:[%s3481_s0 + $0xbe0] sm:$0xff] }
  0x31   :  { %495 = vmatpush2.msra.mxu0 %v156_v29  ;;  %571 = vmatprep.subr.mxu1 %v317_v30  ;;  %v417_v14 = vld [vmem:[%s3481_s0 + $0xbe8] sm:$0xff]  ;;  %v103_v17 = vld [vmem:[%s3481_s0 + $0x218] sm:$0xff]  ;;  %v412_v18 = vld [vmem:[%s3481_s0 + $0xbc0] sm:$0xff] }
  0x32   :  { %496 = vmatprep.subr.mxu0 %v152_v31  ;;  %572 = vmatpush2.msra.mxu1 %v316_v32  ;;  %v99_v19 = vld [vmem:[%s3481_s0 + $0x1f8] sm:$0xff]  ;;  %v98_v21 = vld [vmem:[%s3481_s0 + $0x1f0] sm:$0xff]  ;;  %v93_v25 = vld [vmem:[%s3481_s0 + $0x1c8] sm:$0xff] }
  0x33   :  { %497 = vmatpush2.msra.mxu0 %v151_v33  ;;  %573 = vmatprep.subr.mxu1 %v312_v34  ;;  %v411_v20 = vld [vmem:[%s3481_s0 + $0xbb8] sm:$0xff]  ;;  %v94_v23 = vld [vmem:[%s3481_s0 + $0x1d0] sm:$0xff]  ;;  %v89_v27 = vld [vmem:[%s3481_s0 + $0x1a8] sm:$0xff] }
  0x34   :  { %498 = vmatprep.subr.mxu0 %v147_v35  ;;  %574 = vmatpush2.msra.mxu1 %v311_v36  ;;  %v407_v22 = vld [vmem:[%s3481_s0 + $0xb98] sm:$0xff]  ;;  %v406_v24 = vld [vmem:[%s3481_s0 + $0xb90] sm:$0xff]  ;;  %v401_v28 = vld [vmem:[%s3481_s0 + $0xb68] sm:$0xff] }
  0x35   :  { %499 = vmatpush2.msra.mxu0 %v146_v37  ;;  %575 = vmatprep.subr.mxu1 %v307_v38  ;;  %v402_v26 = vld [vmem:[%s3481_s0 + $0xb70] sm:$0xff]  ;;  %v88_v29 = vld [vmem:[%s3481_s0 + $0x1a0] sm:$0xff]  ;;  %v397_v30 = vld [vmem:[%s3481_s0 + $0xb48] sm:$0xff] }
  0x36   :  { %500 = vmatprep.subr.mxu0 %v142_v39  ;;  %576 = vmatpush2.msra.mxu1 %v306_v40  ;;  %v84_v31 = vld [vmem:[%s3481_s0 + $0x180] sm:$0xff]  ;;  %v83_v33 = vld [vmem:[%s3481_s0 + $0x178] sm:$0xff]  ;;  %v78_v37 = vld [vmem:[%s3481_s0 + $0x150] sm:$0xff] }
  0x37   :  { %501 = vmatpush2.msra.mxu0 %v141_v41  ;;  %577 = vmatprep.subr.mxu1 %v302_v42  ;;  %v396_v32 = vld [vmem:[%s3481_s0 + $0xb40] sm:$0xff]  ;;  %v79_v35 = vld [vmem:[%s3481_s0 + $0x158] sm:$0xff]  ;;  %v74_v39 = vld [vmem:[%s3481_s0 + $0x130] sm:$0xff] }
  0x38   :  { %502 = vmatprep.subr.mxu0 %v137_v43  ;;  %578 = vmatpush2.msra.mxu1 %v301_v44  ;;  %v392_v34 = vld [vmem:[%s3481_s0 + $0xb20] sm:$0xff]  ;;  %v391_v36 = vld [vmem:[%s3481_s0 + $0xb18] sm:$0xff]  ;;  %v386_v40 = vld [vmem:[%s3481_s0 + $0xaf0] sm:$0xff] }
  0x39   :  { %503 = vmatpush2.msra.mxu0 %v136_v45  ;;  %579 = vmatprep.subr.mxu1 %v297_v46  ;;  %v387_v38 = vld [vmem:[%s3481_s0 + $0xaf8] sm:$0xff]  ;;  %v73_v41 = vld [vmem:[%s3481_s0 + $0x128] sm:$0xff]  ;;  %v382_v42 = vld [vmem:[%s3481_s0 + $0xad0] sm:$0xff] }
  0x3a   :  { %504 = vmatprep.subr.mxu0 %v132_v47  ;;  %580 = vmatpush2.msra.mxu1 %v296_v48  ;;  %v69_v43 = vld [vmem:[%s3481_s0 + $0x108] sm:$0xff]  ;;  %v68_v45 = vld [vmem:[%s3481_s0 + $0x100] sm:$0xff] }
  0x3b   :  { %505 = vmatpush2.msra.mxu0 %v131_v49  ;;  %581 = vmatprep.subr.mxu1 %v292_v50  ;;  %v381_v44 = vld [vmem:[%s3481_s0 + $0xac8] sm:$0xff]  ;;  %v64_v47 = vld [vmem:[%s3481_s0 + $0xe0] sm:$0xff]  ;;  %v63_v49 = vld [vmem:[%s3481_s0 + $0xd8] sm:$0xff] }
  0x3c   :  { %506 = vmatprep.subr.mxu0 %v127_v51  ;;  %582 = vmatpush2.msra.mxu1 %v291_v52  ;;  %v377_v46 = vld [vmem:[%s3481_s0 + $0xaa8] sm:$0xff]  ;;  %v376_v48 = vld [vmem:[%s3481_s0 + $0xaa0] sm:$0xff]  ;;  %v59_v51 = vld [vmem:[%s3481_s0 + $0xb8] sm:$0xff] }
  0x3d   :  { %507 = vmatpush2.msra.mxu0 %v126_v53  ;;  %583 = vmatprep.subr.mxu1 %v287_v54  ;;  %v372_v50 = vld [vmem:[%s3481_s0 + $0xa80] sm:$0xff]  ;;  %v371_v52 = vld [vmem:[%s3481_s0 + $0xa78] sm:$0xff]  ;;  %v58_v53 = vld [vmem:[%s3481_s0 + $0xb0] sm:$0xff] }
  0x3e   :  { %508 = vmatprep.subr.mxu0 %v122_v55  ;;  %584 = vmatpush2.msra.mxu1 %v286_v56  ;;  %v2531_v54 = vld [vmem:[%s3482_s1 + $0x30] sm:$0xff]  ;;  %v367_v55 = vld [vmem:[%s3481_s0 + $0xa58] sm:$0xff] }
  0x3f   :  { %509 = vmatpush2.msra.mxu0 %v121_v57  ;;  %585 = vmatprep.subr.mxu1 %v282_v58  ;;  %v54_v56 = vld [vmem:[%s3481_s0 + $0x90] sm:$0xff]  ;;  %v2542_v57 = vld [vmem:[%s3482_s1 + $0x28] sm:$0xff] }
  0x40   :  { %510 = vmatprep.subr.mxu0 %v117_v59  ;;  %512 = vmatprep.mubr.f32.mxu0 %v2345_v60  ;;  %v53_v58 = vld [vmem:[%s3481_s0 + $0x88] sm:$0xff]  ;;  %v366_v59 = vld [vmem:[%s3481_s0 + $0xa50] sm:$0xff] }
  0x41   :  { %511 = vmatpush2.msra.mxu0 %v116_v61  ;;  %586 = vmatpush2.msra.mxu1 %v281_v62  ;;  %v2554_v61 = vld [vmem:[%s3482_s1 + $0x40] sm:$0xff]  ;;  %v362_v62 = vld [vmem:[%s3481_s0 + $0xa30] sm:$0xff] }
  0x42   :  { %513 = vmatmul.mubr.f32.vlgmr.msra.gmra.mxu0 %v2356_v63  ;;  %587 = vmatprep.subr.mxu1 %v277_v0  ;;  %v49_v0 = vld [vmem:[%s3481_s0 + $0x68] sm:$0xff] }
  0x43   :  { %602 = vmatprep.subr.mxu0 %v432_v1  ;;  %588 = vmatpush2.msra.mxu1 %v276_v2  ;;  %v2566_v1 = vld [vmem:[%s3482_s1 + $0x38] sm:$0xff]  ;;  %v361_v2 = vld [vmem:[%s3481_s0 + $0xa28] sm:$0xff] }
  0x44   :  { %589 = vmatprep.mubr.f32.mxu1 %v2371_v3  ;;  %603 = vmatpush1.msra.mxu0 %v431_v4  ;;  %v48_v4 = vld [vmem:[%s3481_s0 + $0x60] sm:$0xff] }
  0x45   :  { %590 = vmatmul.mubr.f32.vlgmr.msra.gmra.mxu1 %v2380_v5  ;;  %604 = vmatprep.subr.mxu0 %v427_v6  ;;  %v357_v6 = vld [vmem:[%s3481_s0 + $0xa08] sm:$0xff] }
  0x46   :  { %679 = vmatprep.subr.mxu1 %v114_v7  ;;  %605 = vmatpush1.msra.mxu0 %v426_v8  ;;  %v44_v7 = vld [vmem:[%s3481_s0 + $0x40] sm:$0xff] }
  0x47   :  { %680 = vmatpush1.msra.mxu1 %v113_v9  ;;  %606 = vmatprep.subr.mxu0 %v422_v10  ;;  %v356_v8 = vld [vmem:[%s3481_s0 + $0xa00] sm:$0xff]  ;;  %v43_v9 = vld [vmem:[%s3481_s0 + $0x38] sm:$0xff] }
  0x48   :  { %681 = vmatprep.subr.mxu1 %v109_v11  ;;  %607 = vmatpush1.msra.mxu0 %v421_v12  ;;  %v2591_v10 = vld [vmem:[%s3482_s1 + $0x20] sm:$0xff]  ;;  %v39_v11 = vld [vmem:[%s3481_s0 + $0x18] sm:$0xff]  ;;  %v274_v12 = vld [vmem:[%s3481_s0 + $0x770] sm:$0xff] }
  0x49   :  { %682 = vmatpush1.msra.mxu1 %v108_v13  ;;  %608 = vmatprep.subr.mxu0 %v417_v14  ;;  %v38_v13 = vld [vmem:[%s3481_s0 + $0x10] sm:$0xff]  ;;  %v1928_v14 = vmov 0.0  }
  0x4a   :  { %683 = vmatprep.subr.mxu1 %v104_v15  ;;  %609 = vmatpush1.msra.mxu0 %v416_v16  ;;  %v273_v15 = vld [vmem:[%s3481_s0 + $0x768] sm:$0xff]  ;;  %v194_v16 = vld [vmem:[%s3481_s0 + $0x4f0] sm:$0xff] }
  0x4b   :  { %684 = vmatpush1.msra.mxu1 %v103_v17  ;;  %610 = vmatprep.subr.mxu0 %v412_v18  ;;  %v269_v17 = vld [vmem:[%s3481_s0 + $0x748] sm:$0xff] }
  0x4c   :  { %685 = vmatprep.subr.mxu1 %v99_v19  ;;  %611 = vmatpush1.msra.mxu0 %v411_v20  ;;  %v193_v18 = vld [vmem:[%s3481_s0 + $0x4e8] sm:$0xff]  ;;  %v268_v19 = vld [vmem:[%s3481_s0 + $0x740] sm:$0xff] }
  0x4d   :  { %686 = vmatpush1.msra.mxu1 %v98_v21  ;;  %612 = vmatprep.subr.mxu0 %v407_v22  ;;  %v2622_v20 = vld [vmem:[%s3482_s1 + $0x48] sm:$0xff]  ;;  %v264_v22 = vld [vmem:[%s3481_s0 + $0x720] sm:$0xff] }
  0x4e   :  { %687 = vmatprep.subr.mxu1 %v94_v23  ;;  %613 = vmatpush1.msra.mxu0 %v406_v24  ;;  %v189_v21 = vld [vmem:[%s3481_s0 + $0x4c8] sm:$0xff]  ;;  %v188_v23 = vld [vmem:[%s3481_s0 + $0x4c0] sm:$0xff]  ;;  %v263_v24 = vld [vmem:[%s3481_s0 + $0x718] sm:$0xff] }
  0x4f   :  { %688 = vmatpush1.msra.mxu1 %v93_v25  ;;  %614 = vmatprep.subr.mxu0 %v402_v26  ;;  %v184_v25 = vld [vmem:[%s3481_s0 + $0x4a0] sm:$0xff]  ;;  %v259_v26 = vld [vmem:[%s3481_s0 + $0x6f8] sm:$0xff] }
  0x50   :  { %689 = vmatprep.subr.mxu1 %v89_v27  ;;  %615 = vmatpush1.msra.mxu0 %v401_v28  ;;  %v183_v27 = vld [vmem:[%s3481_s0 + $0x498] sm:$0xff]  ;;  %v258_v28 = vld [vmem:[%s3481_s0 + $0x6f0] sm:$0xff] }
  0x51   :  { %690 = vmatpush1.msra.mxu1 %v88_v29  ;;  %616 = vmatprep.subr.mxu0 %v397_v30  ;;  %v179_v29 = vld [vmem:[%s3481_s0 + $0x478] sm:$0xff]  ;;  %v254_v30 = vld [vmem:[%s3481_s0 + $0x6d0] sm:$0xff] }
  0x52   :  { %691 = vmatprep.subr.mxu1 %v84_v31  ;;  %617 = vmatpush1.msra.mxu0 %v396_v32  ;;  %v178_v31 = vld [vmem:[%s3481_s0 + $0x470] sm:$0xff]  ;;  %v253_v32 = vld [vmem:[%s3481_s0 + $0x6c8] sm:$0xff] }
  0x53   :  { %692 = vmatpush1.msra.mxu1 %v83_v33  ;;  %618 = vmatprep.subr.mxu0 %v392_v34  ;;  %v174_v33 = vld [vmem:[%s3481_s0 + $0x450] sm:$0xff]  ;;  %v249_v34 = vld [vmem:[%s3481_s0 + $0x6a8] sm:$0xff] }
  0x54   :  { %693 = vmatprep.subr.mxu1 %v79_v35  ;;  %619 = vmatpush1.msra.mxu0 %v391_v36  ;;  %v173_v35 = vld [vmem:[%s3481_s0 + $0x448] sm:$0xff]  ;;  %v248_v36 = vld [vmem:[%s3481_s0 + $0x6a0] sm:$0xff] }
  0x55   :  { %694 = vmatpush1.msra.mxu1 %v78_v37  ;;  %620 = vmatprep.subr.mxu0 %v387_v38  ;;  %v169_v37 = vld [vmem:[%s3481_s0 + $0x428] sm:$0xff]  ;;  %v244_v38 = vld [vmem:[%s3481_s0 + $0x680] sm:$0xff] }
  0x56   :  { %695 = vmatprep.subr.mxu1 %v74_v39  ;;  %621 = vmatpush1.msra.mxu0 %v386_v40  ;;  %v168_v39 = vld [vmem:[%s3481_s0 + $0x420] sm:$0xff]  ;;  %v243_v40 = vld [vmem:[%s3481_s0 + $0x678] sm:$0xff] }
  0x57   :  { %696 = vmatpush1.msra.mxu1 %v73_v41  ;;  %622 = vmatprep.subr.mxu0 %v382_v42  ;;  %v164_v41 = vld [vmem:[%s3481_s0 + $0x400] sm:$0xff]  ;;  %v239_v42 = vld [vmem:[%s3481_s0 + $0x658] sm:$0xff] }
  0x58   :  { %697 = vmatprep.subr.mxu1 %v69_v43  ;;  %623 = vmatpush1.msra.mxu0 %v381_v44  ;;  %v163_v43 = vld [vmem:[%s3481_s0 + $0x3f8] sm:$0xff]  ;;  %v238_v44 = vld [vmem:[%s3481_s0 + $0x650] sm:$0xff] }
  0x59   :  { %698 = vmatpush1.msra.mxu1 %v68_v45  ;;  %624 = vmatprep.subr.mxu0 %v377_v46  ;;  %v159_v45 = vld [vmem:[%s3481_s0 + $0x3d8] sm:$0xff]  ;;  %v234_v46 = vld [vmem:[%s3481_s0 + $0x630] sm:$0xff] }
  0x5a   :  { %699 = vmatprep.subr.mxu1 %v64_v47  ;;  %625 = vmatpush1.msra.mxu0 %v376_v48  ;;  %v158_v47 = vld [vmem:[%s3481_s0 + $0x3d0] sm:$0xff]  ;;  %v233_v48 = vld [vmem:[%s3481_s0 + $0x628] sm:$0xff] }
  0x5b   :  { %700 = vmatpush1.msra.mxu1 %v63_v49  ;;  %626 = vmatprep.subr.mxu0 %v372_v50  ;;  %v154_v49 = vld [vmem:[%s3481_s0 + $0x3b0] sm:$0xff]  ;;  %v229_v50 = vld [vmem:[%s3481_s0 + $0x608] sm:$0xff] }
  0x5c   :  { %701 = vmatprep.subr.mxu1 %v59_v51  ;;  %627 = vmatpush1.msra.mxu0 %v371_v52  ;;  %v153_v51 = vld [vmem:[%s3481_s0 + $0x3a8] sm:$0xff]  ;;  %v228_v52 = vld [vmem:[%s3481_s0 + $0x600] sm:$0xff] }
  0x5d   :  { %702 = vmatpush1.msra.mxu1 %v58_v53  ;;  %518 = vmatprep.mubr.f32.mxu0 %v2531_v54  ;;  %v149_v53 = vld [vmem:[%s3481_s0 + $0x388] sm:$0xff] }
  0x5e   :  { %628 = vmatprep.subr.mxu0 %v367_v55  ;;  %703 = vmatprep.subr.mxu1 %v54_v56  ;;  %v224_v55 = vld [vmem:[%s3481_s0 + $0x5e0] sm:$0xff] }
  0x5f   :  { %519 = vmatmul.mubr.f32.gmra.mxu0 %v2542_v57  ;;  %704 = vmatpush1.msra.mxu1 %v53_v58  ;;  %v148_v56 = vld [vmem:[%s3481_s0 + $0x380] sm:$0xff]  ;;  %v223_v58 = vld [vmem:[%s3481_s0 + $0x5d8] sm:$0xff] }
  0x60   :  { %629 = vmatpush1.msra.mxu0 %v366_v59  ;;  %595 = vmatprep.mubr.f32.mxu1 %v2554_v61  ;;  %v144_v59 = vld [vmem:[%s3481_s0 + $0x360] sm:$0xff] }
  0x61   :  { %630 = vmatprep.subr.mxu0 %v362_v62  ;;  %705 = vmatprep.subr.mxu1 %v49_v0  ;;  %v219_v62 = vld [vmem:[%s3481_s0 + $0x5b8] sm:$0xff] }
  0x62   :  { %596 = vmatmul.mubr.f32.gmra.mxu1 %v2566_v1  ;;  %631 = vmatpush1.msra.mxu0 %v361_v2  ;;  %v143_v0 = vld [vmem:[%s3481_s0 + $0x358] sm:$0xff]  ;;  %v218_v2 = vld [vmem:[%s3481_s0 + $0x5b0] sm:$0xff] }
  0x63   :  { %706 = vmatpush1.msra.mxu1 %v48_v4  ;;  %632 = vmatprep.subr.mxu0 %v357_v6  ;;  %v139_v4 = vld [vmem:[%s3481_s0 + $0x338] sm:$0xff]  ;;  %v214_v6 = vld [vmem:[%s3481_s0 + $0x590] sm:$0xff] }
  0x64   :  { %707 = vmatprep.subr.mxu1 %v44_v7  ;;  %633 = vmatpush1.msra.mxu0 %v356_v8  ;;  %v138_v7 = vld [vmem:[%s3481_s0 + $0x330] sm:$0xff]  ;;  %v213_v8 = vld [vmem:[%s3481_s0 + $0x588] sm:$0xff] }
  0x65   :  { %666 = vmatprep.mubr.f32.mxu0 %v1928_v14  ;;  %708 = vmatpush1.msra.mxu1 %v43_v9  ;;  %v134_v9 = vld [vmem:[%s3481_s0 + $0x310] sm:$0xff] }
  0x66   :  { %667 = vmatmul.mubr.f32.vlgmr.msra.gmra.mxu0 %v2591_v10  ;;  %709 = vmatprep.subr.mxu1 %v39_v11  ;;  %v209_v11 = vld [vmem:[%s3481_s0 + $0x568] sm:$0xff] }
  0x67   :  { %756 = vmatprep.subr.mxu0 %v274_v12  ;;  %710 = vmatpush1.msra.mxu1 %v38_v13  ;;  %v133_v12 = vld [vmem:[%s3481_s0 + $0x308] sm:$0xff]  ;;  %v208_v13 = vld [vmem:[%s3481_s0 + $0x560] sm:$0xff] }
  0x68   :  { %757 = vmatpush1.msra.mxu0 %v273_v15  ;;  %711 = vmatprep.subr.mxu1 %v194_v16  ;;  %v129_v15 = vld [vmem:[%s3481_s0 + $0x2e8] sm:$0xff]  ;;  %v204_v16 = vld [vmem:[%s3481_s0 + $0x540] sm:$0xff] }
  0x69   :  { %758 = vmatprep.subr.mxu0 %v269_v17  ;;  %672 = vmatprep.mubr.f32.mxu0 %v1928_v14  ;;  %v128_v17 = vld [vmem:[%s3481_s0 + $0x2e0] sm:$0xff] }
  0x6a   :  { %712 = vmatpush2.msra.mxu1 %v193_v18  ;;  %759 = vmatpush1.msra.mxu0 %v268_v19  ;;  %v203_v18 = vld [vmem:[%s3481_s0 + $0x538] sm:$0xff]  ;;  %v124_v19 = vld [vmem:[%s3481_s0 + $0x2c0] sm:$0xff] }
  0x6b   :  { %673 = vmatmul.mubr.f32.gmra.mxu0 %v2622_v20  ;;  %713 = vmatprep.subr.mxu1 %v189_v21  ;;  %v199_v21 = vld [vmem:[%s3481_s0 + $0x518] sm:$0xff] }
  0x6c   :  { %760 = vmatprep.subr.mxu0 %v264_v22  ;;  %714 = vmatpush2.msra.mxu1 %v188_v23  ;;  %v123_v22 = vld [vmem:[%s3481_s0 + $0x2b8] sm:$0xff]  ;;  %v198_v23 = vld [vmem:[%s3481_s0 + $0x510] sm:$0xff] }
  0x6d   :  { %761 = vmatpush1.msra.mxu0 %v263_v24  ;;  %715 = vmatprep.subr.mxu1 %v184_v25  ;;  %v119_v24 = vld [vmem:[%s3481_s0 + $0x298] sm:$0xff]  ;;  %v354_v25 = vld [vmem:[%s3481_s0 + $0x9f0] sm:$0xff] }
  0x6e   :  { %762 = vmatprep.subr.mxu0 %v259_v26  ;;  %716 = vmatpush2.msra.mxu1 %v183_v27  ;;  %v118_v26 = vld [vmem:[%s3481_s0 + $0x290] sm:$0xff]  ;;  %v353_v27 = vld [vmem:[%s3481_s0 + $0x9e8] sm:$0xff] }
  0x6f   :  { %763 = vmatpush1.msra.mxu0 %v258_v28  ;;  %717 = vmatprep.subr.mxu1 %v179_v29  ;;  %v437_v28 = vld [vmem:[%s3483_s2 + $0x8] sm:$0xff]  ;;  %v1929_v29 = vmov 0  }
  0x70   :  { %764 = vmatprep.subr.mxu0 %v254_v30  ;;  %718 = vmatpush2.msra.mxu1 %v178_v31  ;;  %v349_v30 = vld [vmem:[%s3481_s0 + $0x9c8] sm:$0xff]  ;;  %v434_v31 = vld [vmem:[%s3481_s0 + $0xc70] sm:$0xff] }
  0x71   :  { %765 = vmatpush1.msra.mxu0 %v253_v32  ;;  %719 = vmatprep.subr.mxu1 %v174_v33  ;;  %v348_v32 = vld [vmem:[%s3481_s0 + $0x9c0] sm:$0xff]  ;;  %v433_v33 = vld [vmem:[%s3481_s0 + $0xc68] sm:$0xff] }
  0x72   :  { %766 = vmatprep.subr.mxu0 %v249_v34  ;;  %720 = vmatpush2.msra.mxu1 %v173_v35  ;;  %v344_v34 = vld [vmem:[%s3481_s0 + $0x9a0] sm:$0xff]  ;;  %v429_v35 = vld [vmem:[%s3481_s0 + $0xc48] sm:$0xff] }
  0x73   :  { %767 = vmatpush1.msra.mxu0 %v248_v36  ;;  %721 = vmatprep.subr.mxu1 %v169_v37  ;;  %v343_v36 = vld [vmem:[%s3481_s0 + $0x998] sm:$0xff]  ;;  %v436_v37 = vld [vmem:[%s3483_s2] sm:$0xff] }
  0x74   :  { %768 = vmatprep.subr.mxu0 %v244_v38  ;;  %722 = vmatpush2.msra.mxu1 %v168_v39  ;;  %v339_v38 = vld [vmem:[%s3481_s0 + $0x978] sm:$0xff]  ;;  %v424_v39 = vld [vmem:[%s3481_s0 + $0xc20] sm:$0xff] }
  0x75   :  { %769 = vmatpush1.msra.mxu0 %v243_v40  ;;  %723 = vmatprep.subr.mxu1 %v164_v41  ;;  %v423_v40 = vld [vmem:[%s3481_s0 + $0xc18] sm:$0xff]  ;;  %v334_v41 = vld [vmem:[%s3481_s0 + $0x950] sm:$0xff] }
  0x76   :  { %770 = vmatprep.subr.mxu0 %v239_v42  ;;  %724 = vmatpush2.msra.mxu1 %v163_v43  ;;  %v419_v42 = vld [vmem:[%s3481_s0 + $0xbf8] sm:$0xff]  ;;  %v333_v43 = vld [vmem:[%s3481_s0 + $0x948] sm:$0xff] }
  0x77   :  { %771 = vmatpush1.msra.mxu0 %v238_v44  ;;  %725 = vmatprep.subr.mxu1 %v159_v45  ;;  %v418_v44 = vld [vmem:[%s3481_s0 + $0xbf0] sm:$0xff]  ;;  %v329_v45 = vld [vmem:[%s3481_s0 + $0x928] sm:$0xff] }
  0x78   :  { %772 = vmatprep.subr.mxu0 %v234_v46  ;;  %726 = vmatpush2.msra.mxu1 %v158_v47  ;;  %v414_v46 = vld [vmem:[%s3481_s0 + $0xbd0] sm:$0xff]  ;;  %v328_v47 = vld [vmem:[%s3481_s0 + $0x920] sm:$0xff] }
  0x79   :  { %773 = vmatpush1.msra.mxu0 %v233_v48  ;;  %727 = vmatprep.subr.mxu1 %v154_v49  ;;  %v413_v48 = vld [vmem:[%s3481_s0 + $0xbc8] sm:$0xff]  ;;  %v324_v49 = vld [vmem:[%s3481_s0 + $0x900] sm:$0xff] }
  0x7a   :  { %774 = vmatprep.subr.mxu0 %v229_v50  ;;  %728 = vmatpush2.msra.mxu1 %v153_v51  ;;  %v409_v50 = vld [vmem:[%s3481_s0 + $0xba8] sm:$0xff]  ;;  %v323_v51 = vld [vmem:[%s3481_s0 + $0x8f8] sm:$0xff] }
  0x7b   :  { %775 = vmatpush1.msra.mxu0 %v228_v52  ;;  %729 = vmatprep.subr.mxu1 %v149_v53  ;;  %v408_v52 = vld [vmem:[%s3481_s0 + $0xba0] sm:$0xff]  ;;  %v319_v53 = vld [vmem:[%s3481_s0 + $0x8d8] sm:$0xff] }
  0x7c   :  { %776 = vmatprep.subr.mxu0 %v224_v55  ;;  %730 = vmatpush2.msra.mxu1 %v148_v56  ;;  %v404_v55 = vld [vmem:[%s3481_s0 + $0xb80] sm:$0xff]  ;;  %v318_v56 = vld [vmem:[%s3481_s0 + $0x8d0] sm:$0xff] }
  0x7d   :  { %777 = vmatpush1.msra.mxu0 %v223_v58  ;;  %731 = vmatprep.subr.mxu1 %v144_v59  ;;  %v403_v58 = vld [vmem:[%s3481_s0 + $0xb78] sm:$0xff]  ;;  %v314_v59 = vld [vmem:[%s3481_s0 + $0x8b0] sm:$0xff] }
  0x7e   :  { %778 = vmatprep.subr.mxu0 %v219_v62  ;;  %732 = vmatpush2.msra.mxu1 %v143_v0  ;;  %v399_v62 = vld [vmem:[%s3481_s0 + $0xb58] sm:$0xff]  ;;  %v313_v0 = vld [vmem:[%s3481_s0 + $0x8a8] sm:$0xff] }
  0x7f   :  { %779 = vmatpush1.msra.mxu0 %v218_v2  ;;  %733 = vmatprep.subr.mxu1 %v139_v4  ;;  %v398_v2 = vld [vmem:[%s3481_s0 + $0xb50] sm:$0xff]  ;;  %v309_v4 = vld [vmem:[%s3481_s0 + $0x888] sm:$0xff] }
  0x80   :  { %780 = vmatprep.subr.mxu0 %v214_v6  ;;  %734 = vmatpush2.msra.mxu1 %v138_v7  ;;  %v394_v6 = vld [vmem:[%s3481_s0 + $0xb30] sm:$0xff]  ;;  %v308_v7 = vld [vmem:[%s3481_s0 + $0x880] sm:$0xff] }
  0x81   :  { %781 = vmatpush1.msra.mxu0 %v213_v8  ;;  %735 = vmatprep.subr.mxu1 %v134_v9  ;;  %v393_v8 = vld [vmem:[%s3481_s0 + $0xb28] sm:$0xff]  ;;  %v304_v9 = vld [vmem:[%s3481_s0 + $0x860] sm:$0xff] }
  0x82   :  { %782 = vmatprep.subr.mxu0 %v209_v11  ;;  %736 = vmatpush2.msra.mxu1 %v133_v12  ;;  %v389_v11 = vld [vmem:[%s3481_s0 + $0xb08] sm:$0xff]  ;;  %v303_v12 = vld [vmem:[%s3481_s0 + $0x858] sm:$0xff] }
  0x83   :  { %783 = vmatpush1.msra.mxu0 %v208_v13  ;;  %737 = vmatprep.subr.mxu1 %v129_v15  ;;  %v388_v13 = vld [vmem:[%s3481_s0 + $0xb00] sm:$0xff]  ;;  %v299_v15 = vld [vmem:[%s3481_s0 + $0x838] sm:$0xff] }
  0x84   :  { %784 = vmatprep.subr.mxu0 %v204_v16  ;;  %738 = vmatpush2.msra.mxu1 %v128_v17  ;;  %v384_v16 = vld [vmem:[%s3481_s0 + $0xae0] sm:$0xff]  ;;  %v298_v17 = vld [vmem:[%s3481_s0 + $0x830] sm:$0xff] }
  0x85   :  { %785 = vmatpush1.msra.mxu0 %v203_v18  ;;  %739 = vmatprep.subr.mxu1 %v124_v19  ;;  %v383_v18 = vld [vmem:[%s3481_s0 + $0xad8] sm:$0xff]  ;;  %v294_v19 = vld [vmem:[%s3481_s0 + $0x810] sm:$0xff] }
  0x86   :  { %786 = vmatprep.subr.mxu0 %v199_v21  ;;  %740 = vmatpush2.msra.mxu1 %v123_v22  ;;  %v379_v21 = vld [vmem:[%s3481_s0 + $0xab8] sm:$0xff]  ;;  %v293_v22 = vld [vmem:[%s3481_s0 + $0x808] sm:$0xff] }
  0x87   :  { %787 = vmatpush1.msra.mxu0 %v198_v23  ;;  %741 = vmatprep.subr.mxu1 %v119_v24  ;;  %v378_v23 = vld [vmem:[%s3481_s0 + $0xab0] sm:$0xff]  ;;  %v289_v24 = vld [vmem:[%s3481_s0 + $0x7e8] sm:$0xff] }
  0x88   :  { %788 = vmatprep.subr.mxu0 %v354_v25  ;;  %1918 = vset.pattern.permute.xlu0 %v1929_v29  ;;  %v374_v25 = vld [vmem:[%s3481_s0 + $0xa90] sm:$0xff] }
  0x89   :  { %742 = vmatpush2.msra.mxu1 %v118_v26  ;;  %789 = vmatpush2.msra.mxu0 %v353_v27  ;;  %v288_v26 = vld [vmem:[%s3481_s0 + $0x7e0] sm:$0xff]  ;;  %v373_v27 = vld [vmem:[%s3481_s0 + $0xa88] sm:$0xff] }
  0x8a   :  { %445 = vperm.xlu0 %1918, %v437_v28   ;;  %743 = vmatprep.mubr.f32.mxu1 %v2345_v60  ;;  %v428_v60 = vld [vmem:[%s3481_s0 + $0xc40] sm:$0xff] }
  0x8b   :  { %790 = vmatprep.subr.mxu0 %v349_v30  ;;  %833 = vmatprep.subr.mxu1 %v434_v31  ;;  %v284_v28 = vld [vmem:[%s3481_s0 + $0x7c0] sm:$0xff]  ;;  %v369_v30 = vld [vmem:[%s3481_s0 + $0xa68] sm:$0xff]  ;;  %v283_v31 = vld [vmem:[%s3481_s0 + $0x7b8] sm:$0xff] }
  0x8c   :  { %744 = vmatmul.mubr.f32.vlgmr.msra.gmra.mxu1 %v2356_v63  ;;  %791 = vmatpush2.msra.mxu0 %v348_v32  ;;  %v338_v63 = vld [vmem:[%s3481_s0 + $0x970] sm:$0xff]  ;;  %v368_v32 = vld [vmem:[%s3481_s0 + $0xa60] sm:$0xff] }
  0x8d   :  { %834 = vmatpush1.msra.mxu1 %v433_v33  ;;  %792 = vmatprep.subr.mxu0 %v344_v34  ;;  %v279_v33 = vld [vmem:[%s3481_s0 + $0x798] sm:$0xff]  ;;  %v364_v34 = vld [vmem:[%s3481_s0 + $0xa40] sm:$0xff] }
  0x8e   :  { %835 = vmatprep.subr.mxu1 %v429_v35  ;;  %793 = vmatpush2.msra.mxu0 %v343_v36  ;;  %v278_v35 = vld [vmem:[%s3481_s0 + $0x790] sm:$0xff]  ;;  %v363_v36 = vld [vmem:[%s3481_s0 + $0xa38] sm:$0xff] }
  0x8f   :  { %836 = vmatpush1.msra.mxu1 %v428_v60  ;;  %440 = vperm.xlu0 %1918, %v436_v37   ;;  %v359_v60 = vld [vmem:[%s3481_s0 + $0xa18] sm:$0xff] }
  0x90   :  { %794 = vmatprep.subr.mxu0 %v339_v38  ;;  %837 = vmatprep.subr.mxu1 %v424_v39  ;;  %v195_v37 = vld [vmem:[%s3481_s0 + $0x4f8] sm:$0xff]  ;;  %v358_v38 = vld [vmem:[%s3481_s0 + $0xa10] sm:$0xff] }
  0x91   :  { %795 = vmatpush2.msra.mxu0 %v338_v63  ;;  %838 = vmatpush1.msra.mxu1 %v423_v40  ;;  %v115_v39 = vld [vmem:[%s3481_s0 + $0x278] sm:$0xff]  ;;  %v190_v63 = vld [vmem:[%s3481_s0 + $0x4d0] sm:$0xff] }
  0x92   :  { %796 = vmatprep.subr.mxu0 %v334_v41  ;;  %839 = vmatprep.subr.mxu1 %v419_v42  ;;  %v275_v40 = vld [vmem:[%s3481_s0 + $0x778] sm:$0xff]  ;;  %v185_v41 = vld [vmem:[%s3481_s0 + $0x4a8] sm:$0xff]  ;;  %v350_v42 = vld [vmem:[%s3481_s0 + $0x9d0] sm:$0xff] }
  0x93   :  { %797 = vmatpush2.msra.mxu0 %v333_v43  ;;  %840 = vmatpush1.msra.mxu1 %v418_v44  ;;  %v105_v43 = vld [vmem:[%s3481_s0 + $0x228] sm:$0xff]  ;;  %v270_v44 = vld [vmem:[%s3481_s0 + $0x750] sm:$0xff] }
  0x94   :  { %798 = vmatprep.subr.mxu0 %v329_v45  ;;  %841 = vmatprep.subr.mxu1 %v414_v46  ;;  %v180_v45 = vld [vmem:[%s3481_s0 + $0x480] sm:$0xff]  ;;  %v345_v46 = vld [vmem:[%s3481_s0 + $0x9a8] sm:$0xff] }
  0x95   :  { %799 = vmatpush2.msra.mxu0 %v328_v47  ;;  %842 = vmatpush1.msra.mxu1 %v413_v48  ;;  %v100_v47 = vld [vmem:[%s3481_s0 + $0x200] sm:$0xff]  ;;  %v265_v48 = vld [vmem:[%s3481_s0 + $0x728] sm:$0xff] }
  0x96   :  { %800 = vmatprep.subr.mxu0 %v324_v49  ;;  %843 = vmatprep.subr.mxu1 %v409_v50  ;;  %v175_v49 = vld [vmem:[%s3481_s0 + $0x458] sm:$0xff]  ;;  %v340_v50 = vld [vmem:[%s3481_s0 + $0x980] sm:$0xff] }
  0x97   :  { %801 = vmatpush2.msra.mxu0 %v323_v51  ;;  %844 = vmatpush1.msra.mxu1 %v408_v52  ;;  %v95_v51 = vld [vmem:[%s3481_s0 + $0x1d8] sm:$0xff]  ;;  %v260_v52 = vld [vmem:[%s3481_s0 + $0x700] sm:$0xff] }
  0x98   :  { %802 = vmatprep.subr.mxu0 %v319_v53  ;;  %845 = vmatprep.subr.mxu1 %v404_v55  ;;  %v170_v53 = vld [vmem:[%s3481_s0 + $0x430] sm:$0xff]  ;;  %v335_v55 = vld [vmem:[%s3481_s0 + $0x958] sm:$0xff] }
  0x99   :  { %803 = vmatpush2.msra.mxu0 %v318_v56  ;;  %846 = vmatpush1.msra.mxu1 %v403_v58  ;;  %v90_v56 = vld [vmem:[%s3481_s0 + $0x1b0] sm:$0xff]  ;;  %v255_v58 = vld [vmem:[%s3481_s0 + $0x6d8] sm:$0xff] }
  0x9a   :  { %804 = vmatprep.subr.mxu0 %v314_v59  ;;  %847 = vmatprep.subr.mxu1 %v399_v62  ;;  %v165_v59 = vld [vmem:[%s3481_s0 + $0x408] sm:$0xff]  ;;  %v330_v62 = vld [vmem:[%s3481_s0 + $0x930] sm:$0xff] }
  0x9b   :  { %805 = vmatpush2.msra.mxu0 %v313_v0  ;;  %848 = vmatpush1.msra.mxu1 %v398_v2  ;;  %v85_v0 = vld [vmem:[%s3481_s0 + $0x188] sm:$0xff]  ;;  %v250_v2 = vld [vmem:[%s3481_s0 + $0x6b0] sm:$0xff] }
  0x9c   :  { %806 = vmatprep.subr.mxu0 %v309_v4  ;;  %849 = vmatprep.subr.mxu1 %v394_v6  ;;  %v160_v4 = vld [vmem:[%s3481_s0 + $0x3e0] sm:$0xff]  ;;  %v325_v6 = vld [vmem:[%s3481_s0 + $0x908] sm:$0xff] }
  0x9d   :  { %807 = vmatpush2.msra.mxu0 %v308_v7  ;;  %850 = vmatpush1.msra.mxu1 %v393_v8  ;;  %v80_v7 = vld [vmem:[%s3481_s0 + $0x160] sm:$0xff]  ;;  %v245_v8 = vld [vmem:[%s3481_s0 + $0x688] sm:$0xff] }
  0x9e   :  { %808 = vmatprep.subr.mxu0 %v304_v9  ;;  %851 = vmatprep.subr.mxu1 %v389_v11  ;;  %v155_v9 = vld [vmem:[%s3481_s0 + $0x3b8] sm:$0xff]  ;;  %v320_v11 = vld [vmem:[%s3481_s0 + $0x8e0] sm:$0xff] }
  0x9f   :  { %809 = vmatpush2.msra.mxu0 %v303_v12  ;;  %852 = vmatpush1.msra.mxu1 %v388_v13  ;;  %v75_v12 = vld [vmem:[%s3481_s0 + $0x138] sm:$0xff]  ;;  %v240_v13 = vld [vmem:[%s3481_s0 + $0x660] sm:$0xff] }
  0xa0   :  { %810 = vmatprep.subr.mxu0 %v299_v15  ;;  %853 = vmatprep.subr.mxu1 %v384_v16  ;;  %v150_v15 = vld [vmem:[%s3481_s0 + $0x390] sm:$0xff]  ;;  %v315_v16 = vld [vmem:[%s3481_s0 + $0x8b8] sm:$0xff] }
  0xa1   :  { %811 = vmatpush2.msra.mxu0 %v298_v17  ;;  %854 = vmatpush1.msra.mxu1 %v383_v18  ;;  %v70_v17 = vld [vmem:[%s3481_s0 + $0x110] sm:$0xff]  ;;  %v235_v18 = vld [vmem:[%s3481_s0 + $0x638] sm:$0xff] }
  0xa2   :  { %812 = vmatprep.subr.mxu0 %v294_v19  ;;  %855 = vmatprep.subr.mxu1 %v379_v21  ;;  %v145_v19 = vld [vmem:[%s3481_s0 + $0x368] sm:$0xff]  ;;  %v310_v21 = vld [vmem:[%s3481_s0 + $0x890] sm:$0xff] }
  0xa3   :  { %813 = vmatpush2.msra.mxu0 %v293_v22  ;;  %856 = vmatpush1.msra.mxu1 %v378_v23  ;;  %v65_v22 = vld [vmem:[%s3481_s0 + $0xe8] sm:$0xff]  ;;  %v230_v23 = vld [vmem:[%s3481_s0 + $0x610] sm:$0xff] }
  0xa4   :  { %814 = vmatprep.subr.mxu0 %v289_v24  ;;  %857 = vmatprep.subr.mxu1 %v374_v25  ;;  %v140_v24 = vld [vmem:[%s3481_s0 + $0x340] sm:$0xff]  ;;  %v305_v25 = vld [vmem:[%s3481_s0 + $0x868] sm:$0xff] }
  0xa5   :  { %815 = vmatpush2.msra.mxu0 %v288_v26  ;;  %858 = vmatpush1.msra.mxu1 %v373_v27  ;;  %v60_v26 = vld [vmem:[%s3481_s0 + $0xc0] sm:$0xff]  ;;  %v225_v27 = vld [vmem:[%s3481_s0 + $0x5e8] sm:$0xff] }
  0xa6   :  { %816 = vmatprep.subr.mxu0 %v284_v28  ;;  %859 = vmatprep.subr.mxu1 %v369_v30  ;;  %v135_v28 = vld [vmem:[%s3481_s0 + $0x318] sm:$0xff]  ;;  %v300_v30 = vld [vmem:[%s3481_s0 + $0x840] sm:$0xff] }
  0xa7   :  { %749 = vmatprep.mubr.f32.mxu1 %v2531_v54  ;;  %817 = vmatpush2.msra.mxu0 %v283_v31  ;;  %v55_v31 = vld [vmem:[%s3481_s0 + $0x98] sm:$0xff] }
  0xa8   :  { %860 = vmatpush1.msra.mxu1 %v368_v32  ;;  %818 = vmatprep.subr.mxu0 %v279_v33  ;;  %v220_v32 = vld [vmem:[%s3481_s0 + $0x5c0] sm:$0xff]  ;;  %v130_v33 = vld [vmem:[%s3481_s0 + $0x2f0] sm:$0xff] }
  0xa9   :  { %750 = vmatmul.mubr.f32.gmra.mxu1 %v2542_v57  ;;  %861 = vmatprep.subr.mxu1 %v364_v34  ;;  %v295_v34 = vld [vmem:[%s3481_s0 + $0x818] sm:$0xff] }
  0xaa   :  { %819 = vmatpush2.msra.mxu0 %v278_v35  ;;  %820 = vmatprep.mubr.f32.mxu0 %v2371_v3  ;;  %v355_v3 = vld [vmem:[%s3481_s0 + $0x9f8] sm:$0xff]  ;;  %v50_v35 = vld [vmem:[%s3481_s0 + $0x70] sm:$0xff] }
  0xab   :  { %862 = vmatpush1.msra.mxu1 %v363_v36  ;;  %821 = vmatmul.mubr.f32.vlgmr.msra.gmra.mxu0 %v2380_v5  ;;  %v110_v5 = vld [vmem:[%s3481_s0 + $0x250] sm:$0xff]  ;;  %v215_v36 = vld [vmem:[%s3481_s0 + $0x598] sm:$0xff] }
  0xac   :  { %863 = vmatprep.subr.mxu1 %v359_v60  ;;  %1765 = vmatprep.subr.mxu0 %v195_v37  ;;  %v125_v60 = vld [vmem:[%s3481_s0 + $0x2c8] sm:$0xff]  ;;  %v290_v37 = vld [vmem:[%s3481_s0 + $0x7f0] sm:$0xff] }
  0xad   :  { %864 = vmatpush1.msra.mxu1 %v358_v38  ;;  %897 = vmatprep.mubr.f32.mxu1 %v1928_v14  ;;  %v45_v38 = vld [vmem:[%s3481_s0 + $0x48] sm:$0xff] }
  0xae   :  { %1766 = vmatpush3.msra.mxu0 %v115_v39  ;;  %898 = vmatmul.mubr.f32.vlgmr.msra.gmra.mxu1 %v2591_v10  ;;  %v210_v39 = vld [vmem:[%s3481_s0 + $0x570] sm:$0xff] }
  0xaf   :  { %1767 = vmatprep.subr.mxu0 %v190_v63  ;;  %1803 = vmatprep.subr.mxu1 %v355_v3  ;;  %v120_v63 = vld [vmem:[%s3481_s0 + $0x2a0] sm:$0xff]  ;;  %v285_v3 = vld [vmem:[%s3481_s0 + $0x7c8] sm:$0xff] }
  0xb0   :  { %826 = vmatprep.mubr.f32.mxu0 %v2554_v61  ;;  %1768 = vmatpush3.msra.mxu0 %v110_v5  ;;  %v40_v5 = vld [vmem:[%s3481_s0 + $0x20] sm:$0xff] }
  0xb1   :  { %1804 = vmatpush3.msra.mxu1 %v275_v40  ;;  %827 = vmatmul.mubr.f32.gmra.mxu0 %v2566_v1  ;;  %v205_v40 = vld [vmem:[%s3481_s0 + $0x548] sm:$0xff] }
  0xb2   :  { %1769 = vmatprep.subr.mxu0 %v185_v41  ;;  %1805 = vmatprep.subr.mxu1 %v350_v42  ;;  %v280_v41 = vld [vmem:[%s3481_s0 + $0x7a0] sm:$0xff]  ;;  %v435_v42 = vld [vmem:[%s3481_s0 + $0xc78] sm:$0xff] }
  0xb3   :  { %903 = vmatprep.mubr.f32.mxu1 %v1928_v14  ;;  %1770 = vmatpush3.msra.mxu0 %v105_v43  ;;  %v1924_v43 = vld [vmem:[%s3482_s1 + $0x8] sm:$0xff] }
  0xb4   :  { %1806 = vmatpush3.msra.mxu1 %v270_v44  ;;  %1771 = vmatprep.subr.mxu0 %v180_v45  ;;  %v200_v44 = vld [vmem:[%s3481_s0 + $0x520] sm:$0xff] }
  0xb5   :  { %904 = vmatmul.mubr.f32.gmra.mxu1 %v2622_v20  ;;  %1807 = vmatprep.subr.mxu1 %v345_v46  ;;  %v1925_v45 = vld [vmem:[%s3482_s1] sm:$0xff]  ;;  %v430_v46 = vld [vmem:[%s3481_s0 + $0xc50] sm:$0xff] }
  0xb6   :  { %1772 = vmatpush3.msra.mxu0 %v100_v47  ;;  %1808 = vmatpush3.msra.mxu1 %v265_v48  ;;  %v1926_v47 = vld [vmem:[%s3482_s1 + $0x18] sm:$0xff]  ;;  %v1927_v48 = vld [vmem:[%s3482_s1 + $0x10] sm:$0xff] }
  0xb7   :  { %1773 = vmatprep.subr.mxu0 %v175_v49  ;;  %1809 = vmatprep.subr.mxu1 %v340_v50  ;;  %v425_v49 = vld [vmem:[%s3481_s0 + $0xc28] sm:$0xff]  ;;  %v420_v50 = vld [vmem:[%s3481_s0 + $0xc00] sm:$0xff] }
  0xb8   :  { %1774 = vmatpush3.msra.mxu0 %v95_v51  ;;  %1810 = vmatpush3.msra.mxu1 %v260_v52  ;;  %v415_v51 = vld [vmem:[%s3481_s0 + $0xbd8] sm:$0xff]  ;;  %v380_v52 = vld [vmem:[%s3481_s0 + $0xac0] sm:$0xff] }
  0xb9   :  { %1775 = vmatprep.subr.mxu0 %v170_v53  ;;  %1811 = vmatprep.subr.mxu1 %v335_v55  ;;  %v375_v53 = vld [vmem:[%s3481_s0 + $0xa98] sm:$0xff]  ;;  %v370_v55 = vld [vmem:[%s3481_s0 + $0xa70] sm:$0xff] }
  0xba   :  { %1776 = vmatpush3.msra.mxu0 %v90_v56  ;;  %1812 = vmatpush3.msra.mxu1 %v255_v58  ;;  %v365_v56 = vld [vmem:[%s3481_s0 + $0xa48] sm:$0xff]  ;;  %v360_v58 = vld [vmem:[%s3481_s0 + $0xa20] sm:$0xff] }
  0xbb   :  { %1777 = vmatprep.subr.mxu0 %v165_v59  ;;  %1813 = vmatprep.subr.mxu1 %v330_v62 }
  0xbc   :  { %1778 = vmatpush3.msra.mxu0 %v85_v0  ;;  %1814 = vmatpush3.msra.mxu1 %v250_v2 }
  0xbd   :  { %1779 = vmatprep.subr.mxu0 %v160_v4  ;;  %1815 = vmatprep.subr.mxu1 %v325_v6 }
  0xbe   :  { %1780 = vmatpush3.msra.mxu0 %v80_v7  ;;  %1816 = vmatpush3.msra.mxu1 %v245_v8 }
  0xbf   :  { %1781 = vmatprep.subr.mxu0 %v155_v9  ;;  %1817 = vmatprep.subr.mxu1 %v320_v11 }
  0xc0   :  { %1782 = vmatpush3.msra.mxu0 %v75_v12  ;;  %1818 = vmatpush3.msra.mxu1 %v240_v13 }
  0xc1   :  { %1783 = vmatprep.subr.mxu0 %v150_v15  ;;  %1819 = vmatprep.subr.mxu1 %v315_v16 }
  0xc2   :  { %1784 = vmatpush3.msra.mxu0 %v70_v17  ;;  %1820 = vmatpush3.msra.mxu1 %v235_v18 }
  0xc3   :  { %1785 = vmatprep.subr.mxu0 %v145_v19  ;;  %1821 = vmatprep.subr.mxu1 %v310_v21 }
  0xc4   :  { %1786 = vmatpush3.msra.mxu0 %v65_v22  ;;  %1822 = vmatpush3.msra.mxu1 %v230_v23 }
  0xc5   :  { %1787 = vmatprep.subr.mxu0 %v140_v24  ;;  %1823 = vmatprep.subr.mxu1 %v305_v25 }
  0xc6   :  { %1788 = vmatpush3.msra.mxu0 %v60_v26  ;;  %1824 = vmatpush3.msra.mxu1 %v225_v27 }
  0xc7   :  { %1789 = vmatprep.subr.mxu0 %v135_v28  ;;  %1825 = vmatprep.subr.mxu1 %v300_v30  ;;  %v3293_v30 = vld [vmem:[%s3484_s5] sm:$0xff] }
  0xc8   :  { %1790 = vmatpush3.msra.mxu0 %v55_v31  ;;  %1826 = vmatpush3.msra.mxu1 %v220_v32  ;;  %v3303_v31 = vld [vmem:[%s3484_s5 + $0x8] sm:$0xff] }
  0xc9   :  { %1791 = vmatprep.subr.mxu0 %v130_v33  ;;  %1827 = vmatprep.subr.mxu1 %v295_v34 }
  0xca   :  { %1792 = vmatpush3.msra.mxu0 %v50_v35  ;;  %1828 = vmatpush3.msra.mxu1 %v215_v36 }
  0xcb   :  { %1793 = vmatprep.subr.mxu0 %v125_v60  ;;  %1829 = vmatprep.subr.mxu1 %v290_v37 }
  0xcc   :  { %1794 = vmatpush3.msra.mxu0 %v45_v38  ;;  %1830 = vmatpush3.msra.mxu1 %v210_v39 }
  0xcd   :  { %1795 = vmatprep.subr.mxu0 %v120_v63  ;;  %1831 = vmatprep.subr.mxu1 %v285_v3 }
  0xce   :  { %1796 = vmatpush3.msra.mxu0 %v40_v5  ;;  %974 = vmatprep.mubr.f32.mxu0 %v1924_v43 }
  0xcf   :  { %1832 = vmatpush3.msra.mxu1 %v205_v40  ;;  %975 = vmatmul.mubr.f32.vlgmr.msra.gmra.mxu0 %v1925_v45 }
  0xd0   :  { %1833 = vmatprep.subr.mxu1 %v280_v41  ;;  %1867 = vmatprep.subr.mxu0 %v435_v42 }
  0xd1   :  { %1834 = vmatpush3.msra.mxu1 %v200_v44  ;;  %1049 = vmatprep.mubr.f32.mxu1 %v1926_v47 }
  0xd2   :  { %1868 = vmatpush3.msra.mxu0 %v435_v42  ;;  %1050 = vmatmul.mubr.f32.vlgmr.msra.gmra.mxu1 %v1927_v48 }
  0xd3   :  { %1869 = vmatprep.subr.mxu0 %v430_v46  ;;  %979 = vmatprep.mubr.f32.mxu0 %v2531_v54  ;;  %v410_v54 = vld [vmem:[%s3481_s0 + $0xbb0] sm:$0xff] }
  0xd4   :  { %1870 = vmatpush3.msra.mxu0 %v430_v46  ;;  %1054 = vmatprep.mubr.f32.mxu1 %v2554_v61  ;;  %v400_v61 = vld [vmem:[%s3481_s0 + $0xb60] sm:$0xff] }
  0xd5   :  { %1871 = vmatprep.subr.mxu0 %v425_v49  ;;  %980 = vmatmul.mubr.f32.gmra.mxu0 %v2542_v57  ;;  %v405_v57 = vld [vmem:[%s3481_s0 + $0xb88] sm:$0xff] }
  0xd6   :  { %1872 = vmatpush3.msra.mxu0 %v425_v49  ;;  %1055 = vmatmul.mubr.f32.gmra.mxu1 %v2566_v1  ;;  %v395_v1 = vld [vmem:[%s3481_s0 + $0xb38] sm:$0xff] }
  0xd7   :  { %1873 = vmatprep.subr.mxu0 %v420_v50  ;;  %1899 = vmatprep.mubr.f32.mxu0 %v2591_v10  ;;  %v390_v10 = vld [vmem:[%s3481_s0 + $0xb10] sm:$0xff] }
  0xd8   :  { %1874 = vmatpush3.msra.mxu0 %v420_v50  ;;  %1208 = vmatprep.mubr.f32.mxu1 %v1928_v14 }
  0xd9   :  { %1875 = vmatprep.subr.mxu0 %v415_v51  ;;  %1919 = vset.pattern.permute.xlu1 %v1929_v29  ;;  %v385_v29 = vld [vmem:[%s3481_s0 + $0xae8] sm:$0xff] }
  0xda   :  { %1876 = vmatpush3.msra.mxu0 %v415_v51 }
  0xdb   :  { %1877 = vmatprep.subr.mxu0 %v410_v54 }
  0xdc   :  { %1878 = vmatpush3.msra.mxu0 %v410_v54 }
  0xdd   :  { %1879 = vmatprep.subr.mxu0 %v405_v57 }
  0xde   :  { %1880 = vmatpush3.msra.mxu0 %v405_v57 }
  0xdf   :  { %1881 = vmatprep.subr.mxu0 %v400_v61 }
  0xe0   :  { %1882 = vmatpush3.msra.mxu0 %v400_v61 }
  0xe1   :  { %1883 = vmatprep.subr.mxu0 %v395_v1 }
  0xe2   :  { %1884 = vmatpush3.msra.mxu0 %v395_v1 }
  0xe3   :  { %1885 = vmatprep.subr.mxu0 %v390_v10 }
  0xe4   :  { %1886 = vmatpush3.msra.mxu0 %v390_v10 }
  0xe5   :  { %1887 = vmatprep.subr.mxu0 %v385_v29 }
  0xe6   :  { %1888 = vmatpush3.msra.mxu0 %v385_v29 }
  0xe7   :  { %1889 = vmatprep.subr.mxu0 %v380_v52 }
  0xe8   :  { %1890 = vmatpush3.msra.mxu0 %v380_v52 }
  0xe9   :  { %1891 = vmatprep.subr.mxu0 %v375_v53 }
  0xea   :  { %1892 = vmatpush3.msra.mxu0 %v375_v53 }
  0xeb   :  { %1893 = vmatprep.subr.mxu0 %v370_v55 }
  0xec   :  { %1894 = vmatpush3.msra.mxu0 %v370_v55 }
  0xed   :  { %1895 = vmatprep.subr.mxu0 %v365_v56 }
  0xee   :  { %1896 = vmatpush3.msra.mxu0 %v365_v56 }
  0xef   :  { %1897 = vmatprep.subr.mxu0 %v360_v58 }
  0xf0   :  { %1898 = vmatpush3.msra.mxu0 %v360_v58 }
  0xf1   :  { %1900 = vmatmul.mubr.f32.vlgmr.msra.gmra.mxu0 %v2622_v20 }
  0xf2   :  { %1549 = vmatprep.mubr.f32.mxu0 %v1928_v14 }
 0x102   :  { %v514_v59 = vpop.f32.mrf.mxu0 }
 0x104   :  { %v516_v62 = vpop.f32.mrf.mxu0 }
 0x105   :  { %v591_v0 = vpop.f32.mrf.mxu1  ;;  %v3272_v4 = vpop.permute.xlu0 %445 }
 0x107   :  { %v593_v7 = vpop.f32.mrf.mxu1 }
 0x10a   :  { %v3274_v11 = vpop.permute.xlu0 %440 }
 0x10b   :  { %v517_v16 = vadd.f32 %v516_v62, %v3274_v11  ;;  %v515_v17 = vadd.f32 %v514_v59, %v3274_v11 }
 0x10d   :  { %v594_v23 = vadd.f32 %v593_v7, %v517_v16  ;;  %v592_v25 = vadd.f32 %v591_v0, %v515_v17 }
 0x11f   :  { %v520_v2 = vpop.f32.mrf.mxu0 }
 0x120   :  { %v521_v15 = vadd.f32 %v520_v2, %v3272_v4 }
 0x121   :  { %v522_v6 = vpop.f32.mrf.mxu0 }
 0x122   :  { %v597_v8 = vpop.f32.mrf.mxu1  ;;  %v523_v12 = vadd.f32 %v522_v6, %v3272_v4 }
 0x123   :  { %v598_v21 = vadd.f32 %v597_v8, %v521_v15 }
 0x124   :  { %v599_v20 = vpop.f32.mrf.mxu1 }
 0x125   :  { %v600_v19 = vadd.f32 %v599_v20, %v523_v12 }
 0x126   :  { %v668_v9 = vpop.f32.mrf.mxu0 }
 0x127   :  { %v3287_v28 = vadd.f32 %v668_v9, %v592_v25 }
 0x128   :  { %v670_v13 = vpop.f32.mrf.mxu0 }
 0x129   :  { %v3284_v27 = vadd.f32 %v670_v13, %v594_v23 }
 0x12b   :  { %v674_v18 = vpop.f32.mrf.mxu0 }
 0x12c   :  { %v3282_v26 = vadd.f32 %v674_v18, %v598_v21 }
 0x12d   :  { %v676_v22 = vpop.f32.mrf.mxu0 }
 0x12e   :  { %v3280_v24 = vadd.f32 %v676_v22, %v600_v19 }
 0x130   :  { %1172 = vmatprep.subr.mxu1 %v3280_v24 }
 0x131   :  { %1173 = vmatpush1.msra.mxu1 %v3282_v26 }
 0x132   :  { %1174 = vmatprep.subr.mxu1 %v3284_v27 }
 0x133   :  { %1175 = vmatpush1.msra.mxu1 %v3287_v28 }
 0x134   :  { %1753 = vmatmul.mubr.msk.f32.vlgmr.msra.gmra.mxu1 %vm1137_vm0, %v3293_v30 }
 0x135   :  { %1214 = vmatprep.mubr.f32.mxu1 %v1928_v14 }
 0x138   :  { %1754 = vmatmul.mubr.msk.f32.gmra.mxu1 %vm1137_vm0, %v3303_v31 }
 0x139   :  { %1285 = vmatprep.mubr.f32.mxu1 %v1928_v14 }
 0x14c   :  { %v745_v32 = vpop.f32.mrf.mxu1 }
 0x14d   :  { %v746_v43 = vadd.f32 %v745_v32, %v3274_v11 }
 0x14e   :  { %v747_v33 = vpop.f32.mrf.mxu1 }
 0x14f   :  { %v748_v41 = vadd.f32 %v747_v33, %v3274_v11 }
 0x169   :  { %v751_v34 = vpop.f32.mrf.mxu1 }
 0x16a   :  { %v752_v38 = vadd.f32 %v751_v34, %v3272_v4 }
 0x16b   :  { %v753_v35 = vpop.f32.mrf.mxu1  ;;  %v822_v36 = vpop.f32.mrf.mxu0 }
 0x16c   :  { %v754_v39 = vadd.f32 %v753_v35, %v3272_v4  ;;  %v823_v46 = vadd.f32 %v822_v36, %v746_v43 }
 0x16d   :  { %v824_v60 = vpop.f32.mrf.mxu0 }
 0x16e   :  { %v899_v37 = vpop.f32.mrf.mxu1  ;;  %v825_v45 = vadd.f32 %v824_v60, %v748_v41 }
 0x16f   :  { %v3319_v51 = vadd.f32 %v899_v37, %v823_v46 }
 0x170   :  { %v901_v3 = vpop.f32.mrf.mxu1 }
 0x171   :  { %v828_v63 = vpop.f32.mrf.mxu0  ;;  %v3316_v50 = vadd.f32 %v901_v3, %v825_v45 }
 0x172   :  { %v829_v5 = vadd.f32 %v828_v63, %v752_v38  ;;  %v1665_v38 = vld [vmem:[%s3485_s3] sm:$0xff] }
 0x173   :  { %v830_v40 = vpop.f32.mrf.mxu0  ;;  %v1687_v63 = vld [vmem:[%s3486_s4] sm:$0xff] }
 0x174   :  { %v831_v42 = vadd.f32 %v830_v40, %v754_v39  ;;  %v1666_v39 = vld [vmem:[%s3485_s3 + $0x8] sm:$0xff] }
 0x175   :  { %v905_v44 = vpop.f32.mrf.mxu1 }
 0x176   :  { %v3312_v47 = vadd.f32 %v905_v44, %v829_v5 }
 0x177   :  { %v907_v48 = vpop.f32.mrf.mxu1 }
 0x178   :  { %v3314_v49 = vadd.f32 %v907_v48, %v831_v42 }
 0x17a   :  { %1249 = vmatprep.subr.mxu1 %v3314_v49 }
 0x17b   :  { %1250 = vmatpush1.msra.mxu1 %v3312_v47 }
 0x17c   :  { %1251 = vmatprep.subr.mxu1 %v3316_v50 }
 0x17d   :  { %1252 = vmatpush1.msra.mxu1 %v3319_v51 }
 0x17e   :  { %1755 = vmatmul.mubr.msk.f32.vlgmr.msra.gmra.mxu1 %vm1137_vm0, %v3293_v30 }
 0x17f   :  { %1291 = vmatprep.mubr.f32.mxu1 %v1928_v14 }
 0x182   :  { %1756 = vmatmul.mubr.msk.f32.gmra.mxu1 %vm1137_vm0, %v3303_v31 }
 0x183   :  { %1906 = vmatprep.mubr.msk.f32.mxu1 %vm1137_vm0, %v3293_v30 }
 0x18f   :  { %v1797_v54 = vpop.f32.mrf.mxu0 }
 0x191   :  { %v1798_v57 = vpop.f32.mrf.mxu0 }
 0x192   :  { %v1835_v61 = vpop.f32.mrf.mxu1  ;;  %v1799_v56 = vadd.f32 %v1798_v57, %v1797_v54 }
 0x194   :  { %v1836_v10 = vpop.f32.mrf.mxu1  ;;  %v977_v62 = vadd.f32 %v1799_v56, %v3274_v11 }
 0x195   :  { %v1800_v1 = vpop.f32.mrf.mxu0  ;;  %v1837_v0 = vadd.f32 %v1836_v10, %v1835_v61 }
 0x196   :  { %v1838_v52 = vpop.f32.mrf.mxu1 }
 0x197   :  { %v1801_v29 = vpop.f32.mrf.mxu0  ;;  %v1052_v8 = vadd.f32 %v1837_v0, %v977_v62 }
 0x198   :  { %v1802_v53 = vadd.f32 %v1801_v29, %v1800_v1  ;;  %v1839_v55 = vpop.f32.mrf.mxu1 }
 0x199   :  { %v1840_v59 = vadd.f32 %v1839_v55, %v1838_v52 }
 0x19a   :  { %v982_v58 = vadd.f32 %v1802_v53, %v3272_v4 }
 0x19c   :  { %v1057_v2 = vadd.f32 %v1840_v59, %v982_v58 }
 0x1b1   :  { %v1901_v6 = vpop.f32.mrf.mxu0 }
 0x1b2   :  { %v1132_v7 = vadd.f32 %v1901_v6, %v1057_v2 }
 0x1b3   :  { %v1126_v9 = vpop.f32.mrf.mxu0 }
 0x1b4   :  { %v1127_v12 = vadd.f32 %v1126_v9, %v1052_v8  ;;  %1902 = vmatprep.subr.mxu1 %v1132_v7 }
 0x1b5   :  { %1903 = vmatpush3.msra.mxu1 %v1132_v7 }
 0x1b6   :  { %1904 = vmatprep.subr.mxu1 %v1127_v12 }
 0x1b7   :  { %1905 = vmatpush3.msra.mxu1 %v1127_v12 }
 0x1b8   :  { %1907 = vmatmul.mubr.msk.f32.vlgmr.msra.gmra.mxu1 %vm1137_vm0, %v3303_v31 }
 0x1b9   :  { %1472 = vmatprep.mubr.f32.mxu1 %v1928_v14 }
 0x1f4   :  { %v1210_v4 = vpop.f32.mrf.mxu1 }
 0x1f6   :  { %v1212_v13 = vpop.f32.mrf.mxu1 }
 0x1f7   :  { %v1373_v19 = vadd.f32 %v1212_v13, %v1210_v4  ;;  %v1688_v13 = vld [vmem:[%s3486_s4 + $0x8] sm:$0xff] }
 0x1f8   :  { %v1216_v15 = vpop.f32.mrf.mxu1 }
 0x1fa   :  { %v1218_v11 = vpop.f32.mrf.mxu1 }
 0x1fb   :  { %v1381_v17 = vadd.f32 %v1218_v11, %v1216_v15 }
 0x23e   :  { %v1287_v20 = vpop.f32.mrf.mxu1 }
 0x23f   :  { %v1374_v23 = vadd.f32 %v1373_v19, %v1287_v20 }
 0x240   :  { %v1289_v16 = vpop.f32.mrf.mxu1 }
 0x241   :  { %v1375_v60 = vadd.f32 %v1374_v23, %v1289_v16 }
 0x242   :  { %v1293_v18 = vpop.f32.mrf.mxu1 }
 0x243   :  { %v1382_v21 = vadd.f32 %v1381_v17, %v1293_v18 }
 0x244   :  { %v1295_v22 = vpop.f32.mrf.mxu1 }
 0x245   :  { %v1383_v25 = vadd.f32 %v1382_v21, %v1295_v22 }
 0x278   :  { %v1908_v32 = vpop.f32.mrf.mxu1 }
 0x279   :  { %v1384_v33 = vsel %vm1376_vm1, %v1908_v32, 0.0 }
 0x27a   :  { %v1364_v34 = vpop.f32.mrf.mxu1  ;;  %v1385_v35 = vadd.f32 %v1384_v33, %v1383_v25 }
 0x27b   :  { %v1377_v36 = vsel %vm1376_vm1, %v1364_v34, 0.0 }
 0x27c   :  { %1386 = vadd.xlane.f32.xlu1 %v1385_v35  ;;  %v1378_v37 = vadd.f32 %v1377_v36, %v1375_v60 }
 0x280   :  { %1379 = vadd.xlane.f32.xlu1 %v1378_v37 }
 0x291   :  { %1669 = vperm.xlu1 %1919, %v1665_v38  }
 0x295   :  { %1674 = vperm.xlu1 %1919, %v1666_v39  }
 0x299   :  { %1691 = vperm.xlu1 %1919, %v1687_v63  }
 0x305   :  { %v1387_v3 = vpop.xlane.xlu1 %1386 }
 0x306   :  { %v3348_v5 = vsub.f32 %v3282_v26, %v1387_v3  ;;  %v3351_v40 = vsub.f32 %v3312_v47, %v1387_v3  ;;  %v3354_v41 = vsub.f32 %v3280_v24, %v1387_v3  ;;  %v3357_v42 = vsub.f32 %v3314_v49, %v1387_v3 }
 0x307   :  { %v3379_v54 = vsub.f32 %v1132_v7, %v1387_v3 }
 0x308   :  { %v1404_v43 = vmul.f32 %v3354_v41, %v3354_v41  ;;  %v1406_v44 = vmul.f32 %v3357_v42, %v3357_v42  ;;  %v1403_v45 = vmul.f32 %v3348_v5, %v3348_v5  ;;  %v1405_v26 = vmul.f32 %v3351_v40, %v3351_v40 }
 0x309   :  { %v1380_v46 = vpop.xlane.xlu1 %1379 }
 0x30a   :  { %v3368_v47 = vsub.f32 %v3287_v28, %v1380_v46  ;;  %v3371_v24 = vsub.f32 %v3319_v51, %v1380_v46  ;;  %1436 = vmatprep.subr.mxu1 %v1404_v43  ;;  %1513 = vmatprep.subr.mxu0 %v1406_v44  ;;  %v3374_v48 = vsub.f32 %v3284_v27, %v1380_v46 }
 0x30b   :  { %1437 = vmatpush1.msra.mxu1 %v1403_v45  ;;  %1514 = vmatpush1.msra.mxu0 %v1405_v26  ;;  %v3377_v49 = vsub.f32 %v3316_v50, %v1380_v46  ;;  %v1392_v61 = vsub.f32 %v1127_v12, %v1380_v46  ;;  %v1407_v50 = vmul.f32 %v3379_v54, %v3379_v54 }
 0x30c   :  { %v1399_v57 = vmul.f32 %v3374_v48, %v3374_v48  ;;  %v1398_v28 = vmul.f32 %v3368_v47, %v3368_v47  ;;  %v1400_v51 = vmul.f32 %v3371_v24, %v3371_v24 }
 0x30d   :  { %v1401_v27 = vmul.f32 %v3377_v49, %v3377_v49  ;;  %v1402_v1 = vmul.f32 %v1392_v61, %v1392_v61  ;;  %v1670_v15 = vpop.permute.xlu1 %1669 }
 0x30e   :  { %1438 = vmatprep.subr.mxu1 %v1399_v57  ;;  %v1720_v57 = vld [vmem:[%s3487_s6 + $0x8] sm:$0xff] }
 0x30f   :  { %1515 = vmatprep.subr.mxu0 %v1401_v27  ;;  %1439 = vmatpush1.msra.mxu1 %v1398_v28  ;;  %v1721_v28 = vld [vmem:[%s3487_s6 + $0x10] sm:$0xff] }
 0x310   :  { %1516 = vmatpush1.msra.mxu0 %v1400_v51  ;;  %1759 = vmatmul.mubr.msk.f32.vlgmr.msra.gmra.mxu1 %vm1137_vm0, %v3293_v30  ;;  %v1722_v51 = vld [vmem:[%s3487_s6 + $0x18] sm:$0xff] }
 0x311   :  { %1909 = vmatprep.subr.mxu1 %v1407_v50  ;;  %1478 = vmatprep.mubr.f32.mxu1 %v1928_v14  ;;  %v1675_v11 = vpop.permute.xlu1 %1674 }
 0x312   :  { %1910 = vmatpush3.msra.mxu1 %v1407_v50  ;;  %1761 = vmatmul.mubr.msk.f32.vlgmr.msra.gmra.mxu0 %vm1137_vm0, %v3293_v30 }
 0x313   :  { %1911 = vmatprep.subr.mxu1 %v1402_v1  ;;  %1555 = vmatprep.mubr.f32.mxu0 %v1928_v14 }
 0x314   :  { %1912 = vmatpush3.msra.mxu1 %v1402_v1 }
 0x315   :  { %1760 = vmatmul.mubr.msk.f32.gmra.mxu1 %vm1137_vm0, %v3303_v31  ;;  %v1692_v20 = vpop.permute.xlu1 %1691 }
 0x316   :  { %1913 = vmatprep.mubr.msk.f32.mxu1 %vm1137_vm0, %v3293_v30  ;;  %1762 = vmatmul.mubr.msk.f32.gmra.mxu0 %vm1137_vm0, %v3303_v31 }
 0x319   :  { %1914 = vmatmul.mubr.msk.f32.vlgmr.msra.gmra.mxu1 %vm1137_vm0, %v3303_v31 }
 0x3d0   :  { %v1474_v10 = vpop.f32.mrf.mxu1 }
 0x3d2   :  { %v1476_v29 = vpop.f32.mrf.mxu1  ;;  %v1551_v52 = vpop.f32.mrf.mxu0 }
 0x3d3   :  { %v1637_v53 = vadd.f32 %v1476_v29, %v1474_v10 }
 0x3d4   :  { %v1553_v55 = vpop.f32.mrf.mxu0 }
 0x3d5   :  { %v1480_v56 = vpop.f32.mrf.mxu1  ;;  %v1638_v14 = vadd.f32 %v1637_v53, %v1551_v52  ;;  %v1723_v53 = vld [vmem:[%s3487_s6 + $0x20] sm:$0xff] }
 0x3d6   :  { %v1557_v59 = vpop.f32.mrf.mxu0 }
 0x3d7   :  { %v1482_v58 = vpop.f32.mrf.mxu1  ;;  %v1639_v6 = vadd.f32 %v1638_v14, %v1553_v55 }
 0x3d8   :  { %v1644_v62 = vadd.f32 %v1482_v58, %v1480_v56  ;;  %v1559_v30 = vpop.f32.mrf.mxu0  ;;  %v1724_v56 = vld [vmem:[%s3487_s6 + $0x28] sm:$0xff] }
 0x3d9   :  { %v1915_v0 = vpop.f32.mrf.mxu1 }
 0x3da   :  { %v1645_v2 = vadd.f32 %v1644_v62, %v1557_v59  ;;  %v1647_v31 = vsel %vm1376_vm1, %v1915_v0, 0.0  ;;  %v1725_v62 = vld [vmem:[%s3487_s6 + $0x30] sm:$0xff]  ;;  %v1726_v0 = vld [vmem:[%s3487_s6 + $0x38] sm:$0xff] }
 0x3db   :  { %v1628_v7 = vpop.f32.mrf.mxu1 }
 0x3dc   :  { %v1646_v8 = vadd.f32 %v1645_v2, %v1559_v30  ;;  %v1640_v9 = vsel %vm1376_vm1, %v1628_v7, 0.0  ;;  %v1727_v2 = vld [vmem:[%s3487_s6 + $0x40] sm:$0xff] }
 0x3dd   :  { %v1641_v12 = vadd.f32 %v1640_v9, %v1639_v6  ;;  %v1728_v9 = vld [vmem:[%s3487_s6 + $0x48] sm:$0xff] }
 0x3de   :  { %v1648_v4 = vadd.f32 %v1647_v31, %v1646_v8 }
 0x3df   :  { %1642 = vadd.xlane.f32.xlu0 %v1641_v12 }
 0x3e0   :  { %1649 = vadd.xlane.f32.xlu1 %v1648_v4 }
 0x3f1   :  { %1696 = vperm.xlu1 %1919, %v1688_v13  }
 0x468   :  { %v1643_v16 = vpop.xlane.xlu0 %1642 }
 0x469   :  { %v1651_v17 = vadd.f32 1e-05, %v1643_v16  ;;  %v1650_v18 = vpop.xlane.xlu1 %1649 }
 0x46a   :  { %v1652_v19 = vadd.f32 1e-05, %v1650_v18 }
 0x46b   :  { %1920 = vrsqrt.f32 %v1651_v17 }
 0x46c   :  { %1922 = vrsqrt.f32 %v1652_v19 }
 0x478   :  { %v1921_v21 = vpop.eup %1920 }
 0x479   :  { %v1923_v22 = vpop.eup %1922  ;;  %v1655_v23 = vmul.f32 %v1921_v21, %v3368_v47  ;;  %v1656_v25 = vmul.f32 %v1921_v21, %v3374_v48  ;;  %v1657_v32 = vmul.f32 %v1921_v21, %v3371_v24  ;;  %v1658_v33 = vmul.f32 %v1921_v21, %v3377_v49 }
 0x47a   :  { %v1659_v34 = vmul.f32 %v1921_v21, %v1392_v61  ;;  %v1660_v35 = vmul.f32 %v1923_v22, %v3348_v5  ;;  %v1661_v36 = vmul.f32 %v1923_v22, %v3354_v41  ;;  %v1662_v60 = vmul.f32 %v1923_v22, %v3351_v40  ;;  %v1719_v40 = vld [vmem:[%s3487_s6] sm:$0xff] }
 0x47b   :  { %v1663_v37 = vmul.f32 %v1923_v22, %v3357_v42  ;;  %v1664_v38 = vmul.f32 %v1923_v22, %v3379_v54  ;;  %v1677_v39 = vmul.f32 %v1670_v15, %v1655_v23  ;;  %v1678_v63 = vmul.f32 %v1670_v15, %v1656_v25  ;;  %v1697_v42 = vpop.permute.xlu1 %1696 }
 0x47c   :  { %v1679_v3 = vmul.f32 %v1670_v15, %v1657_v32  ;;  %v1680_v43 = vmul.f32 %v1670_v15, %v1658_v33  ;;  %v1681_v44 = vmul.f32 %v1670_v15, %v1659_v34  ;;  %v1682_v45 = vmul.f32 %v1675_v11, %v1660_v35 }
 0x47d   :  { %v1683_v26 = vmul.f32 %v1675_v11, %v1661_v36  ;;  %v1684_v46 = vmul.f32 %v1675_v11, %v1662_v60  ;;  %v1685_v47 = vmul.f32 %v1675_v11, %v1663_v37  ;;  %v1686_v24 = vmul.f32 %v1675_v11, %v1664_v38 }
 0x47e   :  { %v1699_v48 = vadd.f32 %v1692_v20, %v1677_v39  ;;  %v1700_v5 = vadd.f32 %v1692_v20, %v1678_v63  ;;  %v1701_v49 = vadd.f32 %v1692_v20, %v1679_v3  ;;  %v1702_v41 = vadd.f32 %v1692_v20, %v1680_v43 }
 0x47f   :  { %v1703_v54 = vadd.f32 %v1692_v20, %v1681_v44  ;;  %v1704_v27 = vadd.f32 %v1697_v42, %v1682_v45  ;;  %v1705_v61 = vadd.f32 %v1697_v42, %v1683_v26  ;;  %v1706_v50 = vadd.f32 %v1697_v42, %v1684_v46 }
 0x480   :  { %v1709_v1 = vmax.f32 %v1699_v48, 0.0  ;;  %v1710_v10 = vmax.f32 %v1700_v5, 0.0  ;;  %v1711_v29 = vmax.f32 %v1701_v49, 0.0  ;;  %v1712_v52 = vmax.f32 %v1702_v41, 0.0 }
 0x481   :  { %v1713_v55 = vmax.f32 %v1703_v54, 0.0  ;;  %v1707_v14 = vadd.f32 %v1697_v42, %v1685_v47  ;;  %v1708_v58 = vadd.f32 %v1697_v42, %v1686_v24  ;;  %v1714_v59 = vmax.f32 %v1704_v27, 0.0 }
 0x482   :  { %v1729_v6 = vadd.f32 %v1719_v40, %v1709_v1  ;;  %v1730_v30 = vadd.f32 %v1720_v57, %v1710_v10  ;;  %v1731_v7 = vadd.f32 %v1721_v28, %v1711_v29  ;;  %v1732_v8 = vadd.f32 %v1722_v51, %v1712_v52 }
 0x483   :  { %v1733_v31 = vadd.f32 %v1723_v53, %v1713_v55  ;;  %v1715_v12 = vmax.f32 %v1705_v61, 0.0  ;;  %v1716_v4 = vmax.f32 %v1706_v50, 0.0  ;;  %v1717_v13 = vmax.f32 %v1707_v14, 0.0 }
 0x484   :  { %1739 = vst [vmem:[%s3488_s7] sm:$0xff] %v1729_v6  ;;  %1740 = vst [vmem:[%s3488_s7 + $0x8] sm:$0xff] %v1730_v30  ;;  %v1718_v15 = vmax.f32 %v1708_v58, 0.0  ;;  %v1734_v11 = vadd.f32 %v1724_v56, %v1714_v59 }
 0x485   :  { %1741 = vst [vmem:[%s3488_s7 + $0x10] sm:$0xff] %v1731_v7  ;;  %1742 = vst [vmem:[%s3488_s7 + $0x18] sm:$0xff] %v1732_v8  ;;  %v1735_v20 = vadd.f32 %v1725_v62, %v1715_v12  ;;  %v1736_v16 = vadd.f32 %v1726_v0, %v1716_v4  ;;  %v1737_v17 = vadd.f32 %v1727_v2, %v1717_v13 }
 0x486   :  { %1743 = vst.msk [vmem:[%s3488_s7 + $0x20] sm:$0xff] %vm1376_vm1, %v1733_v31  ;;  %v1738_v18 = vadd.f32 %v1728_v9, %v1718_v15  ;;  %1744 = vst [vmem:[%s3488_s7 + $0x28] sm:$0xff] %v1734_v11 }
 0x487   :  { %1745 = vst [vmem:[%s3488_s7 + $0x30] sm:$0xff] %v1735_v20  ;;  %1746 = vst [vmem:[%s3488_s7 + $0x38] sm:$0xff] %v1736_v16 }
 0x488   :  { %1747 = vst [vmem:[%s3488_s7 + $0x40] sm:$0xff] %v1737_v17  ;;  %1748 = vst.msk [vmem:[%s3488_s7 + $0x48] sm:$0xff] %vm1376_vm1, %v1738_v18 }

// kernel: _lambda_.9
= control target key start
LH: loop header
LB: loop body
LE: loop exit
PB: predicated region body
PF: predicated region fallthrough
CT: control target
= control target key end

     0   :  { %v3969_v3 = vmov 0.0   ;;  %vm835_vm0 = vcmask 523264   ;;  %vm2260_vm1 = vcmask 64512   ;;  %vm2992_vm2 = vcmask 556032   ;;  %s6970_s0 = inlined_call_operand.vmem [shape: f32[320,2500], index: 0, kind: input, shape index: {}]   ;;  %s6971_s1 = inlined_call_operand.vmem [shape: f32[8,320], index: 1, kind: input, shape index: {}]   ;;  %s6972_s2 = inlined_call_operand.vmem [shape: f32[8,1], index: 2, kind: input, shape index: {}]   ;;  %s6973_s5 = inlined_call_operand.vmem [shape: f32[8,8], index: 5, kind: input, shape index: {}]   ;;  %s6974_s3 = inlined_call_operand.vmem [shape: f32[8,1], index: 3, kind: input, shape index: {}]   ;;  %s6975_s4 = inlined_call_operand.vmem [shape: f32[8,1], index: 4, kind: input, shape index: {}]   ;;  %s6976_s6 = inlined_call_operand.vmem [shape: f32[8,2500], index: 6, kind: input, shape index: {}]   ;;  %s6977_s7 = inlined_call_operand.vmem [shape: f32[8,2500], index: 7, kind: output, shape index: {}]  }
   0x1   :  { %v330_v0 = vld [vmem:[%s6970_s0 + $0x968] sm:$0xff]  ;;  %v329_v2 = vld [vmem:[%s6970_s0 + $0x960] sm:$0xff]  ;;  %974 = vmatprep.mubr.f32.mxu1 %v3969_v3  ;;  %v4114_v34 = vld [vmem:[%s6971_s1 + $0x10] sm:$0xff] }
   0x2   :  { %v810_v1 = vld [vmem:[%s6970_s0 + $0x1868] sm:$0xff]  ;;  %839 = vmatprep.subr.mxu0 %v330_v0  ;;  %v809_v4 = vld [vmem:[%s6970_s0 + $0x1860] sm:$0xff]  ;;  %v332_v35 = vld [vmem:[%s6970_s0 + $0x978] sm:$0xff] }
   0x3   :  { %926 = vmatprep.subr.mxu1 %v810_v1  ;;  %v310_v5 = vld [vmem:[%s6970_s0 + $0x8c8] sm:$0xff]  ;;  %840 = vmatpush1.msra.mxu0 %v329_v2  ;;  %v309_v7 = vld [vmem:[%s6970_s0 + $0x8c0] sm:$0xff]  ;;  %v331_v37 = vld [vmem:[%s6970_s0 + $0x970] sm:$0xff] }
   0x4   :  { %v790_v6 = vld [vmem:[%s6970_s0 + $0x17c8] sm:$0xff]  ;;  %927 = vmatpush1.msra.mxu1 %v809_v4  ;;  %v789_v8 = vld [vmem:[%s6970_s0 + $0x17c0] sm:$0xff]  ;;  %841 = vmatprep.subr.mxu0 %v310_v5  ;;  %v312_v39 = vld [vmem:[%s6970_s0 + $0x8d8] sm:$0xff] }
   0x5   :  { %v290_v9 = vld [vmem:[%s6970_s0 + $0x828] sm:$0xff]  ;;  %928 = vmatprep.subr.mxu1 %v790_v6  ;;  %v289_v11 = vld [vmem:[%s6970_s0 + $0x820] sm:$0xff]  ;;  %842 = vmatpush1.msra.mxu0 %v309_v7  ;;  %v311_v41 = vld [vmem:[%s6970_s0 + $0x8d0] sm:$0xff] }
   0x6   :  { %v770_v10 = vld [vmem:[%s6970_s0 + $0x1728] sm:$0xff]  ;;  %v769_v12 = vld [vmem:[%s6970_s0 + $0x1720] sm:$0xff]  ;;  %929 = vmatpush1.msra.mxu1 %v789_v8  ;;  %843 = vmatprep.subr.mxu0 %v290_v9  ;;  %v292_v43 = vld [vmem:[%s6970_s0 + $0x838] sm:$0xff] }
   0x7   :  { %v270_v13 = vld [vmem:[%s6970_s0 + $0x788] sm:$0xff]  ;;  %930 = vmatprep.subr.mxu1 %v770_v10  ;;  %v269_v15 = vld [vmem:[%s6970_s0 + $0x780] sm:$0xff]  ;;  %844 = vmatpush1.msra.mxu0 %v289_v11  ;;  %v291_v45 = vld [vmem:[%s6970_s0 + $0x830] sm:$0xff] }
   0x8   :  { %v750_v14 = vld [vmem:[%s6970_s0 + $0x1688] sm:$0xff]  ;;  %v749_v16 = vld [vmem:[%s6970_s0 + $0x1680] sm:$0xff]  ;;  %931 = vmatpush1.msra.mxu1 %v769_v12  ;;  %845 = vmatprep.subr.mxu0 %v270_v13  ;;  %v272_v47 = vld [vmem:[%s6970_s0 + $0x798] sm:$0xff] }
   0x9   :  { %v250_v17 = vld [vmem:[%s6970_s0 + $0x6e8] sm:$0xff]  ;;  %932 = vmatprep.subr.mxu1 %v750_v14  ;;  %v249_v19 = vld [vmem:[%s6970_s0 + $0x6e0] sm:$0xff]  ;;  %846 = vmatpush1.msra.mxu0 %v269_v15  ;;  %v271_v49 = vld [vmem:[%s6970_s0 + $0x790] sm:$0xff] }
   0xa   :  { %v730_v18 = vld [vmem:[%s6970_s0 + $0x15e8] sm:$0xff]  ;;  %v729_v20 = vld [vmem:[%s6970_s0 + $0x15e0] sm:$0xff]  ;;  %933 = vmatpush1.msra.mxu1 %v749_v16  ;;  %847 = vmatprep.subr.mxu0 %v250_v17  ;;  %v252_v51 = vld [vmem:[%s6970_s0 + $0x6f8] sm:$0xff] }
   0xb   :  { %v230_v21 = vld [vmem:[%s6970_s0 + $0x648] sm:$0xff]  ;;  %934 = vmatprep.subr.mxu1 %v730_v18  ;;  %v229_v23 = vld [vmem:[%s6970_s0 + $0x640] sm:$0xff]  ;;  %848 = vmatpush1.msra.mxu0 %v249_v19  ;;  %v251_v53 = vld [vmem:[%s6970_s0 + $0x6f0] sm:$0xff] }
   0xc   :  { %v710_v22 = vld [vmem:[%s6970_s0 + $0x1548] sm:$0xff]  ;;  %v709_v24 = vld [vmem:[%s6970_s0 + $0x1540] sm:$0xff]  ;;  %935 = vmatpush1.msra.mxu1 %v729_v20  ;;  %849 = vmatprep.subr.mxu0 %v230_v21  ;;  %v232_v55 = vld [vmem:[%s6970_s0 + $0x658] sm:$0xff] }
   0xd   :  { %v210_v25 = vld [vmem:[%s6970_s0 + $0x5a8] sm:$0xff]  ;;  %936 = vmatprep.subr.mxu1 %v710_v22  ;;  %v209_v27 = vld [vmem:[%s6970_s0 + $0x5a0] sm:$0xff]  ;;  %850 = vmatpush1.msra.mxu0 %v229_v23  ;;  %v231_v57 = vld [vmem:[%s6970_s0 + $0x650] sm:$0xff] }
   0xe   :  { %v690_v26 = vld [vmem:[%s6970_s0 + $0x14a8] sm:$0xff]  ;;  %v689_v28 = vld [vmem:[%s6970_s0 + $0x14a0] sm:$0xff]  ;;  %937 = vmatpush1.msra.mxu1 %v709_v24  ;;  %851 = vmatprep.subr.mxu0 %v210_v25  ;;  %v212_v59 = vld [vmem:[%s6970_s0 + $0x5b8] sm:$0xff] }
   0xf   :  { %v190_v29 = vld [vmem:[%s6970_s0 + $0x508] sm:$0xff]  ;;  %938 = vmatprep.subr.mxu1 %v690_v26  ;;  %v189_v31 = vld [vmem:[%s6970_s0 + $0x500] sm:$0xff]  ;;  %852 = vmatpush1.msra.mxu0 %v209_v27  ;;  %v211_v61 = vld [vmem:[%s6970_s0 + $0x5b0] sm:$0xff] }
  0x10   :  { %v670_v30 = vld [vmem:[%s6970_s0 + $0x1408] sm:$0xff]  ;;  %v669_v32 = vld [vmem:[%s6970_s0 + $0x1400] sm:$0xff]  ;;  %939 = vmatpush1.msra.mxu1 %v689_v28  ;;  %853 = vmatprep.subr.mxu0 %v190_v29  ;;  %v192_v63 = vld [vmem:[%s6970_s0 + $0x518] sm:$0xff] }
  0x11   :  { %v170_v33 = vld [vmem:[%s6970_s0 + $0x468] sm:$0xff]  ;;  %940 = vmatprep.subr.mxu1 %v670_v30  ;;  %v169_v36 = vld [vmem:[%s6970_s0 + $0x460] sm:$0xff]  ;;  %854 = vmatpush1.msra.mxu0 %v189_v31  ;;  %v191_v1 = vld [vmem:[%s6970_s0 + $0x510] sm:$0xff] }
  0x12   :  { %941 = vmatpush1.msra.mxu1 %v669_v32  ;;  %v150_v38 = vld [vmem:[%s6970_s0 + $0x3c8] sm:$0xff]  ;;  %855 = vmatprep.subr.mxu0 %v170_v33  ;;  %v149_v40 = vld [vmem:[%s6970_s0 + $0x3c0] sm:$0xff]  ;;  %v172_v4 = vld [vmem:[%s6970_s0 + $0x478] sm:$0xff] }
  0x13   :  { %3927 = vmatmul.mubr.msk.f32.vlgmr.msra.gmra.mxu1 %vm835_vm0, %v4114_v34  ;;  %981 = vmatprep.subr.mxu1 %v332_v35  ;;  %v130_v42 = vld [vmem:[%s6970_s0 + $0x328] sm:$0xff]  ;;  %v129_v44 = vld [vmem:[%s6970_s0 + $0x320] sm:$0xff]  ;;  %v171_v6 = vld [vmem:[%s6970_s0 + $0x470] sm:$0xff] }
  0x14   :  { %856 = vmatpush1.msra.mxu0 %v169_v36  ;;  %982 = vmatpush1.msra.mxu1 %v331_v37  ;;  %v110_v46 = vld [vmem:[%s6970_s0 + $0x288] sm:$0xff]  ;;  %v109_v48 = vld [vmem:[%s6970_s0 + $0x280] sm:$0xff]  ;;  %v152_v8 = vld [vmem:[%s6970_s0 + $0x3d8] sm:$0xff] }
  0x15   :  { %857 = vmatprep.subr.mxu0 %v150_v38  ;;  %983 = vmatprep.subr.mxu1 %v312_v39  ;;  %v90_v50 = vld [vmem:[%s6970_s0 + $0x1e8] sm:$0xff]  ;;  %v89_v52 = vld [vmem:[%s6970_s0 + $0x1e0] sm:$0xff]  ;;  %v151_v10 = vld [vmem:[%s6970_s0 + $0x3d0] sm:$0xff] }
  0x16   :  { %858 = vmatpush1.msra.mxu0 %v149_v40  ;;  %984 = vmatpush1.msra.mxu1 %v311_v41  ;;  %v70_v54 = vld [vmem:[%s6970_s0 + $0x148] sm:$0xff]  ;;  %v69_v56 = vld [vmem:[%s6970_s0 + $0x140] sm:$0xff]  ;;  %v132_v12 = vld [vmem:[%s6970_s0 + $0x338] sm:$0xff] }
  0x17   :  { %859 = vmatprep.subr.mxu0 %v130_v42  ;;  %985 = vmatprep.subr.mxu1 %v292_v43  ;;  %v50_v58 = vld [vmem:[%s6970_s0 + $0xa8] sm:$0xff]  ;;  %v49_v60 = vld [vmem:[%s6970_s0 + $0xa0] sm:$0xff]  ;;  %v131_v14 = vld [vmem:[%s6970_s0 + $0x330] sm:$0xff] }
  0x18   :  { %860 = vmatpush1.msra.mxu0 %v129_v44  ;;  %986 = vmatpush1.msra.mxu1 %v291_v45  ;;  %v30_v62 = vld [vmem:[%s6970_s0 + $0x8] sm:$0xff]  ;;  %v29_v0 = vld [vmem:[%s6970_s0] sm:$0xff]  ;;  %v112_v16 = vld [vmem:[%s6970_s0 + $0x298] sm:$0xff] }
  0x19   :  { %861 = vmatprep.subr.mxu0 %v110_v46  ;;  %987 = vmatprep.subr.mxu1 %v272_v47  ;;  %v650_v2 = vld [vmem:[%s6970_s0 + $0x1368] sm:$0xff]  ;;  %v649_v5 = vld [vmem:[%s6970_s0 + $0x1360] sm:$0xff]  ;;  %v111_v18 = vld [vmem:[%s6970_s0 + $0x290] sm:$0xff] }
  0x1a   :  { %862 = vmatpush1.msra.mxu0 %v109_v48  ;;  %988 = vmatpush1.msra.mxu1 %v271_v49  ;;  %v630_v7 = vld [vmem:[%s6970_s0 + $0x12c8] sm:$0xff]  ;;  %v629_v9 = vld [vmem:[%s6970_s0 + $0x12c0] sm:$0xff]  ;;  %v92_v20 = vld [vmem:[%s6970_s0 + $0x1f8] sm:$0xff] }
  0x1b   :  { %863 = vmatprep.subr.mxu0 %v90_v50  ;;  %989 = vmatprep.subr.mxu1 %v252_v51  ;;  %v610_v11 = vld [vmem:[%s6970_s0 + $0x1228] sm:$0xff]  ;;  %v609_v13 = vld [vmem:[%s6970_s0 + $0x1220] sm:$0xff]  ;;  %v91_v22 = vld [vmem:[%s6970_s0 + $0x1f0] sm:$0xff] }
  0x1c   :  { %864 = vmatpush1.msra.mxu0 %v89_v52  ;;  %990 = vmatpush1.msra.mxu1 %v251_v53  ;;  %v590_v15 = vld [vmem:[%s6970_s0 + $0x1188] sm:$0xff]  ;;  %v589_v17 = vld [vmem:[%s6970_s0 + $0x1180] sm:$0xff]  ;;  %v72_v24 = vld [vmem:[%s6970_s0 + $0x158] sm:$0xff] }
  0x1d   :  { %865 = vmatprep.subr.mxu0 %v70_v54  ;;  %991 = vmatprep.subr.mxu1 %v232_v55  ;;  %v570_v19 = vld [vmem:[%s6970_s0 + $0x10e8] sm:$0xff]  ;;  %v569_v21 = vld [vmem:[%s6970_s0 + $0x10e0] sm:$0xff]  ;;  %v71_v26 = vld [vmem:[%s6970_s0 + $0x150] sm:$0xff] }
  0x1e   :  { %866 = vmatpush1.msra.mxu0 %v69_v56  ;;  %992 = vmatpush1.msra.mxu1 %v231_v57  ;;  %v550_v23 = vld [vmem:[%s6970_s0 + $0x1048] sm:$0xff]  ;;  %v549_v25 = vld [vmem:[%s6970_s0 + $0x1040] sm:$0xff]  ;;  %v52_v28 = vld [vmem:[%s6970_s0 + $0xb8] sm:$0xff] }
  0x1f   :  { %867 = vmatprep.subr.mxu0 %v50_v58  ;;  %993 = vmatprep.subr.mxu1 %v212_v59  ;;  %v530_v27 = vld [vmem:[%s6970_s0 + $0xfa8] sm:$0xff]  ;;  %v529_v29 = vld [vmem:[%s6970_s0 + $0xfa0] sm:$0xff]  ;;  %v51_v30 = vld [vmem:[%s6970_s0 + $0xb0] sm:$0xff] }
  0x20   :  { %868 = vmatpush1.msra.mxu0 %v49_v60  ;;  %994 = vmatpush1.msra.mxu1 %v211_v61  ;;  %v510_v31 = vld [vmem:[%s6970_s0 + $0xf08] sm:$0xff]  ;;  %v32_v32 = vld [vmem:[%s6970_s0 + $0x18] sm:$0xff]  ;;  %v509_v33 = vld [vmem:[%s6970_s0 + $0xf00] sm:$0xff] }
  0x21   :  { %869 = vmatprep.subr.mxu0 %v30_v62  ;;  %995 = vmatprep.subr.mxu1 %v192_v63  ;;  %v31_v35 = vld [vmem:[%s6970_s0 + $0x10] sm:$0xff]  ;;  %v490_v36 = vld [vmem:[%s6970_s0 + $0xe68] sm:$0xff]  ;;  %v652_v37 = vld [vmem:[%s6970_s0 + $0x1378] sm:$0xff] }
  0x22   :  { %870 = vmatpush1.msra.mxu0 %v29_v0  ;;  %996 = vmatpush1.msra.mxu1 %v191_v1  ;;  %v489_v38 = vld [vmem:[%s6970_s0 + $0xe60] sm:$0xff]  ;;  %v651_v39 = vld [vmem:[%s6970_s0 + $0x1370] sm:$0xff]  ;;  %v470_v40 = vld [vmem:[%s6970_s0 + $0xdc8] sm:$0xff] }
  0x23   :  { %871 = vmatprep.subr.mxu0 %v650_v2  ;;  %997 = vmatprep.subr.mxu1 %v172_v4  ;;  %v632_v41 = vld [vmem:[%s6970_s0 + $0x12d8] sm:$0xff]  ;;  %v469_v42 = vld [vmem:[%s6970_s0 + $0xdc0] sm:$0xff]  ;;  %v631_v43 = vld [vmem:[%s6970_s0 + $0x12d0] sm:$0xff] }
  0x24   :  { %872 = vmatpush2.msra.mxu0 %v649_v5  ;;  %998 = vmatpush1.msra.mxu1 %v171_v6  ;;  %v450_v44 = vld [vmem:[%s6970_s0 + $0xd28] sm:$0xff]  ;;  %v612_v45 = vld [vmem:[%s6970_s0 + $0x1238] sm:$0xff]  ;;  %v449_v46 = vld [vmem:[%s6970_s0 + $0xd20] sm:$0xff] }
  0x25   :  { %873 = vmatprep.subr.mxu0 %v630_v7  ;;  %999 = vmatprep.subr.mxu1 %v152_v8  ;;  %v611_v47 = vld [vmem:[%s6970_s0 + $0x1230] sm:$0xff]  ;;  %v430_v48 = vld [vmem:[%s6970_s0 + $0xc88] sm:$0xff]  ;;  %v592_v49 = vld [vmem:[%s6970_s0 + $0x1198] sm:$0xff] }
  0x26   :  { %874 = vmatpush2.msra.mxu0 %v629_v9  ;;  %1000 = vmatpush1.msra.mxu1 %v151_v10  ;;  %v429_v50 = vld [vmem:[%s6970_s0 + $0xc80] sm:$0xff]  ;;  %v591_v51 = vld [vmem:[%s6970_s0 + $0x1190] sm:$0xff]  ;;  %v410_v52 = vld [vmem:[%s6970_s0 + $0xbe8] sm:$0xff] }
  0x27   :  { %875 = vmatprep.subr.mxu0 %v610_v11  ;;  %1001 = vmatprep.subr.mxu1 %v132_v12  ;;  %v572_v53 = vld [vmem:[%s6970_s0 + $0x10f8] sm:$0xff]  ;;  %v409_v54 = vld [vmem:[%s6970_s0 + $0xbe0] sm:$0xff]  ;;  %v571_v55 = vld [vmem:[%s6970_s0 + $0x10f0] sm:$0xff] }
  0x28   :  { %876 = vmatpush2.msra.mxu0 %v609_v13  ;;  %1002 = vmatpush1.msra.mxu1 %v131_v14  ;;  %v390_v56 = vld [vmem:[%s6970_s0 + $0xb48] sm:$0xff]  ;;  %v552_v57 = vld [vmem:[%s6970_s0 + $0x1058] sm:$0xff]  ;;  %v389_v58 = vld [vmem:[%s6970_s0 + $0xb40] sm:$0xff] }
  0x29   :  { %877 = vmatprep.subr.mxu0 %v590_v15  ;;  %1003 = vmatprep.subr.mxu1 %v112_v16  ;;  %v551_v59 = vld [vmem:[%s6970_s0 + $0x1050] sm:$0xff]  ;;  %v370_v60 = vld [vmem:[%s6970_s0 + $0xaa8] sm:$0xff]  ;;  %v532_v61 = vld [vmem:[%s6970_s0 + $0xfb8] sm:$0xff] }
  0x2a   :  { %878 = vmatpush2.msra.mxu0 %v589_v17  ;;  %1004 = vmatpush1.msra.mxu1 %v111_v18  ;;  %v369_v62 = vld [vmem:[%s6970_s0 + $0xaa0] sm:$0xff]  ;;  %v531_v63 = vld [vmem:[%s6970_s0 + $0xfb0] sm:$0xff]  ;;  %v350_v0 = vld [vmem:[%s6970_s0 + $0xa08] sm:$0xff] }
  0x2b   :  { %879 = vmatprep.subr.mxu0 %v570_v19  ;;  %1005 = vmatprep.subr.mxu1 %v92_v20  ;;  %v512_v1 = vld [vmem:[%s6970_s0 + $0xf18] sm:$0xff]  ;;  %v349_v2 = vld [vmem:[%s6970_s0 + $0xa00] sm:$0xff]  ;;  %v4403_v4 = vld [vmem:[%s6971_s1 + $0x8] sm:$0xff] }
  0x2c   :  { %880 = vmatpush2.msra.mxu0 %v569_v21  ;;  %1006 = vmatpush1.msra.mxu1 %v91_v22  ;;  %v511_v5 = vld [vmem:[%s6970_s0 + $0xf10] sm:$0xff]  ;;  %v4411_v6 = vld [vmem:[%s6971_s1] sm:$0xff]  ;;  %v492_v7 = vld [vmem:[%s6970_s0 + $0xe78] sm:$0xff] }
  0x2d   :  { %881 = vmatprep.subr.mxu0 %v550_v23  ;;  %1007 = vmatprep.subr.mxu1 %v72_v24  ;;  %v812_v8 = vld [vmem:[%s6970_s0 + $0x1878] sm:$0xff]  ;;  %v491_v9 = vld [vmem:[%s6970_s0 + $0xe70] sm:$0xff] }
  0x2e   :  { %882 = vmatpush2.msra.mxu0 %v549_v25  ;;  %1008 = vmatpush1.msra.mxu1 %v71_v26  ;;  %v811_v10 = vld [vmem:[%s6970_s0 + $0x1870] sm:$0xff]  ;;  %v472_v11 = vld [vmem:[%s6970_s0 + $0xdd8] sm:$0xff] }
  0x2f   :  { %883 = vmatprep.subr.mxu0 %v530_v27  ;;  %1009 = vmatprep.subr.mxu1 %v52_v28  ;;  %v792_v12 = vld [vmem:[%s6970_s0 + $0x17d8] sm:$0xff]  ;;  %v471_v13 = vld [vmem:[%s6970_s0 + $0xdd0] sm:$0xff] }
  0x30   :  { %884 = vmatpush2.msra.mxu0 %v529_v29  ;;  %1010 = vmatpush1.msra.mxu1 %v51_v30  ;;  %v791_v14 = vld [vmem:[%s6970_s0 + $0x17d0] sm:$0xff]  ;;  %v452_v15 = vld [vmem:[%s6970_s0 + $0xd38] sm:$0xff] }
  0x31   :  { %885 = vmatprep.subr.mxu0 %v510_v31  ;;  %1011 = vmatprep.subr.mxu1 %v32_v32  ;;  %v772_v16 = vld [vmem:[%s6970_s0 + $0x1738] sm:$0xff]  ;;  %v451_v17 = vld [vmem:[%s6970_s0 + $0xd30] sm:$0xff] }
  0x32   :  { %886 = vmatpush2.msra.mxu0 %v509_v33  ;;  %1012 = vmatpush1.msra.mxu1 %v31_v35  ;;  %v771_v18 = vld [vmem:[%s6970_s0 + $0x1730] sm:$0xff]  ;;  %v432_v19 = vld [vmem:[%s6970_s0 + $0xc98] sm:$0xff] }
  0x33   :  { %887 = vmatprep.subr.mxu0 %v490_v36  ;;  %1013 = vmatprep.subr.mxu1 %v652_v37  ;;  %v752_v20 = vld [vmem:[%s6970_s0 + $0x1698] sm:$0xff]  ;;  %v431_v21 = vld [vmem:[%s6970_s0 + $0xc90] sm:$0xff] }
  0x34   :  { %888 = vmatpush2.msra.mxu0 %v489_v38  ;;  %1014 = vmatpush2.msra.mxu1 %v651_v39  ;;  %v751_v22 = vld [vmem:[%s6970_s0 + $0x1690] sm:$0xff]  ;;  %v412_v23 = vld [vmem:[%s6970_s0 + $0xbf8] sm:$0xff] }
  0x35   :  { %889 = vmatprep.subr.mxu0 %v470_v40  ;;  %1015 = vmatprep.subr.mxu1 %v632_v41  ;;  %v732_v24 = vld [vmem:[%s6970_s0 + $0x15f8] sm:$0xff]  ;;  %v411_v25 = vld [vmem:[%s6970_s0 + $0xbf0] sm:$0xff]  ;;  %v334_v40 = vld [vmem:[%s6970_s0 + $0x988] sm:$0xff] }
  0x36   :  { %890 = vmatpush2.msra.mxu0 %v469_v42  ;;  %1016 = vmatpush2.msra.mxu1 %v631_v43  ;;  %v731_v26 = vld [vmem:[%s6970_s0 + $0x15f0] sm:$0xff]  ;;  %v392_v27 = vld [vmem:[%s6970_s0 + $0xb58] sm:$0xff]  ;;  %v814_v41 = vld [vmem:[%s6970_s0 + $0x1888] sm:$0xff] }
  0x37   :  { %891 = vmatprep.subr.mxu0 %v450_v44  ;;  %1017 = vmatprep.subr.mxu1 %v612_v45  ;;  %v712_v28 = vld [vmem:[%s6970_s0 + $0x1558] sm:$0xff]  ;;  %v391_v29 = vld [vmem:[%s6970_s0 + $0xb50] sm:$0xff]  ;;  %v813_v42 = vld [vmem:[%s6970_s0 + $0x1880] sm:$0xff] }
  0x38   :  { %892 = vmatpush2.msra.mxu0 %v449_v46  ;;  %1018 = vmatpush2.msra.mxu1 %v611_v47  ;;  %v711_v30 = vld [vmem:[%s6970_s0 + $0x1550] sm:$0xff]  ;;  %v372_v31 = vld [vmem:[%s6970_s0 + $0xab8] sm:$0xff]  ;;  %v333_v43 = vld [vmem:[%s6970_s0 + $0x980] sm:$0xff] }
  0x39   :  { %893 = vmatprep.subr.mxu0 %v430_v48  ;;  %1019 = vmatprep.subr.mxu1 %v592_v49  ;;  %v692_v32 = vld [vmem:[%s6970_s0 + $0x14b8] sm:$0xff]  ;;  %v371_v33 = vld [vmem:[%s6970_s0 + $0xab0] sm:$0xff]  ;;  %v794_v44 = vld [vmem:[%s6970_s0 + $0x17e8] sm:$0xff] }
  0x3a   :  { %894 = vmatpush2.msra.mxu0 %v429_v50  ;;  %1020 = vmatpush2.msra.mxu1 %v591_v51  ;;  %v691_v35 = vld [vmem:[%s6970_s0 + $0x14b0] sm:$0xff]  ;;  %v352_v36 = vld [vmem:[%s6970_s0 + $0xa18] sm:$0xff]  ;;  %v314_v45 = vld [vmem:[%s6970_s0 + $0x8e8] sm:$0xff] }
  0x3b   :  { %895 = vmatprep.subr.mxu0 %v410_v52  ;;  %1021 = vmatprep.subr.mxu1 %v572_v53  ;;  %v672_v37 = vld [vmem:[%s6970_s0 + $0x1418] sm:$0xff]  ;;  %v351_v38 = vld [vmem:[%s6970_s0 + $0xa10] sm:$0xff]  ;;  %v793_v46 = vld [vmem:[%s6970_s0 + $0x17e0] sm:$0xff] }
  0x3c   :  { %896 = vmatpush2.msra.mxu0 %v409_v54  ;;  %1022 = vmatpush2.msra.mxu1 %v571_v55  ;;  %v671_v39 = vld [vmem:[%s6970_s0 + $0x1410] sm:$0xff]  ;;  %v313_v47 = vld [vmem:[%s6970_s0 + $0x8e0] sm:$0xff]  ;;  %v774_v48 = vld [vmem:[%s6970_s0 + $0x1748] sm:$0xff] }
  0x3d   :  { %897 = vmatprep.subr.mxu0 %v390_v56  ;;  %1023 = vmatprep.subr.mxu1 %v552_v57  ;;  %v294_v49 = vld [vmem:[%s6970_s0 + $0x848] sm:$0xff]  ;;  %v773_v50 = vld [vmem:[%s6970_s0 + $0x1740] sm:$0xff] }
  0x3e   :  { %898 = vmatpush2.msra.mxu0 %v389_v58  ;;  %1024 = vmatpush2.msra.mxu1 %v551_v59  ;;  %v293_v51 = vld [vmem:[%s6970_s0 + $0x840] sm:$0xff]  ;;  %v754_v52 = vld [vmem:[%s6970_s0 + $0x16a8] sm:$0xff] }
  0x3f   :  { %899 = vmatprep.subr.mxu0 %v370_v60  ;;  %1025 = vmatprep.subr.mxu1 %v532_v61  ;;  %v274_v53 = vld [vmem:[%s6970_s0 + $0x7a8] sm:$0xff]  ;;  %v753_v54 = vld [vmem:[%s6970_s0 + $0x16a0] sm:$0xff] }
  0x40   :  { %900 = vmatpush2.msra.mxu0 %v369_v62  ;;  %1026 = vmatpush2.msra.mxu1 %v531_v63  ;;  %v273_v55 = vld [vmem:[%s6970_s0 + $0x7a0] sm:$0xff]  ;;  %v734_v56 = vld [vmem:[%s6970_s0 + $0x1608] sm:$0xff] }
  0x41   :  { %901 = vmatprep.subr.mxu0 %v350_v0  ;;  %1027 = vmatprep.subr.mxu1 %v512_v1  ;;  %v254_v57 = vld [vmem:[%s6970_s0 + $0x708] sm:$0xff]  ;;  %v733_v58 = vld [vmem:[%s6970_s0 + $0x1600] sm:$0xff] }
  0x42   :  { %902 = vmatpush2.msra.mxu0 %v349_v2  ;;  %903 = vmatprep.mubr.f32.mxu0 %v4403_v4  ;;  %v253_v59 = vld [vmem:[%s6970_s0 + $0x700] sm:$0xff]  ;;  %v714_v60 = vld [vmem:[%s6970_s0 + $0x1568] sm:$0xff] }
  0x43   :  { %1028 = vmatpush2.msra.mxu1 %v511_v5  ;;  %904 = vmatmul.mubr.f32.vlgmr.msra.gmra.mxu0 %v4411_v6  ;;  %v234_v61 = vld [vmem:[%s6970_s0 + $0x668] sm:$0xff]  ;;  %v713_v62 = vld [vmem:[%s6970_s0 + $0x1560] sm:$0xff] }
  0x44   :  { %1029 = vmatprep.subr.mxu1 %v492_v7  ;;  %1068 = vmatprep.subr.mxu0 %v812_v8  ;;  %v233_v63 = vld [vmem:[%s6970_s0 + $0x660] sm:$0xff]  ;;  %v694_v0 = vld [vmem:[%s6970_s0 + $0x14c8] sm:$0xff] }
  0x45   :  { %1030 = vmatpush2.msra.mxu1 %v491_v9  ;;  %1069 = vmatpush1.msra.mxu0 %v811_v10  ;;  %v214_v1 = vld [vmem:[%s6970_s0 + $0x5c8] sm:$0xff]  ;;  %v693_v2 = vld [vmem:[%s6970_s0 + $0x14c0] sm:$0xff] }
  0x46   :  { %1031 = vmatprep.subr.mxu1 %v472_v11  ;;  %1070 = vmatprep.subr.mxu0 %v792_v12  ;;  %v213_v5 = vld [vmem:[%s6970_s0 + $0x5c0] sm:$0xff]  ;;  %v674_v7 = vld [vmem:[%s6970_s0 + $0x1428] sm:$0xff]  ;;  %v336_v12 = vld [vmem:[%s6970_s0 + $0x998] sm:$0xff] }
  0x47   :  { %1032 = vmatpush2.msra.mxu1 %v471_v13  ;;  %1071 = vmatpush1.msra.mxu0 %v791_v14  ;;  %v194_v8 = vld [vmem:[%s6970_s0 + $0x528] sm:$0xff]  ;;  %v673_v9 = vld [vmem:[%s6970_s0 + $0x1420] sm:$0xff]  ;;  %v335_v14 = vld [vmem:[%s6970_s0 + $0x990] sm:$0xff] }
  0x48   :  { %1033 = vmatprep.subr.mxu1 %v452_v15  ;;  %1072 = vmatprep.subr.mxu0 %v772_v16  ;;  %v193_v10 = vld [vmem:[%s6970_s0 + $0x520] sm:$0xff]  ;;  %v174_v11 = vld [vmem:[%s6970_s0 + $0x488] sm:$0xff]  ;;  %v316_v16 = vld [vmem:[%s6970_s0 + $0x8f8] sm:$0xff] }
  0x49   :  { %1034 = vmatpush2.msra.mxu1 %v451_v17  ;;  %1073 = vmatpush1.msra.mxu0 %v771_v18  ;;  %v173_v13 = vld [vmem:[%s6970_s0 + $0x480] sm:$0xff]  ;;  %v154_v15 = vld [vmem:[%s6970_s0 + $0x3e8] sm:$0xff]  ;;  %v315_v18 = vld [vmem:[%s6970_s0 + $0x8f0] sm:$0xff] }
  0x4a   :  { %1035 = vmatprep.subr.mxu1 %v432_v19  ;;  %1074 = vmatprep.subr.mxu0 %v752_v20  ;;  %v153_v17 = vld [vmem:[%s6970_s0 + $0x3e0] sm:$0xff]  ;;  %v134_v19 = vld [vmem:[%s6970_s0 + $0x348] sm:$0xff] }
  0x4b   :  { %1036 = vmatpush2.msra.mxu1 %v431_v21  ;;  %1075 = vmatpush1.msra.mxu0 %v751_v22  ;;  %v133_v20 = vld [vmem:[%s6970_s0 + $0x340] sm:$0xff]  ;;  %v295_v21 = vld [vmem:[%s6970_s0 + $0x850] sm:$0xff]  ;;  %v114_v22 = vld [vmem:[%s6970_s0 + $0x2a8] sm:$0xff] }
  0x4c   :  { %1037 = vmatprep.subr.mxu1 %v412_v23  ;;  %1076 = vmatprep.subr.mxu0 %v732_v24  ;;  %v276_v23 = vld [vmem:[%s6970_s0 + $0x7b8] sm:$0xff]  ;;  %v113_v24 = vld [vmem:[%s6970_s0 + $0x2a0] sm:$0xff] }
  0x4d   :  { %1038 = vmatpush2.msra.mxu1 %v411_v25  ;;  %1077 = vmatpush1.msra.mxu0 %v731_v26  ;;  %v275_v25 = vld [vmem:[%s6970_s0 + $0x7b0] sm:$0xff]  ;;  %v94_v26 = vld [vmem:[%s6970_s0 + $0x208] sm:$0xff] }
  0x4e   :  { %1039 = vmatprep.subr.mxu1 %v392_v27  ;;  %1078 = vmatprep.subr.mxu0 %v712_v28  ;;  %v256_v27 = vld [vmem:[%s6970_s0 + $0x718] sm:$0xff]  ;;  %v93_v28 = vld [vmem:[%s6970_s0 + $0x200] sm:$0xff] }
  0x4f   :  { %1040 = vmatpush2.msra.mxu1 %v391_v29  ;;  %1079 = vmatpush1.msra.mxu0 %v711_v30  ;;  %v255_v29 = vld [vmem:[%s6970_s0 + $0x710] sm:$0xff]  ;;  %v74_v30 = vld [vmem:[%s6970_s0 + $0x168] sm:$0xff] }
  0x50   :  { %1041 = vmatprep.subr.mxu1 %v372_v31  ;;  %1080 = vmatprep.subr.mxu0 %v692_v32  ;;  %v236_v31 = vld [vmem:[%s6970_s0 + $0x678] sm:$0xff]  ;;  %v73_v32 = vld [vmem:[%s6970_s0 + $0x160] sm:$0xff] }
  0x51   :  { %1042 = vmatpush2.msra.mxu1 %v371_v33  ;;  %1081 = vmatpush1.msra.mxu0 %v691_v35  ;;  %v235_v33 = vld [vmem:[%s6970_s0 + $0x670] sm:$0xff]  ;;  %v54_v35 = vld [vmem:[%s6970_s0 + $0xc8] sm:$0xff] }
  0x52   :  { %1043 = vmatprep.subr.mxu1 %v352_v36  ;;  %1082 = vmatprep.subr.mxu0 %v672_v37  ;;  %v216_v36 = vld [vmem:[%s6970_s0 + $0x5d8] sm:$0xff]  ;;  %v53_v37 = vld [vmem:[%s6970_s0 + $0xc0] sm:$0xff] }
  0x53   :  { %1044 = vmatpush2.msra.mxu1 %v351_v38  ;;  %1045 = vmatprep.mubr.f32.mxu1 %v4403_v4  ;;  %v215_v38 = vld [vmem:[%s6970_s0 + $0x5d0] sm:$0xff] }
  0x54   :  { %1083 = vmatpush1.msra.mxu0 %v671_v39  ;;  %1046 = vmatmul.mubr.f32.vlgmr.msra.gmra.mxu1 %v4411_v6  ;;  %v34_v39 = vld [vmem:[%s6970_s0 + $0x28] sm:$0xff] }
  0x55   :  { %1116 = vmatprep.mubr.f32.mxu0 %v3969_v3  ;;  %1123 = vmatprep.subr.mxu0 %v334_v40  ;;  %v196_v40 = vld [vmem:[%s6970_s0 + $0x538] sm:$0xff] }
  0x56   :  { %1210 = vmatprep.subr.mxu1 %v814_v41  ;;  %3928 = vmatmul.mubr.msk.f32.vlgmr.msra.gmra.mxu0 %vm835_vm0, %v4114_v34  ;;  %v33_v41 = vld [vmem:[%s6970_s0 + $0x20] sm:$0xff] }
  0x57   :  { %1211 = vmatpush1.msra.mxu1 %v813_v42  ;;  %1124 = vmatpush1.msra.mxu0 %v333_v43  ;;  %v195_v42 = vld [vmem:[%s6970_s0 + $0x530] sm:$0xff]  ;;  %v654_v43 = vld [vmem:[%s6970_s0 + $0x1388] sm:$0xff] }
  0x58   :  { %1212 = vmatprep.subr.mxu1 %v794_v44  ;;  %1125 = vmatprep.subr.mxu0 %v314_v45  ;;  %v176_v44 = vld [vmem:[%s6970_s0 + $0x498] sm:$0xff]  ;;  %v653_v45 = vld [vmem:[%s6970_s0 + $0x1380] sm:$0xff] }
  0x59   :  { %1213 = vmatpush1.msra.mxu1 %v793_v46  ;;  %1126 = vmatpush1.msra.mxu0 %v313_v47  ;;  %v175_v46 = vld [vmem:[%s6970_s0 + $0x490] sm:$0xff]  ;;  %v634_v47 = vld [vmem:[%s6970_s0 + $0x12e8] sm:$0xff] }
  0x5a   :  { %1214 = vmatprep.subr.mxu1 %v774_v48  ;;  %1127 = vmatprep.subr.mxu0 %v294_v49  ;;  %v156_v48 = vld [vmem:[%s6970_s0 + $0x3f8] sm:$0xff]  ;;  %v633_v49 = vld [vmem:[%s6970_s0 + $0x12e0] sm:$0xff] }
  0x5b   :  { %1215 = vmatpush1.msra.mxu1 %v773_v50  ;;  %1128 = vmatpush1.msra.mxu0 %v293_v51  ;;  %v155_v50 = vld [vmem:[%s6970_s0 + $0x3f0] sm:$0xff]  ;;  %v614_v51 = vld [vmem:[%s6970_s0 + $0x1248] sm:$0xff] }
  0x5c   :  { %1216 = vmatprep.subr.mxu1 %v754_v52  ;;  %1129 = vmatprep.subr.mxu0 %v274_v53  ;;  %v136_v52 = vld [vmem:[%s6970_s0 + $0x358] sm:$0xff]  ;;  %v613_v53 = vld [vmem:[%s6970_s0 + $0x1240] sm:$0xff] }
  0x5d   :  { %1217 = vmatpush1.msra.mxu1 %v753_v54  ;;  %1130 = vmatpush1.msra.mxu0 %v273_v55  ;;  %v135_v54 = vld [vmem:[%s6970_s0 + $0x350] sm:$0xff]  ;;  %v594_v55 = vld [vmem:[%s6970_s0 + $0x11a8] sm:$0xff] }
  0x5e   :  { %1218 = vmatprep.subr.mxu1 %v734_v56  ;;  %1131 = vmatprep.subr.mxu0 %v254_v57  ;;  %v116_v56 = vld [vmem:[%s6970_s0 + $0x2b8] sm:$0xff]  ;;  %v593_v57 = vld [vmem:[%s6970_s0 + $0x11a0] sm:$0xff] }
  0x5f   :  { %1219 = vmatpush1.msra.mxu1 %v733_v58  ;;  %1132 = vmatpush1.msra.mxu0 %v253_v59  ;;  %v115_v58 = vld [vmem:[%s6970_s0 + $0x2b0] sm:$0xff]  ;;  %v574_v59 = vld [vmem:[%s6970_s0 + $0x1108] sm:$0xff] }
  0x60   :  { %1220 = vmatprep.subr.mxu1 %v714_v60  ;;  %1133 = vmatprep.subr.mxu0 %v234_v61  ;;  %v96_v60 = vld [vmem:[%s6970_s0 + $0x218] sm:$0xff]  ;;  %v573_v61 = vld [vmem:[%s6970_s0 + $0x1100] sm:$0xff] }
  0x61   :  { %1221 = vmatpush1.msra.mxu1 %v713_v62  ;;  %1134 = vmatpush1.msra.mxu0 %v233_v63  ;;  %v95_v62 = vld [vmem:[%s6970_s0 + $0x210] sm:$0xff]  ;;  %v554_v63 = vld [vmem:[%s6970_s0 + $0x1068] sm:$0xff] }
  0x62   :  { %1222 = vmatprep.subr.mxu1 %v694_v0  ;;  %1135 = vmatprep.subr.mxu0 %v214_v1  ;;  %v76_v0 = vld [vmem:[%s6970_s0 + $0x178] sm:$0xff]  ;;  %v553_v1 = vld [vmem:[%s6970_s0 + $0x1060] sm:$0xff] }
  0x63   :  { %1223 = vmatpush1.msra.mxu1 %v693_v2  ;;  %1136 = vmatpush1.msra.mxu0 %v213_v5  ;;  %v75_v2 = vld [vmem:[%s6970_s0 + $0x170] sm:$0xff]  ;;  %v534_v5 = vld [vmem:[%s6970_s0 + $0xfc8] sm:$0xff] }
  0x64   :  { %1224 = vmatprep.subr.mxu1 %v674_v7  ;;  %1137 = vmatprep.subr.mxu0 %v194_v8  ;;  %v56_v7 = vld [vmem:[%s6970_s0 + $0xd8] sm:$0xff]  ;;  %v533_v8 = vld [vmem:[%s6970_s0 + $0xfc0] sm:$0xff] }
  0x65   :  { %1225 = vmatpush1.msra.mxu1 %v673_v9  ;;  %1138 = vmatpush1.msra.mxu0 %v193_v10  ;;  %v55_v9 = vld [vmem:[%s6970_s0 + $0xd0] sm:$0xff]  ;;  %v514_v10 = vld [vmem:[%s6970_s0 + $0xf28] sm:$0xff] }
  0x66   :  { %1258 = vmatprep.mubr.f32.mxu1 %v3969_v3  ;;  %1139 = vmatprep.subr.mxu0 %v174_v11  ;;  %v36_v11 = vld [vmem:[%s6970_s0 + $0x38] sm:$0xff] }
  0x67   :  { %3929 = vmatmul.mubr.msk.f32.vlgmr.msra.gmra.mxu1 %vm835_vm0, %v4114_v34  ;;  %1265 = vmatprep.subr.mxu1 %v336_v12  ;;  %v296_v34 = vld [vmem:[%s6970_s0 + $0x858] sm:$0xff]  ;;  %v513_v12 = vld [vmem:[%s6970_s0 + $0xf20] sm:$0xff] }
  0x68   :  { %1140 = vmatpush1.msra.mxu0 %v173_v13  ;;  %1266 = vmatpush1.msra.mxu1 %v335_v14  ;;  %v35_v13 = vld [vmem:[%s6970_s0 + $0x30] sm:$0xff]  ;;  %v494_v14 = vld [vmem:[%s6970_s0 + $0xe88] sm:$0xff] }
  0x69   :  { %1141 = vmatprep.subr.mxu0 %v154_v15  ;;  %1267 = vmatprep.subr.mxu1 %v316_v16  ;;  %v656_v15 = vld [vmem:[%s6970_s0 + $0x1398] sm:$0xff]  ;;  %v493_v16 = vld [vmem:[%s6970_s0 + $0xe80] sm:$0xff] }
  0x6a   :  { %1142 = vmatpush1.msra.mxu0 %v153_v17  ;;  %1268 = vmatpush1.msra.mxu1 %v315_v18  ;;  %v655_v17 = vld [vmem:[%s6970_s0 + $0x1390] sm:$0xff]  ;;  %v474_v18 = vld [vmem:[%s6970_s0 + $0xde8] sm:$0xff] }
  0x6b   :  { %1143 = vmatprep.subr.mxu0 %v134_v19  ;;  %1269 = vmatprep.subr.mxu1 %v296_v34  ;;  %v636_v19 = vld [vmem:[%s6970_s0 + $0x12f8] sm:$0xff]  ;;  %v473_v34 = vld [vmem:[%s6970_s0 + $0xde0] sm:$0xff] }
  0x6c   :  { %1144 = vmatpush1.msra.mxu0 %v133_v20  ;;  %1270 = vmatpush1.msra.mxu1 %v295_v21  ;;  %v635_v20 = vld [vmem:[%s6970_s0 + $0x12f0] sm:$0xff]  ;;  %v454_v21 = vld [vmem:[%s6970_s0 + $0xd48] sm:$0xff] }
  0x6d   :  { %1145 = vmatprep.subr.mxu0 %v114_v22  ;;  %1271 = vmatprep.subr.mxu1 %v276_v23  ;;  %v616_v22 = vld [vmem:[%s6970_s0 + $0x1258] sm:$0xff]  ;;  %v829_v23 = vld [vmem:[%s6972_s2] sm:$0xff] }
  0x6e   :  { %1146 = vmatpush1.msra.mxu0 %v113_v24  ;;  %1272 = vmatpush1.msra.mxu1 %v275_v25  ;;  %v453_v24 = vld [vmem:[%s6970_s0 + $0xd40] sm:$0xff]  ;;  %v3970_v25 = vmov 0  }
  0x6f   :  { %1147 = vmatprep.subr.mxu0 %v94_v26  ;;  %1273 = vmatprep.subr.mxu1 %v256_v27  ;;  %v615_v26 = vld [vmem:[%s6970_s0 + $0x1250] sm:$0xff]  ;;  %v434_v27 = vld [vmem:[%s6970_s0 + $0xca8] sm:$0xff] }
  0x70   :  { %1148 = vmatpush1.msra.mxu0 %v93_v28  ;;  %1274 = vmatpush1.msra.mxu1 %v255_v29  ;;  %v596_v28 = vld [vmem:[%s6970_s0 + $0x11b8] sm:$0xff]  ;;  %v433_v29 = vld [vmem:[%s6970_s0 + $0xca0] sm:$0xff] }
  0x71   :  { %1149 = vmatprep.subr.mxu0 %v74_v30  ;;  %1275 = vmatprep.subr.mxu1 %v236_v31  ;;  %v595_v30 = vld [vmem:[%s6970_s0 + $0x11b0] sm:$0xff]  ;;  %v414_v31 = vld [vmem:[%s6970_s0 + $0xc08] sm:$0xff] }
  0x72   :  { %1150 = vmatpush1.msra.mxu0 %v73_v32  ;;  %1276 = vmatpush1.msra.mxu1 %v235_v33  ;;  %v576_v32 = vld [vmem:[%s6970_s0 + $0x1118] sm:$0xff]  ;;  %v413_v33 = vld [vmem:[%s6970_s0 + $0xc00] sm:$0xff] }
  0x73   :  { %1151 = vmatprep.subr.mxu0 %v54_v35  ;;  %1277 = vmatprep.subr.mxu1 %v216_v36  ;;  %v575_v35 = vld [vmem:[%s6970_s0 + $0x1110] sm:$0xff]  ;;  %v394_v36 = vld [vmem:[%s6970_s0 + $0xb68] sm:$0xff] }
  0x74   :  { %1152 = vmatpush1.msra.mxu0 %v53_v37  ;;  %1278 = vmatpush1.msra.mxu1 %v215_v38  ;;  %v556_v37 = vld [vmem:[%s6970_s0 + $0x1078] sm:$0xff]  ;;  %v393_v38 = vld [vmem:[%s6970_s0 + $0xb60] sm:$0xff] }
  0x75   :  { %1153 = vmatprep.subr.mxu0 %v34_v39  ;;  %1279 = vmatprep.subr.mxu1 %v196_v40  ;;  %v555_v39 = vld [vmem:[%s6970_s0 + $0x1070] sm:$0xff]  ;;  %v374_v40 = vld [vmem:[%s6970_s0 + $0xac8] sm:$0xff] }
  0x76   :  { %1154 = vmatpush1.msra.mxu0 %v33_v41  ;;  %1280 = vmatpush1.msra.mxu1 %v195_v42  ;;  %v536_v41 = vld [vmem:[%s6970_s0 + $0xfd8] sm:$0xff]  ;;  %v373_v42 = vld [vmem:[%s6970_s0 + $0xac0] sm:$0xff] }
  0x77   :  { %1155 = vmatprep.subr.mxu0 %v654_v43  ;;  %1281 = vmatprep.subr.mxu1 %v176_v44  ;;  %v535_v43 = vld [vmem:[%s6970_s0 + $0xfd0] sm:$0xff]  ;;  %v354_v44 = vld [vmem:[%s6970_s0 + $0xa28] sm:$0xff] }
  0x78   :  { %1156 = vmatpush2.msra.mxu0 %v653_v45  ;;  %1282 = vmatpush1.msra.mxu1 %v175_v46  ;;  %v516_v45 = vld [vmem:[%s6970_s0 + $0xf38] sm:$0xff]  ;;  %v353_v46 = vld [vmem:[%s6970_s0 + $0xa20] sm:$0xff] }
  0x79   :  { %1157 = vmatprep.subr.mxu0 %v634_v47  ;;  %1283 = vmatprep.subr.mxu1 %v156_v48  ;;  %v515_v47 = vld [vmem:[%s6970_s0 + $0xf30] sm:$0xff]  ;;  %v496_v48 = vld [vmem:[%s6970_s0 + $0xe98] sm:$0xff] }
  0x7a   :  { %1158 = vmatpush2.msra.mxu0 %v633_v49  ;;  %1284 = vmatpush1.msra.mxu1 %v155_v50  ;;  %v816_v49 = vld [vmem:[%s6970_s0 + $0x1898] sm:$0xff]  ;;  %v495_v50 = vld [vmem:[%s6970_s0 + $0xe90] sm:$0xff] }
  0x7b   :  { %1159 = vmatprep.subr.mxu0 %v614_v51  ;;  %1285 = vmatprep.subr.mxu1 %v136_v52  ;;  %v815_v51 = vld [vmem:[%s6970_s0 + $0x1890] sm:$0xff]  ;;  %v476_v52 = vld [vmem:[%s6970_s0 + $0xdf8] sm:$0xff] }
  0x7c   :  { %1160 = vmatpush2.msra.mxu0 %v613_v53  ;;  %1286 = vmatpush1.msra.mxu1 %v135_v54  ;;  %v796_v53 = vld [vmem:[%s6970_s0 + $0x17f8] sm:$0xff]  ;;  %v475_v54 = vld [vmem:[%s6970_s0 + $0xdf0] sm:$0xff] }
  0x7d   :  { %1161 = vmatprep.subr.mxu0 %v594_v55  ;;  %1287 = vmatprep.subr.mxu1 %v116_v56  ;;  %v795_v55 = vld [vmem:[%s6970_s0 + $0x17f0] sm:$0xff]  ;;  %v456_v56 = vld [vmem:[%s6970_s0 + $0xd58] sm:$0xff] }
  0x7e   :  { %1162 = vmatpush2.msra.mxu0 %v593_v57  ;;  %1288 = vmatpush1.msra.mxu1 %v115_v58  ;;  %v776_v57 = vld [vmem:[%s6970_s0 + $0x1758] sm:$0xff]  ;;  %v455_v58 = vld [vmem:[%s6970_s0 + $0xd50] sm:$0xff] }
  0x7f   :  { %1163 = vmatprep.subr.mxu0 %v574_v59  ;;  %1289 = vmatprep.subr.mxu1 %v96_v60  ;;  %v775_v59 = vld [vmem:[%s6970_s0 + $0x1750] sm:$0xff]  ;;  %v436_v60 = vld [vmem:[%s6970_s0 + $0xcb8] sm:$0xff] }
  0x80   :  { %1164 = vmatpush2.msra.mxu0 %v573_v61  ;;  %1290 = vmatpush1.msra.mxu1 %v95_v62  ;;  %v756_v61 = vld [vmem:[%s6970_s0 + $0x16b8] sm:$0xff]  ;;  %v435_v62 = vld [vmem:[%s6970_s0 + $0xcb0] sm:$0xff] }
  0x81   :  { %1165 = vmatprep.subr.mxu0 %v554_v63  ;;  %1291 = vmatprep.subr.mxu1 %v76_v0  ;;  %v755_v63 = vld [vmem:[%s6970_s0 + $0x16b0] sm:$0xff]  ;;  %v416_v0 = vld [vmem:[%s6970_s0 + $0xc18] sm:$0xff] }
  0x82   :  { %1166 = vmatpush2.msra.mxu0 %v553_v1  ;;  %1292 = vmatpush1.msra.mxu1 %v75_v2  ;;  %v736_v1 = vld [vmem:[%s6970_s0 + $0x1618] sm:$0xff]  ;;  %v415_v2 = vld [vmem:[%s6970_s0 + $0xc10] sm:$0xff] }
  0x83   :  { %1167 = vmatprep.subr.mxu0 %v534_v5  ;;  %1293 = vmatprep.subr.mxu1 %v56_v7  ;;  %v735_v5 = vld [vmem:[%s6970_s0 + $0x1610] sm:$0xff]  ;;  %v396_v7 = vld [vmem:[%s6970_s0 + $0xb78] sm:$0xff] }
  0x84   :  { %1168 = vmatpush2.msra.mxu0 %v533_v8  ;;  %1294 = vmatpush1.msra.mxu1 %v55_v9  ;;  %v716_v8 = vld [vmem:[%s6970_s0 + $0x1578] sm:$0xff]  ;;  %v395_v9 = vld [vmem:[%s6970_s0 + $0xb70] sm:$0xff] }
  0x85   :  { %1169 = vmatprep.subr.mxu0 %v514_v10  ;;  %1295 = vmatprep.subr.mxu1 %v36_v11  ;;  %v715_v10 = vld [vmem:[%s6970_s0 + $0x1570] sm:$0xff]  ;;  %v376_v11 = vld [vmem:[%s6970_s0 + $0xad8] sm:$0xff] }
  0x86   :  { %1170 = vmatpush2.msra.mxu0 %v513_v12  ;;  %1296 = vmatpush1.msra.mxu1 %v35_v13  ;;  %v696_v12 = vld [vmem:[%s6970_s0 + $0x14d8] sm:$0xff]  ;;  %v375_v13 = vld [vmem:[%s6970_s0 + $0xad0] sm:$0xff] }
  0x87   :  { %1171 = vmatprep.subr.mxu0 %v494_v14  ;;  %1297 = vmatprep.subr.mxu1 %v656_v15  ;;  %v695_v14 = vld [vmem:[%s6970_s0 + $0x14d0] sm:$0xff]  ;;  %v356_v15 = vld [vmem:[%s6970_s0 + $0xa38] sm:$0xff] }
  0x88   :  { %1172 = vmatpush2.msra.mxu0 %v493_v16  ;;  %1298 = vmatpush2.msra.mxu1 %v655_v17  ;;  %v676_v16 = vld [vmem:[%s6970_s0 + $0x1438] sm:$0xff]  ;;  %v355_v17 = vld [vmem:[%s6970_s0 + $0xa30] sm:$0xff] }
  0x89   :  { %1173 = vmatprep.subr.mxu0 %v474_v18  ;;  %1299 = vmatprep.subr.mxu1 %v636_v19  ;;  %v675_v18 = vld [vmem:[%s6970_s0 + $0x1430] sm:$0xff]  ;;  %v338_v19 = vld [vmem:[%s6970_s0 + $0x9a8] sm:$0xff] }
  0x8a   :  { %1174 = vmatpush2.msra.mxu0 %v473_v34  ;;  %1300 = vmatpush2.msra.mxu1 %v635_v20  ;;  %v818_v34 = vld [vmem:[%s6970_s0 + $0x18a8] sm:$0xff]  ;;  %v817_v20 = vld [vmem:[%s6970_s0 + $0x18a0] sm:$0xff] }
  0x8b   :  { %3959 = vset.pattern.permute.xlu0 %v3970_v25  ;;  %1175 = vmatprep.subr.mxu0 %v454_v21  ;;  %v337_v21 = vld [vmem:[%s6970_s0 + $0x9a0] sm:$0xff] }
  0x8c   :  { %1301 = vmatprep.subr.mxu1 %v616_v22  ;;  %832 = vperm.xlu0 %3959, %v829_v23   ;;  %v798_v22 = vld [vmem:[%s6970_s0 + $0x1808] sm:$0xff]  ;;  %v5032_v23 = vld [vmem:[%s6971_s1 + $0x10] sm:$0xff] }
  0x8d   :  { %1176 = vmatpush2.msra.mxu0 %v453_v24  ;;  %1302 = vmatpush2.msra.mxu1 %v615_v26  ;;  %v317_v24 = vld [vmem:[%s6970_s0 + $0x900] sm:$0xff]  ;;  %v778_v26 = vld [vmem:[%s6970_s0 + $0x1768] sm:$0xff] }
  0x8e   :  { %1177 = vmatprep.subr.mxu0 %v434_v27  ;;  %1303 = vmatprep.subr.mxu1 %v596_v28  ;;  %v298_v27 = vld [vmem:[%s6970_s0 + $0x868] sm:$0xff]  ;;  %v777_v28 = vld [vmem:[%s6970_s0 + $0x1760] sm:$0xff] }
  0x8f   :  { %1178 = vmatpush2.msra.mxu0 %v433_v29  ;;  %1304 = vmatpush2.msra.mxu1 %v595_v30  ;;  %v297_v29 = vld [vmem:[%s6970_s0 + $0x860] sm:$0xff]  ;;  %v758_v30 = vld [vmem:[%s6970_s0 + $0x16c8] sm:$0xff] }
  0x90   :  { %1179 = vmatprep.subr.mxu0 %v414_v31  ;;  %1305 = vmatprep.subr.mxu1 %v576_v32  ;;  %v278_v31 = vld [vmem:[%s6970_s0 + $0x7c8] sm:$0xff]  ;;  %v757_v32 = vld [vmem:[%s6970_s0 + $0x16c0] sm:$0xff] }
  0x91   :  { %1180 = vmatpush2.msra.mxu0 %v413_v33  ;;  %1306 = vmatpush2.msra.mxu1 %v575_v35  ;;  %v277_v33 = vld [vmem:[%s6970_s0 + $0x7c0] sm:$0xff]  ;;  %v738_v35 = vld [vmem:[%s6970_s0 + $0x1628] sm:$0xff] }
  0x92   :  { %1181 = vmatprep.subr.mxu0 %v394_v36  ;;  %1307 = vmatprep.subr.mxu1 %v556_v37  ;;  %v258_v36 = vld [vmem:[%s6970_s0 + $0x728] sm:$0xff]  ;;  %v737_v37 = vld [vmem:[%s6970_s0 + $0x1620] sm:$0xff] }
  0x93   :  { %1182 = vmatpush2.msra.mxu0 %v393_v38  ;;  %1308 = vmatpush2.msra.mxu1 %v555_v39  ;;  %v257_v38 = vld [vmem:[%s6970_s0 + $0x720] sm:$0xff]  ;;  %v718_v39 = vld [vmem:[%s6970_s0 + $0x1588] sm:$0xff] }
  0x94   :  { %1183 = vmatprep.subr.mxu0 %v374_v40  ;;  %1309 = vmatprep.subr.mxu1 %v536_v41  ;;  %v238_v40 = vld [vmem:[%s6970_s0 + $0x688] sm:$0xff]  ;;  %v717_v41 = vld [vmem:[%s6970_s0 + $0x1580] sm:$0xff] }
  0x95   :  { %1184 = vmatpush2.msra.mxu0 %v373_v42  ;;  %1310 = vmatpush2.msra.mxu1 %v535_v43  ;;  %v237_v42 = vld [vmem:[%s6970_s0 + $0x680] sm:$0xff]  ;;  %v698_v43 = vld [vmem:[%s6970_s0 + $0x14e8] sm:$0xff] }
  0x96   :  { %1185 = vmatprep.subr.mxu0 %v354_v44  ;;  %1311 = vmatprep.subr.mxu1 %v516_v45  ;;  %v218_v44 = vld [vmem:[%s6970_s0 + $0x5e8] sm:$0xff]  ;;  %v697_v45 = vld [vmem:[%s6970_s0 + $0x14e0] sm:$0xff] }
  0x97   :  { %1186 = vmatpush2.msra.mxu0 %v353_v46  ;;  %1187 = vmatprep.mubr.f32.mxu0 %v4403_v4  ;;  %v217_v46 = vld [vmem:[%s6970_s0 + $0x5e0] sm:$0xff] }
  0x98   :  { %1312 = vmatpush2.msra.mxu1 %v515_v47  ;;  %1188 = vmatmul.mubr.f32.vlgmr.msra.gmra.mxu0 %v4411_v6  ;;  %v678_v47 = vld [vmem:[%s6970_s0 + $0x1448] sm:$0xff] }
  0x99   :  { %1313 = vmatprep.subr.mxu1 %v496_v48  ;;  %1352 = vmatprep.subr.mxu0 %v816_v49  ;;  %v198_v48 = vld [vmem:[%s6970_s0 + $0x548] sm:$0xff]  ;;  %v677_v49 = vld [vmem:[%s6970_s0 + $0x1440] sm:$0xff] }
  0x9a   :  { %1314 = vmatpush2.msra.mxu1 %v495_v50  ;;  %1353 = vmatpush1.msra.mxu0 %v815_v51  ;;  %v197_v50 = vld [vmem:[%s6970_s0 + $0x540] sm:$0xff]  ;;  %v178_v51 = vld [vmem:[%s6970_s0 + $0x4a8] sm:$0xff] }
  0x9b   :  { %1315 = vmatprep.subr.mxu1 %v476_v52  ;;  %1354 = vmatprep.subr.mxu0 %v796_v53  ;;  %v340_v52 = vld [vmem:[%s6970_s0 + $0x9b8] sm:$0xff]  ;;  %v177_v53 = vld [vmem:[%s6970_s0 + $0x4a0] sm:$0xff] }
  0x9c   :  { %1316 = vmatpush2.msra.mxu1 %v475_v54  ;;  %1355 = vmatpush1.msra.mxu0 %v795_v55  ;;  %v339_v54 = vld [vmem:[%s6970_s0 + $0x9b0] sm:$0xff]  ;;  %v158_v55 = vld [vmem:[%s6970_s0 + $0x408] sm:$0xff] }
  0x9d   :  { %1317 = vmatprep.subr.mxu1 %v456_v56  ;;  %1356 = vmatprep.subr.mxu0 %v776_v57  ;;  %v320_v56 = vld [vmem:[%s6970_s0 + $0x918] sm:$0xff]  ;;  %v157_v57 = vld [vmem:[%s6970_s0 + $0x400] sm:$0xff] }
  0x9e   :  { %1318 = vmatpush2.msra.mxu1 %v455_v58  ;;  %1357 = vmatpush1.msra.mxu0 %v775_v59  ;;  %v319_v58 = vld [vmem:[%s6970_s0 + $0x910] sm:$0xff]  ;;  %v138_v59 = vld [vmem:[%s6970_s0 + $0x368] sm:$0xff] }
  0x9f   :  { %1319 = vmatprep.subr.mxu1 %v436_v60  ;;  %1358 = vmatprep.subr.mxu0 %v756_v61  ;;  %v300_v60 = vld [vmem:[%s6970_s0 + $0x878] sm:$0xff]  ;;  %v137_v61 = vld [vmem:[%s6970_s0 + $0x360] sm:$0xff] }
  0xa0   :  { %1320 = vmatpush2.msra.mxu1 %v435_v62  ;;  %1359 = vmatpush1.msra.mxu0 %v755_v63  ;;  %v299_v62 = vld [vmem:[%s6970_s0 + $0x870] sm:$0xff]  ;;  %v118_v63 = vld [vmem:[%s6970_s0 + $0x2c8] sm:$0xff] }
  0xa1   :  { %1321 = vmatprep.subr.mxu1 %v416_v0  ;;  %1360 = vmatprep.subr.mxu0 %v736_v1  ;;  %v280_v0 = vld [vmem:[%s6970_s0 + $0x7d8] sm:$0xff]  ;;  %v117_v1 = vld [vmem:[%s6970_s0 + $0x2c0] sm:$0xff] }
  0xa2   :  { %1322 = vmatpush2.msra.mxu1 %v415_v2  ;;  %1361 = vmatpush1.msra.mxu0 %v735_v5  ;;  %v279_v2 = vld [vmem:[%s6970_s0 + $0x7d0] sm:$0xff]  ;;  %v98_v5 = vld [vmem:[%s6970_s0 + $0x228] sm:$0xff] }
  0xa3   :  { %1323 = vmatprep.subr.mxu1 %v396_v7  ;;  %1362 = vmatprep.subr.mxu0 %v716_v8  ;;  %v260_v7 = vld [vmem:[%s6970_s0 + $0x738] sm:$0xff]  ;;  %v97_v8 = vld [vmem:[%s6970_s0 + $0x220] sm:$0xff] }
  0xa4   :  { %1324 = vmatpush2.msra.mxu1 %v395_v9  ;;  %1363 = vmatpush1.msra.mxu0 %v715_v10  ;;  %v259_v9 = vld [vmem:[%s6970_s0 + $0x730] sm:$0xff]  ;;  %v78_v10 = vld [vmem:[%s6970_s0 + $0x188] sm:$0xff] }
  0xa5   :  { %1325 = vmatprep.subr.mxu1 %v376_v11  ;;  %1364 = vmatprep.subr.mxu0 %v696_v12  ;;  %v240_v11 = vld [vmem:[%s6970_s0 + $0x698] sm:$0xff]  ;;  %v77_v12 = vld [vmem:[%s6970_s0 + $0x180] sm:$0xff] }
  0xa6   :  { %1326 = vmatpush2.msra.mxu1 %v375_v13  ;;  %1365 = vmatpush1.msra.mxu0 %v695_v14  ;;  %v239_v13 = vld [vmem:[%s6970_s0 + $0x690] sm:$0xff]  ;;  %v58_v14 = vld [vmem:[%s6970_s0 + $0xe8] sm:$0xff] }
  0xa7   :  { %1327 = vmatprep.subr.mxu1 %v356_v15  ;;  %1366 = vmatprep.subr.mxu0 %v676_v16  ;;  %v220_v15 = vld [vmem:[%s6970_s0 + $0x5f8] sm:$0xff]  ;;  %v57_v16 = vld [vmem:[%s6970_s0 + $0xe0] sm:$0xff] }
  0xa8   :  { %1328 = vmatpush2.msra.mxu1 %v355_v17  ;;  %1329 = vmatprep.mubr.f32.mxu1 %v4403_v4  ;;  %v318_v4 = vld [vmem:[%s6970_s0 + $0x908] sm:$0xff]  ;;  %v219_v17 = vld [vmem:[%s6970_s0 + $0x5f0] sm:$0xff] }
  0xa9   :  { %1367 = vmatpush1.msra.mxu0 %v675_v18  ;;  %1330 = vmatmul.mubr.f32.vlgmr.msra.gmra.mxu1 %v4411_v6  ;;  %v797_v6 = vld [vmem:[%s6970_s0 + $0x1800] sm:$0xff]  ;;  %v38_v18 = vld [vmem:[%s6970_s0 + $0x48] sm:$0xff] }
  0xaa   :  { %1400 = vmatprep.mubr.f32.mxu0 %v3969_v3  ;;  %1407 = vmatprep.subr.mxu0 %v338_v19  ;;  %v200_v19 = vld [vmem:[%s6970_s0 + $0x558] sm:$0xff] }
  0xab   :  { %1494 = vmatprep.subr.mxu1 %v818_v34  ;;  %3930 = vmatmul.mubr.msk.f32.vlgmr.msra.gmra.mxu0 %vm835_vm0, %v5032_v23  ;;  %v37_v34 = vld [vmem:[%s6970_s0 + $0x40] sm:$0xff] }
  0xac   :  { %1495 = vmatpush1.msra.mxu1 %v817_v20  ;;  %1408 = vmatpush1.msra.mxu0 %v337_v21  ;;  %v199_v20 = vld [vmem:[%s6970_s0 + $0x550] sm:$0xff]  ;;  %v658_v21 = vld [vmem:[%s6970_s0 + $0x13a8] sm:$0xff] }
  0xad   :  { %1496 = vmatprep.subr.mxu1 %v798_v22  ;;  %1409 = vmatprep.subr.mxu0 %v318_v4  ;;  %v180_v22 = vld [vmem:[%s6970_s0 + $0x4b8] sm:$0xff]  ;;  %v657_v4 = vld [vmem:[%s6970_s0 + $0x13a0] sm:$0xff] }
  0xae   :  { %1497 = vmatpush1.msra.mxu1 %v797_v6  ;;  %1410 = vmatpush1.msra.mxu0 %v317_v24  ;;  %v179_v6 = vld [vmem:[%s6970_s0 + $0x4b0] sm:$0xff]  ;;  %v638_v24 = vld [vmem:[%s6970_s0 + $0x1308] sm:$0xff] }
  0xaf   :  { %1498 = vmatprep.subr.mxu1 %v778_v26  ;;  %1411 = vmatprep.subr.mxu0 %v298_v27  ;;  %v160_v26 = vld [vmem:[%s6970_s0 + $0x418] sm:$0xff]  ;;  %v637_v27 = vld [vmem:[%s6970_s0 + $0x1300] sm:$0xff] }
  0xb0   :  { %1499 = vmatpush1.msra.mxu1 %v777_v28  ;;  %1412 = vmatpush1.msra.mxu0 %v297_v29  ;;  %v159_v28 = vld [vmem:[%s6970_s0 + $0x410] sm:$0xff]  ;;  %v618_v29 = vld [vmem:[%s6970_s0 + $0x1268] sm:$0xff] }
  0xb1   :  { %1500 = vmatprep.subr.mxu1 %v758_v30  ;;  %1413 = vmatprep.subr.mxu0 %v278_v31  ;;  %v140_v30 = vld [vmem:[%s6970_s0 + $0x378] sm:$0xff]  ;;  %v617_v31 = vld [vmem:[%s6970_s0 + $0x1260] sm:$0xff] }
  0xb2   :  { %1501 = vmatpush1.msra.mxu1 %v757_v32  ;;  %1414 = vmatpush1.msra.mxu0 %v277_v33  ;;  %v139_v32 = vld [vmem:[%s6970_s0 + $0x370] sm:$0xff]  ;;  %v598_v33 = vld [vmem:[%s6970_s0 + $0x11c8] sm:$0xff] }
  0xb3   :  { %1502 = vmatprep.subr.mxu1 %v738_v35  ;;  %1415 = vmatprep.subr.mxu0 %v258_v36  ;;  %v120_v35 = vld [vmem:[%s6970_s0 + $0x2d8] sm:$0xff]  ;;  %v597_v36 = vld [vmem:[%s6970_s0 + $0x11c0] sm:$0xff] }
  0xb4   :  { %1503 = vmatpush1.msra.mxu1 %v737_v37  ;;  %1416 = vmatpush1.msra.mxu0 %v257_v38  ;;  %v119_v37 = vld [vmem:[%s6970_s0 + $0x2d0] sm:$0xff]  ;;  %v578_v38 = vld [vmem:[%s6970_s0 + $0x1128] sm:$0xff] }
  0xb5   :  { %1504 = vmatprep.subr.mxu1 %v718_v39  ;;  %1417 = vmatprep.subr.mxu0 %v238_v40  ;;  %v100_v39 = vld [vmem:[%s6970_s0 + $0x238] sm:$0xff]  ;;  %v577_v40 = vld [vmem:[%s6970_s0 + $0x1120] sm:$0xff] }
  0xb6   :  { %1505 = vmatpush1.msra.mxu1 %v717_v41  ;;  %1418 = vmatpush1.msra.mxu0 %v237_v42  ;;  %v99_v41 = vld [vmem:[%s6970_s0 + $0x230] sm:$0xff]  ;;  %v558_v42 = vld [vmem:[%s6970_s0 + $0x1088] sm:$0xff] }
  0xb7   :  { %1506 = vmatprep.subr.mxu1 %v698_v43  ;;  %1419 = vmatprep.subr.mxu0 %v218_v44  ;;  %v80_v43 = vld [vmem:[%s6970_s0 + $0x198] sm:$0xff]  ;;  %v557_v44 = vld [vmem:[%s6970_s0 + $0x1080] sm:$0xff] }
  0xb8   :  { %1507 = vmatpush1.msra.mxu1 %v697_v45  ;;  %1420 = vmatpush1.msra.mxu0 %v217_v46  ;;  %v79_v45 = vld [vmem:[%s6970_s0 + $0x190] sm:$0xff]  ;;  %v538_v46 = vld [vmem:[%s6970_s0 + $0xfe8] sm:$0xff] }
  0xb9   :  { %1508 = vmatprep.subr.mxu1 %v678_v47  ;;  %1421 = vmatprep.subr.mxu0 %v198_v48  ;;  %v60_v47 = vld [vmem:[%s6970_s0 + $0xf8] sm:$0xff]  ;;  %v537_v48 = vld [vmem:[%s6970_s0 + $0xfe0] sm:$0xff] }
  0xba   :  { %1509 = vmatpush1.msra.mxu1 %v677_v49  ;;  %1422 = vmatpush1.msra.mxu0 %v197_v50  ;;  %v59_v49 = vld [vmem:[%s6970_s0 + $0xf0] sm:$0xff]  ;;  %v518_v50 = vld [vmem:[%s6970_s0 + $0xf48] sm:$0xff] }
  0xbb   :  { %1542 = vmatprep.mubr.f32.mxu1 %v3969_v3  ;;  %1423 = vmatprep.subr.mxu0 %v178_v51  ;;  %v40_v51 = vld [vmem:[%s6970_s0 + $0x58] sm:$0xff] }
  0xbc   :  { %3931 = vmatmul.mubr.msk.f32.vlgmr.msra.gmra.mxu1 %vm835_vm0, %v5032_v23  ;;  %1549 = vmatprep.subr.mxu1 %v340_v52  ;;  %v517_v52 = vld [vmem:[%s6970_s0 + $0xf40] sm:$0xff] }
  0xbd   :  { %1424 = vmatpush1.msra.mxu0 %v177_v53  ;;  %1550 = vmatpush1.msra.mxu1 %v339_v54  ;;  %v39_v53 = vld [vmem:[%s6970_s0 + $0x50] sm:$0xff]  ;;  %v498_v54 = vld [vmem:[%s6970_s0 + $0xea8] sm:$0xff] }
  0xbe   :  { %1425 = vmatprep.subr.mxu0 %v158_v55  ;;  %1551 = vmatprep.subr.mxu1 %v320_v56  ;;  %v660_v55 = vld [vmem:[%s6970_s0 + $0x13b8] sm:$0xff]  ;;  %v497_v56 = vld [vmem:[%s6970_s0 + $0xea0] sm:$0xff] }
  0xbf   :  { %1426 = vmatpush1.msra.mxu0 %v157_v57  ;;  %1552 = vmatpush1.msra.mxu1 %v319_v58  ;;  %v659_v57 = vld [vmem:[%s6970_s0 + $0x13b0] sm:$0xff]  ;;  %v478_v58 = vld [vmem:[%s6970_s0 + $0xe08] sm:$0xff] }
  0xc0   :  { %1427 = vmatprep.subr.mxu0 %v138_v59  ;;  %1553 = vmatprep.subr.mxu1 %v300_v60  ;;  %v640_v59 = vld [vmem:[%s6970_s0 + $0x1318] sm:$0xff]  ;;  %v477_v60 = vld [vmem:[%s6970_s0 + $0xe00] sm:$0xff] }
  0xc1   :  { %1428 = vmatpush1.msra.mxu0 %v137_v61  ;;  %1554 = vmatpush1.msra.mxu1 %v299_v62  ;;  %v639_v61 = vld [vmem:[%s6970_s0 + $0x1310] sm:$0xff]  ;;  %v458_v62 = vld [vmem:[%s6970_s0 + $0xd68] sm:$0xff] }
  0xc2   :  { %1429 = vmatprep.subr.mxu0 %v118_v63  ;;  %1555 = vmatprep.subr.mxu1 %v280_v0  ;;  %v620_v63 = vld [vmem:[%s6970_s0 + $0x1278] sm:$0xff]  ;;  %v457_v0 = vld [vmem:[%s6970_s0 + $0xd60] sm:$0xff] }
  0xc3   :  { %1430 = vmatpush1.msra.mxu0 %v117_v1  ;;  %1556 = vmatpush1.msra.mxu1 %v279_v2  ;;  %v619_v1 = vld [vmem:[%s6970_s0 + $0x1270] sm:$0xff]  ;;  %v438_v2 = vld [vmem:[%s6970_s0 + $0xcc8] sm:$0xff] }
  0xc4   :  { %1431 = vmatprep.subr.mxu0 %v98_v5  ;;  %1557 = vmatprep.subr.mxu1 %v260_v7  ;;  %v600_v5 = vld [vmem:[%s6970_s0 + $0x11d8] sm:$0xff]  ;;  %v437_v7 = vld [vmem:[%s6970_s0 + $0xcc0] sm:$0xff] }
  0xc5   :  { %1432 = vmatpush1.msra.mxu0 %v97_v8  ;;  %1558 = vmatpush1.msra.mxu1 %v259_v9  ;;  %v599_v8 = vld [vmem:[%s6970_s0 + $0x11d0] sm:$0xff]  ;;  %v418_v9 = vld [vmem:[%s6970_s0 + $0xc28] sm:$0xff] }
  0xc6   :  { %1433 = vmatprep.subr.mxu0 %v78_v10  ;;  %1559 = vmatprep.subr.mxu1 %v240_v11  ;;  %v580_v10 = vld [vmem:[%s6970_s0 + $0x1138] sm:$0xff]  ;;  %v417_v11 = vld [vmem:[%s6970_s0 + $0xc20] sm:$0xff] }
  0xc7   :  { %1434 = vmatpush1.msra.mxu0 %v77_v12  ;;  %1560 = vmatpush1.msra.mxu1 %v239_v13  ;;  %v579_v12 = vld [vmem:[%s6970_s0 + $0x1130] sm:$0xff]  ;;  %v398_v13 = vld [vmem:[%s6970_s0 + $0xb88] sm:$0xff] }
  0xc8   :  { %1435 = vmatprep.subr.mxu0 %v58_v14  ;;  %1561 = vmatprep.subr.mxu1 %v220_v15  ;;  %v560_v14 = vld [vmem:[%s6970_s0 + $0x1098] sm:$0xff]  ;;  %v397_v15 = vld [vmem:[%s6970_s0 + $0xb80] sm:$0xff] }
  0xc9   :  { %1436 = vmatpush1.msra.mxu0 %v57_v16  ;;  %1562 = vmatpush1.msra.mxu1 %v219_v17  ;;  %v559_v16 = vld [vmem:[%s6970_s0 + $0x1090] sm:$0xff]  ;;  %v378_v17 = vld [vmem:[%s6970_s0 + $0xae8] sm:$0xff] }
  0xca   :  { %1437 = vmatprep.subr.mxu0 %v38_v18  ;;  %1563 = vmatprep.subr.mxu1 %v200_v19  ;;  %v540_v18 = vld [vmem:[%s6970_s0 + $0xff8] sm:$0xff]  ;;  %v377_v19 = vld [vmem:[%s6970_s0 + $0xae0] sm:$0xff] }
  0xcb   :  { %1438 = vmatpush1.msra.mxu0 %v37_v34  ;;  %1564 = vmatpush1.msra.mxu1 %v199_v20  ;;  %v539_v34 = vld [vmem:[%s6970_s0 + $0xff0] sm:$0xff]  ;;  %v358_v20 = vld [vmem:[%s6970_s0 + $0xa48] sm:$0xff] }
  0xcc   :  { %1439 = vmatprep.subr.mxu0 %v658_v21  ;;  %1565 = vmatprep.subr.mxu1 %v180_v22  ;;  %v520_v21 = vld [vmem:[%s6970_s0 + $0xf58] sm:$0xff]  ;;  %v357_v22 = vld [vmem:[%s6970_s0 + $0xa40] sm:$0xff] }
  0xcd   :  { %1440 = vmatpush2.msra.mxu0 %v657_v4  ;;  %1566 = vmatpush1.msra.mxu1 %v179_v6  ;;  %v519_v4 = vld [vmem:[%s6970_s0 + $0xf50] sm:$0xff]  ;;  %v500_v6 = vld [vmem:[%s6970_s0 + $0xeb8] sm:$0xff] }
  0xce   :  { %1441 = vmatprep.subr.mxu0 %v638_v24  ;;  %1567 = vmatprep.subr.mxu1 %v160_v26  ;;  %v820_v24 = vld [vmem:[%s6970_s0 + $0x18b8] sm:$0xff]  ;;  %v499_v26 = vld [vmem:[%s6970_s0 + $0xeb0] sm:$0xff] }
  0xcf   :  { %1442 = vmatpush2.msra.mxu0 %v637_v27  ;;  %1568 = vmatpush1.msra.mxu1 %v159_v28  ;;  %v5414_v27 = vld [vmem:[%s6971_s1 + $0x8] sm:$0xff]  ;;  %v819_v28 = vld [vmem:[%s6970_s0 + $0x18b0] sm:$0xff] }
  0xd0   :  { %1443 = vmatprep.subr.mxu0 %v618_v29  ;;  %1569 = vmatprep.subr.mxu1 %v140_v30  ;;  %v480_v29 = vld [vmem:[%s6970_s0 + $0xe18] sm:$0xff]  ;;  %v5426_v30 = vld [vmem:[%s6971_s1] sm:$0xff] }
  0xd1   :  { %1444 = vmatpush2.msra.mxu0 %v617_v31  ;;  %1570 = vmatpush1.msra.mxu1 %v139_v32  ;;  %v800_v31 = vld [vmem:[%s6970_s0 + $0x1818] sm:$0xff]  ;;  %v479_v32 = vld [vmem:[%s6970_s0 + $0xe10] sm:$0xff] }
  0xd2   :  { %1445 = vmatprep.subr.mxu0 %v598_v33  ;;  %1571 = vmatprep.subr.mxu1 %v120_v35  ;;  %v799_v33 = vld [vmem:[%s6970_s0 + $0x1810] sm:$0xff]  ;;  %v460_v35 = vld [vmem:[%s6970_s0 + $0xd78] sm:$0xff] }
  0xd3   :  { %1446 = vmatpush2.msra.mxu0 %v597_v36  ;;  %1572 = vmatpush1.msra.mxu1 %v119_v37  ;;  %v780_v36 = vld [vmem:[%s6970_s0 + $0x1778] sm:$0xff]  ;;  %v459_v37 = vld [vmem:[%s6970_s0 + $0xd70] sm:$0xff] }
  0xd4   :  { %1447 = vmatprep.subr.mxu0 %v578_v38  ;;  %1573 = vmatprep.subr.mxu1 %v100_v39  ;;  %v779_v38 = vld [vmem:[%s6970_s0 + $0x1770] sm:$0xff]  ;;  %v440_v39 = vld [vmem:[%s6970_s0 + $0xcd8] sm:$0xff] }
  0xd5   :  { %1448 = vmatpush2.msra.mxu0 %v577_v40  ;;  %1574 = vmatpush1.msra.mxu1 %v99_v41  ;;  %v760_v40 = vld [vmem:[%s6970_s0 + $0x16d8] sm:$0xff]  ;;  %v439_v41 = vld [vmem:[%s6970_s0 + $0xcd0] sm:$0xff] }
  0xd6   :  { %1449 = vmatprep.subr.mxu0 %v558_v42  ;;  %1575 = vmatprep.subr.mxu1 %v80_v43  ;;  %v759_v42 = vld [vmem:[%s6970_s0 + $0x16d0] sm:$0xff]  ;;  %v420_v43 = vld [vmem:[%s6970_s0 + $0xc38] sm:$0xff] }
  0xd7   :  { %1450 = vmatpush2.msra.mxu0 %v557_v44  ;;  %1576 = vmatpush1.msra.mxu1 %v79_v45  ;;  %v740_v44 = vld [vmem:[%s6970_s0 + $0x1638] sm:$0xff]  ;;  %v419_v45 = vld [vmem:[%s6970_s0 + $0xc30] sm:$0xff] }
  0xd8   :  { %1451 = vmatprep.subr.mxu0 %v538_v46  ;;  %1577 = vmatprep.subr.mxu1 %v60_v47  ;;  %v739_v46 = vld [vmem:[%s6970_s0 + $0x1630] sm:$0xff]  ;;  %v400_v47 = vld [vmem:[%s6970_s0 + $0xb98] sm:$0xff] }
  0xd9   :  { %1452 = vmatpush2.msra.mxu0 %v537_v48  ;;  %1578 = vmatpush1.msra.mxu1 %v59_v49  ;;  %v720_v48 = vld [vmem:[%s6970_s0 + $0x1598] sm:$0xff]  ;;  %v399_v49 = vld [vmem:[%s6970_s0 + $0xb90] sm:$0xff] }
  0xda   :  { %1453 = vmatprep.subr.mxu0 %v518_v50  ;;  %1579 = vmatprep.subr.mxu1 %v40_v51  ;;  %v719_v50 = vld [vmem:[%s6970_s0 + $0x1590] sm:$0xff]  ;;  %v380_v51 = vld [vmem:[%s6970_s0 + $0xaf8] sm:$0xff] }
  0xdb   :  { %1454 = vmatpush2.msra.mxu0 %v517_v52  ;;  %1580 = vmatpush1.msra.mxu1 %v39_v53  ;;  %v700_v52 = vld [vmem:[%s6970_s0 + $0x14f8] sm:$0xff]  ;;  %v379_v53 = vld [vmem:[%s6970_s0 + $0xaf0] sm:$0xff] }
  0xdc   :  { %1455 = vmatprep.subr.mxu0 %v498_v54  ;;  %1581 = vmatprep.subr.mxu1 %v660_v55  ;;  %v699_v54 = vld [vmem:[%s6970_s0 + $0x14f0] sm:$0xff]  ;;  %v360_v55 = vld [vmem:[%s6970_s0 + $0xa58] sm:$0xff] }
  0xdd   :  { %1456 = vmatpush2.msra.mxu0 %v497_v56  ;;  %1582 = vmatpush2.msra.mxu1 %v659_v57  ;;  %v680_v56 = vld [vmem:[%s6970_s0 + $0x1458] sm:$0xff]  ;;  %v359_v57 = vld [vmem:[%s6970_s0 + $0xa50] sm:$0xff] }
  0xde   :  { %1457 = vmatprep.subr.mxu0 %v478_v58  ;;  %1583 = vmatprep.subr.mxu1 %v640_v59  ;;  %v679_v58 = vld [vmem:[%s6970_s0 + $0x1450] sm:$0xff]  ;;  %v342_v59 = vld [vmem:[%s6970_s0 + $0x9c8] sm:$0xff] }
  0xdf   :  { %1458 = vmatpush2.msra.mxu0 %v477_v60  ;;  %1584 = vmatpush2.msra.mxu1 %v639_v61  ;;  %v822_v60 = vld [vmem:[%s6970_s0 + $0x18c8] sm:$0xff]  ;;  %v821_v61 = vld [vmem:[%s6970_s0 + $0x18c0] sm:$0xff] }
  0xe0   :  { %1459 = vmatprep.subr.mxu0 %v458_v62  ;;  %1585 = vmatprep.subr.mxu1 %v620_v63  ;;  %v341_v62 = vld [vmem:[%s6970_s0 + $0x9c0] sm:$0xff]  ;;  %v802_v63 = vld [vmem:[%s6970_s0 + $0x1828] sm:$0xff] }
  0xe1   :  { %1460 = vmatpush2.msra.mxu0 %v457_v0  ;;  %1586 = vmatpush2.msra.mxu1 %v619_v1  ;;  %v322_v0 = vld [vmem:[%s6970_s0 + $0x928] sm:$0xff]  ;;  %v801_v1 = vld [vmem:[%s6970_s0 + $0x1820] sm:$0xff] }
  0xe2   :  { %1461 = vmatprep.subr.mxu0 %v438_v2  ;;  %1587 = vmatprep.subr.mxu1 %v600_v5  ;;  %v321_v2 = vld [vmem:[%s6970_s0 + $0x920] sm:$0xff]  ;;  %v782_v5 = vld [vmem:[%s6970_s0 + $0x1788] sm:$0xff] }
  0xe3   :  { %1462 = vmatpush2.msra.mxu0 %v437_v7  ;;  %1588 = vmatpush2.msra.mxu1 %v599_v8  ;;  %v302_v7 = vld [vmem:[%s6970_s0 + $0x888] sm:$0xff]  ;;  %v781_v8 = vld [vmem:[%s6970_s0 + $0x1780] sm:$0xff] }
  0xe4   :  { %1463 = vmatprep.subr.mxu0 %v418_v9  ;;  %1589 = vmatprep.subr.mxu1 %v580_v10  ;;  %v301_v9 = vld [vmem:[%s6970_s0 + $0x880] sm:$0xff]  ;;  %v762_v10 = vld [vmem:[%s6970_s0 + $0x16e8] sm:$0xff] }
  0xe5   :  { %1464 = vmatpush2.msra.mxu0 %v417_v11  ;;  %1590 = vmatpush2.msra.mxu1 %v579_v12  ;;  %v282_v11 = vld [vmem:[%s6970_s0 + $0x7e8] sm:$0xff]  ;;  %v761_v12 = vld [vmem:[%s6970_s0 + $0x16e0] sm:$0xff] }
  0xe6   :  { %1465 = vmatprep.subr.mxu0 %v398_v13  ;;  %1591 = vmatprep.subr.mxu1 %v560_v14  ;;  %v281_v13 = vld [vmem:[%s6970_s0 + $0x7e0] sm:$0xff]  ;;  %v742_v14 = vld [vmem:[%s6970_s0 + $0x1648] sm:$0xff] }
  0xe7   :  { %1466 = vmatpush2.msra.mxu0 %v397_v15  ;;  %1592 = vmatpush2.msra.mxu1 %v559_v16  ;;  %v262_v15 = vld [vmem:[%s6970_s0 + $0x748] sm:$0xff]  ;;  %v741_v16 = vld [vmem:[%s6970_s0 + $0x1640] sm:$0xff] }
  0xe8   :  { %1467 = vmatprep.subr.mxu0 %v378_v17  ;;  %1593 = vmatprep.subr.mxu1 %v540_v18  ;;  %v261_v17 = vld [vmem:[%s6970_s0 + $0x740] sm:$0xff]  ;;  %v722_v18 = vld [vmem:[%s6970_s0 + $0x15a8] sm:$0xff] }
  0xe9   :  { %1468 = vmatpush2.msra.mxu0 %v377_v19  ;;  %1594 = vmatpush2.msra.mxu1 %v539_v34  ;;  %v242_v19 = vld [vmem:[%s6970_s0 + $0x6a8] sm:$0xff]  ;;  %v721_v34 = vld [vmem:[%s6970_s0 + $0x15a0] sm:$0xff] }
  0xea   :  { %1469 = vmatprep.subr.mxu0 %v358_v20  ;;  %1595 = vmatprep.subr.mxu1 %v520_v21  ;;  %v241_v20 = vld [vmem:[%s6970_s0 + $0x6a0] sm:$0xff]  ;;  %v702_v21 = vld [vmem:[%s6970_s0 + $0x1508] sm:$0xff] }
  0xeb   :  { %1470 = vmatpush2.msra.mxu0 %v357_v22  ;;  %1471 = vmatprep.mubr.f32.mxu0 %v5414_v27  ;;  %v222_v22 = vld [vmem:[%s6970_s0 + $0x608] sm:$0xff] }
  0xec   :  { %1596 = vmatpush2.msra.mxu1 %v519_v4  ;;  %1472 = vmatmul.mubr.f32.vlgmr.msra.gmra.mxu0 %v5426_v30  ;;  %v701_v4 = vld [vmem:[%s6970_s0 + $0x1500] sm:$0xff] }
  0xed   :  { %1597 = vmatprep.subr.mxu1 %v500_v6  ;;  %1636 = vmatprep.subr.mxu0 %v820_v24  ;;  %v221_v6 = vld [vmem:[%s6970_s0 + $0x600] sm:$0xff]  ;;  %v682_v24 = vld [vmem:[%s6970_s0 + $0x1468] sm:$0xff] }
  0xee   :  { %1598 = vmatpush2.msra.mxu1 %v499_v26  ;;  %1637 = vmatpush1.msra.mxu0 %v819_v28  ;;  %v202_v26 = vld [vmem:[%s6970_s0 + $0x568] sm:$0xff]  ;;  %v681_v28 = vld [vmem:[%s6970_s0 + $0x1460] sm:$0xff] }
  0xef   :  { %1599 = vmatprep.subr.mxu1 %v480_v29  ;;  %1638 = vmatprep.subr.mxu0 %v800_v31  ;;  %v201_v29 = vld [vmem:[%s6970_s0 + $0x560] sm:$0xff]  ;;  %v182_v31 = vld [vmem:[%s6970_s0 + $0x4c8] sm:$0xff] }
  0xf0   :  { %1600 = vmatpush2.msra.mxu1 %v479_v32  ;;  %1639 = vmatpush1.msra.mxu0 %v799_v33  ;;  %v344_v32 = vld [vmem:[%s6970_s0 + $0x9d8] sm:$0xff]  ;;  %v181_v33 = vld [vmem:[%s6970_s0 + $0x4c0] sm:$0xff] }
  0xf1   :  { %1601 = vmatprep.subr.mxu1 %v460_v35  ;;  %1640 = vmatprep.subr.mxu0 %v780_v36  ;;  %v343_v35 = vld [vmem:[%s6970_s0 + $0x9d0] sm:$0xff]  ;;  %v162_v36 = vld [vmem:[%s6970_s0 + $0x428] sm:$0xff] }
  0xf2   :  { %1602 = vmatpush2.msra.mxu1 %v459_v37  ;;  %1641 = vmatpush1.msra.mxu0 %v779_v38  ;;  %v324_v37 = vld [vmem:[%s6970_s0 + $0x938] sm:$0xff]  ;;  %v161_v38 = vld [vmem:[%s6970_s0 + $0x420] sm:$0xff] }
  0xf3   :  { %1603 = vmatprep.subr.mxu1 %v440_v39  ;;  %1642 = vmatprep.subr.mxu0 %v760_v40  ;;  %v323_v39 = vld [vmem:[%s6970_s0 + $0x930] sm:$0xff]  ;;  %v142_v40 = vld [vmem:[%s6970_s0 + $0x388] sm:$0xff] }
  0xf4   :  { %1604 = vmatpush2.msra.mxu1 %v439_v41  ;;  %1643 = vmatpush1.msra.mxu0 %v759_v42  ;;  %v141_v41 = vld [vmem:[%s6970_s0 + $0x380] sm:$0xff]  ;;  %v303_v42 = vld [vmem:[%s6970_s0 + $0x890] sm:$0xff] }
  0xf5   :  { %1605 = vmatprep.subr.mxu1 %v420_v43  ;;  %1644 = vmatprep.subr.mxu0 %v740_v44  ;;  %v122_v43 = vld [vmem:[%s6970_s0 + $0x2e8] sm:$0xff]  ;;  %v284_v44 = vld [vmem:[%s6970_s0 + $0x7f8] sm:$0xff] }
  0xf6   :  { %1606 = vmatpush2.msra.mxu1 %v419_v45  ;;  %1645 = vmatpush1.msra.mxu0 %v739_v46  ;;  %v121_v45 = vld [vmem:[%s6970_s0 + $0x2e0] sm:$0xff]  ;;  %v283_v46 = vld [vmem:[%s6970_s0 + $0x7f0] sm:$0xff] }
  0xf7   :  { %1607 = vmatprep.subr.mxu1 %v400_v47  ;;  %1646 = vmatprep.subr.mxu0 %v720_v48  ;;  %v102_v47 = vld [vmem:[%s6970_s0 + $0x248] sm:$0xff]  ;;  %v264_v48 = vld [vmem:[%s6970_s0 + $0x758] sm:$0xff] }
  0xf8   :  { %1608 = vmatpush2.msra.mxu1 %v399_v49  ;;  %1647 = vmatpush1.msra.mxu0 %v719_v50  ;;  %v101_v49 = vld [vmem:[%s6970_s0 + $0x240] sm:$0xff]  ;;  %v263_v50 = vld [vmem:[%s6970_s0 + $0x750] sm:$0xff] }
  0xf9   :  { %1609 = vmatprep.subr.mxu1 %v380_v51  ;;  %1648 = vmatprep.subr.mxu0 %v700_v52  ;;  %v82_v51 = vld [vmem:[%s6970_s0 + $0x1a8] sm:$0xff]  ;;  %v244_v52 = vld [vmem:[%s6970_s0 + $0x6b8] sm:$0xff] }
  0xfa   :  { %1610 = vmatpush2.msra.mxu1 %v379_v53  ;;  %1649 = vmatpush1.msra.mxu0 %v699_v54  ;;  %v81_v53 = vld [vmem:[%s6970_s0 + $0x1a0] sm:$0xff]  ;;  %v243_v54 = vld [vmem:[%s6970_s0 + $0x6b0] sm:$0xff] }
  0xfb   :  { %1611 = vmatprep.subr.mxu1 %v360_v55  ;;  %1650 = vmatprep.subr.mxu0 %v680_v56  ;;  %v62_v55 = vld [vmem:[%s6970_s0 + $0x108] sm:$0xff]  ;;  %v224_v56 = vld [vmem:[%s6970_s0 + $0x618] sm:$0xff] }
  0xfc   :  { %1612 = vmatpush2.msra.mxu1 %v359_v57  ;;  %1613 = vmatprep.mubr.f32.mxu1 %v5414_v27  ;;  %v61_v57 = vld [vmem:[%s6970_s0 + $0x100] sm:$0xff] }
  0xfd   :  { %1651 = vmatpush1.msra.mxu0 %v679_v58  ;;  %1614 = vmatmul.mubr.f32.vlgmr.msra.gmra.mxu1 %v5426_v30  ;;  %v223_v58 = vld [vmem:[%s6970_s0 + $0x610] sm:$0xff] }
  0xfe   :  { %1684 = vmatprep.mubr.f32.mxu0 %v3969_v3  ;;  %1691 = vmatprep.subr.mxu0 %v342_v59  ;;  %v42_v59 = vld [vmem:[%s6970_s0 + $0x68] sm:$0xff] }
  0xff   :  { %1778 = vmatprep.subr.mxu1 %v822_v60  ;;  %3932 = vmatmul.mubr.msk.f32.vlgmr.msra.gmra.mxu0 %vm835_vm0, %v5032_v23  ;;  %v204_v60 = vld [vmem:[%s6970_s0 + $0x578] sm:$0xff] }
 0x100   :  { %1779 = vmatpush1.msra.mxu1 %v821_v61  ;;  %1692 = vmatpush1.msra.mxu0 %v341_v62  ;;  %v41_v61 = vld [vmem:[%s6970_s0 + $0x60] sm:$0xff]  ;;  %v203_v62 = vld [vmem:[%s6970_s0 + $0x570] sm:$0xff] }
 0x101   :  { %1780 = vmatprep.subr.mxu1 %v802_v63  ;;  %1693 = vmatprep.subr.mxu0 %v322_v0  ;;  %v662_v63 = vld [vmem:[%s6970_s0 + $0x13c8] sm:$0xff]  ;;  %v184_v0 = vld [vmem:[%s6970_s0 + $0x4d8] sm:$0xff] }
 0x102   :  { %1781 = vmatpush1.msra.mxu1 %v801_v1  ;;  %1694 = vmatpush1.msra.mxu0 %v321_v2  ;;  %v661_v1 = vld [vmem:[%s6970_s0 + $0x13c0] sm:$0xff]  ;;  %v183_v2 = vld [vmem:[%s6970_s0 + $0x4d0] sm:$0xff] }
 0x103   :  { %1782 = vmatprep.subr.mxu1 %v782_v5  ;;  %1695 = vmatprep.subr.mxu0 %v302_v7  ;;  %v642_v5 = vld [vmem:[%s6970_s0 + $0x1328] sm:$0xff]  ;;  %v164_v7 = vld [vmem:[%s6970_s0 + $0x438] sm:$0xff] }
 0x104   :  { %1783 = vmatpush1.msra.mxu1 %v781_v8  ;;  %1696 = vmatpush1.msra.mxu0 %v301_v9  ;;  %v641_v8 = vld [vmem:[%s6970_s0 + $0x1320] sm:$0xff]  ;;  %v163_v9 = vld [vmem:[%s6970_s0 + $0x430] sm:$0xff] }
 0x105   :  { %1784 = vmatprep.subr.mxu1 %v762_v10  ;;  %1697 = vmatprep.subr.mxu0 %v282_v11  ;;  %v622_v10 = vld [vmem:[%s6970_s0 + $0x1288] sm:$0xff]  ;;  %v144_v11 = vld [vmem:[%s6970_s0 + $0x398] sm:$0xff] }
 0x106   :  { %1785 = vmatpush1.msra.mxu1 %v761_v12  ;;  %1698 = vmatpush1.msra.mxu0 %v281_v13  ;;  %v621_v12 = vld [vmem:[%s6970_s0 + $0x1280] sm:$0xff]  ;;  %v143_v13 = vld [vmem:[%s6970_s0 + $0x390] sm:$0xff] }
 0x107   :  { %1786 = vmatprep.subr.mxu1 %v742_v14  ;;  %1699 = vmatprep.subr.mxu0 %v262_v15  ;;  %v602_v14 = vld [vmem:[%s6970_s0 + $0x11e8] sm:$0xff]  ;;  %v124_v15 = vld [vmem:[%s6970_s0 + $0x2f8] sm:$0xff] }
 0x108   :  { %1787 = vmatpush1.msra.mxu1 %v741_v16  ;;  %1700 = vmatpush1.msra.mxu0 %v261_v17  ;;  %v601_v16 = vld [vmem:[%s6970_s0 + $0x11e0] sm:$0xff]  ;;  %v123_v17 = vld [vmem:[%s6970_s0 + $0x2f0] sm:$0xff] }
 0x109   :  { %1788 = vmatprep.subr.mxu1 %v722_v18  ;;  %1701 = vmatprep.subr.mxu0 %v242_v19  ;;  %v582_v18 = vld [vmem:[%s6970_s0 + $0x1148] sm:$0xff]  ;;  %v104_v19 = vld [vmem:[%s6970_s0 + $0x258] sm:$0xff] }
 0x10a   :  { %1789 = vmatpush1.msra.mxu1 %v721_v34  ;;  %1702 = vmatpush1.msra.mxu0 %v241_v20  ;;  %v581_v34 = vld [vmem:[%s6970_s0 + $0x1140] sm:$0xff]  ;;  %v103_v20 = vld [vmem:[%s6970_s0 + $0x250] sm:$0xff] }
 0x10b   :  { %1790 = vmatprep.subr.mxu1 %v702_v21  ;;  %1703 = vmatprep.subr.mxu0 %v222_v22  ;;  %v562_v21 = vld [vmem:[%s6970_s0 + $0x10a8] sm:$0xff]  ;;  %v84_v22 = vld [vmem:[%s6970_s0 + $0x1b8] sm:$0xff] }
 0x10c   :  { %1791 = vmatpush1.msra.mxu1 %v701_v4  ;;  %1704 = vmatpush1.msra.mxu0 %v221_v6  ;;  %v561_v4 = vld [vmem:[%s6970_s0 + $0x10a0] sm:$0xff]  ;;  %v83_v6 = vld [vmem:[%s6970_s0 + $0x1b0] sm:$0xff] }
 0x10d   :  { %1792 = vmatprep.subr.mxu1 %v682_v24  ;;  %1705 = vmatprep.subr.mxu0 %v202_v26  ;;  %v542_v24 = vld [vmem:[%s6970_s0 + $0x1008] sm:$0xff]  ;;  %v64_v26 = vld [vmem:[%s6970_s0 + $0x118] sm:$0xff] }
 0x10e   :  { %1793 = vmatpush1.msra.mxu1 %v681_v28  ;;  %1706 = vmatpush1.msra.mxu0 %v201_v29  ;;  %v541_v28 = vld [vmem:[%s6970_s0 + $0x1000] sm:$0xff]  ;;  %v63_v29 = vld [vmem:[%s6970_s0 + $0x110] sm:$0xff] }
 0x10f   :  { %1826 = vmatprep.mubr.f32.mxu1 %v3969_v3  ;;  %1707 = vmatprep.subr.mxu0 %v182_v31  ;;  %v522_v31 = vld [vmem:[%s6970_s0 + $0xf68] sm:$0xff] }
 0x110   :  { %3933 = vmatmul.mubr.msk.f32.vlgmr.msra.gmra.mxu1 %vm835_vm0, %v5032_v23  ;;  %1833 = vmatprep.subr.mxu1 %v344_v32  ;;  %v304_v23 = vld [vmem:[%s6970_s0 + $0x898] sm:$0xff] }
 0x111   :  { %1708 = vmatpush1.msra.mxu0 %v181_v33  ;;  %1834 = vmatpush1.msra.mxu1 %v343_v35  ;;  %v44_v32 = vld [vmem:[%s6970_s0 + $0x78] sm:$0xff]  ;;  %v521_v33 = vld [vmem:[%s6970_s0 + $0xf60] sm:$0xff]  ;;  %v43_v35 = vld [vmem:[%s6970_s0 + $0x70] sm:$0xff] }
 0x112   :  { %1709 = vmatprep.subr.mxu0 %v162_v36  ;;  %1835 = vmatprep.subr.mxu1 %v324_v37  ;;  %v502_v36 = vld [vmem:[%s6970_s0 + $0xec8] sm:$0xff]  ;;  %v664_v37 = vld [vmem:[%s6970_s0 + $0x13d8] sm:$0xff] }
 0x113   :  { %1710 = vmatpush1.msra.mxu0 %v161_v38  ;;  %1836 = vmatpush1.msra.mxu1 %v323_v39  ;;  %v501_v38 = vld [vmem:[%s6970_s0 + $0xec0] sm:$0xff]  ;;  %v663_v39 = vld [vmem:[%s6970_s0 + $0x13d0] sm:$0xff] }
 0x114   :  { %1711 = vmatprep.subr.mxu0 %v142_v40  ;;  %1837 = vmatprep.subr.mxu1 %v304_v23  ;;  %v482_v40 = vld [vmem:[%s6970_s0 + $0xe28] sm:$0xff]  ;;  %v644_v23 = vld [vmem:[%s6970_s0 + $0x1338] sm:$0xff] }
 0x115   :  { %1712 = vmatpush1.msra.mxu0 %v141_v41  ;;  %1838 = vmatpush1.msra.mxu1 %v303_v42  ;;  %v481_v41 = vld [vmem:[%s6970_s0 + $0xe20] sm:$0xff]  ;;  %v643_v42 = vld [vmem:[%s6970_s0 + $0x1330] sm:$0xff] }
 0x116   :  { %1713 = vmatprep.subr.mxu0 %v122_v43  ;;  %1839 = vmatprep.subr.mxu1 %v284_v44  ;;  %v462_v43 = vld [vmem:[%s6970_s0 + $0xd88] sm:$0xff]  ;;  %v624_v44 = vld [vmem:[%s6970_s0 + $0x1298] sm:$0xff] }
 0x117   :  { %1714 = vmatpush1.msra.mxu0 %v121_v45  ;;  %1840 = vmatpush1.msra.mxu1 %v283_v46  ;;  %v461_v45 = vld [vmem:[%s6970_s0 + $0xd80] sm:$0xff]  ;;  %v623_v46 = vld [vmem:[%s6970_s0 + $0x1290] sm:$0xff] }
 0x118   :  { %1715 = vmatprep.subr.mxu0 %v102_v47  ;;  %1841 = vmatprep.subr.mxu1 %v264_v48  ;;  %v442_v47 = vld [vmem:[%s6970_s0 + $0xce8] sm:$0xff]  ;;  %v604_v48 = vld [vmem:[%s6970_s0 + $0x11f8] sm:$0xff] }
 0x119   :  { %1716 = vmatpush1.msra.mxu0 %v101_v49  ;;  %1842 = vmatpush1.msra.mxu1 %v263_v50  ;;  %v441_v49 = vld [vmem:[%s6970_s0 + $0xce0] sm:$0xff]  ;;  %v603_v50 = vld [vmem:[%s6970_s0 + $0x11f0] sm:$0xff] }
 0x11a   :  { %1717 = vmatprep.subr.mxu0 %v82_v51  ;;  %1843 = vmatprep.subr.mxu1 %v244_v52  ;;  %v422_v51 = vld [vmem:[%s6970_s0 + $0xc48] sm:$0xff]  ;;  %v584_v52 = vld [vmem:[%s6970_s0 + $0x1158] sm:$0xff] }
 0x11b   :  { %1718 = vmatpush1.msra.mxu0 %v81_v53  ;;  %1844 = vmatpush1.msra.mxu1 %v243_v54  ;;  %v421_v53 = vld [vmem:[%s6970_s0 + $0xc40] sm:$0xff]  ;;  %v583_v54 = vld [vmem:[%s6970_s0 + $0x1150] sm:$0xff] }
 0x11c   :  { %1719 = vmatprep.subr.mxu0 %v62_v55  ;;  %1845 = vmatprep.subr.mxu1 %v224_v56  ;;  %v402_v55 = vld [vmem:[%s6970_s0 + $0xba8] sm:$0xff]  ;;  %v564_v56 = vld [vmem:[%s6970_s0 + $0x10b8] sm:$0xff] }
 0x11d   :  { %1720 = vmatpush1.msra.mxu0 %v61_v57  ;;  %1846 = vmatpush1.msra.mxu1 %v223_v58  ;;  %v401_v57 = vld [vmem:[%s6970_s0 + $0xba0] sm:$0xff]  ;;  %v563_v58 = vld [vmem:[%s6970_s0 + $0x10b0] sm:$0xff] }
 0x11e   :  { %1721 = vmatprep.subr.mxu0 %v42_v59  ;;  %1847 = vmatprep.subr.mxu1 %v204_v60  ;;  %v382_v59 = vld [vmem:[%s6970_s0 + $0xb08] sm:$0xff]  ;;  %v544_v60 = vld [vmem:[%s6970_s0 + $0x1018] sm:$0xff] }
 0x11f   :  { %1722 = vmatpush1.msra.mxu0 %v41_v61  ;;  %1848 = vmatpush1.msra.mxu1 %v203_v62  ;;  %v381_v61 = vld [vmem:[%s6970_s0 + $0xb00] sm:$0xff]  ;;  %v543_v62 = vld [vmem:[%s6970_s0 + $0x1010] sm:$0xff] }
 0x120   :  { %1723 = vmatprep.subr.mxu0 %v662_v63  ;;  %1849 = vmatprep.subr.mxu1 %v184_v0  ;;  %v362_v63 = vld [vmem:[%s6970_s0 + $0xa68] sm:$0xff]  ;;  %v524_v0 = vld [vmem:[%s6970_s0 + $0xf78] sm:$0xff] }
 0x121   :  { %1724 = vmatpush2.msra.mxu0 %v661_v1  ;;  %1850 = vmatpush1.msra.mxu1 %v183_v2  ;;  %v361_v1 = vld [vmem:[%s6970_s0 + $0xa60] sm:$0xff]  ;;  %v523_v2 = vld [vmem:[%s6970_s0 + $0xf70] sm:$0xff] }
 0x122   :  { %1725 = vmatprep.subr.mxu0 %v642_v5  ;;  %1851 = vmatprep.subr.mxu1 %v164_v7  ;;  %v504_v5 = vld [vmem:[%s6970_s0 + $0xed8] sm:$0xff] }
 0x123   :  { %1726 = vmatpush2.msra.mxu0 %v641_v8  ;;  %1852 = vmatpush1.msra.mxu1 %v163_v9  ;;  %v824_v7 = vld [vmem:[%s6970_s0 + $0x18d8] sm:$0xff]  ;;  %v503_v8 = vld [vmem:[%s6970_s0 + $0xed0] sm:$0xff] }
 0x124   :  { %1727 = vmatprep.subr.mxu0 %v622_v10  ;;  %1853 = vmatprep.subr.mxu1 %v144_v11  ;;  %v823_v9 = vld [vmem:[%s6970_s0 + $0x18d0] sm:$0xff]  ;;  %v484_v10 = vld [vmem:[%s6970_s0 + $0xe38] sm:$0xff] }
 0x125   :  { %1728 = vmatpush2.msra.mxu0 %v621_v12  ;;  %1854 = vmatpush1.msra.mxu1 %v143_v13  ;;  %v804_v11 = vld [vmem:[%s6970_s0 + $0x1838] sm:$0xff]  ;;  %v483_v12 = vld [vmem:[%s6970_s0 + $0xe30] sm:$0xff] }
 0x126   :  { %1729 = vmatprep.subr.mxu0 %v602_v14  ;;  %1855 = vmatprep.subr.mxu1 %v124_v15  ;;  %v803_v13 = vld [vmem:[%s6970_s0 + $0x1830] sm:$0xff]  ;;  %v464_v14 = vld [vmem:[%s6970_s0 + $0xd98] sm:$0xff] }
 0x127   :  { %1730 = vmatpush2.msra.mxu0 %v601_v16  ;;  %1856 = vmatpush1.msra.mxu1 %v123_v17  ;;  %v784_v15 = vld [vmem:[%s6970_s0 + $0x1798] sm:$0xff]  ;;  %v463_v16 = vld [vmem:[%s6970_s0 + $0xd90] sm:$0xff] }
 0x128   :  { %1731 = vmatprep.subr.mxu0 %v582_v18  ;;  %1857 = vmatprep.subr.mxu1 %v104_v19  ;;  %v783_v17 = vld [vmem:[%s6970_s0 + $0x1790] sm:$0xff]  ;;  %v444_v18 = vld [vmem:[%s6970_s0 + $0xcf8] sm:$0xff] }
 0x129   :  { %1732 = vmatpush2.msra.mxu0 %v581_v34  ;;  %1858 = vmatpush1.msra.mxu1 %v103_v20  ;;  %v764_v19 = vld [vmem:[%s6970_s0 + $0x16f8] sm:$0xff]  ;;  %v443_v34 = vld [vmem:[%s6970_s0 + $0xcf0] sm:$0xff] }
 0x12a   :  { %1733 = vmatprep.subr.mxu0 %v562_v21  ;;  %1859 = vmatprep.subr.mxu1 %v84_v22  ;;  %v763_v20 = vld [vmem:[%s6970_s0 + $0x16f0] sm:$0xff]  ;;  %v424_v21 = vld [vmem:[%s6970_s0 + $0xc58] sm:$0xff] }
 0x12b   :  { %1734 = vmatpush2.msra.mxu0 %v561_v4  ;;  %1860 = vmatpush1.msra.mxu1 %v83_v6  ;;  %v744_v22 = vld [vmem:[%s6970_s0 + $0x1658] sm:$0xff]  ;;  %v423_v4 = vld [vmem:[%s6970_s0 + $0xc50] sm:$0xff] }
 0x12c   :  { %1735 = vmatprep.subr.mxu0 %v542_v24  ;;  %1861 = vmatprep.subr.mxu1 %v64_v26  ;;  %v743_v6 = vld [vmem:[%s6970_s0 + $0x1650] sm:$0xff]  ;;  %v404_v24 = vld [vmem:[%s6970_s0 + $0xbb8] sm:$0xff] }
 0x12d   :  { %1736 = vmatpush2.msra.mxu0 %v541_v28  ;;  %1862 = vmatpush1.msra.mxu1 %v63_v29  ;;  %v724_v26 = vld [vmem:[%s6970_s0 + $0x15b8] sm:$0xff]  ;;  %v403_v28 = vld [vmem:[%s6970_s0 + $0xbb0] sm:$0xff] }
 0x12e   :  { %1737 = vmatprep.subr.mxu0 %v522_v31  ;;  %1863 = vmatprep.subr.mxu1 %v44_v32  ;;  %v723_v29 = vld [vmem:[%s6970_s0 + $0x15b0] sm:$0xff]  ;;  %v384_v31 = vld [vmem:[%s6970_s0 + $0xb18] sm:$0xff] }
 0x12f   :  { %1738 = vmatpush2.msra.mxu0 %v521_v33  ;;  %1864 = vmatpush1.msra.mxu1 %v43_v35  ;;  %v704_v32 = vld [vmem:[%s6970_s0 + $0x1518] sm:$0xff]  ;;  %v383_v33 = vld [vmem:[%s6970_s0 + $0xb10] sm:$0xff] }
 0x130   :  { %1739 = vmatprep.subr.mxu0 %v502_v36  ;;  %1865 = vmatprep.subr.mxu1 %v664_v37  ;;  %v703_v35 = vld [vmem:[%s6970_s0 + $0x1510] sm:$0xff]  ;;  %v364_v36 = vld [vmem:[%s6970_s0 + $0xa78] sm:$0xff] }
 0x131   :  { %1740 = vmatpush2.msra.mxu0 %v501_v38  ;;  %1866 = vmatpush2.msra.mxu1 %v663_v39  ;;  %v684_v37 = vld [vmem:[%s6970_s0 + $0x1478] sm:$0xff]  ;;  %v363_v38 = vld [vmem:[%s6970_s0 + $0xa70] sm:$0xff] }
 0x132   :  { %1741 = vmatprep.subr.mxu0 %v482_v40  ;;  %1867 = vmatprep.subr.mxu1 %v644_v23  ;;  %v683_v39 = vld [vmem:[%s6970_s0 + $0x1470] sm:$0xff]  ;;  %v346_v40 = vld [vmem:[%s6970_s0 + $0x9e8] sm:$0xff] }
 0x133   :  { %1742 = vmatpush2.msra.mxu0 %v481_v41  ;;  %1868 = vmatpush2.msra.mxu1 %v643_v42  ;;  %v826_v23 = vld [vmem:[%s6970_s0 + $0x18e8] sm:$0xff]  ;;  %v825_v41 = vld [vmem:[%s6970_s0 + $0x18e0] sm:$0xff] }
 0x134   :  { %1743 = vmatprep.subr.mxu0 %v462_v43  ;;  %1869 = vmatprep.subr.mxu1 %v624_v44  ;;  %v345_v42 = vld [vmem:[%s6970_s0 + $0x9e0] sm:$0xff]  ;;  %v806_v43 = vld [vmem:[%s6970_s0 + $0x1848] sm:$0xff]  ;;  %v6027_v44 = vld [vmem:[%s6971_s1 + $0x10] sm:$0xff] }
 0x135   :  { %1744 = vmatpush2.msra.mxu0 %v461_v45  ;;  %1870 = vmatpush2.msra.mxu1 %v623_v46  ;;  %v325_v45 = vld [vmem:[%s6970_s0 + $0x940] sm:$0xff]  ;;  %v786_v46 = vld [vmem:[%s6970_s0 + $0x17a8] sm:$0xff] }
 0x136   :  { %1745 = vmatprep.subr.mxu0 %v442_v47  ;;  %1871 = vmatprep.subr.mxu1 %v604_v48  ;;  %v306_v47 = vld [vmem:[%s6970_s0 + $0x8a8] sm:$0xff]  ;;  %v785_v48 = vld [vmem:[%s6970_s0 + $0x17a0] sm:$0xff] }
 0x137   :  { %1746 = vmatpush2.msra.mxu0 %v441_v49  ;;  %1872 = vmatpush2.msra.mxu1 %v603_v50  ;;  %v305_v49 = vld [vmem:[%s6970_s0 + $0x8a0] sm:$0xff]  ;;  %v766_v50 = vld [vmem:[%s6970_s0 + $0x1708] sm:$0xff] }
 0x138   :  { %1747 = vmatprep.subr.mxu0 %v422_v51  ;;  %1873 = vmatprep.subr.mxu1 %v584_v52  ;;  %v286_v51 = vld [vmem:[%s6970_s0 + $0x808] sm:$0xff]  ;;  %v765_v52 = vld [vmem:[%s6970_s0 + $0x1700] sm:$0xff] }
 0x139   :  { %1748 = vmatpush2.msra.mxu0 %v421_v53  ;;  %1874 = vmatpush2.msra.mxu1 %v583_v54  ;;  %v285_v53 = vld [vmem:[%s6970_s0 + $0x800] sm:$0xff]  ;;  %v746_v54 = vld [vmem:[%s6970_s0 + $0x1668] sm:$0xff] }
 0x13a   :  { %1749 = vmatprep.subr.mxu0 %v402_v55  ;;  %1875 = vmatprep.subr.mxu1 %v564_v56  ;;  %v266_v55 = vld [vmem:[%s6970_s0 + $0x768] sm:$0xff]  ;;  %v745_v56 = vld [vmem:[%s6970_s0 + $0x1660] sm:$0xff] }
 0x13b   :  { %1750 = vmatpush2.msra.mxu0 %v401_v57  ;;  %1876 = vmatpush2.msra.mxu1 %v563_v58  ;;  %v265_v57 = vld [vmem:[%s6970_s0 + $0x760] sm:$0xff]  ;;  %v726_v58 = vld [vmem:[%s6970_s0 + $0x15c8] sm:$0xff] }
 0x13c   :  { %1751 = vmatprep.subr.mxu0 %v382_v59  ;;  %1877 = vmatprep.subr.mxu1 %v544_v60  ;;  %v246_v59 = vld [vmem:[%s6970_s0 + $0x6c8] sm:$0xff]  ;;  %v725_v60 = vld [vmem:[%s6970_s0 + $0x15c0] sm:$0xff] }
 0x13d   :  { %1752 = vmatpush2.msra.mxu0 %v381_v61  ;;  %1878 = vmatpush2.msra.mxu1 %v543_v62  ;;  %v245_v61 = vld [vmem:[%s6970_s0 + $0x6c0] sm:$0xff]  ;;  %v706_v62 = vld [vmem:[%s6970_s0 + $0x1528] sm:$0xff] }
 0x13e   :  { %1753 = vmatprep.subr.mxu0 %v362_v63  ;;  %1879 = vmatprep.subr.mxu1 %v524_v0  ;;  %v226_v63 = vld [vmem:[%s6970_s0 + $0x628] sm:$0xff]  ;;  %v705_v0 = vld [vmem:[%s6970_s0 + $0x1520] sm:$0xff] }
 0x13f   :  { %1754 = vmatpush2.msra.mxu0 %v361_v1  ;;  %1755 = vmatprep.mubr.f32.mxu0 %v5414_v27  ;;  %v225_v1 = vld [vmem:[%s6970_s0 + $0x620] sm:$0xff] }
 0x140   :  { %1880 = vmatpush2.msra.mxu1 %v523_v2  ;;  %1756 = vmatmul.mubr.f32.vlgmr.msra.gmra.mxu0 %v5426_v30  ;;  %v686_v2 = vld [vmem:[%s6970_s0 + $0x1488] sm:$0xff] }
 0x141   :  { %1881 = vmatprep.subr.mxu1 %v504_v5  ;;  %1920 = vmatprep.subr.mxu0 %v824_v7  ;;  %v206_v5 = vld [vmem:[%s6970_s0 + $0x588] sm:$0xff]  ;;  %v685_v7 = vld [vmem:[%s6970_s0 + $0x1480] sm:$0xff] }
 0x142   :  { %1882 = vmatpush2.msra.mxu1 %v503_v8  ;;  %1921 = vmatpush1.msra.mxu0 %v823_v9  ;;  %v205_v8 = vld [vmem:[%s6970_s0 + $0x580] sm:$0xff]  ;;  %v186_v9 = vld [vmem:[%s6970_s0 + $0x4e8] sm:$0xff] }
 0x143   :  { %1883 = vmatprep.subr.mxu1 %v484_v10  ;;  %1922 = vmatprep.subr.mxu0 %v804_v11  ;;  %v348_v10 = vld [vmem:[%s6970_s0 + $0x9f8] sm:$0xff]  ;;  %v185_v11 = vld [vmem:[%s6970_s0 + $0x4e0] sm:$0xff] }
 0x144   :  { %1884 = vmatpush2.msra.mxu1 %v483_v12  ;;  %1923 = vmatpush1.msra.mxu0 %v803_v13  ;;  %v347_v12 = vld [vmem:[%s6970_s0 + $0x9f0] sm:$0xff]  ;;  %v166_v13 = vld [vmem:[%s6970_s0 + $0x448] sm:$0xff] }
 0x145   :  { %1885 = vmatprep.subr.mxu1 %v464_v14  ;;  %1924 = vmatprep.subr.mxu0 %v784_v15  ;;  %v328_v14 = vld [vmem:[%s6970_s0 + $0x958] sm:$0xff]  ;;  %v165_v15 = vld [vmem:[%s6970_s0 + $0x440] sm:$0xff] }
 0x146   :  { %1886 = vmatpush2.msra.mxu1 %v463_v16  ;;  %1925 = vmatpush1.msra.mxu0 %v783_v17  ;;  %v327_v16 = vld [vmem:[%s6970_s0 + $0x950] sm:$0xff]  ;;  %v146_v17 = vld [vmem:[%s6970_s0 + $0x3a8] sm:$0xff] }
 0x147   :  { %1887 = vmatprep.subr.mxu1 %v444_v18  ;;  %1926 = vmatprep.subr.mxu0 %v764_v19  ;;  %v308_v18 = vld [vmem:[%s6970_s0 + $0x8b8] sm:$0xff]  ;;  %v145_v19 = vld [vmem:[%s6970_s0 + $0x3a0] sm:$0xff] }
 0x148   :  { %1888 = vmatpush2.msra.mxu1 %v443_v34  ;;  %1927 = vmatpush1.msra.mxu0 %v763_v20  ;;  %v307_v34 = vld [vmem:[%s6970_s0 + $0x8b0] sm:$0xff]  ;;  %v126_v20 = vld [vmem:[%s6970_s0 + $0x308] sm:$0xff] }
 0x149   :  { %1889 = vmatprep.subr.mxu1 %v424_v21  ;;  %1928 = vmatprep.subr.mxu0 %v744_v22  ;;  %v288_v21 = vld [vmem:[%s6970_s0 + $0x818] sm:$0xff]  ;;  %v125_v22 = vld [vmem:[%s6970_s0 + $0x300] sm:$0xff] }
 0x14a   :  { %1890 = vmatpush2.msra.mxu1 %v423_v4  ;;  %1929 = vmatpush1.msra.mxu0 %v743_v6  ;;  %v287_v4 = vld [vmem:[%s6970_s0 + $0x810] sm:$0xff]  ;;  %v106_v6 = vld [vmem:[%s6970_s0 + $0x268] sm:$0xff] }
 0x14b   :  { %1891 = vmatprep.subr.mxu1 %v404_v24  ;;  %1930 = vmatprep.subr.mxu0 %v724_v26  ;;  %v268_v24 = vld [vmem:[%s6970_s0 + $0x778] sm:$0xff]  ;;  %v105_v26 = vld [vmem:[%s6970_s0 + $0x260] sm:$0xff] }
 0x14c   :  { %1892 = vmatpush2.msra.mxu1 %v403_v28  ;;  %1931 = vmatpush1.msra.mxu0 %v723_v29  ;;  %v267_v28 = vld [vmem:[%s6970_s0 + $0x770] sm:$0xff]  ;;  %v86_v29 = vld [vmem:[%s6970_s0 + $0x1c8] sm:$0xff] }
 0x14d   :  { %1893 = vmatprep.subr.mxu1 %v384_v31  ;;  %1932 = vmatprep.subr.mxu0 %v704_v32  ;;  %v248_v31 = vld [vmem:[%s6970_s0 + $0x6d8] sm:$0xff]  ;;  %v85_v32 = vld [vmem:[%s6970_s0 + $0x1c0] sm:$0xff] }
 0x14e   :  { %1894 = vmatpush2.msra.mxu1 %v383_v33  ;;  %1933 = vmatpush1.msra.mxu0 %v703_v35  ;;  %v247_v33 = vld [vmem:[%s6970_s0 + $0x6d0] sm:$0xff]  ;;  %v66_v35 = vld [vmem:[%s6970_s0 + $0x128] sm:$0xff] }
 0x14f   :  { %1895 = vmatprep.subr.mxu1 %v364_v36  ;;  %1934 = vmatprep.subr.mxu0 %v684_v37  ;;  %v228_v36 = vld [vmem:[%s6970_s0 + $0x638] sm:$0xff]  ;;  %v65_v37 = vld [vmem:[%s6970_s0 + $0x120] sm:$0xff] }
 0x150   :  { %1896 = vmatpush2.msra.mxu1 %v363_v38  ;;  %1897 = vmatprep.mubr.f32.mxu1 %v5414_v27  ;;  %v326_v27 = vld [vmem:[%s6970_s0 + $0x948] sm:$0xff]  ;;  %v227_v38 = vld [vmem:[%s6970_s0 + $0x630] sm:$0xff] }
 0x151   :  { %1935 = vmatpush1.msra.mxu0 %v683_v39  ;;  %1898 = vmatmul.mubr.f32.vlgmr.msra.gmra.mxu1 %v5426_v30  ;;  %v805_v30 = vld [vmem:[%s6970_s0 + $0x1840] sm:$0xff]  ;;  %v46_v39 = vld [vmem:[%s6970_s0 + $0x88] sm:$0xff] }
 0x152   :  { %1968 = vmatprep.mubr.f32.mxu0 %v3969_v3  ;;  %1975 = vmatprep.subr.mxu0 %v346_v40  ;;  %v208_v40 = vld [vmem:[%s6970_s0 + $0x598] sm:$0xff] }
 0x153   :  { %2062 = vmatprep.subr.mxu1 %v826_v23  ;;  %3934 = vmatmul.mubr.msk.f32.vlgmr.msra.gmra.mxu0 %vm835_vm0, %v6027_v44  ;;  %v45_v23 = vld [vmem:[%s6970_s0 + $0x80] sm:$0xff] }
 0x154   :  { %2063 = vmatpush1.msra.mxu1 %v825_v41  ;;  %1976 = vmatpush1.msra.mxu0 %v345_v42  ;;  %v207_v41 = vld [vmem:[%s6970_s0 + $0x590] sm:$0xff]  ;;  %v666_v42 = vld [vmem:[%s6970_s0 + $0x13e8] sm:$0xff] }
 0x155   :  { %2064 = vmatprep.subr.mxu1 %v806_v43  ;;  %1977 = vmatprep.subr.mxu0 %v326_v27  ;;  %v188_v43 = vld [vmem:[%s6970_s0 + $0x4f8] sm:$0xff]  ;;  %v665_v27 = vld [vmem:[%s6970_s0 + $0x13e0] sm:$0xff] }
 0x156   :  { %2065 = vmatpush1.msra.mxu1 %v805_v30  ;;  %1978 = vmatpush1.msra.mxu0 %v325_v45  ;;  %v187_v30 = vld [vmem:[%s6970_s0 + $0x4f0] sm:$0xff]  ;;  %v646_v45 = vld [vmem:[%s6970_s0 + $0x1348] sm:$0xff] }
 0x157   :  { %2066 = vmatprep.subr.mxu1 %v786_v46  ;;  %1979 = vmatprep.subr.mxu0 %v306_v47  ;;  %v168_v46 = vld [vmem:[%s6970_s0 + $0x458] sm:$0xff]  ;;  %v645_v47 = vld [vmem:[%s6970_s0 + $0x1340] sm:$0xff] }
 0x158   :  { %2067 = vmatpush1.msra.mxu1 %v785_v48  ;;  %1980 = vmatpush1.msra.mxu0 %v305_v49  ;;  %v167_v48 = vld [vmem:[%s6970_s0 + $0x450] sm:$0xff]  ;;  %v626_v49 = vld [vmem:[%s6970_s0 + $0x12a8] sm:$0xff] }
 0x159   :  { %2068 = vmatprep.subr.mxu1 %v766_v50  ;;  %1981 = vmatprep.subr.mxu0 %v286_v51  ;;  %v148_v50 = vld [vmem:[%s6970_s0 + $0x3b8] sm:$0xff]  ;;  %v625_v51 = vld [vmem:[%s6970_s0 + $0x12a0] sm:$0xff] }
 0x15a   :  { %2069 = vmatpush1.msra.mxu1 %v765_v52  ;;  %1982 = vmatpush1.msra.mxu0 %v285_v53  ;;  %v147_v52 = vld [vmem:[%s6970_s0 + $0x3b0] sm:$0xff]  ;;  %v606_v53 = vld [vmem:[%s6970_s0 + $0x1208] sm:$0xff] }
 0x15b   :  { %2070 = vmatprep.subr.mxu1 %v746_v54  ;;  %1983 = vmatprep.subr.mxu0 %v266_v55  ;;  %v128_v54 = vld [vmem:[%s6970_s0 + $0x318] sm:$0xff]  ;;  %v605_v55 = vld [vmem:[%s6970_s0 + $0x1200] sm:$0xff] }
 0x15c   :  { %2071 = vmatpush1.msra.mxu1 %v745_v56  ;;  %1984 = vmatpush1.msra.mxu0 %v265_v57  ;;  %v127_v56 = vld [vmem:[%s6970_s0 + $0x310] sm:$0xff]  ;;  %v586_v57 = vld [vmem:[%s6970_s0 + $0x1168] sm:$0xff] }
 0x15d   :  { %2072 = vmatprep.subr.mxu1 %v726_v58  ;;  %1985 = vmatprep.subr.mxu0 %v246_v59  ;;  %v108_v58 = vld [vmem:[%s6970_s0 + $0x278] sm:$0xff]  ;;  %v585_v59 = vld [vmem:[%s6970_s0 + $0x1160] sm:$0xff] }
 0x15e   :  { %2073 = vmatpush1.msra.mxu1 %v725_v60  ;;  %1986 = vmatpush1.msra.mxu0 %v245_v61  ;;  %v107_v60 = vld [vmem:[%s6970_s0 + $0x270] sm:$0xff]  ;;  %v566_v61 = vld [vmem:[%s6970_s0 + $0x10c8] sm:$0xff] }
 0x15f   :  { %2074 = vmatprep.subr.mxu1 %v706_v62  ;;  %1987 = vmatprep.subr.mxu0 %v226_v63  ;;  %v88_v62 = vld [vmem:[%s6970_s0 + $0x1d8] sm:$0xff]  ;;  %v565_v63 = vld [vmem:[%s6970_s0 + $0x10c0] sm:$0xff] }
 0x160   :  { %2075 = vmatpush1.msra.mxu1 %v705_v0  ;;  %1988 = vmatpush1.msra.mxu0 %v225_v1  ;;  %v87_v0 = vld [vmem:[%s6970_s0 + $0x1d0] sm:$0xff]  ;;  %v546_v1 = vld [vmem:[%s6970_s0 + $0x1028] sm:$0xff] }
 0x161   :  { %2076 = vmatprep.subr.mxu1 %v686_v2  ;;  %1989 = vmatprep.subr.mxu0 %v206_v5  ;;  %v68_v2 = vld [vmem:[%s6970_s0 + $0x138] sm:$0xff]  ;;  %v545_v5 = vld [vmem:[%s6970_s0 + $0x1020] sm:$0xff] }
 0x162   :  { %2077 = vmatpush1.msra.mxu1 %v685_v7  ;;  %1990 = vmatpush1.msra.mxu0 %v205_v8  ;;  %v67_v7 = vld [vmem:[%s6970_s0 + $0x130] sm:$0xff]  ;;  %v526_v8 = vld [vmem:[%s6970_s0 + $0xf88] sm:$0xff] }
 0x163   :  { %2110 = vmatprep.mubr.f32.mxu1 %v3969_v3  ;;  %1991 = vmatprep.subr.mxu0 %v186_v9  ;;  %v48_v9 = vld [vmem:[%s6970_s0 + $0x98] sm:$0xff] }
 0x164   :  { %3935 = vmatmul.mubr.msk.f32.vlgmr.msra.gmra.mxu1 %vm835_vm0, %v6027_v44  ;;  %2117 = vmatprep.subr.mxu1 %v348_v10  ;;  %v525_v10 = vld [vmem:[%s6970_s0 + $0xf80] sm:$0xff] }
 0x165   :  { %1992 = vmatpush1.msra.mxu0 %v185_v11  ;;  %2118 = vmatpush1.msra.mxu1 %v347_v12  ;;  %v47_v11 = vld [vmem:[%s6970_s0 + $0x90] sm:$0xff]  ;;  %v506_v12 = vld [vmem:[%s6970_s0 + $0xee8] sm:$0xff] }
 0x166   :  { %1993 = vmatprep.subr.mxu0 %v166_v13  ;;  %2119 = vmatprep.subr.mxu1 %v328_v14  ;;  %v668_v13 = vld [vmem:[%s6970_s0 + $0x13f8] sm:$0xff]  ;;  %v505_v14 = vld [vmem:[%s6970_s0 + $0xee0] sm:$0xff] }
 0x167   :  { %1994 = vmatpush1.msra.mxu0 %v165_v15  ;;  %2120 = vmatpush1.msra.mxu1 %v327_v16  ;;  %v667_v15 = vld [vmem:[%s6970_s0 + $0x13f0] sm:$0xff]  ;;  %v486_v16 = vld [vmem:[%s6970_s0 + $0xe48] sm:$0xff] }
 0x168   :  { %1995 = vmatprep.subr.mxu0 %v146_v17  ;;  %2121 = vmatprep.subr.mxu1 %v308_v18  ;;  %v648_v17 = vld [vmem:[%s6970_s0 + $0x1358] sm:$0xff]  ;;  %v485_v18 = vld [vmem:[%s6970_s0 + $0xe40] sm:$0xff] }
 0x169   :  { %1996 = vmatpush1.msra.mxu0 %v145_v19  ;;  %2122 = vmatpush1.msra.mxu1 %v307_v34  ;;  %v647_v19 = vld [vmem:[%s6970_s0 + $0x1350] sm:$0xff]  ;;  %v466_v34 = vld [vmem:[%s6970_s0 + $0xda8] sm:$0xff] }
 0x16a   :  { %1997 = vmatprep.subr.mxu0 %v126_v20  ;;  %2123 = vmatprep.subr.mxu1 %v288_v21  ;;  %v628_v20 = vld [vmem:[%s6970_s0 + $0x12b8] sm:$0xff]  ;;  %v465_v21 = vld [vmem:[%s6970_s0 + $0xda0] sm:$0xff] }
 0x16b   :  { %1998 = vmatpush1.msra.mxu0 %v125_v22  ;;  %2124 = vmatpush1.msra.mxu1 %v287_v4  ;;  %v627_v22 = vld [vmem:[%s6970_s0 + $0x12b0] sm:$0xff]  ;;  %v446_v4 = vld [vmem:[%s6970_s0 + $0xd08] sm:$0xff] }
 0x16c   :  { %1999 = vmatprep.subr.mxu0 %v106_v6  ;;  %2125 = vmatprep.subr.mxu1 %v268_v24  ;;  %v608_v6 = vld [vmem:[%s6970_s0 + $0x1218] sm:$0xff]  ;;  %v445_v24 = vld [vmem:[%s6970_s0 + $0xd00] sm:$0xff] }
 0x16d   :  { %2000 = vmatpush1.msra.mxu0 %v105_v26  ;;  %2126 = vmatpush1.msra.mxu1 %v267_v28  ;;  %v607_v26 = vld [vmem:[%s6970_s0 + $0x1210] sm:$0xff]  ;;  %v426_v28 = vld [vmem:[%s6970_s0 + $0xc68] sm:$0xff] }
 0x16e   :  { %2001 = vmatprep.subr.mxu0 %v86_v29  ;;  %2127 = vmatprep.subr.mxu1 %v248_v31  ;;  %v588_v29 = vld [vmem:[%s6970_s0 + $0x1178] sm:$0xff]  ;;  %v425_v31 = vld [vmem:[%s6970_s0 + $0xc60] sm:$0xff] }
 0x16f   :  { %2002 = vmatpush1.msra.mxu0 %v85_v32  ;;  %2128 = vmatpush1.msra.mxu1 %v247_v33  ;;  %v6358_v32 = vpop.f32.mrf.mxu1  ;;  %v587_v33 = vld [vmem:[%s6970_s0 + $0x1170] sm:$0xff] }
 0x170   :  { %2003 = vmatprep.subr.mxu0 %v66_v35  ;;  %2129 = vmatprep.subr.mxu1 %v228_v36  ;;  %v406_v35 = vld [vmem:[%s6970_s0 + $0xbc8] sm:$0xff]  ;;  %v568_v36 = vld [vmem:[%s6970_s0 + $0x10d8] sm:$0xff] }
 0x171   :  { %2004 = vmatpush1.msra.mxu0 %v65_v37  ;;  %2130 = vmatpush1.msra.mxu1 %v227_v38  ;;  %v405_v37 = vld [vmem:[%s6970_s0 + $0xbc0] sm:$0xff]  ;;  %v567_v38 = vld [vmem:[%s6970_s0 + $0x10d0] sm:$0xff] }
 0x172   :  { %2005 = vmatprep.subr.mxu0 %v46_v39  ;;  %2131 = vmatprep.subr.mxu1 %v208_v40  ;;  %v386_v39 = vld [vmem:[%s6970_s0 + $0xb28] sm:$0xff]  ;;  %v548_v40 = vld [vmem:[%s6970_s0 + $0x1038] sm:$0xff] }
 0x173   :  { %2006 = vmatpush1.msra.mxu0 %v45_v23  ;;  %2132 = vmatpush1.msra.mxu1 %v207_v41  ;;  %v385_v23 = vld [vmem:[%s6970_s0 + $0xb20] sm:$0xff]  ;;  %v6384_v41 = vpop.f32.mrf.mxu1 }
 0x174   :  { %2007 = vmatprep.subr.mxu0 %v666_v42  ;;  %2133 = vmatprep.subr.mxu1 %v188_v43  ;;  %v6386_v42 = vpop.f32.mrf.mxu0  ;;  %v547_v43 = vld [vmem:[%s6970_s0 + $0x1030] sm:$0xff] }
 0x175   :  { %2008 = vmatpush2.msra.mxu0 %v665_v27  ;;  %2134 = vmatpush1.msra.mxu1 %v187_v30  ;;  %v366_v27 = vld [vmem:[%s6970_s0 + $0xa88] sm:$0xff]  ;;  %v528_v30 = vld [vmem:[%s6970_s0 + $0xf98] sm:$0xff] }
 0x176   :  { %2009 = vmatprep.subr.mxu0 %v646_v45  ;;  %2135 = vmatprep.subr.mxu1 %v168_v46  ;;  %v365_v45 = vld [vmem:[%s6970_s0 + $0xa80] sm:$0xff]  ;;  %v6400_v46 = vpop.f32.mrf.mxu1 }
 0x177   :  { %2010 = vmatpush2.msra.mxu0 %v645_v47  ;;  %2136 = vmatpush1.msra.mxu1 %v167_v48  ;;  %v527_v47 = vld [vmem:[%s6970_s0 + $0xf90] sm:$0xff]  ;;  %v508_v48 = vld [vmem:[%s6970_s0 + $0xef8] sm:$0xff] }
 0x178   :  { %2011 = vmatprep.subr.mxu0 %v626_v49  ;;  %2137 = vmatprep.subr.mxu1 %v148_v50  ;;  %v6408_v49 = vpop.f32.mrf.mxu0  ;;  %v828_v50 = vld [vmem:[%s6970_s0 + $0x18f8] sm:$0xff] }
 0x179   :  { %2012 = vmatpush2.msra.mxu0 %v625_v51  ;;  %2138 = vmatpush1.msra.mxu1 %v147_v52  ;;  %v507_v51 = vld [vmem:[%s6970_s0 + $0xef0] sm:$0xff]  ;;  %v6419_v52 = vld [vmem:[%s6971_s1 + $0x8] sm:$0xff] }
 0x17a   :  { %2013 = vmatprep.subr.mxu0 %v606_v53  ;;  %2139 = vmatprep.subr.mxu1 %v128_v54  ;;  %v827_v53 = vld [vmem:[%s6970_s0 + $0x18f0] sm:$0xff]  ;;  %v488_v54 = vld [vmem:[%s6970_s0 + $0xe58] sm:$0xff] }
 0x17b   :  { %2014 = vmatpush2.msra.mxu0 %v605_v55  ;;  %2140 = vmatpush1.msra.mxu1 %v127_v56  ;;  %v6428_v55 = vpop.f32.mrf.mxu0  ;;  %v6430_v56 = vpop.f32.mrf.mxu1 }
 0x17c   :  { %2015 = vmatprep.subr.mxu0 %v586_v57  ;;  %2141 = vmatprep.subr.mxu1 %v108_v58  ;;  %v6435_v57 = vld [vmem:[%s6971_s1] sm:$0xff]  ;;  %v808_v58 = vld [vmem:[%s6970_s0 + $0x1858] sm:$0xff] }
 0x17d   :  { %2016 = vmatpush2.msra.mxu0 %v585_v59  ;;  %2142 = vmatpush1.msra.mxu1 %v107_v60  ;;  %v487_v59 = vld [vmem:[%s6970_s0 + $0xe50] sm:$0xff] }
 0x17e   :  { %2017 = vmatprep.subr.mxu0 %v566_v61  ;;  %2143 = vmatprep.subr.mxu1 %v88_v62  ;;  %v807_v60 = vld [vmem:[%s6970_s0 + $0x1850] sm:$0xff]  ;;  %v468_v61 = vld [vmem:[%s6970_s0 + $0xdb8] sm:$0xff]  ;;  %v6450_v62 = vpop.f32.mrf.mxu1 }
 0x17f   :  { %2018 = vmatpush2.msra.mxu0 %v565_v63  ;;  %2144 = vmatpush1.msra.mxu1 %v87_v0  ;;  %v788_v63 = vld [vmem:[%s6970_s0 + $0x17b8] sm:$0xff]  ;;  %v467_v0 = vld [vmem:[%s6970_s0 + $0xdb0] sm:$0xff] }
 0x180   :  { %2019 = vmatprep.subr.mxu0 %v546_v1  ;;  %2145 = vmatprep.subr.mxu1 %v68_v2  ;;  %v787_v1 = vld [vmem:[%s6970_s0 + $0x17b0] sm:$0xff]  ;;  %v448_v2 = vld [vmem:[%s6970_s0 + $0xd18] sm:$0xff] }
 0x181   :  { %2020 = vmatpush2.msra.mxu0 %v545_v5  ;;  %2146 = vmatpush1.msra.mxu1 %v67_v7  ;;  %v6464_v5 = vpop.f32.mrf.mxu0  ;;  %v768_v7 = vld [vmem:[%s6970_s0 + $0x1718] sm:$0xff] }
 0x182   :  { %2021 = vmatprep.subr.mxu0 %v526_v8  ;;  %2147 = vmatprep.subr.mxu1 %v48_v9  ;;  %v447_v8 = vld [vmem:[%s6970_s0 + $0xd10] sm:$0xff] }
 0x183   :  { %2022 = vmatpush2.msra.mxu0 %v525_v10  ;;  %2148 = vmatpush1.msra.mxu1 %v47_v11  ;;  %v767_v9 = vld [vmem:[%s6970_s0 + $0x1710] sm:$0xff]  ;;  %v428_v10 = vld [vmem:[%s6970_s0 + $0xc78] sm:$0xff]  ;;  %v1262_v11 = vpop.f32.mrf.mxu1 }
 0x184   :  { %2023 = vmatprep.subr.mxu0 %v506_v12  ;;  %2149 = vmatprep.subr.mxu1 %v668_v13  ;;  %v1189_v12 = vpop.f32.mrf.mxu0  ;;  %v748_v13 = vld [vmem:[%s6970_s0 + $0x1678] sm:$0xff] }
 0x185   :  { %2024 = vmatpush2.msra.mxu0 %v505_v14  ;;  %2150 = vmatpush2.msra.mxu1 %v667_v15  ;;  %v427_v14 = vld [vmem:[%s6970_s0 + $0xc70] sm:$0xff] }
 0x186   :  { %2025 = vmatprep.subr.mxu0 %v486_v16  ;;  %2151 = vmatprep.subr.mxu1 %v648_v17  ;;  %v747_v15 = vld [vmem:[%s6970_s0 + $0x1670] sm:$0xff]  ;;  %v408_v16 = vld [vmem:[%s6970_s0 + $0xbd8] sm:$0xff]  ;;  %v1331_v17 = vpop.f32.mrf.mxu1 }
 0x187   :  { %2026 = vmatpush2.msra.mxu0 %v485_v18  ;;  %2152 = vmatpush2.msra.mxu1 %v647_v19  ;;  %v728_v18 = vld [vmem:[%s6970_s0 + $0x15d8] sm:$0xff]  ;;  %v407_v19 = vld [vmem:[%s6970_s0 + $0xbd0] sm:$0xff] }
 0x188   :  { %2027 = vmatprep.subr.mxu0 %v466_v34  ;;  %2153 = vmatprep.subr.mxu1 %v628_v20  ;;  %v727_v34 = vld [vmem:[%s6970_s0 + $0x15d0] sm:$0xff]  ;;  %v388_v20 = vld [vmem:[%s6970_s0 + $0xb38] sm:$0xff] }
 0x189   :  { %2028 = vmatpush2.msra.mxu0 %v465_v21  ;;  %2154 = vmatpush2.msra.mxu1 %v627_v22  ;;  %v6502_v21 = vpop.permute.xlu0 %832  ;;  %v1191_v22 = vpop.f32.mrf.mxu0 }
 0x18a   :  { %2029 = vmatprep.subr.mxu0 %v446_v4  ;;  %2155 = vmatprep.subr.mxu1 %v608_v6  ;;  %v708_v4 = vld [vmem:[%s6970_s0 + $0x1538] sm:$0xff]  ;;  %v387_v6 = vld [vmem:[%s6970_s0 + $0xb30] sm:$0xff] }
 0x18b   :  { %2030 = vmatpush2.msra.mxu0 %v445_v24  ;;  %2156 = vmatpush2.msra.mxu1 %v607_v26  ;;  %v707_v24 = vld [vmem:[%s6970_s0 + $0x1530] sm:$0xff]  ;;  %v368_v26 = vld [vmem:[%s6970_s0 + $0xa98] sm:$0xff] }
 0x18c   :  { %2031 = vmatprep.subr.mxu0 %v426_v28  ;;  %2157 = vmatprep.subr.mxu1 %v588_v29  ;;  %v908_v28 = vadd.f32 %v6408_v49, %v6502_v21  ;;  %v1402_v29 = vpop.f32.mrf.mxu0 }
 0x18d   :  { %2032 = vmatpush2.msra.mxu0 %v425_v31  ;;  %2158 = vmatpush2.msra.mxu1 %v587_v33  ;;  %v1333_v31 = vpop.f32.mrf.mxu1  ;;  %v688_v33 = vld [vmem:[%s6970_s0 + $0x1498] sm:$0xff] }
 0x18e   :  { %2033 = vmatprep.subr.mxu0 %v406_v35  ;;  %2159 = vmatprep.subr.mxu1 %v568_v36  ;;  %v367_v35 = vld [vmem:[%s6970_s0 + $0xa90] sm:$0xff]  ;;  %v906_v36 = vadd.f32 %v6386_v42, %v6502_v21  ;;  %v6536_v42 = vadd.f32 %v6384_v41, %v908_v28 }
 0x18f   :  { %2034 = vmatpush2.msra.mxu0 %v405_v37  ;;  %2160 = vmatpush2.msra.mxu1 %v567_v38  ;;  %v1050_v37 = vadd.f32 %v6430_v56, %v6502_v21  ;;  %v687_v38 = vld [vmem:[%s6970_s0 + $0x1490] sm:$0xff] }
 0x190   :  { %2035 = vmatprep.subr.mxu0 %v386_v39  ;;  %2161 = vmatprep.subr.mxu1 %v548_v40  ;;  %v1048_v39 = vadd.f32 %v6400_v46, %v6502_v21  ;;  %v1192_v40 = vadd.f32 %v1191_v22, %v6502_v21 }
 0x191   :  { %2036 = vmatpush2.msra.mxu0 %v385_v23  ;;  %2162 = vmatpush2.msra.mxu1 %v547_v43  ;;  %v1334_v23 = vadd.f32 %v1333_v31, %v6502_v21  ;;  %v1404_v43 = vpop.f32.mrf.mxu0 }
 0x192   :  { %2037 = vmatprep.subr.mxu0 %v366_v27  ;;  %2163 = vmatprep.subr.mxu1 %v528_v30  ;;  %v6540_v27 = vadd.f32 %v6358_v32, %v906_v36  ;;  %v6543_v30 = vadd.f32 %v6464_v5, %v1050_v37  ;;  %v6549_v46 = vadd.f32 %v6428_v55, %v1048_v39 }
 0x193   :  { %2038 = vmatpush2.msra.mxu0 %v365_v45  ;;  %2039 = vmatprep.mubr.f32.mxu0 %v6419_v52  ;;  %v1190_v45 = vadd.f32 %v1189_v12, %v6502_v21  ;;  %v6551_v41 = vadd.f32 %v1262_v11, %v1192_v40  ;;  %v6557_v32 = vadd.f32 %v1404_v43, %v1334_v23 }
 0x194   :  { %2164 = vmatpush2.msra.mxu1 %v527_v47  ;;  %2040 = vmatmul.mubr.f32.vlgmr.msra.gmra.mxu0 %v6435_v57  ;;  %v1332_v47 = vadd.f32 %v1331_v17, %v6502_v21 }
 0x195   :  { %2165 = vmatprep.subr.mxu1 %v508_v48  ;;  %2204 = vmatprep.subr.mxu0 %v828_v50  ;;  %v6564_v48 = vld [vmem:[%s6973_s5] sm:$0xff]  ;;  %v1544_v50 = vpop.f32.mrf.mxu1 }
 0x196   :  { %2166 = vmatpush2.msra.mxu1 %v507_v51  ;;  %2205 = vmatpush1.msra.mxu0 %v827_v53  ;;  %v6573_v49 = vadd.f32 %v1402_v29, %v1332_v47 }
 0x197   :  { %2167 = vmatprep.subr.mxu1 %v488_v54  ;;  %2206 = vmatprep.subr.mxu0 %v808_v58  ;;  %v1546_v55 = vpop.f32.mrf.mxu1 }
 0x198   :  { %2168 = vmatpush2.msra.mxu1 %v487_v59  ;;  %2207 = vmatpush1.msra.mxu0 %v807_v60 }
 0x199   :  { %2169 = vmatprep.subr.mxu1 %v468_v61  ;;  %2208 = vmatprep.subr.mxu0 %v788_v63 }
 0x19a   :  { %2170 = vmatpush2.msra.mxu1 %v467_v0  ;;  %2209 = vmatpush1.msra.mxu0 %v787_v1 }
 0x19b   :  { %2171 = vmatprep.subr.mxu1 %v448_v2  ;;  %2210 = vmatprep.subr.mxu0 %v768_v7 }
 0x19c   :  { %2172 = vmatpush2.msra.mxu1 %v447_v8  ;;  %2211 = vmatpush1.msra.mxu0 %v767_v9 }
 0x19d   :  { %2173 = vmatprep.subr.mxu1 %v428_v10  ;;  %2212 = vmatprep.subr.mxu0 %v748_v13 }
 0x19e   :  { %2174 = vmatpush2.msra.mxu1 %v427_v14  ;;  %2213 = vmatpush1.msra.mxu0 %v747_v15 }
 0x19f   :  { %2175 = vmatprep.subr.mxu1 %v408_v16  ;;  %2214 = vmatprep.subr.mxu0 %v728_v18 }
 0x1a0   :  { %2176 = vmatpush2.msra.mxu1 %v407_v19  ;;  %2215 = vmatpush1.msra.mxu0 %v727_v34 }
 0x1a1   :  { %2177 = vmatprep.subr.mxu1 %v388_v20  ;;  %2216 = vmatprep.subr.mxu0 %v708_v4 }
 0x1a2   :  { %2178 = vmatpush2.msra.mxu1 %v387_v6  ;;  %2217 = vmatpush1.msra.mxu0 %v707_v24 }
 0x1a3   :  { %2179 = vmatprep.subr.mxu1 %v368_v26  ;;  %2218 = vmatprep.subr.mxu0 %v688_v33 }
 0x1a4   :  { %2180 = vmatpush2.msra.mxu1 %v367_v35  ;;  %2181 = vmatprep.mubr.f32.mxu1 %v6419_v52 }
 0x1a5   :  { %2219 = vmatpush1.msra.mxu0 %v687_v38  ;;  %2252 = vmatprep.mubr.f32.mxu0 %v3969_v3 }
 0x1a6   :  { %2182 = vmatmul.mubr.f32.vlgmr.msra.gmra.mxu1 %v6435_v57  ;;  %3936 = vmatmul.mubr.msk.f32.vlgmr.msra.gmra.mxu0 %vm835_vm0, %v6027_v44  ;;  %v6569_v44 = vadd.f32 %v6450_v62, %v1190_v45 }
 0x1a7   :  { %2294 = vmatprep.subr.mxu0 %v6536_v42  ;;  %2365 = vmatprep.subr.mxu1 %v6543_v30 }
 0x1a8   :  { %2295 = vmatpush1.msra.mxu0 %v6540_v27  ;;  %2366 = vmatpush1.msra.mxu1 %v6549_v46 }
 0x1a9   :  { %2436 = vmatprep.subr.mxu0 %v6551_v41  ;;  %2507 = vmatprep.subr.mxu1 %v6557_v32 }
 0x1aa   :  { %2328 = vmatprep.mubr.f32.mxu0 %v3969_v3  ;;  %2399 = vmatprep.mubr.f32.mxu1 %v3969_v3 }
 0x1ab   :  { %3937 = vmatmul.mubr.msk.f32.vlgmr.msra.gmra.mxu0 %vm2260_vm1, %v6564_v48  ;;  %3938 = vmatmul.mubr.msk.f32.vlgmr.msra.gmra.mxu1 %vm2260_vm1, %v6564_v48 }
 0x1ac   :  { %2437 = vmatpush1.msra.mxu0 %v6569_v44  ;;  %2508 = vmatpush1.msra.mxu1 %v6573_v49  ;;  %v1473_v51 = vpop.f32.mrf.mxu0 }
 0x1ad   :  { %2470 = vmatprep.mubr.f32.mxu0 %v3969_v3  ;;  %2541 = vmatprep.mubr.f32.mxu1 %v3969_v3  ;;  %v1474_v52 = vadd.f32 %v1473_v51, %v6502_v21 }
 0x1ae   :  { %3960 = vset.pattern.permute.xlu1 %v3970_v25  ;;  %v1475_v53 = vpop.f32.mrf.mxu0 }
 0x1af   :  { %3939 = vmatmul.mubr.msk.f32.vlgmr.msra.gmra.mxu0 %vm2260_vm1, %v6564_v48  ;;  %v1476_v54 = vadd.f32 %v1475_v53, %v6502_v21  ;;  %3940 = vmatmul.mubr.msk.f32.vlgmr.msra.gmra.mxu1 %vm2260_vm1, %v6564_v48  ;;  %v6595_v57 = vadd.f32 %v1544_v50, %v1474_v52 }
 0x1b0   :  { %2612 = vmatprep.mubr.f32.mxu0 %v3969_v3  ;;  %2683 = vmatprep.mubr.f32.mxu1 %v3969_v3 }
 0x1b1   :  { %v6593_v56 = vadd.f32 %v1546_v55, %v1476_v54 }
 0x1b3   :  { %2578 = vmatprep.subr.mxu0 %v6593_v56 }
 0x1b4   :  { %2579 = vmatpush1.msra.mxu0 %v6595_v57 }
 0x1b5   :  { %3941 = vmatmul.mubr.msk.f32.vlgmr.msra.gmra.mxu0 %vm2260_vm1, %v6564_v48 }
 0x1b6   :  { %2754 = vmatprep.mubr.f32.mxu0 %v3969_v3 }
 0x1bd   :  { %v1615_v25 = vpop.f32.mrf.mxu1 }
 0x1be   :  { %v1616_v58 = vadd.f32 %v1615_v25, %v6502_v21 }
 0x1bf   :  { %v1686_v59 = vpop.f32.mrf.mxu0  ;;  %v1617_v60 = vpop.f32.mrf.mxu1 }
 0x1c0   :  { %v1618_v61 = vadd.f32 %v1617_v60, %v6502_v21  ;;  %v6606_v0 = vadd.f32 %v1686_v59, %v1616_v58 }
 0x1c1   :  { %v1688_v62 = vpop.f32.mrf.mxu0 }
 0x1c2   :  { %v6604_v63 = vadd.f32 %v1688_v62, %v1618_v61 }
 0x1c4   :  { %2649 = vmatprep.subr.mxu1 %v6604_v63 }
 0x1c5   :  { %2650 = vmatpush1.msra.mxu1 %v6606_v0 }
 0x1c6   :  { %3942 = vmatmul.mubr.msk.f32.vlgmr.msra.gmra.mxu1 %vm2260_vm1, %v6564_v48 }
 0x1c7   :  { %2825 = vmatprep.mubr.f32.mxu1 %v3969_v3 }
 0x1d0   :  { %v1828_v1 = vpop.f32.mrf.mxu1 }
 0x1d2   :  { %v1830_v9 = vpop.f32.mrf.mxu1 }
 0x200   :  { %v1757_v2 = vpop.f32.mrf.mxu0 }
 0x201   :  { %v1758_v5 = vadd.f32 %v1757_v2, %v6502_v21 }
 0x202   :  { %v1759_v7 = vpop.f32.mrf.mxu0 }
 0x203   :  { %v1760_v8 = vadd.f32 %v1759_v7, %v6502_v21  ;;  %v6617_v11 = vadd.f32 %v1828_v1, %v1758_v5 }
 0x205   :  { %v6615_v10 = vadd.f32 %v1830_v9, %v1760_v8 }
 0x207   :  { %2720 = vmatprep.subr.mxu0 %v6615_v10 }
 0x208   :  { %2721 = vmatpush1.msra.mxu0 %v6617_v11 }
 0x209   :  { %3943 = vmatmul.mubr.msk.f32.vlgmr.msra.gmra.mxu0 %vm2260_vm1, %v6564_v48 }
 0x20a   :  { %2896 = vmatprep.mubr.f32.mxu0 %v3969_v3 }
 0x211   :  { %v1899_v12 = vpop.f32.mrf.mxu1 }
 0x212   :  { %v1900_v13 = vadd.f32 %v1899_v12, %v6502_v21 }
 0x213   :  { %v1970_v14 = vpop.f32.mrf.mxu0  ;;  %v1901_v15 = vpop.f32.mrf.mxu1 }
 0x214   :  { %v1902_v16 = vadd.f32 %v1901_v15, %v6502_v21  ;;  %v6628_v19 = vadd.f32 %v1970_v14, %v1900_v13 }
 0x215   :  { %v1972_v17 = vpop.f32.mrf.mxu0 }
 0x216   :  { %v6626_v18 = vadd.f32 %v1972_v17, %v1902_v16 }
 0x218   :  { %2791 = vmatprep.subr.mxu1 %v6626_v18 }
 0x219   :  { %2792 = vmatpush1.msra.mxu1 %v6628_v19 }
 0x21a   :  { %3944 = vmatmul.mubr.msk.f32.vlgmr.msra.gmra.mxu1 %vm2260_vm1, %v6564_v48 }
 0x21b   :  { %2967 = vmatprep.mubr.f32.mxu1 %v3969_v3 }
 0x224   :  { %v2112_v34 = vpop.f32.mrf.mxu1 }
 0x226   :  { %v2114_v24 = vpop.f32.mrf.mxu1 }
 0x254   :  { %v2041_v20 = vpop.f32.mrf.mxu0 }
 0x255   :  { %v2042_v22 = vadd.f32 %v2041_v20, %v6502_v21 }
 0x256   :  { %v2043_v4 = vpop.f32.mrf.mxu0 }
 0x257   :  { %v2044_v6 = vadd.f32 %v2043_v4, %v6502_v21  ;;  %v6639_v28 = vadd.f32 %v2112_v34, %v2042_v22 }
 0x259   :  { %v6637_v26 = vadd.f32 %v2114_v24, %v2044_v6 }
 0x25b   :  { %2862 = vmatprep.subr.mxu0 %v6637_v26 }
 0x25c   :  { %2863 = vmatpush1.msra.mxu0 %v6639_v28 }
 0x25d   :  { %3945 = vmatmul.mubr.msk.f32.vlgmr.msra.gmra.mxu0 %vm2260_vm1, %v6564_v48 }
 0x25e   :  { %3101 = vmatprep.mubr.f32.mxu0 %v3969_v3 }
 0x266   :  { %v2183_v29 = vpop.f32.mrf.mxu1  ;;  %v2254_v31 = vpop.f32.mrf.mxu0 }
 0x267   :  { %v2184_v33 = vadd.f32 %v2183_v29, %v6502_v21 }
 0x268   :  { %v2185_v35 = vpop.f32.mrf.mxu1  ;;  %v2256_v37 = vpop.f32.mrf.mxu0 }
 0x269   :  { %v2186_v36 = vadd.f32 %v2185_v35, %v6502_v21  ;;  %v6650_v39 = vadd.f32 %v2254_v31, %v2184_v33 }
 0x26b   :  { %v6648_v38 = vadd.f32 %v2256_v37, %v2186_v36  ;;  %v2330_v40 = vpop.f32.mrf.mxu0  ;;  %v2401_v45 = vpop.f32.mrf.mxu1 }
 0x26d   :  { %2933 = vmatprep.subr.mxu1 %v6648_v38  ;;  %v2332_v23 = vpop.f32.mrf.mxu0  ;;  %v2403_v21 = vpop.f32.mrf.mxu1 }
 0x26e   :  { %2934 = vmatpush1.msra.mxu1 %v6650_v39  ;;  %v2974_v43 = vadd.f32 %v2332_v23, %v2330_v40 }
 0x26f   :  { %3946 = vmatmul.mubr.msk.f32.vlgmr.msra.gmra.mxu1 %vm2260_vm1, %v6564_v48  ;;  %v2472_v51 = vpop.f32.mrf.mxu0  ;;  %v2543_v55 = vpop.f32.mrf.mxu1 }
 0x270   :  { %3172 = vmatprep.mubr.f32.mxu1 %v3969_v3  ;;  %v2975_v47 = vadd.f32 %v2974_v43, %v2401_v45 }
 0x271   :  { %v2474_v53 = vpop.f32.mrf.mxu0  ;;  %v2545_v58 = vpop.f32.mrf.mxu1 }
 0x272   :  { %v2976_v50 = vadd.f32 %v2975_v47, %v2403_v21 }
 0x274   :  { %v2977_v52 = vadd.f32 %v2976_v50, %v2472_v51 }
 0x275   :  { %v2614_v60 = vpop.f32.mrf.mxu0 }
 0x276   :  { %v2978_v54 = vadd.f32 %v2977_v52, %v2474_v53 }
 0x277   :  { %v2616_v62 = vpop.f32.mrf.mxu0 }
 0x278   :  { %v2979_v25 = vadd.f32 %v2978_v54, %v2543_v55 }
 0x27a   :  { %v2980_v59 = vadd.f32 %v2979_v25, %v2545_v58 }
 0x27c   :  { %v2981_v61 = vadd.f32 %v2980_v59, %v2614_v60 }
 0x27e   :  { %v2982_v1 = vadd.f32 %v2981_v61, %v2616_v62 }
 0x286   :  { %v2685_v2 = vpop.f32.mrf.mxu1 }
 0x287   :  { %v2983_v5 = vadd.f32 %v2982_v1, %v2685_v2  ;;  %v3791_v2 = vld [vmem:[%s6974_s3] sm:$0xff] }
 0x288   :  { %v2687_v7 = vpop.f32.mrf.mxu1  ;;  %3794 = vperm.xlu1 %3960, %v3791_v2  }
 0x289   :  { %v2984_v8 = vadd.f32 %v2983_v5, %v2687_v7 }
 0x2c9   :  { %v2756_v9 = vpop.f32.mrf.mxu0 }
 0x2ca   :  { %v2985_v12 = vadd.f32 %v2984_v8, %v2756_v9 }
 0x2cb   :  { %v2758_v13 = vpop.f32.mrf.mxu0 }
 0x2cc   :  { %v2986_v14 = vadd.f32 %v2985_v12, %v2758_v13 }
 0x2da   :  { %v2827_v15 = vpop.f32.mrf.mxu1 }
 0x2db   :  { %v2987_v16 = vadd.f32 %v2986_v14, %v2827_v15 }
 0x2dc   :  { %v2829_v17 = vpop.f32.mrf.mxu1 }
 0x2dd   :  { %v2988_v34 = vadd.f32 %v2987_v16, %v2829_v17 }
 0x31d   :  { %v2898_v20 = vpop.f32.mrf.mxu0 }
 0x31e   :  { %v2989_v22 = vadd.f32 %v2988_v34, %v2898_v20 }
 0x31f   :  { %v2900_v4 = vpop.f32.mrf.mxu0 }
 0x320   :  { %v2990_v6 = vadd.f32 %v2989_v22, %v2900_v4 }
 0x32f   :  { %v2969_v24 = vpop.f32.mrf.mxu1 }
 0x330   :  { %v2991_v29 = vadd.f32 %v2990_v6, %v2969_v24 }
 0x331   :  { %v2971_v31 = vpop.f32.mrf.mxu1 }
 0x332   :  { %v2993_v33 = vsel %vm2992_vm2, %v2971_v31, 0.0 }
 0x333   :  { %v2994_v35 = vadd.f32 %v2993_v33, %v2991_v29 }
 0x335   :  { %2995 = vadd.xlane.f32.xlu0 %v2994_v35 }
 0x3be   :  { %v2996_v36 = vpop.xlane.xlu0 %2995 }
 0x3bf   :  { %v6659_v37 = vsub.f32 %v6536_v42, %v2996_v36  ;;  %v6662_v40 = vsub.f32 %v6543_v30, %v2996_v36  ;;  %v6665_v23 = vsub.f32 %v6540_v27, %v2996_v36  ;;  %v6668_v43 = vsub.f32 %v6549_v46, %v2996_v36 }
 0x3c0   :  { %v6671_v45 = vsub.f32 %v6551_v41, %v2996_v36  ;;  %v6674_v47 = vsub.f32 %v6557_v32, %v2996_v36  ;;  %v6677_v21 = vsub.f32 %v6569_v44, %v2996_v36  ;;  %v6680_v42 = vsub.f32 %v6573_v49, %v2996_v36 }
 0x3c1   :  { %v3018_v30 = vmul.f32 %v6659_v37, %v6659_v37  ;;  %v3020_v27 = vmul.f32 %v6662_v40, %v6662_v40  ;;  %v3017_v46 = vmul.f32 %v6665_v23, %v6665_v23  ;;  %v3019_v41 = vmul.f32 %v6668_v43, %v6668_v43 }
 0x3c2   :  { %v3022_v32 = vmul.f32 %v6671_v45, %v6671_v45  ;;  %v6693_v44 = vsub.f32 %v6593_v56, %v2996_v36  ;;  %v6696_v49 = vsub.f32 %v6604_v63, %v2996_v36  ;;  %v3024_v50 = vmul.f32 %v6674_v47, %v6674_v47 }
 0x3c3   :  { %3067 = vmatprep.subr.mxu0 %v3018_v30  ;;  %3138 = vmatprep.subr.mxu1 %v3020_v27  ;;  %v6701_v51 = vsub.f32 %v6595_v57, %v2996_v36  ;;  %v6704_v52 = vsub.f32 %v6606_v0, %v2996_v36  ;;  %v3021_v56 = vmul.f32 %v6677_v21, %v6677_v21 }
 0x3c4   :  { %3068 = vmatpush1.msra.mxu0 %v3017_v46  ;;  %3139 = vmatpush1.msra.mxu1 %v3019_v41  ;;  %v3023_v63 = vmul.f32 %v6680_v42, %v6680_v42  ;;  %v6715_v53 = vsub.f32 %v6615_v10, %v2996_v36  ;;  %v3026_v57 = vmul.f32 %v6693_v44, %v6693_v44 }
 0x3c5   :  { %3947 = vmatmul.mubr.msk.f32.vlgmr.msra.gmra.mxu0 %vm2260_vm1, %v6564_v48  ;;  %3948 = vmatmul.mubr.msk.f32.vlgmr.msra.gmra.mxu1 %vm2260_vm1, %v6564_v48  ;;  %v3028_v0 = vmul.f32 %v6696_v49, %v6696_v49  ;;  %v6722_v54 = vsub.f32 %v6626_v18, %v2996_v36  ;;  %v3025_v55 = vmul.f32 %v6701_v51, %v6701_v51 }
 0x3c6   :  { %3209 = vmatprep.subr.mxu0 %v3022_v32  ;;  %3280 = vmatprep.subr.mxu1 %v3024_v50  ;;  %v3027_v10 = vmul.f32 %v6704_v52, %v6704_v52  ;;  %v3030_v25 = vmul.f32 %v6715_v53, %v6715_v53  ;;  %v6733_v18 = vsub.f32 %v6617_v11, %v2996_v36 }
 0x3c7   :  { %3210 = vmatpush1.msra.mxu0 %v3021_v56  ;;  %3281 = vmatpush1.msra.mxu1 %v3023_v63  ;;  %v6736_v58 = vsub.f32 %v6628_v19, %v2996_v36  ;;  %v3032_v59 = vmul.f32 %v6722_v54, %v6722_v54  ;;  %v6745_v60 = vsub.f32 %v6637_v26, %v2996_v36 }
 0x3c8   :  { %3351 = vmatprep.subr.mxu0 %v3026_v57  ;;  %3422 = vmatprep.subr.mxu1 %v3028_v0  ;;  %v6748_v61 = vsub.f32 %v6648_v38, %v2996_v36  ;;  %v6751_v11 = vsub.f32 %v6639_v28, %v2996_v36  ;;  %v3029_v19 = vmul.f32 %v6733_v18, %v6733_v18 }
 0x3c9   :  { %3243 = vmatprep.mubr.f32.mxu0 %v3969_v3  ;;  %3314 = vmatprep.mubr.f32.mxu1 %v3969_v3  ;;  %v3031_v26 = vmul.f32 %v6736_v58, %v6736_v58  ;;  %v6760_v38 = vsub.f32 %v6650_v39, %v2996_v36  ;;  %v3034_v28 = vmul.f32 %v6745_v60, %v6745_v60 }
 0x3ca   :  { %3949 = vmatmul.mubr.msk.f32.vlgmr.msra.gmra.mxu0 %vm2260_vm1, %v6564_v48  ;;  %3950 = vmatmul.mubr.msk.f32.vlgmr.msra.gmra.mxu1 %vm2260_vm1, %v6564_v48  ;;  %v3036_v62 = vmul.f32 %v6748_v61, %v6748_v61  ;;  %v3033_v39 = vmul.f32 %v6751_v11, %v6751_v11 }
 0x3cb   :  { %3352 = vmatpush1.msra.mxu0 %v3025_v55  ;;  %3423 = vmatpush1.msra.mxu1 %v3027_v10  ;;  %v3035_v1 = vmul.f32 %v6760_v38, %v6760_v38 }
 0x3cc   :  { %3493 = vmatprep.subr.mxu0 %v3030_v25  ;;  %3564 = vmatprep.subr.mxu1 %v3032_v59 }
 0x3cd   :  { %3385 = vmatprep.mubr.f32.mxu0 %v3969_v3  ;;  %3456 = vmatprep.mubr.f32.mxu1 %v3969_v3 }
 0x3ce   :  { %3951 = vmatmul.mubr.msk.f32.vlgmr.msra.gmra.mxu0 %vm2260_vm1, %v6564_v48  ;;  %3952 = vmatmul.mubr.msk.f32.vlgmr.msra.gmra.mxu1 %vm2260_vm1, %v6564_v48 }
 0x3cf   :  { %3494 = vmatpush1.msra.mxu0 %v3029_v19  ;;  %3565 = vmatpush1.msra.mxu1 %v3031_v26 }
 0x3d0   :  { %3635 = vmatprep.subr.mxu0 %v3034_v28  ;;  %3706 = vmatprep.subr.mxu1 %v3036_v62  ;;  %v3817_v62 = vld [vmem:[%s6975_s4] sm:$0xff] }
 0x3d1   :  { %3527 = vmatprep.mubr.f32.mxu0 %v3969_v3  ;;  %3598 = vmatprep.mubr.f32.mxu1 %v3969_v3 }
 0x3d2   :  { %3953 = vmatmul.mubr.msk.f32.vlgmr.msra.gmra.mxu0 %vm2260_vm1, %v6564_v48  ;;  %3954 = vmatmul.mubr.msk.f32.vlgmr.msra.gmra.mxu1 %vm2260_vm1, %v6564_v48 }
 0x3d3   :  { %3636 = vmatpush1.msra.mxu0 %v3033_v39  ;;  %3707 = vmatpush1.msra.mxu1 %v3035_v1  ;;  %v3795_v39 = vpop.permute.xlu1 %3794 }
 0x3d4   :  { %3669 = vmatprep.mubr.f32.mxu0 %v3969_v3  ;;  %3740 = vmatprep.mubr.f32.mxu1 %v3969_v3 }
 0x3d6   :  { %3955 = vmatmul.mubr.msk.f32.vlgmr.msra.gmra.mxu0 %vm2260_vm1, %v6564_v48  ;;  %3956 = vmatmul.mubr.msk.f32.vlgmr.msra.gmra.mxu1 %vm2260_vm1, %v6564_v48 }
 0x485   :  { %v3103_v5 = vpop.f32.mrf.mxu0  ;;  %v3174_v8 = vpop.f32.mrf.mxu1 }
 0x487   :  { %v3105_v7 = vpop.f32.mrf.mxu0  ;;  %v3176_v13 = vpop.f32.mrf.mxu1 }
 0x488   :  { %v3747_v9 = vadd.f32 %v3105_v7, %v3103_v5 }
 0x48a   :  { %v3748_v12 = vadd.f32 %v3747_v9, %v3174_v8  ;;  %v3245_v14 = vpop.f32.mrf.mxu0  ;;  %v3316_v17 = vpop.f32.mrf.mxu1 }
 0x48c   :  { %v3749_v15 = vadd.f32 %v3748_v12, %v3176_v13  ;;  %v3247_v16 = vpop.f32.mrf.mxu0  ;;  %v3318_v22 = vpop.f32.mrf.mxu1 }
 0x48e   :  { %v3750_v3 = vadd.f32 %v3749_v15, %v3245_v14  ;;  %v3387_v48 = vpop.f32.mrf.mxu0  ;;  %v3458_v29 = vpop.f32.mrf.mxu1 }
 0x490   :  { %v3751_v34 = vadd.f32 %v3750_v3, %v3247_v16  ;;  %v3389_v24 = vpop.f32.mrf.mxu0  ;;  %v3460_v35 = vpop.f32.mrf.mxu1 }
 0x492   :  { %v3752_v20 = vadd.f32 %v3751_v34, %v3316_v17  ;;  %v3529_v36 = vpop.f32.mrf.mxu0  ;;  %v3600_v46 = vpop.f32.mrf.mxu1 }
 0x494   :  { %v3753_v4 = vadd.f32 %v3752_v20, %v3318_v22  ;;  %v3531_v41 = vpop.f32.mrf.mxu0  ;;  %v3602_v56 = vpop.f32.mrf.mxu1 }
 0x496   :  { %v3754_v6 = vadd.f32 %v3753_v4, %v3387_v48  ;;  %v3671_v63 = vpop.f32.mrf.mxu0  ;;  %v3742_v0 = vpop.f32.mrf.mxu1 }
 0x498   :  { %v3755_v31 = vadd.f32 %v3754_v6, %v3389_v24  ;;  %v3673_v10 = vpop.f32.mrf.mxu0  ;;  %v3744_v59 = vpop.f32.mrf.mxu1 }
 0x499   :  { %v3765_v26 = vsel %vm2992_vm2, %v3744_v59, 0.0 }
 0x49a   :  { %v3756_v33 = vadd.f32 %v3755_v31, %v3458_v29 }
 0x49c   :  { %v3757_v30 = vadd.f32 %v3756_v33, %v3460_v35 }
 0x49e   :  { %v3758_v27 = vadd.f32 %v3757_v30, %v3529_v36 }
 0x4a0   :  { %v3759_v32 = vadd.f32 %v3758_v27, %v3531_v41 }
 0x4a2   :  { %v3760_v50 = vadd.f32 %v3759_v32, %v3600_v46 }
 0x4a4   :  { %v3761_v57 = vadd.f32 %v3760_v50, %v3602_v56 }
 0x4a6   :  { %v3762_v55 = vadd.f32 %v3761_v57, %v3671_v63 }
 0x4a8   :  { %v3763_v25 = vadd.f32 %v3762_v55, %v3673_v10 }
 0x4aa   :  { %v3764_v19 = vadd.f32 %v3763_v25, %v3742_v0 }
 0x4ac   :  { %v3766_v28 = vadd.f32 %v3765_v26, %v3764_v19 }
 0x4ae   :  { %3767 = vadd.xlane.f32.xlu1 %v3766_v28 }
 0x4bf   :  { %3820 = vperm.xlu1 %3960, %v3817_v62  }
 0x537   :  { %v3768_v1 = vpop.xlane.xlu1 %3767 }
 0x538   :  { %v3769_v2 = vadd.f32 1e-05, %v3768_v1  ;;  %v3863_v1 = vld [vmem:[%s6976_s6] sm:$0xff] }
 0x53a   :  { %3961 = vrsqrt.f32 %v3769_v2  ;;  %v3864_v2 = vld [vmem:[%s6976_s6 + $0x8] sm:$0xff] }
 0x53b   :  { %v3821_v35 = vpop.permute.xlu1 %3820 }
 0x547   :  { %v3962_v5 = vpop.eup %3961 }
 0x548   :  { %v3771_v7 = vmul.f32 %v3962_v5, %v6665_v23  ;;  %v3772_v8 = vmul.f32 %v3962_v5, %v6659_v37  ;;  %v3773_v9 = vmul.f32 %v3962_v5, %v6668_v43  ;;  %v3774_v12 = vmul.f32 %v3962_v5, %v6662_v40 }
 0x549   :  { %v3775_v13 = vmul.f32 %v3962_v5, %v6677_v21  ;;  %v3776_v14 = vmul.f32 %v3962_v5, %v6671_v45  ;;  %v3777_v15 = vmul.f32 %v3962_v5, %v6680_v42  ;;  %v3778_v3 = vmul.f32 %v3962_v5, %v6674_v47 }
 0x54a   :  { %v3779_v16 = vmul.f32 %v3962_v5, %v6701_v51  ;;  %v3780_v17 = vmul.f32 %v3962_v5, %v6693_v44  ;;  %v3781_v23 = vmul.f32 %v3962_v5, %v6704_v52  ;;  %v3782_v37 = vmul.f32 %v3962_v5, %v6696_v49 }
 0x54b   :  { %v3783_v43 = vmul.f32 %v3962_v5, %v6733_v18  ;;  %v3784_v40 = vmul.f32 %v3962_v5, %v6715_v53  ;;  %v3785_v21 = vmul.f32 %v3962_v5, %v6736_v58  ;;  %v3786_v45 = vmul.f32 %v3962_v5, %v6722_v54 }
 0x54c   :  { %v3787_v42 = vmul.f32 %v3962_v5, %v6751_v11  ;;  %v3788_v47 = vmul.f32 %v3962_v5, %v6745_v60  ;;  %v3789_v51 = vmul.f32 %v3962_v5, %v6760_v38  ;;  %v3790_v44 = vmul.f32 %v3962_v5, %v6748_v61  ;;  %v3865_v5 = vld [vmem:[%s6976_s6 + $0x10] sm:$0xff] }
 0x54d   :  { %v3797_v34 = vmul.f32 %v3795_v39, %v3771_v7  ;;  %v3798_v52 = vmul.f32 %v3795_v39, %v3772_v8  ;;  %v3799_v20 = vmul.f32 %v3795_v39, %v3773_v9  ;;  %v3800_v49 = vmul.f32 %v3795_v39, %v3774_v12  ;;  %v3866_v7 = vld [vmem:[%s6976_s6 + $0x18] sm:$0xff] }
 0x54e   :  { %v3801_v22 = vmul.f32 %v3795_v39, %v3775_v13  ;;  %v3802_v18 = vmul.f32 %v3795_v39, %v3776_v14  ;;  %v3803_v48 = vmul.f32 %v3795_v39, %v3777_v15  ;;  %v3804_v53 = vmul.f32 %v3795_v39, %v3778_v3  ;;  %v3867_v14 = vld [vmem:[%s6976_s6 + $0x20] sm:$0xff]  ;;  %v3868_v15 = vld [vmem:[%s6976_s6 + $0x28] sm:$0xff]  ;;  %v3869_v3 = vld [vmem:[%s6976_s6 + $0x30] sm:$0xff] }
 0x54f   :  { %v3805_v4 = vmul.f32 %v3795_v39, %v3779_v16  ;;  %v3806_v58 = vmul.f32 %v3795_v39, %v3780_v17  ;;  %v3807_v6 = vmul.f32 %v3795_v39, %v3781_v23  ;;  %v3808_v54 = vmul.f32 %v3795_v39, %v3782_v37  ;;  %v3870_v16 = vld [vmem:[%s6976_s6 + $0x38] sm:$0xff] }
 0x550   :  { %v3809_v24 = vmul.f32 %v3795_v39, %v3783_v43  ;;  %v3810_v11 = vmul.f32 %v3795_v39, %v3784_v40  ;;  %v3811_v29 = vmul.f32 %v3795_v39, %v3785_v21  ;;  %v3812_v60 = vmul.f32 %v3795_v39, %v3786_v45  ;;  %v3871_v40 = vld [vmem:[%s6976_s6 + $0x40] sm:$0xff]  ;;  %v3872_v21 = vld [vmem:[%s6976_s6 + $0x48] sm:$0xff] }
 0x551   :  { %v3813_v31 = vmul.f32 %v3795_v39, %v3787_v42  ;;  %v3814_v38 = vmul.f32 %v3795_v39, %v3788_v47  ;;  %v3815_v33 = vmul.f32 %v3795_v39, %v3789_v51  ;;  %v3816_v61 = vmul.f32 %v3795_v39, %v3790_v44  ;;  %v3873_v44 = vld [vmem:[%s6976_s6 + $0x50] sm:$0xff] }
 0x552   :  { %v3823_v36 = vadd.f32 %v3821_v35, %v3797_v34  ;;  %v3824_v30 = vadd.f32 %v3821_v35, %v3798_v52  ;;  %v3825_v27 = vadd.f32 %v3821_v35, %v3799_v20  ;;  %v3826_v46 = vadd.f32 %v3821_v35, %v3800_v49  ;;  %v3874_v34 = vld [vmem:[%s6976_s6 + $0x58] sm:$0xff] }
 0x553   :  { %v6813_v41 = vadd.f32 %v3821_v35, %v3801_v22  ;;  %v6815_v32 = vadd.f32 %v3821_v35, %v3802_v18  ;;  %v6817_v50 = vadd.f32 %v3821_v35, %v3803_v48  ;;  %v6819_v56 = vadd.f32 %v3821_v35, %v3804_v53  ;;  %v3875_v18 = vld [vmem:[%s6976_s6 + $0x60] sm:$0xff]  ;;  %v3876_v48 = vld [vmem:[%s6976_s6 + $0x68] sm:$0xff] }
 0x554   :  { %v3831_v63 = vadd.f32 %v3821_v35, %v3805_v4  ;;  %v3832_v57 = vadd.f32 %v3821_v35, %v3806_v58  ;;  %v3833_v0 = vadd.f32 %v3821_v35, %v3807_v6  ;;  %v3834_v55 = vadd.f32 %v3821_v35, %v3808_v54  ;;  %v3877_v54 = vld [vmem:[%s6976_s6 + $0x70] sm:$0xff] }
 0x555   :  { %v6821_v10 = vadd.f32 %v3821_v35, %v3809_v24  ;;  %v6823_v25 = vadd.f32 %v3821_v35, %v3810_v11  ;;  %v6825_v59 = vadd.f32 %v3821_v35, %v3811_v29  ;;  %v6827_v19 = vadd.f32 %v3821_v35, %v3812_v60  ;;  %v3878_v24 = vld [vmem:[%s6976_s6 + $0x78] sm:$0xff]  ;;  %v3879_v11 = vld [vmem:[%s6976_s6 + $0x80] sm:$0xff] }
 0x556   :  { %v6829_v26 = vadd.f32 %v3821_v35, %v3813_v31  ;;  %v6831_v28 = vadd.f32 %v3821_v35, %v3814_v38  ;;  %v6833_v62 = vadd.f32 %v3821_v35, %v3815_v33  ;;  %v6835_v39 = vadd.f32 %v3821_v35, %v3816_v61  ;;  %v3880_v33 = vld [vmem:[%s6976_s6 + $0x88] sm:$0xff]  ;;  %v3881_v61 = vld [vmem:[%s6976_s6 + $0x90] sm:$0xff]  ;;  %v3882_v35 = vld [vmem:[%s6976_s6 + $0x98] sm:$0xff] }
 0x557   :  { %v3843_v8 = vmax.f32 %v3823_v36, 0.0  ;;  %v3844_v9 = vmax.f32 %v3824_v30, 0.0  ;;  %v3845_v12 = vmax.f32 %v3825_v27, 0.0  ;;  %v3846_v13 = vmax.f32 %v3826_v46, 0.0 }
 0x558   :  { %v3847_v17 = vmax.f32 %v6813_v41, 0.0  ;;  %v3848_v23 = vmax.f32 %v6815_v32, 0.0  ;;  %v3849_v37 = vmax.f32 %v6817_v50, 0.0  ;;  %v3850_v43 = vmax.f32 %v6819_v56, 0.0 }
 0x559   :  { %v3851_v45 = vmax.f32 %v3831_v63, 0.0  ;;  %v3852_v42 = vmax.f32 %v3832_v57, 0.0  ;;  %v3853_v47 = vmax.f32 %v3833_v0, 0.0  ;;  %v3854_v51 = vmax.f32 %v3834_v55, 0.0 }
 0x55a   :  { %v3855_v52 = vmax.f32 %v6821_v10, 0.0  ;;  %v3856_v20 = vmax.f32 %v6823_v25, 0.0  ;;  %v3857_v49 = vmax.f32 %v6825_v59, 0.0  ;;  %v3858_v22 = vmax.f32 %v6827_v19, 0.0 }
 0x55b   :  { %v3859_v53 = vmax.f32 %v6829_v26, 0.0  ;;  %v3860_v4 = vmax.f32 %v6831_v28, 0.0  ;;  %v3861_v58 = vmax.f32 %v6833_v62, 0.0  ;;  %v3862_v6 = vmax.f32 %v6835_v39, 0.0 }
 0x55c   :  { %v3883_v29 = vadd.f32 %v3863_v1, %v3843_v8  ;;  %v3884_v60 = vadd.f32 %v3864_v2, %v3844_v9  ;;  %v3885_v31 = vadd.f32 %v3865_v5, %v3845_v12  ;;  %v3886_v38 = vadd.f32 %v3866_v7, %v3846_v13 }
 0x55d   :  { %v3887_v36 = vadd.f32 %v3867_v14, %v3847_v17  ;;  %v3888_v30 = vadd.f32 %v3868_v15, %v3848_v23  ;;  %v3889_v27 = vadd.f32 %v3869_v3, %v3849_v37  ;;  %v3890_v46 = vadd.f32 %v3870_v16, %v3850_v43 }
 0x55e   :  { %v3891_v41 = vadd.f32 %v3871_v40, %v3851_v45  ;;  %v3892_v32 = vadd.f32 %v3872_v21, %v3852_v42  ;;  %v3893_v50 = vadd.f32 %v3873_v44, %v3853_v47  ;;  %v3894_v56 = vadd.f32 %v3874_v34, %v3854_v51  ;;  %3903 = vst [vmem:[%s6977_s7] sm:$0xff] %v3883_v29 }
 0x55f   :  { %3904 = vst [vmem:[%s6977_s7 + $0x8] sm:$0xff] %v3884_v60  ;;  %3905 = vst [vmem:[%s6977_s7 + $0x10] sm:$0xff] %v3885_v31  ;;  %v3895_v63 = vadd.f32 %v3875_v18, %v3855_v52  ;;  %v3896_v57 = vadd.f32 %v3876_v48, %v3856_v20  ;;  %v3897_v0 = vadd.f32 %v3877_v54, %v3857_v49 }
 0x560   :  { %3906 = vst [vmem:[%s6977_s7 + $0x18] sm:$0xff] %v3886_v38  ;;  %v3898_v55 = vadd.f32 %v3878_v24, %v3858_v22  ;;  %3907 = vst [vmem:[%s6977_s7 + $0x20] sm:$0xff] %v3887_v36  ;;  %v3899_v10 = vadd.f32 %v3879_v11, %v3859_v53  ;;  %v3900_v25 = vadd.f32 %v3880_v33, %v3860_v4 }
 0x561   :  { %3908 = vst [vmem:[%s6977_s7 + $0x28] sm:$0xff] %v3888_v30  ;;  %3909 = vst [vmem:[%s6977_s7 + $0x30] sm:$0xff] %v3889_v27  ;;  %v3901_v59 = vadd.f32 %v3881_v61, %v3861_v58  ;;  %v3902_v19 = vadd.f32 %v3882_v35, %v3862_v6 }
 0x562   :  { %3910 = vst [vmem:[%s6977_s7 + $0x38] sm:$0xff] %v3890_v46  ;;  %3911 = vst [vmem:[%s6977_s7 + $0x40] sm:$0xff] %v3891_v41 }
 0x563   :  { %3912 = vst [vmem:[%s6977_s7 + $0x48] sm:$0xff] %v3892_v32  ;;  %3913 = vst [vmem:[%s6977_s7 + $0x50] sm:$0xff] %v3893_v50 }
 0x564   :  { %3914 = vst [vmem:[%s6977_s7 + $0x58] sm:$0xff] %v3894_v56  ;;  %3915 = vst [vmem:[%s6977_s7 + $0x60] sm:$0xff] %v3895_v63 }
 0x565   :  { %3916 = vst [vmem:[%s6977_s7 + $0x68] sm:$0xff] %v3896_v57  ;;  %3917 = vst [vmem:[%s6977_s7 + $0x70] sm:$0xff] %v3897_v0 }
 0x566   :  { %3918 = vst [vmem:[%s6977_s7 + $0x78] sm:$0xff] %v3898_v55  ;;  %3919 = vst [vmem:[%s6977_s7 + $0x80] sm:$0xff] %v3899_v10 }
 0x567   :  { %3920 = vst [vmem:[%s6977_s7 + $0x88] sm:$0xff] %v3900_v25  ;;  %3921 = vst [vmem:[%s6977_s7 + $0x90] sm:$0xff] %v3901_v59 }
 0x568   :  { %3922 = vst.msk [vmem:[%s6977_s7 + $0x98] sm:$0xff] %vm2992_vm2, %v3902_v19 }

// kernel: _lambda_.10
= control target key start
LH: loop header
LB: loop body
LE: loop exit
PB: predicated region body
PF: predicated region fallthrough
CT: control target
= control target key end

     0   :  { %v4783_v3 = vmov 0.0   ;;  %vm220_vm0 = vcmask 588800   ;;  %vm999_vm1 = vcmask 130048   ;;  %vm1794_vm2 = vcmask 556032   ;;  %s4775_s0 = inlined_call_operand.vmem [shape: f32[72,2500], index: 0, kind: input, shape index: {}]   ;;  %s4776_s1 = inlined_call_operand.vmem [shape: f32[16,72], index: 1, kind: input, shape index: {}]   ;;  %s4777_s2 = inlined_call_operand.vmem [shape: f32[16,1], index: 2, kind: input, shape index: {}]   ;;  %s4778_s5 = inlined_call_operand.vmem [shape: f32[16,16], index: 5, kind: input, shape index: {}]   ;;  %s4779_s3 = inlined_call_operand.vmem [shape: f32[16,1], index: 3, kind: input, shape index: {}]   ;;  %s4780_s4 = inlined_call_operand.vmem [shape: f32[16,1], index: 4, kind: input, shape index: {}]   ;;  %s4781_s6 = inlined_call_operand.vmem [shape: f32[16,2500], index: 6, kind: input, shape index: {}]   ;;  %s4782_s7 = inlined_call_operand.vmem [shape: f32[16,2500], index: 7, kind: output, shape index: {}]  }
   0x1   :  { %v189_v0 = vld [vmem:[%s4775_s0 + $0x508] sm:$0xff]  ;;  %v191_v1 = vld [vmem:[%s4775_s0 + $0x518] sm:$0xff]  ;;  %v188_v2 = vld [vmem:[%s4775_s0 + $0x500] sm:$0xff]  ;;  %291 = vmatprep.mubr.f32.mxu0 %v4783_v3  ;;  %368 = vmatprep.mubr.f32.mxu1 %v4783_v3 }
   0x2   :  { %241 = vmatprep.subr.mxu0 %v189_v0  ;;  %318 = vmatprep.subr.mxu1 %v191_v1  ;;  %v190_v4 = vld [vmem:[%s4775_s0 + $0x510] sm:$0xff]  ;;  %v169_v5 = vld [vmem:[%s4775_s0 + $0x468] sm:$0xff]  ;;  %v171_v6 = vld [vmem:[%s4775_s0 + $0x478] sm:$0xff] }
   0x3   :  { %242 = vmatpush1.msra.mxu0 %v188_v2  ;;  %319 = vmatpush1.msra.mxu1 %v190_v4  ;;  %v168_v7 = vld [vmem:[%s4775_s0 + $0x460] sm:$0xff]  ;;  %v170_v8 = vld [vmem:[%s4775_s0 + $0x470] sm:$0xff]  ;;  %v149_v9 = vld [vmem:[%s4775_s0 + $0x3c8] sm:$0xff] }
   0x4   :  { %243 = vmatprep.subr.mxu0 %v169_v5  ;;  %320 = vmatprep.subr.mxu1 %v171_v6  ;;  %v151_v10 = vld [vmem:[%s4775_s0 + $0x3d8] sm:$0xff]  ;;  %v148_v11 = vld [vmem:[%s4775_s0 + $0x3c0] sm:$0xff]  ;;  %v150_v12 = vld [vmem:[%s4775_s0 + $0x3d0] sm:$0xff] }
   0x5   :  { %244 = vmatpush1.msra.mxu0 %v168_v7  ;;  %321 = vmatpush1.msra.mxu1 %v170_v8  ;;  %v129_v13 = vld [vmem:[%s4775_s0 + $0x328] sm:$0xff]  ;;  %v131_v14 = vld [vmem:[%s4775_s0 + $0x338] sm:$0xff]  ;;  %v128_v15 = vld [vmem:[%s4775_s0 + $0x320] sm:$0xff] }
   0x6   :  { %245 = vmatprep.subr.mxu0 %v149_v9  ;;  %322 = vmatprep.subr.mxu1 %v151_v10  ;;  %v130_v16 = vld [vmem:[%s4775_s0 + $0x330] sm:$0xff]  ;;  %v109_v17 = vld [vmem:[%s4775_s0 + $0x288] sm:$0xff]  ;;  %v111_v18 = vld [vmem:[%s4775_s0 + $0x298] sm:$0xff] }
   0x7   :  { %246 = vmatpush1.msra.mxu0 %v148_v11  ;;  %323 = vmatpush1.msra.mxu1 %v150_v12  ;;  %v108_v19 = vld [vmem:[%s4775_s0 + $0x280] sm:$0xff]  ;;  %v110_v20 = vld [vmem:[%s4775_s0 + $0x290] sm:$0xff]  ;;  %v89_v21 = vld [vmem:[%s4775_s0 + $0x1e8] sm:$0xff] }
   0x8   :  { %247 = vmatprep.subr.mxu0 %v129_v13  ;;  %324 = vmatprep.subr.mxu1 %v131_v14  ;;  %v91_v22 = vld [vmem:[%s4775_s0 + $0x1f8] sm:$0xff]  ;;  %v88_v23 = vld [vmem:[%s4775_s0 + $0x1e0] sm:$0xff]  ;;  %v90_v24 = vld [vmem:[%s4775_s0 + $0x1f0] sm:$0xff] }
   0x9   :  { %248 = vmatpush1.msra.mxu0 %v128_v15  ;;  %325 = vmatpush1.msra.mxu1 %v130_v16  ;;  %v69_v25 = vld [vmem:[%s4775_s0 + $0x148] sm:$0xff]  ;;  %v71_v26 = vld [vmem:[%s4775_s0 + $0x158] sm:$0xff]  ;;  %v68_v27 = vld [vmem:[%s4775_s0 + $0x140] sm:$0xff] }
   0xa   :  { %249 = vmatprep.subr.mxu0 %v109_v17  ;;  %326 = vmatprep.subr.mxu1 %v111_v18  ;;  %v70_v28 = vld [vmem:[%s4775_s0 + $0x150] sm:$0xff]  ;;  %v49_v29 = vld [vmem:[%s4775_s0 + $0xa8] sm:$0xff]  ;;  %v51_v30 = vld [vmem:[%s4775_s0 + $0xb8] sm:$0xff] }
   0xb   :  { %250 = vmatpush1.msra.mxu0 %v108_v19  ;;  %327 = vmatpush1.msra.mxu1 %v110_v20  ;;  %v48_v31 = vld [vmem:[%s4775_s0 + $0xa0] sm:$0xff]  ;;  %v50_v32 = vld [vmem:[%s4775_s0 + $0xb0] sm:$0xff]  ;;  %v29_v33 = vld [vmem:[%s4775_s0 + $0x8] sm:$0xff] }
   0xc   :  { %251 = vmatprep.subr.mxu0 %v89_v21  ;;  %328 = vmatprep.subr.mxu1 %v91_v22  ;;  %v31_v34 = vld [vmem:[%s4775_s0 + $0x18] sm:$0xff]  ;;  %v28_v35 = vld [vmem:[%s4775_s0] sm:$0xff]  ;;  %v30_v36 = vld [vmem:[%s4775_s0 + $0x10] sm:$0xff] }
   0xd   :  { %252 = vmatpush1.msra.mxu0 %v88_v23  ;;  %329 = vmatpush1.msra.mxu1 %v90_v24  ;;  %v3250_v37 = vld [vmem:[%s4776_s1] sm:$0xff]  ;;  %v193_v38 = vld [vmem:[%s4775_s0 + $0x528] sm:$0xff]  ;;  %v195_v39 = vld [vmem:[%s4775_s0 + $0x538] sm:$0xff] }
   0xe   :  { %253 = vmatprep.subr.mxu0 %v69_v25  ;;  %330 = vmatprep.subr.mxu1 %v71_v26  ;;  %v192_v40 = vld [vmem:[%s4775_s0 + $0x520] sm:$0xff]  ;;  %v194_v41 = vld [vmem:[%s4775_s0 + $0x530] sm:$0xff]  ;;  %v173_v42 = vld [vmem:[%s4775_s0 + $0x488] sm:$0xff] }
   0xf   :  { %254 = vmatpush1.msra.mxu0 %v68_v27  ;;  %331 = vmatpush1.msra.mxu1 %v70_v28  ;;  %v175_v43 = vld [vmem:[%s4775_s0 + $0x498] sm:$0xff]  ;;  %v172_v44 = vld [vmem:[%s4775_s0 + $0x480] sm:$0xff]  ;;  %v174_v45 = vld [vmem:[%s4775_s0 + $0x490] sm:$0xff] }
  0x10   :  { %255 = vmatprep.subr.mxu0 %v49_v29  ;;  %332 = vmatprep.subr.mxu1 %v51_v30  ;;  %v3283_v46 = vld [vmem:[%s4776_s1 + $0x8] sm:$0xff]  ;;  %v155_v48 = vld [vmem:[%s4775_s0 + $0x3f8] sm:$0xff]  ;;  %v152_v49 = vld [vmem:[%s4775_s0 + $0x3e0] sm:$0xff] }
  0x11   :  { %256 = vmatpush1.msra.mxu0 %v48_v31  ;;  %333 = vmatpush1.msra.mxu1 %v50_v32  ;;  %v153_v47 = vld [vmem:[%s4775_s0 + $0x3e8] sm:$0xff]  ;;  %v154_v50 = vld [vmem:[%s4775_s0 + $0x3f0] sm:$0xff]  ;;  %v135_v52 = vld [vmem:[%s4775_s0 + $0x358] sm:$0xff] }
  0x12   :  { %257 = vmatprep.subr.mxu0 %v29_v33  ;;  %334 = vmatprep.subr.mxu1 %v31_v34  ;;  %v133_v51 = vld [vmem:[%s4775_s0 + $0x348] sm:$0xff]  ;;  %v132_v53 = vld [vmem:[%s4775_s0 + $0x340] sm:$0xff]  ;;  %v134_v54 = vld [vmem:[%s4775_s0 + $0x350] sm:$0xff] }
  0x13   :  { %258 = vmatpush1.msra.mxu0 %v28_v35  ;;  %335 = vmatpush1.msra.mxu1 %v30_v36  ;;  %v113_v55 = vld [vmem:[%s4775_s0 + $0x2a8] sm:$0xff]  ;;  %v115_v56 = vld [vmem:[%s4775_s0 + $0x2b8] sm:$0xff]  ;;  %v112_v57 = vld [vmem:[%s4775_s0 + $0x2a0] sm:$0xff] }
  0x14   :  { %3027 = vmatmul.mubr.msk.f32.vlgmr.msra.gmra.mxu0 %vm220_vm0, %v3250_v37  ;;  %3029 = vmatmul.mubr.msk.f32.vlgmr.msra.gmra.mxu1 %vm220_vm0, %v3250_v37  ;;  %v114_v58 = vld [vmem:[%s4775_s0 + $0x2b0] sm:$0xff]  ;;  %v93_v59 = vld [vmem:[%s4775_s0 + $0x208] sm:$0xff]  ;;  %v95_v60 = vld [vmem:[%s4775_s0 + $0x218] sm:$0xff] }
  0x15   :  { %395 = vmatprep.subr.mxu0 %v193_v38  ;;  %472 = vmatprep.subr.mxu1 %v195_v39  ;;  %v92_v61 = vld [vmem:[%s4775_s0 + $0x200] sm:$0xff]  ;;  %v94_v62 = vld [vmem:[%s4775_s0 + $0x210] sm:$0xff]  ;;  %v73_v63 = vld [vmem:[%s4775_s0 + $0x168] sm:$0xff] }
  0x16   :  { %396 = vmatpush1.msra.mxu0 %v192_v40  ;;  %473 = vmatpush1.msra.mxu1 %v194_v41  ;;  %v75_v0 = vld [vmem:[%s4775_s0 + $0x178] sm:$0xff]  ;;  %v72_v1 = vld [vmem:[%s4775_s0 + $0x160] sm:$0xff]  ;;  %v74_v2 = vld [vmem:[%s4775_s0 + $0x170] sm:$0xff] }
  0x17   :  { %397 = vmatprep.subr.mxu0 %v173_v42  ;;  %474 = vmatprep.subr.mxu1 %v175_v43  ;;  %v53_v4 = vld [vmem:[%s4775_s0 + $0xc8] sm:$0xff]  ;;  %v55_v5 = vld [vmem:[%s4775_s0 + $0xd8] sm:$0xff]  ;;  %v52_v6 = vld [vmem:[%s4775_s0 + $0xc0] sm:$0xff] }
  0x18   :  { %297 = vmatprep.mubr.f32.mxu0 %v4783_v3  ;;  %374 = vmatprep.mubr.f32.mxu1 %v4783_v3  ;;  %v54_v7 = vld [vmem:[%s4775_s0 + $0xd0] sm:$0xff]  ;;  %v33_v8 = vld [vmem:[%s4775_s0 + $0x28] sm:$0xff]  ;;  %v35_v9 = vld [vmem:[%s4775_s0 + $0x38] sm:$0xff] }
  0x19   :  { %398 = vmatpush1.msra.mxu0 %v172_v44  ;;  %475 = vmatpush1.msra.mxu1 %v174_v45  ;;  %v32_v10 = vld [vmem:[%s4775_s0 + $0x20] sm:$0xff]  ;;  %v34_v11 = vld [vmem:[%s4775_s0 + $0x30] sm:$0xff]  ;;  %v197_v12 = vld [vmem:[%s4775_s0 + $0x548] sm:$0xff] }
  0x1a   :  { %3028 = vmatmul.mubr.msk.f32.gmra.mxu0 %vm220_vm0, %v3283_v46  ;;  %3030 = vmatmul.mubr.msk.f32.gmra.mxu1 %vm220_vm0, %v3283_v46  ;;  %v199_v13 = vld [vmem:[%s4775_s0 + $0x558] sm:$0xff]  ;;  %v196_v14 = vld [vmem:[%s4775_s0 + $0x540] sm:$0xff]  ;;  %v198_v15 = vld [vmem:[%s4775_s0 + $0x550] sm:$0xff] }
  0x1b   :  { %399 = vmatprep.subr.mxu0 %v153_v47  ;;  %476 = vmatprep.subr.mxu1 %v155_v48  ;;  %v177_v16 = vld [vmem:[%s4775_s0 + $0x4a8] sm:$0xff]  ;;  %v179_v17 = vld [vmem:[%s4775_s0 + $0x4b8] sm:$0xff]  ;;  %v176_v18 = vld [vmem:[%s4775_s0 + $0x4a0] sm:$0xff] }
  0x1c   :  { %400 = vmatpush1.msra.mxu0 %v152_v49  ;;  %477 = vmatpush1.msra.mxu1 %v154_v50  ;;  %v178_v19 = vld [vmem:[%s4775_s0 + $0x4b0] sm:$0xff]  ;;  %v157_v20 = vld [vmem:[%s4775_s0 + $0x408] sm:$0xff]  ;;  %v159_v21 = vld [vmem:[%s4775_s0 + $0x418] sm:$0xff] }
  0x1d   :  { %401 = vmatprep.subr.mxu0 %v133_v51  ;;  %478 = vmatprep.subr.mxu1 %v135_v52  ;;  %v156_v22 = vld [vmem:[%s4775_s0 + $0x400] sm:$0xff]  ;;  %v158_v23 = vld [vmem:[%s4775_s0 + $0x410] sm:$0xff]  ;;  %v137_v24 = vld [vmem:[%s4775_s0 + $0x368] sm:$0xff] }
  0x1e   :  { %402 = vmatpush1.msra.mxu0 %v132_v53  ;;  %479 = vmatpush1.msra.mxu1 %v134_v54  ;;  %v139_v25 = vld [vmem:[%s4775_s0 + $0x378] sm:$0xff]  ;;  %v136_v26 = vld [vmem:[%s4775_s0 + $0x360] sm:$0xff]  ;;  %v138_v27 = vld [vmem:[%s4775_s0 + $0x370] sm:$0xff] }
  0x1f   :  { %403 = vmatprep.subr.mxu0 %v113_v55  ;;  %480 = vmatprep.subr.mxu1 %v115_v56  ;;  %v117_v28 = vld [vmem:[%s4775_s0 + $0x2c8] sm:$0xff]  ;;  %v119_v29 = vld [vmem:[%s4775_s0 + $0x2d8] sm:$0xff]  ;;  %v116_v30 = vld [vmem:[%s4775_s0 + $0x2c0] sm:$0xff] }
  0x20   :  { %404 = vmatpush1.msra.mxu0 %v112_v57  ;;  %481 = vmatpush1.msra.mxu1 %v114_v58  ;;  %v118_v31 = vld [vmem:[%s4775_s0 + $0x2d0] sm:$0xff]  ;;  %v97_v32 = vld [vmem:[%s4775_s0 + $0x228] sm:$0xff]  ;;  %v99_v33 = vld [vmem:[%s4775_s0 + $0x238] sm:$0xff] }
  0x21   :  { %405 = vmatprep.subr.mxu0 %v93_v59  ;;  %482 = vmatprep.subr.mxu1 %v95_v60  ;;  %v96_v34 = vld [vmem:[%s4775_s0 + $0x220] sm:$0xff]  ;;  %v98_v35 = vld [vmem:[%s4775_s0 + $0x230] sm:$0xff]  ;;  %v77_v36 = vld [vmem:[%s4775_s0 + $0x188] sm:$0xff] }
  0x22   :  { %406 = vmatpush1.msra.mxu0 %v92_v61  ;;  %483 = vmatpush1.msra.mxu1 %v94_v62  ;;  %v79_v38 = vld [vmem:[%s4775_s0 + $0x198] sm:$0xff]  ;;  %v76_v39 = vld [vmem:[%s4775_s0 + $0x180] sm:$0xff]  ;;  %v78_v40 = vld [vmem:[%s4775_s0 + $0x190] sm:$0xff] }
  0x23   :  { %407 = vmatprep.subr.mxu0 %v73_v63  ;;  %484 = vmatprep.subr.mxu1 %v75_v0  ;;  %v57_v41 = vld [vmem:[%s4775_s0 + $0xe8] sm:$0xff]  ;;  %v59_v42 = vld [vmem:[%s4775_s0 + $0xf8] sm:$0xff]  ;;  %v56_v43 = vld [vmem:[%s4775_s0 + $0xe0] sm:$0xff] }
  0x24   :  { %408 = vmatpush1.msra.mxu0 %v72_v1  ;;  %485 = vmatpush1.msra.mxu1 %v74_v2  ;;  %v58_v44 = vld [vmem:[%s4775_s0 + $0xf0] sm:$0xff]  ;;  %v37_v45 = vld [vmem:[%s4775_s0 + $0x48] sm:$0xff]  ;;  %v39_v47 = vld [vmem:[%s4775_s0 + $0x58] sm:$0xff] }
  0x25   :  { %409 = vmatprep.subr.mxu0 %v53_v4  ;;  %486 = vmatprep.subr.mxu1 %v55_v5  ;;  %v36_v48 = vld [vmem:[%s4775_s0 + $0x40] sm:$0xff]  ;;  %v38_v49 = vld [vmem:[%s4775_s0 + $0x50] sm:$0xff]  ;;  %v201_v50 = vld [vmem:[%s4775_s0 + $0x568] sm:$0xff] }
  0x26   :  { %410 = vmatpush1.msra.mxu0 %v52_v6  ;;  %487 = vmatpush1.msra.mxu1 %v54_v7  ;;  %v203_v51 = vld [vmem:[%s4775_s0 + $0x578] sm:$0xff]  ;;  %v200_v52 = vld [vmem:[%s4775_s0 + $0x560] sm:$0xff]  ;;  %v202_v53 = vld [vmem:[%s4775_s0 + $0x570] sm:$0xff] }
  0x27   :  { %411 = vmatprep.subr.mxu0 %v33_v8  ;;  %488 = vmatprep.subr.mxu1 %v35_v9  ;;  %v181_v54 = vld [vmem:[%s4775_s0 + $0x4c8] sm:$0xff]  ;;  %v183_v55 = vld [vmem:[%s4775_s0 + $0x4d8] sm:$0xff]  ;;  %v180_v56 = vld [vmem:[%s4775_s0 + $0x4c0] sm:$0xff] }
  0x28   :  { %412 = vmatpush1.msra.mxu0 %v32_v10  ;;  %445 = vmatprep.mubr.f32.mxu0 %v4783_v3  ;;  %v182_v57 = vld [vmem:[%s4775_s0 + $0x4d0] sm:$0xff]  ;;  %v161_v58 = vld [vmem:[%s4775_s0 + $0x428] sm:$0xff]  ;;  %v163_v59 = vld [vmem:[%s4775_s0 + $0x438] sm:$0xff] }
  0x29   :  { %489 = vmatpush1.msra.mxu1 %v34_v11  ;;  %522 = vmatprep.mubr.f32.mxu1 %v4783_v3  ;;  %v160_v60 = vld [vmem:[%s4775_s0 + $0x420] sm:$0xff]  ;;  %v162_v61 = vld [vmem:[%s4775_s0 + $0x430] sm:$0xff]  ;;  %v141_v62 = vld [vmem:[%s4775_s0 + $0x388] sm:$0xff] }
  0x2a   :  { %3031 = vmatmul.mubr.msk.f32.vlgmr.msra.gmra.mxu0 %vm220_vm0, %v3250_v37  ;;  %3033 = vmatmul.mubr.msk.f32.vlgmr.msra.gmra.mxu1 %vm220_vm0, %v3250_v37  ;;  %v143_v63 = vld [vmem:[%s4775_s0 + $0x398] sm:$0xff]  ;;  %v140_v0 = vld [vmem:[%s4775_s0 + $0x380] sm:$0xff]  ;;  %v142_v1 = vld [vmem:[%s4775_s0 + $0x390] sm:$0xff] }
  0x2b   :  { %549 = vmatprep.subr.mxu0 %v197_v12  ;;  %626 = vmatprep.subr.mxu1 %v199_v13  ;;  %v121_v2 = vld [vmem:[%s4775_s0 + $0x2e8] sm:$0xff]  ;;  %v123_v4 = vld [vmem:[%s4775_s0 + $0x2f8] sm:$0xff]  ;;  %v120_v5 = vld [vmem:[%s4775_s0 + $0x2e0] sm:$0xff] }
  0x2c   :  { %550 = vmatpush1.msra.mxu0 %v196_v14  ;;  %627 = vmatpush1.msra.mxu1 %v198_v15  ;;  %v122_v6 = vld [vmem:[%s4775_s0 + $0x2f0] sm:$0xff]  ;;  %v101_v7 = vld [vmem:[%s4775_s0 + $0x248] sm:$0xff]  ;;  %v103_v8 = vld [vmem:[%s4775_s0 + $0x258] sm:$0xff] }
  0x2d   :  { %551 = vmatprep.subr.mxu0 %v177_v16  ;;  %628 = vmatprep.subr.mxu1 %v179_v17  ;;  %v100_v9 = vld [vmem:[%s4775_s0 + $0x240] sm:$0xff]  ;;  %v102_v10 = vld [vmem:[%s4775_s0 + $0x250] sm:$0xff]  ;;  %v81_v11 = vld [vmem:[%s4775_s0 + $0x1a8] sm:$0xff] }
  0x2e   :  { %451 = vmatprep.mubr.f32.mxu0 %v4783_v3  ;;  %528 = vmatprep.mubr.f32.mxu1 %v4783_v3  ;;  %v83_v12 = vld [vmem:[%s4775_s0 + $0x1b8] sm:$0xff]  ;;  %v80_v13 = vld [vmem:[%s4775_s0 + $0x1a0] sm:$0xff]  ;;  %v82_v14 = vld [vmem:[%s4775_s0 + $0x1b0] sm:$0xff] }
  0x2f   :  { %552 = vmatpush1.msra.mxu0 %v176_v18  ;;  %629 = vmatpush1.msra.mxu1 %v178_v19  ;;  %v61_v15 = vld [vmem:[%s4775_s0 + $0x108] sm:$0xff]  ;;  %v63_v16 = vld [vmem:[%s4775_s0 + $0x118] sm:$0xff]  ;;  %v60_v17 = vld [vmem:[%s4775_s0 + $0x100] sm:$0xff] }
  0x30   :  { %3032 = vmatmul.mubr.msk.f32.gmra.mxu0 %vm220_vm0, %v3283_v46  ;;  %3034 = vmatmul.mubr.msk.f32.gmra.mxu1 %vm220_vm0, %v3283_v46  ;;  %v62_v18 = vld [vmem:[%s4775_s0 + $0x110] sm:$0xff]  ;;  %v41_v19 = vld [vmem:[%s4775_s0 + $0x68] sm:$0xff] }
  0x31   :  { %553 = vmatprep.subr.mxu0 %v157_v20  ;;  %630 = vmatprep.subr.mxu1 %v159_v21  ;;  %v43_v20 = vld [vmem:[%s4775_s0 + $0x78] sm:$0xff]  ;;  %v40_v21 = vld [vmem:[%s4775_s0 + $0x60] sm:$0xff] }
  0x32   :  { %554 = vmatpush1.msra.mxu0 %v156_v22  ;;  %631 = vmatpush1.msra.mxu1 %v158_v23  ;;  %v42_v22 = vld [vmem:[%s4775_s0 + $0x70] sm:$0xff]  ;;  %v205_v23 = vld [vmem:[%s4775_s0 + $0x588] sm:$0xff] }
  0x33   :  { %555 = vmatprep.subr.mxu0 %v137_v24  ;;  %632 = vmatprep.subr.mxu1 %v139_v25  ;;  %v207_v24 = vld [vmem:[%s4775_s0 + $0x598] sm:$0xff]  ;;  %v204_v25 = vld [vmem:[%s4775_s0 + $0x580] sm:$0xff] }
  0x34   :  { %556 = vmatpush1.msra.mxu0 %v136_v26  ;;  %633 = vmatpush1.msra.mxu1 %v138_v27  ;;  %v206_v26 = vld [vmem:[%s4775_s0 + $0x590] sm:$0xff]  ;;  %v185_v27 = vld [vmem:[%s4775_s0 + $0x4e8] sm:$0xff] }
  0x35   :  { %557 = vmatprep.subr.mxu0 %v117_v28  ;;  %634 = vmatprep.subr.mxu1 %v119_v29  ;;  %v187_v28 = vld [vmem:[%s4775_s0 + $0x4f8] sm:$0xff]  ;;  %v184_v29 = vld [vmem:[%s4775_s0 + $0x4e0] sm:$0xff] }
  0x36   :  { %558 = vmatpush1.msra.mxu0 %v116_v30  ;;  %635 = vmatpush1.msra.mxu1 %v118_v31  ;;  %v186_v30 = vld [vmem:[%s4775_s0 + $0x4f0] sm:$0xff]  ;;  %v165_v31 = vld [vmem:[%s4775_s0 + $0x448] sm:$0xff] }
  0x37   :  { %559 = vmatprep.subr.mxu0 %v97_v32  ;;  %636 = vmatprep.subr.mxu1 %v99_v33  ;;  %v167_v32 = vld [vmem:[%s4775_s0 + $0x458] sm:$0xff]  ;;  %v164_v33 = vld [vmem:[%s4775_s0 + $0x440] sm:$0xff] }
  0x38   :  { %560 = vmatpush1.msra.mxu0 %v96_v34  ;;  %637 = vmatpush1.msra.mxu1 %v98_v35  ;;  %v166_v34 = vld [vmem:[%s4775_s0 + $0x450] sm:$0xff]  ;;  %v145_v35 = vld [vmem:[%s4775_s0 + $0x3a8] sm:$0xff] }
  0x39   :  { %561 = vmatprep.subr.mxu0 %v77_v36  ;;  %638 = vmatprep.subr.mxu1 %v79_v38  ;;  %v147_v36 = vld [vmem:[%s4775_s0 + $0x3b8] sm:$0xff]  ;;  %v144_v38 = vld [vmem:[%s4775_s0 + $0x3a0] sm:$0xff] }
  0x3a   :  { %562 = vmatpush1.msra.mxu0 %v76_v39  ;;  %639 = vmatpush1.msra.mxu1 %v78_v40  ;;  %v146_v39 = vld [vmem:[%s4775_s0 + $0x3b0] sm:$0xff]  ;;  %v125_v40 = vld [vmem:[%s4775_s0 + $0x308] sm:$0xff] }
  0x3b   :  { %563 = vmatprep.subr.mxu0 %v57_v41  ;;  %640 = vmatprep.subr.mxu1 %v59_v42  ;;  %v127_v41 = vld [vmem:[%s4775_s0 + $0x318] sm:$0xff]  ;;  %v124_v42 = vld [vmem:[%s4775_s0 + $0x300] sm:$0xff] }
  0x3c   :  { %564 = vmatpush1.msra.mxu0 %v56_v43  ;;  %641 = vmatpush1.msra.mxu1 %v58_v44  ;;  %v126_v43 = vld [vmem:[%s4775_s0 + $0x310] sm:$0xff]  ;;  %v105_v44 = vld [vmem:[%s4775_s0 + $0x268] sm:$0xff] }
  0x3d   :  { %565 = vmatprep.subr.mxu0 %v37_v45  ;;  %642 = vmatprep.subr.mxu1 %v39_v47  ;;  %v107_v45 = vld [vmem:[%s4775_s0 + $0x278] sm:$0xff]  ;;  %v104_v47 = vld [vmem:[%s4775_s0 + $0x260] sm:$0xff] }
  0x3e   :  { %566 = vmatpush1.msra.mxu0 %v36_v48  ;;  %599 = vmatprep.mubr.f32.mxu0 %v4783_v3  ;;  %v106_v48 = vld [vmem:[%s4775_s0 + $0x270] sm:$0xff] }
  0x3f   :  { %643 = vmatpush1.msra.mxu1 %v38_v49  ;;  %676 = vmatprep.mubr.f32.mxu1 %v4783_v3  ;;  %v209_v49 = vld [vmem:[%s4777_s2 + $0x8] sm:$0xff] }
  0x40   :  { %3035 = vmatmul.mubr.msk.f32.vlgmr.msra.gmra.mxu0 %vm220_vm0, %v3250_v37  ;;  %3037 = vmatmul.mubr.msk.f32.vlgmr.msra.gmra.mxu1 %vm220_vm0, %v3250_v37 }
  0x41   :  { %703 = vmatprep.subr.mxu0 %v201_v50  ;;  %780 = vmatprep.subr.mxu1 %v203_v51  ;;  %v85_v50 = vld [vmem:[%s4775_s0 + $0x1c8] sm:$0xff]  ;;  %v87_v51 = vld [vmem:[%s4775_s0 + $0x1d8] sm:$0xff] }
  0x42   :  { %704 = vmatpush1.msra.mxu0 %v200_v52  ;;  %781 = vmatpush1.msra.mxu1 %v202_v53  ;;  %v3096_v52 = vmov 0   ;;  %v84_v53 = vld [vmem:[%s4775_s0 + $0x1c0] sm:$0xff] }
  0x43   :  { %705 = vmatprep.subr.mxu0 %v181_v54  ;;  %782 = vmatprep.subr.mxu1 %v183_v55  ;;  %v86_v54 = vld [vmem:[%s4775_s0 + $0x1d0] sm:$0xff]  ;;  %v65_v55 = vld [vmem:[%s4775_s0 + $0x128] sm:$0xff] }
  0x44   :  { %605 = vmatprep.mubr.f32.mxu0 %v4783_v3  ;;  %682 = vmatprep.mubr.f32.mxu1 %v4783_v3 }
  0x45   :  { %706 = vmatpush1.msra.mxu0 %v180_v56  ;;  %783 = vmatpush1.msra.mxu1 %v182_v57  ;;  %v67_v56 = vld [vmem:[%s4775_s0 + $0x138] sm:$0xff]  ;;  %v64_v57 = vld [vmem:[%s4775_s0 + $0x120] sm:$0xff] }
  0x46   :  { %3036 = vmatmul.mubr.msk.f32.gmra.mxu0 %vm220_vm0, %v3283_v46  ;;  %3038 = vmatmul.mubr.msk.f32.gmra.mxu1 %vm220_vm0, %v3283_v46 }
  0x47   :  { %707 = vmatprep.subr.mxu0 %v161_v58  ;;  %784 = vmatprep.subr.mxu1 %v163_v59  ;;  %v66_v58 = vld [vmem:[%s4775_s0 + $0x130] sm:$0xff]  ;;  %v208_v59 = vld [vmem:[%s4777_s2] sm:$0xff] }
  0x48   :  { %708 = vmatpush1.msra.mxu0 %v160_v60  ;;  %785 = vmatpush1.msra.mxu1 %v162_v61  ;;  %v45_v60 = vld [vmem:[%s4775_s0 + $0x88] sm:$0xff]  ;;  %v47_v61 = vld [vmem:[%s4775_s0 + $0x98] sm:$0xff] }
  0x49   :  { %709 = vmatprep.subr.mxu0 %v141_v62  ;;  %786 = vmatprep.subr.mxu1 %v143_v63  ;;  %v44_v62 = vld [vmem:[%s4775_s0 + $0x80] sm:$0xff]  ;;  %v46_v63 = vld [vmem:[%s4775_s0 + $0x90] sm:$0xff] }
  0x4a   :  { %710 = vmatpush1.msra.mxu0 %v140_v0  ;;  %787 = vmatpush1.msra.mxu1 %v142_v1 }
  0x4b   :  { %711 = vmatprep.subr.mxu0 %v121_v2  ;;  %788 = vmatprep.subr.mxu1 %v123_v4 }
  0x4c   :  { %712 = vmatpush1.msra.mxu0 %v120_v5  ;;  %789 = vmatpush1.msra.mxu1 %v122_v6 }
  0x4d   :  { %713 = vmatprep.subr.mxu0 %v101_v7  ;;  %790 = vmatprep.subr.mxu1 %v103_v8 }
  0x4e   :  { %714 = vmatpush1.msra.mxu0 %v100_v9  ;;  %791 = vmatpush1.msra.mxu1 %v102_v10 }
  0x4f   :  { %715 = vmatprep.subr.mxu0 %v81_v11  ;;  %792 = vmatprep.subr.mxu1 %v83_v12 }
  0x50   :  { %716 = vmatpush1.msra.mxu0 %v80_v13  ;;  %793 = vmatpush1.msra.mxu1 %v82_v14 }
  0x51   :  { %717 = vmatprep.subr.mxu0 %v61_v15  ;;  %794 = vmatprep.subr.mxu1 %v63_v16 }
  0x52   :  { %718 = vmatpush1.msra.mxu0 %v60_v17  ;;  %795 = vmatpush1.msra.mxu1 %v62_v18  ;;  %v3790_v17 = vld [vmem:[%s4778_s5] sm:$0xff] }
  0x53   :  { %719 = vmatprep.subr.mxu0 %v41_v19  ;;  %796 = vmatprep.subr.mxu1 %v43_v20  ;;  %v3805_v20 = vld [vmem:[%s4778_s5 + $0x8] sm:$0xff] }
  0x54   :  { %720 = vmatpush1.msra.mxu0 %v40_v21  ;;  %753 = vmatprep.mubr.f32.mxu0 %v4783_v3 }
  0x55   :  { %797 = vmatpush1.msra.mxu1 %v42_v22  ;;  %830 = vmatprep.mubr.f32.mxu1 %v4783_v3 }
  0x56   :  { %3039 = vmatmul.mubr.msk.f32.vlgmr.msra.gmra.mxu0 %vm220_vm0, %v3250_v37  ;;  %3041 = vmatmul.mubr.msk.f32.vlgmr.msra.gmra.mxu1 %vm220_vm0, %v3250_v37 }
  0x57   :  { %857 = vmatprep.subr.mxu0 %v205_v23  ;;  %934 = vmatprep.subr.mxu1 %v207_v24 }
  0x58   :  { %858 = vmatpush1.msra.mxu0 %v204_v25  ;;  %935 = vmatpush1.msra.mxu1 %v206_v26 }
  0x59   :  { %859 = vmatprep.subr.mxu0 %v185_v27  ;;  %936 = vmatprep.subr.mxu1 %v187_v28 }
  0x5a   :  { %759 = vmatprep.mubr.f32.mxu0 %v4783_v3  ;;  %836 = vmatprep.mubr.f32.mxu1 %v4783_v3 }
  0x5b   :  { %860 = vmatpush1.msra.mxu0 %v184_v29  ;;  %937 = vmatpush1.msra.mxu1 %v186_v30 }
  0x5c   :  { %3040 = vmatmul.mubr.msk.f32.gmra.mxu0 %vm220_vm0, %v3283_v46  ;;  %3042 = vmatmul.mubr.msk.f32.gmra.mxu1 %vm220_vm0, %v3283_v46 }
  0x5d   :  { %861 = vmatprep.subr.mxu0 %v165_v31  ;;  %938 = vmatprep.subr.mxu1 %v167_v32 }
  0x5e   :  { %862 = vmatpush1.msra.mxu0 %v164_v33  ;;  %939 = vmatpush1.msra.mxu1 %v166_v34 }
  0x5f   :  { %863 = vmatprep.subr.mxu0 %v145_v35  ;;  %940 = vmatprep.subr.mxu1 %v147_v36 }
  0x60   :  { %864 = vmatpush1.msra.mxu0 %v144_v38  ;;  %941 = vmatpush1.msra.mxu1 %v146_v39 }
  0x61   :  { %865 = vmatprep.subr.mxu0 %v125_v40  ;;  %942 = vmatprep.subr.mxu1 %v127_v41 }
  0x62   :  { %866 = vmatpush1.msra.mxu0 %v124_v42  ;;  %943 = vmatpush1.msra.mxu1 %v126_v43 }
  0x63   :  { %867 = vmatprep.subr.mxu0 %v105_v44  ;;  %944 = vmatprep.subr.mxu1 %v107_v45 }
  0x64   :  { %3089 = vset.pattern.permute.xlu0 %v3096_v52  ;;  %868 = vmatpush1.msra.mxu0 %v104_v47 }
  0x65   :  { %945 = vmatpush1.msra.mxu1 %v106_v48  ;;  %217 = vperm.xlu0 %3089, %v209_v49  }
  0x66   :  { %869 = vmatprep.subr.mxu0 %v85_v50  ;;  %946 = vmatprep.subr.mxu1 %v87_v51 }
  0x67   :  { %870 = vmatpush1.msra.mxu0 %v84_v53  ;;  %947 = vmatpush1.msra.mxu1 %v86_v54 }
  0x68   :  { %871 = vmatprep.subr.mxu0 %v65_v55  ;;  %948 = vmatprep.subr.mxu1 %v67_v56 }
  0x69   :  { %872 = vmatpush1.msra.mxu0 %v64_v57  ;;  %949 = vmatpush1.msra.mxu1 %v66_v58 }
  0x6a   :  { %212 = vperm.xlu0 %3089, %v208_v59   ;;  %873 = vmatprep.subr.mxu0 %v45_v60 }
  0x6b   :  { %950 = vmatprep.subr.mxu1 %v47_v61  ;;  %874 = vmatpush1.msra.mxu0 %v44_v62 }
  0x6c   :  { %907 = vmatprep.mubr.f32.mxu0 %v4783_v3  ;;  %951 = vmatpush1.msra.mxu1 %v46_v63 }
  0x6d   :  { %984 = vmatprep.mubr.f32.mxu1 %v4783_v3  ;;  %3043 = vmatmul.mubr.msk.f32.vlgmr.msra.gmra.mxu0 %vm220_vm0, %v3250_v37 }
  0x6e   :  { %3045 = vmatmul.mubr.msk.f32.vlgmr.msra.gmra.mxu1 %vm220_vm0, %v3250_v37  ;;  %913 = vmatprep.mubr.f32.mxu0 %v4783_v3 }
  0x6f   :  { %990 = vmatprep.mubr.f32.mxu1 %v4783_v3  ;;  %3090 = vset.pattern.permute.xlu1 %v3096_v52 }
  0x71   :  { %3044 = vmatmul.mubr.msk.f32.gmra.mxu0 %vm220_vm0, %v3283_v46 }
  0x72   :  { %3046 = vmatmul.mubr.msk.f32.gmra.mxu1 %vm220_vm0, %v3283_v46  ;;  %1070 = vmatprep.mubr.f32.mxu0 %v4783_v3 }
  0x73   :  { %1147 = vmatprep.mubr.f32.mxu1 %v4783_v3 }
  0xd4   :  { %v293_v0 = vpop.f32.mrf.mxu0  ;;  %v370_v1 = vpop.f32.mrf.mxu1 }
  0xd6   :  { %v295_v2 = vpop.f32.mrf.mxu0  ;;  %v372_v4 = vpop.f32.mrf.mxu1 }
  0xda   :  { %v299_v37 = vpop.f32.mrf.mxu0  ;;  %v376_v5 = vpop.f32.mrf.mxu1 }
  0xdc   :  { %v301_v6 = vpop.f32.mrf.mxu0  ;;  %v378_v7 = vpop.f32.mrf.mxu1 }
  0xe0   :  { %v3755_v8 = vpop.permute.xlu0 %217 }
  0xe1   :  { %v3758_v9 = vadd.f32 %v299_v37, %v3755_v8  ;;  %v3761_v10 = vadd.f32 %v376_v5, %v3755_v8  ;;  %v3764_v46 = vadd.f32 %v301_v6, %v3755_v8  ;;  %v3767_v11 = vadd.f32 %v378_v7, %v3755_v8 }
  0xe3   :  { %1034 = vmatprep.subr.mxu0 %v3764_v46  ;;  %1111 = vmatprep.subr.mxu1 %v3767_v11 }
  0xe4   :  { %1035 = vmatpush1.msra.mxu0 %v3758_v9  ;;  %1112 = vmatpush1.msra.mxu1 %v3761_v10 }
  0xe5   :  { %v3773_v12 = vpop.permute.xlu0 %212 }
  0xe6   :  { %v3776_v13 = vadd.f32 %v295_v2, %v3773_v12  ;;  %v3779_v14 = vadd.f32 %v372_v4, %v3773_v12  ;;  %v3782_v15 = vadd.f32 %v293_v0, %v3773_v12  ;;  %v3785_v16 = vadd.f32 %v370_v1, %v3773_v12 }
  0xe8   :  { %1036 = vmatprep.subr.mxu0 %v3776_v13  ;;  %1113 = vmatprep.subr.mxu1 %v3779_v14 }
  0xe9   :  { %1037 = vmatpush1.msra.mxu0 %v3782_v15  ;;  %1114 = vmatpush1.msra.mxu1 %v3785_v16 }
  0xea   :  { %v447_v18 = vpop.f32.mrf.mxu0  ;;  %v524_v19 = vpop.f32.mrf.mxu1  ;;  %3047 = vmatmul.mubr.msk.f32.vlgmr.msra.gmra.mxu0 %vm999_vm1, %v3790_v17  ;;  %3049 = vmatmul.mubr.msk.f32.vlgmr.msra.gmra.mxu1 %vm999_vm1, %v3790_v17 }
  0xeb   :  { %1076 = vmatprep.mubr.f32.mxu0 %v4783_v3  ;;  %1153 = vmatprep.mubr.f32.mxu1 %v4783_v3  ;;  %v3834_v33 = vadd.f32 %v447_v18, %v3773_v12  ;;  %v3837_v34 = vadd.f32 %v524_v19, %v3773_v12 }
  0xec   :  { %v449_v21 = vpop.f32.mrf.mxu0  ;;  %v526_v22 = vpop.f32.mrf.mxu1 }
  0xed   :  { %v3826_v31 = vadd.f32 %v449_v21, %v3773_v12  ;;  %v3829_v32 = vadd.f32 %v526_v22, %v3773_v12 }
  0xee   :  { %3048 = vmatmul.mubr.msk.f32.gmra.mxu0 %vm999_vm1, %v3805_v20  ;;  %3050 = vmatmul.mubr.msk.f32.gmra.mxu1 %vm999_vm1, %v3805_v20 }
  0xef   :  { %1224 = vmatprep.mubr.f32.mxu0 %v4783_v3  ;;  %1301 = vmatprep.mubr.f32.mxu1 %v4783_v3 }
  0xf0   :  { %v453_v23 = vpop.f32.mrf.mxu0  ;;  %v530_v24 = vpop.f32.mrf.mxu1 }
  0xf1   :  { %v3814_v25 = vadd.f32 %v453_v23, %v3755_v8  ;;  %v3817_v26 = vadd.f32 %v530_v24, %v3755_v8 }
  0xf2   :  { %v455_v27 = vpop.f32.mrf.mxu0  ;;  %v532_v28 = vpop.f32.mrf.mxu1 }
  0xf3   :  { %v3820_v29 = vadd.f32 %v455_v27, %v3755_v8  ;;  %v3823_v30 = vadd.f32 %v532_v28, %v3755_v8 }
  0xf5   :  { %1188 = vmatprep.subr.mxu0 %v3820_v29  ;;  %1265 = vmatprep.subr.mxu1 %v3823_v30 }
  0xf6   :  { %1189 = vmatpush1.msra.mxu0 %v3814_v25  ;;  %1266 = vmatpush1.msra.mxu1 %v3817_v26 }
  0xf7   :  { %1190 = vmatprep.subr.mxu0 %v3826_v31  ;;  %1267 = vmatprep.subr.mxu1 %v3829_v32 }
  0xf8   :  { %1191 = vmatpush1.msra.mxu0 %v3834_v33  ;;  %1268 = vmatpush1.msra.mxu1 %v3837_v34 }
  0xf9   :  { %3051 = vmatmul.mubr.msk.f32.vlgmr.msra.gmra.mxu0 %vm999_vm1, %v3790_v17  ;;  %3053 = vmatmul.mubr.msk.f32.vlgmr.msra.gmra.mxu1 %vm999_vm1, %v3790_v17 }
  0xfa   :  { %1230 = vmatprep.mubr.f32.mxu0 %v4783_v3  ;;  %1307 = vmatprep.mubr.f32.mxu1 %v4783_v3 }
  0xfd   :  { %3052 = vmatmul.mubr.msk.f32.gmra.mxu0 %vm999_vm1, %v3805_v20  ;;  %3054 = vmatmul.mubr.msk.f32.gmra.mxu1 %vm999_vm1, %v3805_v20 }
  0xfe   :  { %1378 = vmatprep.mubr.f32.mxu0 %v4783_v3  ;;  %1455 = vmatprep.mubr.f32.mxu1 %v4783_v3 }
 0x100   :  { %v601_v35 = vpop.f32.mrf.mxu0  ;;  %v678_v36 = vpop.f32.mrf.mxu1 }
 0x101   :  { %v3878_v51 = vadd.f32 %v601_v35, %v3773_v12  ;;  %v3881_v52 = vadd.f32 %v678_v36, %v3773_v12 }
 0x102   :  { %v603_v38 = vpop.f32.mrf.mxu0  ;;  %v680_v39 = vpop.f32.mrf.mxu1 }
 0x103   :  { %v3870_v49 = vadd.f32 %v603_v38, %v3773_v12  ;;  %v3873_v50 = vadd.f32 %v680_v39, %v3773_v12 }
 0x106   :  { %v607_v40 = vpop.f32.mrf.mxu0  ;;  %v684_v41 = vpop.f32.mrf.mxu1 }
 0x107   :  { %v3858_v42 = vadd.f32 %v607_v40, %v3755_v8  ;;  %v3861_v43 = vadd.f32 %v684_v41, %v3755_v8 }
 0x108   :  { %v609_v44 = vpop.f32.mrf.mxu0  ;;  %v686_v45 = vpop.f32.mrf.mxu1 }
 0x109   :  { %v3864_v47 = vadd.f32 %v609_v44, %v3755_v8  ;;  %v3867_v48 = vadd.f32 %v686_v45, %v3755_v8 }
 0x10b   :  { %1342 = vmatprep.subr.mxu0 %v3864_v47  ;;  %1419 = vmatprep.subr.mxu1 %v3867_v48 }
 0x10c   :  { %1343 = vmatpush1.msra.mxu0 %v3858_v42  ;;  %1420 = vmatpush1.msra.mxu1 %v3861_v43 }
 0x10d   :  { %1344 = vmatprep.subr.mxu0 %v3870_v49  ;;  %1421 = vmatprep.subr.mxu1 %v3873_v50 }
 0x10e   :  { %1345 = vmatpush1.msra.mxu0 %v3878_v51  ;;  %1422 = vmatpush1.msra.mxu1 %v3881_v52 }
 0x10f   :  { %3055 = vmatmul.mubr.msk.f32.vlgmr.msra.gmra.mxu0 %vm999_vm1, %v3790_v17  ;;  %3057 = vmatmul.mubr.msk.f32.vlgmr.msra.gmra.mxu1 %vm999_vm1, %v3790_v17 }
 0x110   :  { %1384 = vmatprep.mubr.f32.mxu0 %v4783_v3  ;;  %1461 = vmatprep.mubr.f32.mxu1 %v4783_v3 }
 0x113   :  { %3056 = vmatmul.mubr.msk.f32.gmra.mxu0 %vm999_vm1, %v3805_v20  ;;  %3058 = vmatmul.mubr.msk.f32.gmra.mxu1 %vm999_vm1, %v3805_v20 }
 0x114   :  { %1532 = vmatprep.mubr.f32.mxu0 %v4783_v3  ;;  %1609 = vmatprep.mubr.f32.mxu1 %v4783_v3 }
 0x116   :  { %v755_v53 = vpop.f32.mrf.mxu0  ;;  %v832_v54 = vpop.f32.mrf.mxu1 }
 0x117   :  { %v3922_v4 = vadd.f32 %v755_v53, %v3773_v12  ;;  %v3925_v37 = vadd.f32 %v832_v54, %v3773_v12 }
 0x118   :  { %v757_v55 = vpop.f32.mrf.mxu0  ;;  %v834_v56 = vpop.f32.mrf.mxu1 }
 0x119   :  { %v3914_v1 = vadd.f32 %v757_v55, %v3773_v12  ;;  %v3917_v2 = vadd.f32 %v834_v56, %v3773_v12 }
 0x11c   :  { %v761_v57 = vpop.f32.mrf.mxu0  ;;  %v838_v58 = vpop.f32.mrf.mxu1 }
 0x11d   :  { %v3908_v63 = vadd.f32 %v761_v57, %v3755_v8  ;;  %v3911_v0 = vadd.f32 %v838_v58, %v3755_v8 }
 0x11e   :  { %v763_v59 = vpop.f32.mrf.mxu0  ;;  %v840_v60 = vpop.f32.mrf.mxu1 }
 0x11f   :  { %v3902_v61 = vadd.f32 %v763_v59, %v3755_v8  ;;  %v3905_v62 = vadd.f32 %v840_v60, %v3755_v8 }
 0x121   :  { %1496 = vmatprep.subr.mxu0 %v3902_v61  ;;  %1573 = vmatprep.subr.mxu1 %v3905_v62 }
 0x122   :  { %1497 = vmatpush1.msra.mxu0 %v3908_v63  ;;  %1574 = vmatpush1.msra.mxu1 %v3911_v0 }
 0x123   :  { %1498 = vmatprep.subr.mxu0 %v3914_v1  ;;  %1575 = vmatprep.subr.mxu1 %v3917_v2 }
 0x124   :  { %1499 = vmatpush1.msra.mxu0 %v3922_v4  ;;  %1576 = vmatpush1.msra.mxu1 %v3925_v37 }
 0x125   :  { %3059 = vmatmul.mubr.msk.f32.vlgmr.msra.gmra.mxu0 %vm999_vm1, %v3790_v17  ;;  %3061 = vmatmul.mubr.msk.f32.vlgmr.msra.gmra.mxu1 %vm999_vm1, %v3790_v17 }
 0x126   :  { %1538 = vmatprep.mubr.f32.mxu0 %v4783_v3  ;;  %1615 = vmatprep.mubr.f32.mxu1 %v4783_v3 }
 0x129   :  { %3060 = vmatmul.mubr.msk.f32.gmra.mxu0 %vm999_vm1, %v3805_v20  ;;  %3062 = vmatmul.mubr.msk.f32.gmra.mxu1 %vm999_vm1, %v3805_v20 }
 0x12a   :  { %1686 = vmatprep.mubr.f32.mxu0 %v4783_v3  ;;  %1763 = vmatprep.mubr.f32.mxu1 %v4783_v3 }
 0x12d   :  { %v909_v5 = vpop.f32.mrf.mxu0 }
 0x12e   :  { %v986_v6 = vpop.f32.mrf.mxu1  ;;  %v3962_v38 = vadd.f32 %v909_v5, %v3773_v12 }
 0x12f   :  { %v911_v7 = vpop.f32.mrf.mxu0  ;;  %v3970_v40 = vadd.f32 %v986_v6, %v3773_v12 }
 0x130   :  { %v988_v18 = vpop.f32.mrf.mxu1  ;;  %v3955_v35 = vadd.f32 %v911_v7, %v3773_v12  ;;  %4792 = vst [vmem:[#allocation3_spill] sm:$0xff] %v3962_v38 }
 0x131   :  { %v915_v19 = vpop.f32.mrf.mxu0  ;;  %v3965_v39 = vadd.f32 %v988_v18, %v3773_v12  ;;  %4794 = vst [vmem:[#allocation5_spill] sm:$0xff] %v3970_v40 }
 0x132   :  { %v992_v21 = vpop.f32.mrf.mxu1  ;;  %v3949_v27 = vadd.f32 %v915_v19, %v3755_v8  ;;  %4791 = vst [vmem:[#allocation2_spill] sm:$0xff] %v3955_v35 }
 0x133   :  { %v917_v22 = vpop.f32.mrf.mxu0  ;;  %v3958_v36 = vadd.f32 %v992_v21, %v3755_v8  ;;  %4793 = vst [vmem:[#allocation4_spill] sm:$0xff] %v3965_v39 }
 0x134   :  { %v3946_v23 = vadd.f32 %v917_v22, %v3755_v8  ;;  %v994_v24 = vpop.f32.mrf.mxu1 }
 0x135   :  { %v3952_v28 = vadd.f32 %v994_v24, %v3755_v8 }
 0x136   :  { %1650 = vmatprep.subr.mxu0 %v3946_v23 }
 0x137   :  { %1727 = vmatprep.subr.mxu1 %v3952_v28  ;;  %1651 = vmatpush1.msra.mxu0 %v3949_v27 }
 0x138   :  { %1728 = vmatpush1.msra.mxu1 %v3958_v36  ;;  %1652 = vmatprep.subr.mxu0 %v3955_v35 }
 0x139   :  { %1729 = vmatprep.subr.mxu1 %v3965_v39  ;;  %1653 = vmatpush1.msra.mxu0 %v3962_v38 }
 0x13a   :  { %1730 = vmatpush1.msra.mxu1 %v3970_v40  ;;  %3063 = vmatmul.mubr.msk.f32.vlgmr.msra.gmra.mxu0 %vm999_vm1, %v3790_v17 }
 0x13b   :  { %1692 = vmatprep.mubr.f32.mxu0 %v4783_v3  ;;  %3065 = vmatmul.mubr.msk.f32.vlgmr.msra.gmra.mxu1 %vm999_vm1, %v3790_v17 }
 0x13c   :  { %1769 = vmatprep.mubr.f32.mxu1 %v4783_v3 }
 0x13e   :  { %3064 = vmatmul.mubr.msk.f32.gmra.mxu0 %vm999_vm1, %v3805_v20 }
 0x13f   :  { %3066 = vmatmul.mubr.msk.f32.gmra.mxu1 %vm999_vm1, %v3805_v20  ;;  %1965 = vmatprep.mubr.f32.mxu0 %v4783_v3 }
 0x140   :  { %2042 = vmatprep.mubr.f32.mxu1 %v4783_v3 }
 0x1aa   :  { %v1072_v8 = vpop.f32.mrf.mxu0  ;;  %v1149_v41 = vpop.f32.mrf.mxu1 }
 0x1ac   :  { %v1074_v12 = vpop.f32.mrf.mxu0  ;;  %v1151_v45 = vpop.f32.mrf.mxu1 }
 0x1ad   :  { %v1776_v54 = vadd.f32 %v1074_v12, %v1072_v8 }
 0x1ae   :  { %v1078_v44 = vpop.f32.mrf.mxu0  ;;  %v1155_v55 = vpop.f32.mrf.mxu1 }
 0x1af   :  { %v1777_v58 = vadd.f32 %v1776_v54, %v1149_v41 }
 0x1b0   :  { %v1080_v53 = vpop.f32.mrf.mxu0  ;;  %v1157_v59 = vpop.f32.mrf.mxu1 }
 0x1b1   :  { %v1799_v56 = vadd.f32 %v1080_v53, %v1078_v44  ;;  %v1778_v6 = vadd.f32 %v1777_v58, %v1151_v45 }
 0x1b3   :  { %v1800_v60 = vadd.f32 %v1799_v56, %v1155_v55 }
 0x1b5   :  { %v1801_v18 = vadd.f32 %v1800_v60, %v1157_v59 }
 0x1b9   :  { %v1226_v57 = vpop.f32.mrf.mxu0  ;;  %v1303_v7 = vpop.f32.mrf.mxu1 }
 0x1ba   :  { %v1779_v21 = vadd.f32 %v1778_v6, %v1226_v57 }
 0x1bb   :  { %v1228_v5 = vpop.f32.mrf.mxu0  ;;  %v1305_v22 = vpop.f32.mrf.mxu1 }
 0x1bc   :  { %v1780_v40 = vadd.f32 %v1779_v21, %v1228_v5 }
 0x1bd   :  { %v1232_v19 = vpop.f32.mrf.mxu0  ;;  %v1309_v38 = vpop.f32.mrf.mxu1 }
 0x1be   :  { %v1802_v24 = vadd.f32 %v1801_v18, %v1232_v19  ;;  %v1781_v8 = vadd.f32 %v1780_v40, %v1303_v7 }
 0x1bf   :  { %v1234_v3 = vpop.f32.mrf.mxu0  ;;  %v1311_v12 = vpop.f32.mrf.mxu1 }
 0x1c0   :  { %v1803_v39 = vadd.f32 %v1802_v24, %v1234_v3  ;;  %v1782_v41 = vadd.f32 %v1781_v8, %v1305_v22 }
 0x1c2   :  { %v1804_v44 = vadd.f32 %v1803_v39, %v1309_v38 }
 0x1c4   :  { %v1805_v55 = vadd.f32 %v1804_v44, %v1311_v12 }
 0x1cf   :  { %v1380_v35 = vpop.f32.mrf.mxu0  ;;  %v1457_v54 = vpop.f32.mrf.mxu1 }
 0x1d0   :  { %v1783_v45 = vadd.f32 %v1782_v41, %v1380_v35 }
 0x1d1   :  { %v1382_v53 = vpop.f32.mrf.mxu0  ;;  %v1459_v58 = vpop.f32.mrf.mxu1 }
 0x1d2   :  { %v1784_v57 = vadd.f32 %v1783_v45, %v1382_v53 }
 0x1d3   :  { %v1386_v56 = vpop.f32.mrf.mxu0  ;;  %v1463_v6 = vpop.f32.mrf.mxu1 }
 0x1d4   :  { %v1806_v59 = vadd.f32 %v1805_v55, %v1386_v56  ;;  %v1785_v5 = vadd.f32 %v1784_v57, %v1457_v54 }
 0x1d5   :  { %v1388_v60 = vpop.f32.mrf.mxu0  ;;  %v1465_v21 = vpop.f32.mrf.mxu1 }
 0x1d6   :  { %v1807_v18 = vadd.f32 %v1806_v59, %v1388_v60  ;;  %v1786_v40 = vadd.f32 %v1785_v5, %v1459_v58 }
 0x1d8   :  { %v1808_v3 = vadd.f32 %v1807_v18, %v1463_v6 }
 0x1da   :  { %v1809_v38 = vadd.f32 %v1808_v3, %v1465_v21 }
 0x1e5   :  { %v1534_v19 = vpop.f32.mrf.mxu0  ;;  %v1611_v7 = vpop.f32.mrf.mxu1 }
 0x1e6   :  { %v1787_v22 = vadd.f32 %v1786_v40, %v1534_v19 }
 0x1e7   :  { %v1536_v24 = vpop.f32.mrf.mxu0  ;;  %v1613_v8 = vpop.f32.mrf.mxu1 }
 0x1e8   :  { %v1788_v35 = vadd.f32 %v1787_v22, %v1536_v24 }
 0x1e9   :  { %v1540_v39 = vpop.f32.mrf.mxu0  ;;  %v1617_v41 = vpop.f32.mrf.mxu1 }
 0x1ea   :  { %v1810_v12 = vadd.f32 %v1809_v38, %v1540_v39  ;;  %v1789_v56 = vadd.f32 %v1788_v35, %v1611_v7  ;;  %v2759_v35 = vld [vmem:[%s4779_s3] sm:$0xff] }
 0x1eb   :  { %v1542_v44 = vpop.f32.mrf.mxu0  ;;  %v1619_v53 = vpop.f32.mrf.mxu1 }
 0x1ec   :  { %v1811_v55 = vadd.f32 %v1810_v12, %v1542_v44  ;;  %v1790_v60 = vadd.f32 %v1789_v56, %v1613_v8 }
 0x1ee   :  { %v1812_v45 = vadd.f32 %v1811_v55, %v1617_v41 }
 0x1f0   :  { %v1813_v18 = vadd.f32 %v1812_v45, %v1619_v53 }
 0x1fa   :  { %v1688_v59 = vpop.f32.mrf.mxu0 }
 0x1fb   :  { %v1765_v54 = vpop.f32.mrf.mxu1  ;;  %v1791_v6 = vadd.f32 %v1790_v60, %v1688_v59 }
 0x1fc   :  { %v1690_v57 = vpop.f32.mrf.mxu0 }
 0x1fd   :  { %v1767_v58 = vpop.f32.mrf.mxu1  ;;  %v1792_v40 = vadd.f32 %v1791_v6, %v1690_v57 }
 0x1fe   :  { %v1694_v5 = vpop.f32.mrf.mxu0  ;;  %v1795_v8 = vsel %vm1794_vm2, %v1767_v58, 0.0 }
 0x1ff   :  { %v1814_v21 = vadd.f32 %v1813_v18, %v1694_v5  ;;  %v1771_v3 = vpop.f32.mrf.mxu1  ;;  %v1793_v22 = vadd.f32 %v1792_v40, %v1765_v54 }
 0x200   :  { %v1696_v19 = vpop.f32.mrf.mxu0 }
 0x201   :  { %v1815_v38 = vadd.f32 %v1814_v21, %v1696_v19  ;;  %v1773_v39 = vpop.f32.mrf.mxu1  ;;  %v1796_v44 = vadd.f32 %v1795_v8, %v1793_v22 }
 0x202   :  { %v1817_v7 = vsel %vm1794_vm2, %v1773_v39, 0.0 }
 0x203   :  { %v1816_v24 = vadd.f32 %v1815_v38, %v1771_v3 }
 0x205   :  { %v1818_v12 = vadd.f32 %v1817_v7, %v1816_v24  ;;  %v4795_v7 = vmov 0.0  }
 0x207   :  { %1819 = vadd.xlane.f32.xlu1 %v1818_v12 }
 0x20b   :  { %1797 = vadd.xlane.f32.xlu1 %v1796_v44 }
 0x21c   :  { %2763 = vperm.xlu1 %3090, %v2759_v35  }
 0x290   :  { %v3994_v41 = vpop.xlane.xlu1 %1819 }
 0x291   :  { %v3998_v55 = vsub.f32 %v3764_v46, %v3994_v41  ;;  %v4002_v56 = vsub.f32 %v3767_v11, %v3994_v41  ;;  %v4006_v53 = vsub.f32 %v3758_v9, %v3994_v41  ;;  %v4010_v45 = vsub.f32 %v3761_v10, %v3994_v41 }
 0x292   :  { %v4024_v9 = vsub.f32 %v3820_v29, %v3994_v41  ;;  %v4028_v10 = vsub.f32 %v3823_v30, %v3994_v41  ;;  %v4048_v30 = vsub.f32 %v3814_v25, %v3994_v41  ;;  %v4096_v40 = vsub.f32 %v3864_v47, %v3994_v41 }
 0x293   :  { %v1882_v59 = vmul.f32 %v3998_v55, %v3998_v55  ;;  %v1884_v60 = vmul.f32 %v4002_v56, %v4002_v56  ;;  %v1881_v46 = vmul.f32 %v4006_v53, %v4006_v53  ;;  %v1883_v11 = vmul.f32 %v4010_v45, %v4010_v45 }
 0x294   :  { %v4020_v54 = vpop.xlane.xlu1 %1797  ;;  %v1886_v5 = vmul.f32 %v4024_v9, %v4024_v9  ;;  %v1888_v21 = vmul.f32 %v4028_v10, %v4028_v10  ;;  %v4100_v38 = vsub.f32 %v3867_v48, %v3994_v41  ;;  %v4110_v47 = vsub.f32 %v3858_v42, %v3994_v41 }
 0x295   :  { %1929 = vmatprep.subr.mxu0 %v1882_v59  ;;  %2006 = vmatprep.subr.mxu1 %v1884_v60  ;;  %v4032_v57 = vsub.f32 %v3776_v13, %v4020_v54  ;;  %v4036_v6 = vsub.f32 %v3779_v14, %v4020_v54  ;;  %v4040_v18 = vsub.f32 %v3782_v15, %v4020_v54 }
 0x296   :  { %1930 = vmatpush1.msra.mxu0 %v1881_v46  ;;  %2007 = vmatpush1.msra.mxu1 %v1883_v11  ;;  %v4044_v29 = vsub.f32 %v3785_v16, %v4020_v54  ;;  %v4052_v13 = vsub.f32 %v3817_v26, %v3994_v41  ;;  %v4062_v16 = vsub.f32 %v3826_v31, %v4020_v54 }
 0x297   :  { %v1862_v14 = vmul.f32 %v4032_v57, %v4032_v57  ;;  %v1864_v15 = vmul.f32 %v4036_v6, %v4036_v6  ;;  %v1861_v58 = vmul.f32 %v4040_v18, %v4040_v18  ;;  %v4068_v26 = vsub.f32 %v3829_v32, %v4020_v54 }
 0x298   :  { %v1863_v25 = vmul.f32 %v4044_v29, %v4044_v29  ;;  %v4076_v31 = vsub.f32 %v3834_v33, %v4020_v54  ;;  %v4080_v3 = vsub.f32 %v3837_v34, %v4020_v54  ;;  %v1885_v32 = vmul.f32 %v4048_v30, %v4048_v30 }
 0x299   :  { %1931 = vmatprep.subr.mxu0 %v1862_v14  ;;  %2008 = vmatprep.subr.mxu1 %v1864_v15  ;;  %v1887_v19 = vmul.f32 %v4052_v13, %v4052_v13  ;;  %v1866_v33 = vmul.f32 %v4062_v16, %v4062_v16  ;;  %v1868_v34 = vmul.f32 %v4068_v26, %v4068_v26 }
 0x29a   :  { %1932 = vmatpush1.msra.mxu0 %v1861_v58  ;;  %2009 = vmatpush1.msra.mxu1 %v1863_v25  ;;  %v1865_v39 = vmul.f32 %v4076_v31, %v4076_v31  ;;  %v1867_v24 = vmul.f32 %v4080_v3, %v4080_v3  ;;  %v1890_v48 = vmul.f32 %v4096_v40, %v4096_v40 }
 0x29b   :  { %3067 = vmatmul.mubr.msk.f32.vlgmr.msra.gmra.mxu0 %vm999_vm1, %v3790_v17  ;;  %3069 = vmatmul.mubr.msk.f32.vlgmr.msra.gmra.mxu1 %vm999_vm1, %v3790_v17  ;;  %v1892_v22 = vmul.f32 %v4100_v38, %v4100_v38  ;;  %v4118_v12 = vsub.f32 %v3861_v43, %v3994_v41  ;;  %v4126_v42 = vsub.f32 %v3870_v49, %v4020_v54 }
 0x29c   :  { %2083 = vmatprep.subr.mxu0 %v1886_v5  ;;  %2160 = vmatprep.subr.mxu1 %v1888_v21  ;;  %v4130_v8 = vsub.f32 %v3873_v50, %v4020_v54  ;;  %v4134_v43 = vsub.f32 %v3878_v51, %v4020_v54  ;;  %v4138_v44 = vsub.f32 %v3881_v52, %v4020_v54 }
 0x29d   :  { %2084 = vmatpush1.msra.mxu0 %v1885_v32  ;;  %2161 = vmatpush1.msra.mxu1 %v1887_v19  ;;  %v1889_v49 = vmul.f32 %v4110_v47, %v4110_v47  ;;  %v1891_v50 = vmul.f32 %v4118_v12, %v4118_v12  ;;  %v4148_v35 = vsub.f32 %v3902_v61, %v3994_v41 }
 0x29e   :  { %2085 = vmatprep.subr.mxu0 %v1866_v33  ;;  %2162 = vmatprep.subr.mxu1 %v1868_v34  ;;  %v4152_v51 = vsub.f32 %v3905_v62, %v3994_v41  ;;  %v1870_v52 = vmul.f32 %v4126_v42, %v4126_v42  ;;  %v1872_v59 = vmul.f32 %v4130_v8, %v4130_v8  ;;  %v4798_v34 = vld [vmem:[#allocation2_spill] sm:$0xff] }
 0x29f   :  { %1971 = vmatprep.mubr.f32.mxu0 %v4795_v7  ;;  %2048 = vmatprep.mubr.f32.mxu1 %v4795_v7  ;;  %v1869_v61 = vmul.f32 %v4134_v43, %v4134_v43  ;;  %v1871_v62 = vmul.f32 %v4138_v44, %v4138_v44  ;;  %v1894_v60 = vmul.f32 %v4148_v35, %v4148_v35 }
 0x2a0   :  { %2086 = vmatpush1.msra.mxu0 %v1865_v39  ;;  %2163 = vmatpush1.msra.mxu1 %v1867_v24  ;;  %v1896_v46 = vmul.f32 %v4152_v51, %v4152_v51  ;;  %v4174_v11 = vsub.f32 %v3908_v63, %v3994_v41  ;;  %v4178_v14 = vsub.f32 %v3911_v0, %v3994_v41  ;;  %v4799_v24 = vld [vmem:[#allocation4_spill] sm:$0xff] }
 0x2a1   :  { %3068 = vmatmul.mubr.msk.f32.gmra.mxu0 %vm999_vm1, %v3805_v20  ;;  %3070 = vmatmul.mubr.msk.f32.gmra.mxu1 %vm999_vm1, %v3805_v20  ;;  %v4186_v15 = vsub.f32 %v3914_v1, %v4020_v54  ;;  %v4190_v58 = vsub.f32 %v3917_v2, %v4020_v54  ;;  %v4196_v63 = vsub.f32 %v3922_v4, %v4020_v54 }
 0x2a2   :  { %2237 = vmatprep.subr.mxu0 %v1890_v48  ;;  %2314 = vmatprep.subr.mxu1 %v1892_v22  ;;  %v4200_v0 = vsub.f32 %v3925_v37, %v4020_v54  ;;  %v1893_v1 = vmul.f32 %v4174_v11, %v4174_v11  ;;  %v1895_v25 = vmul.f32 %v4178_v14, %v4178_v14 }
 0x2a3   :  { %2119 = vmatprep.mubr.f32.mxu0 %v4795_v7  ;;  %2196 = vmatprep.mubr.f32.mxu1 %v4795_v7  ;;  %v4208_v2 = vsub.f32 %v3946_v23, %v3994_v41  ;;  %v4212_v5 = vsub.f32 %v3952_v28, %v3994_v41  ;;  %v1874_v4 = vmul.f32 %v4186_v15, %v4186_v15 }
 0x2a4   :  { %v1876_v37 = vmul.f32 %v4190_v58, %v4190_v58  ;;  %v1873_v23 = vmul.f32 %v4196_v63, %v4196_v63  ;;  %v1875_v28 = vmul.f32 %v4200_v0, %v4200_v0  ;;  %v4234_v19 = vsub.f32 %v3949_v27, %v3994_v41  ;;  %v4800_v27 = vld [vmem:[#allocation3_spill] sm:$0xff] }
 0x2a5   :  { %3071 = vmatmul.mubr.msk.f32.vlgmr.msra.gmra.mxu0 %vm999_vm1, %v3790_v17  ;;  %3073 = vmatmul.mubr.msk.f32.vlgmr.msra.gmra.mxu1 %vm999_vm1, %v3790_v17  ;;  %4796 = vst [vmem:[#allocation6_spill] sm:$0xff] %v4212_v5  ;;  %v1898_v21 = vmul.f32 %v4208_v2, %v4208_v2  ;;  %v1900_v32 = vmul.f32 %v4212_v5, %v4212_v5 }
 0x2a6   :  { %2238 = vmatpush1.msra.mxu0 %v1889_v49  ;;  %2315 = vmatpush1.msra.mxu1 %v1891_v50  ;;  %v4238_v33 = vsub.f32 %v3958_v36, %v3994_v41  ;;  %v4246_v39 = vsub.f32 %v4798_v34, %v4020_v54  ;;  %v4250_v48 = vsub.f32 %v4799_v24, %v4020_v54  ;;  %v4801_v41 = vld [vmem:[#allocation5_spill] sm:$0xff] }
 0x2a7   :  { %2239 = vmatprep.subr.mxu0 %v1870_v52  ;;  %2316 = vmatprep.subr.mxu1 %v1872_v59  ;;  %v4256_v36 = vsub.f32 %v4800_v27, %v4020_v54  ;;  %v4260_v22 = vsub.f32 %v4801_v41, %v4020_v54  ;;  %v1897_v49 = vmul.f32 %v4234_v19, %v4234_v19 }
 0x2a8   :  { %2240 = vmatpush1.msra.mxu0 %v1869_v61  ;;  %2317 = vmatpush1.msra.mxu1 %v1871_v62  ;;  %4797 = vst [vmem:[#allocation7_spill] sm:$0xff] %v4238_v33  ;;  %v1899_v50 = vmul.f32 %v4238_v33, %v4238_v33  ;;  %v1878_v52 = vmul.f32 %v4246_v39, %v4246_v39  ;;  %v2760_v62 = vld [vmem:[%s4779_s3 + $0x8] sm:$0xff] }
 0x2a9   :  { %2125 = vmatprep.mubr.f32.mxu0 %v4795_v7  ;;  %2202 = vmatprep.mubr.f32.mxu1 %v4795_v7  ;;  %v1880_v59 = vmul.f32 %v4250_v48, %v4250_v48  ;;  %v1877_v54 = vmul.f32 %v4256_v36, %v4256_v36  ;;  %v1879_v61 = vmul.f32 %v4260_v22, %v4260_v22 }
 0x2aa   :  { %2391 = vmatprep.subr.mxu0 %v1894_v60  ;;  %2468 = vmatprep.subr.mxu1 %v1896_v46  ;;  %v2811_v60 = vld [vmem:[%s4780_s4] sm:$0xff] }
 0x2ab   :  { %3072 = vmatmul.mubr.msk.f32.gmra.mxu0 %vm999_vm1, %v3805_v20  ;;  %3074 = vmatmul.mubr.msk.f32.gmra.mxu1 %vm999_vm1, %v3805_v20 }
 0x2ac   :  { %2273 = vmatprep.mubr.f32.mxu0 %v4795_v7  ;;  %2350 = vmatprep.mubr.f32.mxu1 %v4795_v7 }
 0x2ad   :  { %2768 = vperm.xlu1 %3090, %v2760_v62  }
 0x2af   :  { %3075 = vmatmul.mubr.msk.f32.vlgmr.msra.gmra.mxu0 %vm999_vm1, %v3790_v17  ;;  %3077 = vmatmul.mubr.msk.f32.vlgmr.msra.gmra.mxu1 %vm999_vm1, %v3790_v17 }
 0x2b0   :  { %2392 = vmatpush1.msra.mxu0 %v1893_v1  ;;  %2469 = vmatpush1.msra.mxu1 %v1895_v25 }
 0x2b1   :  { %2393 = vmatprep.subr.mxu0 %v1874_v4  ;;  %2470 = vmatprep.subr.mxu1 %v1876_v37 }
 0x2b2   :  { %2394 = vmatpush1.msra.mxu0 %v1873_v23  ;;  %2471 = vmatpush1.msra.mxu1 %v1875_v28 }
 0x2b3   :  { %2279 = vmatprep.mubr.f32.mxu0 %v4795_v7  ;;  %2356 = vmatprep.mubr.f32.mxu1 %v4795_v7 }
 0x2b4   :  { %2545 = vmatprep.subr.mxu0 %v1898_v21  ;;  %2622 = vmatprep.subr.mxu1 %v1900_v32 }
 0x2b5   :  { %3076 = vmatmul.mubr.msk.f32.gmra.mxu0 %vm999_vm1, %v3805_v20  ;;  %3078 = vmatmul.mubr.msk.f32.gmra.mxu1 %vm999_vm1, %v3805_v20 }
 0x2b6   :  { %2427 = vmatprep.mubr.f32.mxu0 %v4795_v7  ;;  %2504 = vmatprep.mubr.f32.mxu1 %v4795_v7 }
 0x2b7   :  { %2815 = vperm.xlu1 %3090, %v2811_v60  }
 0x2b9   :  { %3079 = vmatmul.mubr.msk.f32.vlgmr.msra.gmra.mxu0 %vm999_vm1, %v3790_v17  ;;  %3081 = vmatmul.mubr.msk.f32.vlgmr.msra.gmra.mxu1 %vm999_vm1, %v3790_v17 }
 0x2ba   :  { %2546 = vmatpush1.msra.mxu0 %v1897_v49  ;;  %2623 = vmatpush1.msra.mxu1 %v1899_v50 }
 0x2bb   :  { %2547 = vmatprep.subr.mxu0 %v1878_v52  ;;  %2624 = vmatprep.subr.mxu1 %v1880_v59 }
 0x2bc   :  { %2548 = vmatpush1.msra.mxu0 %v1877_v54  ;;  %2625 = vmatpush1.msra.mxu1 %v1879_v61 }
 0x2bd   :  { %2433 = vmatprep.mubr.f32.mxu0 %v4795_v7  ;;  %2510 = vmatprep.mubr.f32.mxu1 %v4795_v7 }
 0x2be   :  { %3080 = vmatmul.mubr.msk.f32.gmra.mxu0 %vm999_vm1, %v3805_v20  ;;  %3082 = vmatmul.mubr.msk.f32.gmra.mxu1 %vm999_vm1, %v3805_v20 }
 0x2bf   :  { %2581 = vmatprep.mubr.f32.mxu0 %v4795_v7  ;;  %2658 = vmatprep.mubr.f32.mxu1 %v4795_v7 }
 0x2c2   :  { %3083 = vmatmul.mubr.msk.f32.vlgmr.msra.gmra.mxu0 %vm999_vm1, %v3790_v17  ;;  %3085 = vmatmul.mubr.msk.f32.vlgmr.msra.gmra.mxu1 %vm999_vm1, %v3790_v17 }
 0x2c3   :  { %2587 = vmatprep.mubr.f32.mxu0 %v4795_v7  ;;  %2664 = vmatprep.mubr.f32.mxu1 %v4795_v7 }
 0x2c6   :  { %3084 = vmatmul.mubr.msk.f32.gmra.mxu0 %vm999_vm1, %v3805_v20  ;;  %3086 = vmatmul.mubr.msk.f32.gmra.mxu1 %vm999_vm1, %v3805_v20 }
 0x35b   :  { %v1967_v17 = vpop.f32.mrf.mxu0  ;;  %v2044_v46 = vpop.f32.mrf.mxu1 }
 0x35d   :  { %v1969_v1 = vpop.f32.mrf.mxu0  ;;  %v2046_v7 = vpop.f32.mrf.mxu1 }
 0x35e   :  { %v2671_v25 = vadd.f32 %v1969_v1, %v1967_v17 }
 0x360   :  { %v2672_v4 = vadd.f32 %v2671_v25, %v2044_v46 }
 0x361   :  { %v1973_v37 = vpop.f32.mrf.mxu0  ;;  %v2050_v23 = vpop.f32.mrf.mxu1 }
 0x362   :  { %v2673_v28 = vadd.f32 %v2672_v4, %v2046_v7 }
 0x363   :  { %v1975_v20 = vpop.f32.mrf.mxu0  ;;  %v2052_v21 = vpop.f32.mrf.mxu1 }
 0x364   :  { %v2693_v32 = vadd.f32 %v1975_v20, %v1973_v37 }
 0x365   :  { %v2121_v34 = vpop.f32.mrf.mxu0  ;;  %v2198_v24 = vpop.f32.mrf.mxu1 }
 0x366   :  { %v2694_v27 = vadd.f32 %v2693_v32, %v2050_v23  ;;  %v2674_v41 = vadd.f32 %v2673_v28, %v2121_v34 }
 0x367   :  { %v2123_v49 = vpop.f32.mrf.mxu0  ;;  %v2200_v50 = vpop.f32.mrf.mxu1 }
 0x368   :  { %v2695_v52 = vadd.f32 %v2694_v27, %v2052_v21  ;;  %v2675_v59 = vadd.f32 %v2674_v41, %v2123_v49 }
 0x36a   :  { %v2676_v54 = vadd.f32 %v2675_v59, %v2198_v24 }
 0x36b   :  { %v2127_v61 = vpop.f32.mrf.mxu0  ;;  %v2204_v62 = vpop.f32.mrf.mxu1 }
 0x36c   :  { %v2696_v60 = vadd.f32 %v2695_v52, %v2127_v61  ;;  %v2677_v17 = vadd.f32 %v2676_v54, %v2200_v50 }
 0x36d   :  { %v2129_v46 = vpop.f32.mrf.mxu0  ;;  %v2206_v1 = vpop.f32.mrf.mxu1 }
 0x36e   :  { %v2697_v25 = vadd.f32 %v2696_v60, %v2129_v46 }
 0x36f   :  { %v2275_v7 = vpop.f32.mrf.mxu0  ;;  %v2352_v4 = vpop.f32.mrf.mxu1 }
 0x370   :  { %v2698_v5 = vadd.f32 %v2697_v25, %v2204_v62  ;;  %v2678_v37 = vadd.f32 %v2677_v17, %v2275_v7 }
 0x371   :  { %v2277_v20 = vpop.f32.mrf.mxu0  ;;  %v2354_v33 = vpop.f32.mrf.mxu1 }
 0x372   :  { %v2699_v23 = vadd.f32 %v2698_v5, %v2206_v1  ;;  %v2679_v28 = vadd.f32 %v2678_v37, %v2277_v20 }
 0x374   :  { %v2680_v32 = vadd.f32 %v2679_v28, %v2352_v4 }
 0x375   :  { %v2281_v34 = vpop.f32.mrf.mxu0  ;;  %v2358_v21 = vpop.f32.mrf.mxu1 }
 0x376   :  { %v2700_v27 = vadd.f32 %v2699_v23, %v2281_v34  ;;  %v2681_v24 = vadd.f32 %v2680_v32, %v2354_v33 }
 0x377   :  { %v2283_v41 = vpop.f32.mrf.mxu0  ;;  %v2360_v49 = vpop.f32.mrf.mxu1 }
 0x378   :  { %v2701_v52 = vadd.f32 %v2700_v27, %v2283_v41 }
 0x379   :  { %v2429_v50 = vpop.f32.mrf.mxu0  ;;  %v2506_v59 = vpop.f32.mrf.mxu1 }
 0x37a   :  { %v2702_v54 = vadd.f32 %v2701_v52, %v2358_v21  ;;  %v2682_v61 = vadd.f32 %v2681_v24, %v2429_v50 }
 0x37b   :  { %v2431_v60 = vpop.f32.mrf.mxu0  ;;  %v2508_v46 = vpop.f32.mrf.mxu1 }
 0x37c   :  { %v2703_v62 = vadd.f32 %v2702_v54, %v2360_v49  ;;  %v2683_v17 = vadd.f32 %v2682_v61, %v2431_v60 }
 0x37e   :  { %v2684_v25 = vadd.f32 %v2683_v17, %v2506_v59  ;;  %v2435_v7 = vpop.f32.mrf.mxu0  ;;  %v2512_v5 = vpop.f32.mrf.mxu1 }
 0x37f   :  { %v2704_v1 = vadd.f32 %v2703_v62, %v2435_v7 }
 0x380   :  { %v2685_v4 = vadd.f32 %v2684_v25, %v2508_v46  ;;  %v2437_v37 = vpop.f32.mrf.mxu0  ;;  %v2514_v20 = vpop.f32.mrf.mxu1 }
 0x381   :  { %v2705_v23 = vadd.f32 %v2704_v1, %v2437_v37  ;;  %v4307_v1 = vpop.permute.xlu1 %2763 }
 0x382   :  { %v2583_v33 = vpop.f32.mrf.mxu0  ;;  %v2660_v28 = vpop.f32.mrf.mxu1 }
 0x383   :  { %v2706_v32 = vadd.f32 %v2705_v23, %v2512_v5  ;;  %v2686_v34 = vadd.f32 %v2685_v4, %v2583_v33  ;;  %v2812_v5 = vld [vmem:[%s4780_s4 + $0x8] sm:$0xff] }
 0x384   :  { %v2585_v27 = vpop.f32.mrf.mxu0  ;;  %v2662_v41 = vpop.f32.mrf.mxu1 }
 0x385   :  { %v2707_v21 = vadd.f32 %v2706_v32, %v2514_v20  ;;  %v2687_v24 = vadd.f32 %v2686_v34, %v2585_v27  ;;  %v2689_v59 = vsel %vm1794_vm2, %v2662_v41, 0.0  ;;  %v4309_v4 = vpop.permute.xlu1 %2768 }
 0x386   :  { %v2589_v52 = vpop.f32.mrf.mxu0  ;;  %v2666_v50 = vpop.f32.mrf.mxu1 }
 0x387   :  { %v2688_v49 = vadd.f32 %v2687_v24, %v2660_v28  ;;  %v2708_v54 = vadd.f32 %v2707_v21, %v2589_v52 }
 0x388   :  { %v2591_v61 = vpop.f32.mrf.mxu0  ;;  %v2668_v46 = vpop.f32.mrf.mxu1 }
 0x389   :  { %v2709_v60 = vadd.f32 %v2708_v54, %v2591_v61  ;;  %v2690_v62 = vadd.f32 %v2689_v59, %v2688_v49  ;;  %v2711_v25 = vsel %vm1794_vm2, %v2668_v46, 0.0  ;;  %v4311_v37 = vpop.permute.xlu1 %2815  ;;  %v4803_v46 = vld [vmem:[#allocation6_spill] sm:$0xff] }
 0x38b   :  { %v2710_v17 = vadd.f32 %v2709_v60, %v2666_v50  ;;  %2691 = vadd.xlane.f32.xlu0 %v2690_v62  ;;  %v4802_v60 = vld [vmem:[#allocation7_spill] sm:$0xff] }
 0x38d   :  { %v2712_v7 = vadd.f32 %v2711_v25, %v2710_v17 }
 0x38f   :  { %2713 = vadd.xlane.f32.xlu1 %v2712_v7 }
 0x3a0   :  { %2820 = vperm.xlu1 %3090, %v2812_v5  }
 0x414   :  { %v2692_v20 = vpop.xlane.xlu0 %2691 }
 0x415   :  { %v2715_v23 = vadd.f32 1e-05, %v2692_v20 }
 0x417   :  { %3091 = vrsqrt.f32 %v2715_v23 }
 0x418   :  { %v2714_v33 = vpop.xlane.xlu1 %2713 }
 0x419   :  { %v2716_v28 = vadd.f32 1e-05, %v2714_v33 }
 0x41b   :  { %3093 = vrsqrt.f32 %v2716_v28 }
 0x424   :  { %v3092_v32 = vpop.eup %3091 }
 0x425   :  { %v2719_v34 = vmul.f32 %v3092_v32, %v4040_v18  ;;  %v2720_v27 = vmul.f32 %v3092_v32, %v4032_v57  ;;  %v2721_v41 = vmul.f32 %v3092_v32, %v4044_v29  ;;  %v2722_v21 = vmul.f32 %v3092_v32, %v4036_v6 }
 0x426   :  { %v2723_v24 = vmul.f32 %v3092_v32, %v4076_v31  ;;  %v2724_v52 = vmul.f32 %v3092_v32, %v4062_v16  ;;  %v2725_v50 = vmul.f32 %v3092_v32, %v4080_v3  ;;  %v2726_v49 = vmul.f32 %v3092_v32, %v4068_v26 }
 0x427   :  { %v2727_v54 = vmul.f32 %v3092_v32, %v4134_v43  ;;  %v2728_v59 = vmul.f32 %v3092_v32, %v4126_v42  ;;  %v2729_v18 = vmul.f32 %v3092_v32, %v4138_v44  ;;  %v2730_v57 = vmul.f32 %v3092_v32, %v4130_v8 }
 0x428   :  { %v3094_v61 = vpop.eup %3093  ;;  %v2731_v29 = vmul.f32 %v3092_v32, %v4196_v63  ;;  %v2732_v6 = vmul.f32 %v3092_v32, %v4186_v15  ;;  %v2733_v31 = vmul.f32 %v3092_v32, %v4200_v0  ;;  %v2734_v16 = vmul.f32 %v3092_v32, %v4190_v58 }
 0x429   :  { %v2735_v3 = vmul.f32 %v3092_v32, %v4256_v36  ;;  %v2736_v26 = vmul.f32 %v3092_v32, %v4246_v39  ;;  %v2737_v43 = vmul.f32 %v3092_v32, %v4260_v22  ;;  %v2738_v42 = vmul.f32 %v3092_v32, %v4250_v48 }
 0x42a   :  { %v2739_v44 = vmul.f32 %v3094_v61, %v4006_v53  ;;  %v2740_v8 = vmul.f32 %v3094_v61, %v3998_v55  ;;  %v2741_v63 = vmul.f32 %v3094_v61, %v4010_v45  ;;  %v2742_v15 = vmul.f32 %v3094_v61, %v4002_v56 }
 0x42b   :  { %v2743_v0 = vmul.f32 %v3094_v61, %v4048_v30  ;;  %v2744_v58 = vmul.f32 %v3094_v61, %v4024_v9  ;;  %v2745_v36 = vmul.f32 %v3094_v61, %v4052_v13  ;;  %v2746_v39 = vmul.f32 %v3094_v61, %v4028_v10 }
 0x42c   :  { %v2747_v22 = vmul.f32 %v3094_v61, %v4110_v47  ;;  %v2748_v48 = vmul.f32 %v3094_v61, %v4096_v40  ;;  %v2749_v53 = vmul.f32 %v3094_v61, %v4118_v12  ;;  %v2750_v55 = vmul.f32 %v3094_v61, %v4100_v38 }
 0x42d   :  { %v2751_v45 = vmul.f32 %v3094_v61, %v4174_v11  ;;  %v2752_v56 = vmul.f32 %v3094_v61, %v4148_v35  ;;  %v2753_v30 = vmul.f32 %v3094_v61, %v4178_v14  ;;  %v2754_v9 = vmul.f32 %v3094_v61, %v4152_v51 }
 0x42e   :  { %v2755_v13 = vmul.f32 %v3094_v61, %v4234_v19  ;;  %v2756_v10 = vmul.f32 %v3094_v61, %v4208_v2  ;;  %v2757_v47 = vmul.f32 %v3094_v61, %v4802_v60  ;;  %v2758_v40 = vmul.f32 %v3094_v61, %v4803_v46 }
 0x42f   :  { %v2771_v12 = vmul.f32 %v4307_v1, %v2719_v34  ;;  %v2772_v38 = vmul.f32 %v4307_v1, %v2720_v27  ;;  %v2773_v11 = vmul.f32 %v4307_v1, %v2721_v41  ;;  %v2774_v35 = vmul.f32 %v4307_v1, %v2722_v21 }
 0x430   :  { %v2775_v14 = vmul.f32 %v4307_v1, %v2723_v24  ;;  %v2776_v51 = vmul.f32 %v4307_v1, %v2724_v52  ;;  %v2777_v19 = vmul.f32 %v4307_v1, %v2725_v50  ;;  %v2778_v2 = vmul.f32 %v4307_v1, %v2726_v49 }
 0x431   :  { %v2779_v62 = vmul.f32 %v4307_v1, %v2727_v54  ;;  %v2780_v17 = vmul.f32 %v4307_v1, %v2728_v59  ;;  %v2781_v25 = vmul.f32 %v4307_v1, %v2729_v18  ;;  %v2782_v7 = vmul.f32 %v4307_v1, %v2730_v57 }
 0x432   :  { %v2783_v5 = vmul.f32 %v4307_v1, %v2731_v29  ;;  %v2784_v20 = vmul.f32 %v4307_v1, %v2732_v6  ;;  %v2785_v23 = vmul.f32 %v4307_v1, %v2733_v31  ;;  %v2786_v33 = vmul.f32 %v4307_v1, %v2734_v16 }
 0x433   :  { %v2787_v28 = vmul.f32 %v4307_v1, %v2735_v3  ;;  %v2788_v32 = vmul.f32 %v4307_v1, %v2736_v26  ;;  %v2789_v34 = vmul.f32 %v4307_v1, %v2737_v43  ;;  %v2790_v27 = vmul.f32 %v4307_v1, %v2738_v42 }
 0x434   :  { %v4374_v41 = vmul.f32 %v4309_v4, %v2739_v44  ;;  %v4377_v21 = vmul.f32 %v4309_v4, %v2740_v8  ;;  %v4380_v24 = vmul.f32 %v4309_v4, %v2741_v63  ;;  %v4383_v52 = vmul.f32 %v4309_v4, %v2742_v15 }
 0x435   :  { %v4386_v50 = vmul.f32 %v4309_v4, %v2743_v0  ;;  %v4389_v49 = vmul.f32 %v4309_v4, %v2744_v58  ;;  %v4392_v1 = vmul.f32 %v4309_v4, %v2745_v36  ;;  %v4395_v54 = vmul.f32 %v4309_v4, %v2746_v39 }
 0x436   :  { %v4398_v59 = vmul.f32 %v4309_v4, %v2747_v22  ;;  %v4401_v18 = vmul.f32 %v4309_v4, %v2748_v48  ;;  %v4404_v57 = vmul.f32 %v4309_v4, %v2749_v53  ;;  %v4407_v61 = vmul.f32 %v4309_v4, %v2750_v55 }
 0x437   :  { %v4410_v29 = vmul.f32 %v4309_v4, %v2751_v45  ;;  %v4413_v6 = vmul.f32 %v4309_v4, %v2752_v56  ;;  %v4416_v31 = vmul.f32 %v4309_v4, %v2753_v30  ;;  %v4419_v16 = vmul.f32 %v4309_v4, %v2754_v9 }
 0x438   :  { %v4422_v3 = vmul.f32 %v4309_v4, %v2755_v13  ;;  %v4425_v26 = vmul.f32 %v4309_v4, %v2756_v10  ;;  %v4428_v43 = vmul.f32 %v4309_v4, %v2757_v47  ;;  %v4431_v42 = vmul.f32 %v4309_v4, %v2758_v40 }
 0x439   :  { %v2823_v44 = vadd.f32 %v4311_v37, %v2771_v12  ;;  %v2824_v8 = vadd.f32 %v4311_v37, %v2772_v38  ;;  %v2825_v63 = vadd.f32 %v4311_v37, %v2773_v11  ;;  %v2826_v15 = vadd.f32 %v4311_v37, %v2774_v35  ;;  %v2903_v38 = vld [vmem:[%s4781_s6] sm:$0xff]  ;;  %v2904_v11 = vld [vmem:[%s4781_s6 + $0x8] sm:$0xff]  ;;  %v2905_v35 = vld [vmem:[%s4781_s6 + $0x10] sm:$0xff] }
 0x43a   :  { %4804 = vst [vmem:[#allocation2_spill] sm:$0xff] %v4422_v3  ;;  %4805 = vst [vmem:[#allocation4_spill] sm:$0xff] %v4425_v26  ;;  %v4438_v0 = vadd.f32 %v4311_v37, %v2775_v14  ;;  %v4441_v58 = vadd.f32 %v4311_v37, %v2776_v51  ;;  %v4444_v36 = vadd.f32 %v4311_v37, %v2777_v19 }
 0x43b   :  { %4806 = vst [vmem:[#allocation3_spill] sm:$0xff] %v4428_v43  ;;  %4807 = vst [vmem:[#allocation5_spill] sm:$0xff] %v4431_v42  ;;  %v4447_v4 = vadd.f32 %v4311_v37, %v2778_v2  ;;  %v2831_v39 = vadd.f32 %v4311_v37, %v2779_v62  ;;  %v2832_v22 = vadd.f32 %v4311_v37, %v2780_v17  ;;  %v2863_v47 = vmax.f32 %v2823_v44, 0.0  ;;  %v2907_v62 = vld [vmem:[%s4781_s6 + $0x20] sm:$0xff]  ;;  %v2908_v17 = vld [vmem:[%s4781_s6 + $0x28] sm:$0xff] }
 0x43c   :  { %v2833_v48 = vadd.f32 %v4311_v37, %v2781_v25  ;;  %v2834_v53 = vadd.f32 %v4311_v37, %v2782_v7  ;;  %v4454_v55 = vadd.f32 %v4311_v37, %v2783_v5  ;;  %v4457_v45 = vadd.f32 %v4311_v37, %v2784_v20  ;;  %v2909_v25 = vld [vmem:[%s4781_s6 + $0x30] sm:$0xff]  ;;  %v2910_v7 = vld [vmem:[%s4781_s6 + $0x38] sm:$0xff] }
 0x43d   :  { %v4460_v56 = vadd.f32 %v4311_v37, %v2785_v23  ;;  %v4463_v30 = vadd.f32 %v4311_v37, %v2786_v33  ;;  %v4466_v9 = vadd.f32 %v4311_v37, %v2787_v28  ;;  %v4469_v13 = vadd.f32 %v4311_v37, %v2788_v32  ;;  %v2911_v28 = vld [vmem:[%s4781_s6 + $0x40] sm:$0xff]  ;;  %v2912_v32 = vld [vmem:[%s4781_s6 + $0x48] sm:$0xff] }
 0x43e   :  { %v4472_v10 = vadd.f32 %v4311_v37, %v2789_v34  ;;  %v4475_v60 = vadd.f32 %v4311_v37, %v2790_v27  ;;  %v2864_v46 = vmax.f32 %v2824_v8, 0.0  ;;  %v2865_v40 = vmax.f32 %v2825_v63, 0.0  ;;  %v2906_v37 = vld [vmem:[%s4781_s6 + $0x18] sm:$0xff]  ;;  %v2913_v63 = vld [vmem:[%s4781_s6 + $0x50] sm:$0xff] }
 0x43f   :  { %v2866_v12 = vmax.f32 %v2826_v15, 0.0  ;;  %v2867_v14 = vmax.f32 %v4438_v0, 0.0  ;;  %v2868_v51 = vmax.f32 %v4441_v58, 0.0  ;;  %v2869_v19 = vmax.f32 %v4444_v36, 0.0  ;;  %v2914_v15 = vld [vmem:[%s4781_s6 + $0x58] sm:$0xff] }
 0x440   :  { %v2870_v2 = vmax.f32 %v4447_v4, 0.0  ;;  %v2871_v5 = vmax.f32 %v2831_v39, 0.0  ;;  %v2872_v20 = vmax.f32 %v2832_v22, 0.0  ;;  %v2873_v23 = vmax.f32 %v2833_v48, 0.0  ;;  %v2915_v39 = vld [vmem:[%s4781_s6 + $0x60] sm:$0xff]  ;;  %v2916_v22 = vld [vmem:[%s4781_s6 + $0x68] sm:$0xff] }
 0x441   :  { %v2874_v33 = vmax.f32 %v2834_v53, 0.0  ;;  %v2875_v34 = vmax.f32 %v4454_v55, 0.0  ;;  %v2876_v27 = vmax.f32 %v4457_v45, 0.0  ;;  %v2877_v44 = vmax.f32 %v4460_v56, 0.0  ;;  %v2917_v48 = vld [vmem:[%s4781_s6 + $0x70] sm:$0xff]  ;;  %v2918_v53 = vld [vmem:[%s4781_s6 + $0x78] sm:$0xff] }
 0x442   :  { %v2878_v8 = vmax.f32 %v4463_v30, 0.0  ;;  %v2879_v0 = vmax.f32 %v4466_v9, 0.0  ;;  %v2880_v58 = vmax.f32 %v4469_v13, 0.0  ;;  %v2881_v36 = vmax.f32 %v4472_v10, 0.0  ;;  %v2919_v55 = vld [vmem:[%s4781_s6 + $0x80] sm:$0xff]  ;;  %v2920_v13 = vld [vmem:[%s4781_s6 + $0x88] sm:$0xff] }
 0x443   :  { %v2882_v4 = vmax.f32 %v4475_v60, 0.0  ;;  %v2943_v45 = vadd.f32 %v2903_v38, %v2863_v47  ;;  %v2944_v56 = vadd.f32 %v2904_v11, %v2864_v46  ;;  %v2945_v30 = vadd.f32 %v2905_v35, %v2865_v40  ;;  %v2921_v10 = vld [vmem:[%s4781_s6 + $0x90] sm:$0xff]  ;;  %v2922_v60 = vld [vmem:[%s4781_s6 + $0x98] sm:$0xff] }
 0x444   :  { %v2946_v9 = vadd.f32 %v2906_v37, %v2866_v12  ;;  %v2947_v42 = vadd.f32 %v2907_v62, %v2867_v14  ;;  %v2948_v43 = vadd.f32 %v2908_v17, %v2868_v51  ;;  %v2949_v26 = vadd.f32 %v2909_v25, %v2869_v19 }
 0x445   :  { %v2950_v3 = vadd.f32 %v2910_v7, %v2870_v2  ;;  %v2951_v47 = vadd.f32 %v2911_v28, %v2871_v5  ;;  %v2952_v46 = vadd.f32 %v2912_v32, %v2872_v20  ;;  %v2953_v40 = vadd.f32 %v2913_v63, %v2873_v23  ;;  %2983 = vst [vmem:[%s4782_s7] sm:$0xff] %v2943_v45  ;;  %v2926_v28 = vld [vmem:[%s4781_s6 + $0xb8] sm:$0xff]  ;;  %v2928_v63 = vld [vmem:[%s4781_s6 + $0xc8] sm:$0xff] }
 0x446   :  { %v2954_v12 = vadd.f32 %v2914_v15, %v2874_v33  ;;  %2984 = vst [vmem:[%s4782_s7 + $0x8] sm:$0xff] %v2944_v56  ;;  %2985 = vst [vmem:[%s4782_s7 + $0x10] sm:$0xff] %v2945_v30  ;;  %v2955_v38 = vadd.f32 %v2915_v39, %v2875_v34  ;;  %v2956_v11 = vadd.f32 %v2916_v22, %v2876_v27  ;;  %v2929_v15 = vld [vmem:[%s4781_s6 + $0xd0] sm:$0xff]  ;;  %v2931_v22 = vld [vmem:[%s4781_s6 + $0xe0] sm:$0xff] }
 0x447   :  { %2986 = vst [vmem:[%s4782_s7 + $0x18] sm:$0xff] %v2946_v9  ;;  %v2957_v35 = vadd.f32 %v2917_v48, %v2877_v44  ;;  %v2958_v37 = vadd.f32 %v2918_v53, %v2878_v8  ;;  %2987 = vst [vmem:[%s4782_s7 + $0x20] sm:$0xff] %v2947_v42  ;;  %v2959_v14 = vadd.f32 %v2919_v55, %v2879_v0  ;;  %v2927_v8 = vld [vmem:[%s4781_s6 + $0xc0] sm:$0xff]  ;;  %v2930_v0 = vld [vmem:[%s4781_s6 + $0xd8] sm:$0xff] }
 0x448   :  { %2988 = vst [vmem:[%s4782_s7 + $0x28] sm:$0xff] %v2948_v43  ;;  %2989 = vst [vmem:[%s4782_s7 + $0x30] sm:$0xff] %v2949_v26  ;;  %v2960_v51 = vadd.f32 %v2920_v13, %v2880_v58  ;;  %v2961_v19 = vadd.f32 %v2921_v10, %v2881_v36  ;;  %v2962_v2 = vadd.f32 %v2922_v60, %v2882_v4  ;;  %v2932_v48 = vld [vmem:[%s4781_s6 + $0xe8] sm:$0xff]  ;;  %v2933_v30 = vld [vmem:[%s4781_s6 + $0xf0] sm:$0xff] }
 0x449   :  { %2990 = vst [vmem:[%s4782_s7 + $0x38] sm:$0xff] %v2950_v3  ;;  %2991 = vst [vmem:[%s4782_s7 + $0x40] sm:$0xff] %v2951_v47  ;;  %v2821_v3 = vpop.permute.xlu1 %2820  ;;  %v2934_v9 = vld [vmem:[%s4781_s6 + $0xf8] sm:$0xff] }
 0x44a   :  { %2992 = vst [vmem:[%s4782_s7 + $0x48] sm:$0xff] %v2952_v46  ;;  %2993 = vst [vmem:[%s4782_s7 + $0x50] sm:$0xff] %v2953_v40  ;;  %v2843_v26 = vadd.f32 %v2821_v3, %v4374_v41  ;;  %v2844_v43 = vadd.f32 %v2821_v3, %v4377_v21  ;;  %v2845_v42 = vadd.f32 %v2821_v3, %v4380_v24  ;;  %v2935_v46 = vld [vmem:[%s4781_s6 + $0x100] sm:$0xff]  ;;  %v2936_v40 = vld [vmem:[%s4781_s6 + $0x108] sm:$0xff] }
 0x44b   :  { %2994 = vst [vmem:[%s4782_s7 + $0x58] sm:$0xff] %v2954_v12  ;;  %2995 = vst [vmem:[%s4782_s7 + $0x60] sm:$0xff] %v2955_v38  ;;  %v2846_v62 = vadd.f32 %v2821_v3, %v4383_v52  ;;  %v2847_v41 = vadd.f32 %v2821_v3, %v4386_v50  ;;  %v2848_v21 = vadd.f32 %v2821_v3, %v4389_v49 }
 0x44c   :  { %2996 = vst [vmem:[%s4782_s7 + $0x68] sm:$0xff] %v2956_v11  ;;  %2997 = vst [vmem:[%s4782_s7 + $0x70] sm:$0xff] %v2957_v35  ;;  %v2849_v24 = vadd.f32 %v2821_v3, %v4392_v1  ;;  %v2850_v52 = vadd.f32 %v2821_v3, %v4395_v54  ;;  %v2851_v17 = vadd.f32 %v2821_v3, %v4398_v59  ;;  %v4808_v1 = vld [vmem:[#allocation2_spill] sm:$0xff]  ;;  %v4809_v59 = vld [vmem:[#allocation4_spill] sm:$0xff]  ;;  %v2883_v32 = vmax.f32 %v2843_v26, 0.0 }
 0x44d   :  { %2998 = vst [vmem:[%s4782_s7 + $0x78] sm:$0xff] %v2958_v37  ;;  %2999 = vst [vmem:[%s4782_s7 + $0x80] sm:$0xff] %v2959_v14  ;;  %v2852_v25 = vadd.f32 %v2821_v3, %v4401_v18  ;;  %v2853_v7 = vadd.f32 %v2821_v3, %v4404_v57  ;;  %v2854_v5 = vadd.f32 %v2821_v3, %v4407_v61  ;;  %v4810_v57 = vld [vmem:[#allocation3_spill] sm:$0xff]  ;;  %v2884_v34 = vmax.f32 %v2844_v43, 0.0  ;;  %v2937_v37 = vld [vmem:[%s4781_s6 + $0x110] sm:$0xff] }
 0x44e   :  { %3000 = vst [vmem:[%s4782_s7 + $0x88] sm:$0xff] %v2960_v51  ;;  %3001 = vst [vmem:[%s4782_s7 + $0x90] sm:$0xff] %v2961_v19  ;;  %v4623_v20 = vadd.f32 %v2821_v3, %v4410_v29  ;;  %v4626_v23 = vadd.f32 %v2821_v3, %v4413_v6  ;;  %v4629_v50 = vadd.f32 %v2821_v3, %v4416_v31  ;;  %v4811_v29 = vld [vmem:[#allocation5_spill] sm:$0xff]  ;;  %v2923_v6 = vld [vmem:[%s4781_s6 + $0xa0] sm:$0xff]  ;;  %v2885_v27 = vmax.f32 %v2845_v42, 0.0 }
 0x44f   :  { %3002 = vst.msk [vmem:[%s4782_s7 + $0x98] sm:$0xff] %vm1794_vm2, %v2962_v2  ;;  %v4632_v49 = vadd.f32 %v2821_v3, %v4419_v16  ;;  %v4635_v54 = vadd.f32 %v2821_v3, %v4808_v1  ;;  %v4638_v18 = vadd.f32 %v2821_v3, %v4809_v59  ;;  %v4641_v61 = vadd.f32 %v2821_v3, %v4810_v57  ;;  %v2924_v31 = vld [vmem:[%s4781_s6 + $0xa8] sm:$0xff]  ;;  %v2925_v16 = vld [vmem:[%s4781_s6 + $0xb0] sm:$0xff]  ;;  %v2938_v14 = vld [vmem:[%s4781_s6 + $0x118] sm:$0xff] }
 0x450   :  { %v4644_v33 = vadd.f32 %v2821_v3, %v4811_v29  ;;  %v2886_v44 = vmax.f32 %v2846_v62, 0.0  ;;  %v2887_v58 = vmax.f32 %v2847_v41, 0.0  ;;  %v2888_v36 = vmax.f32 %v2848_v21, 0.0  ;;  %v2939_v51 = vld [vmem:[%s4781_s6 + $0x120] sm:$0xff]  ;;  %v2940_v43 = vld [vmem:[%s4781_s6 + $0x128] sm:$0xff]  ;;  %v2941_v42 = vld [vmem:[%s4781_s6 + $0x130] sm:$0xff] }
 0x451   :  { %v2889_v4 = vmax.f32 %v2849_v24, 0.0  ;;  %v2890_v39 = vmax.f32 %v2850_v52, 0.0  ;;  %v2891_v53 = vmax.f32 %v2851_v17, 0.0  ;;  %v2892_v55 = vmax.f32 %v2852_v25, 0.0  ;;  %v2942_v62 = vld [vmem:[%s4781_s6 + $0x138] sm:$0xff] }
 0x452   :  { %v2893_v45 = vmax.f32 %v2853_v7, 0.0  ;;  %v2894_v56 = vmax.f32 %v2854_v5, 0.0  ;;  %v2895_v13 = vmax.f32 %v4623_v20, 0.0  ;;  %v2896_v10 = vmax.f32 %v4626_v23, 0.0 }
 0x453   :  { %v2897_v60 = vmax.f32 %v4629_v50, 0.0  ;;  %v2898_v47 = vmax.f32 %v4632_v49, 0.0  ;;  %v2899_v12 = vmax.f32 %v4635_v54, 0.0  ;;  %v2900_v38 = vmax.f32 %v4638_v18, 0.0 }
 0x454   :  { %v2901_v11 = vmax.f32 %v4641_v61, 0.0  ;;  %v2902_v35 = vmax.f32 %v4644_v33, 0.0  ;;  %v2963_v19 = vadd.f32 %v2923_v6, %v2883_v32  ;;  %v2964_v2 = vadd.f32 %v2924_v31, %v2884_v34 }
 0x455   :  { %v2965_v3 = vadd.f32 %v2925_v16, %v2885_v27  ;;  %v2966_v26 = vadd.f32 %v2926_v28, %v2886_v44  ;;  %v2967_v41 = vadd.f32 %v2927_v8, %v2887_v58  ;;  %v2968_v21 = vadd.f32 %v2928_v63, %v2888_v36 }
 0x456   :  { %v2969_v24 = vadd.f32 %v2929_v15, %v2889_v4  ;;  %v2970_v52 = vadd.f32 %v2930_v0, %v2890_v39  ;;  %v2971_v17 = vadd.f32 %v2931_v22, %v2891_v53  ;;  %v2972_v25 = vadd.f32 %v2932_v48, %v2892_v55  ;;  %3003 = vst [vmem:[%s4782_s7 + $0xa0] sm:$0xff] %v2963_v19 }
 0x457   :  { %v2973_v7 = vadd.f32 %v2933_v30, %v2893_v45  ;;  %v2974_v5 = vadd.f32 %v2934_v9, %v2894_v56  ;;  %3004 = vst [vmem:[%s4782_s7 + $0xa8] sm:$0xff] %v2964_v2  ;;  %3005 = vst [vmem:[%s4782_s7 + $0xb0] sm:$0xff] %v2965_v3  ;;  %v2975_v20 = vadd.f32 %v2935_v46, %v2895_v13 }
 0x458   :  { %3006 = vst [vmem:[%s4782_s7 + $0xb8] sm:$0xff] %v2966_v26  ;;  %v2976_v23 = vadd.f32 %v2936_v40, %v2896_v10  ;;  %v2977_v50 = vadd.f32 %v2937_v37, %v2897_v60  ;;  %v2978_v49 = vadd.f32 %v2938_v14, %v2898_v47  ;;  %3007 = vst [vmem:[%s4782_s7 + $0xc0] sm:$0xff] %v2967_v41 }
 0x459   :  { %3008 = vst [vmem:[%s4782_s7 + $0xc8] sm:$0xff] %v2968_v21  ;;  %3009 = vst [vmem:[%s4782_s7 + $0xd0] sm:$0xff] %v2969_v24  ;;  %v2979_v1 = vadd.f32 %v2939_v51, %v2899_v12  ;;  %v2980_v54 = vadd.f32 %v2940_v43, %v2900_v38  ;;  %v2981_v59 = vadd.f32 %v2941_v42, %v2901_v11 }
 0x45a   :  { %3010 = vst [vmem:[%s4782_s7 + $0xd8] sm:$0xff] %v2970_v52  ;;  %v2982_v18 = vadd.f32 %v2942_v62, %v2902_v35  ;;  %3011 = vst [vmem:[%s4782_s7 + $0xe0] sm:$0xff] %v2971_v17 }
 0x45b   :  { %3012 = vst [vmem:[%s4782_s7 + $0xe8] sm:$0xff] %v2972_v25  ;;  %3013 = vst [vmem:[%s4782_s7 + $0xf0] sm:$0xff] %v2973_v7 }
 0x45c   :  { %3014 = vst [vmem:[%s4782_s7 + $0xf8] sm:$0xff] %v2974_v5  ;;  %3015 = vst [vmem:[%s4782_s7 + $0x100] sm:$0xff] %v2975_v20 }
 0x45d   :  { %3016 = vst [vmem:[%s4782_s7 + $0x108] sm:$0xff] %v2976_v23  ;;  %3017 = vst [vmem:[%s4782_s7 + $0x110] sm:$0xff] %v2977_v50 }
 0x45e   :  { %3018 = vst [vmem:[%s4782_s7 + $0x118] sm:$0xff] %v2978_v49  ;;  %3019 = vst [vmem:[%s4782_s7 + $0x120] sm:$0xff] %v2979_v1 }
 0x45f   :  { %3020 = vst [vmem:[%s4782_s7 + $0x128] sm:$0xff] %v2980_v54  ;;  %3021 = vst [vmem:[%s4782_s7 + $0x130] sm:$0xff] %v2981_v59 }
 0x460   :  { %3022 = vst.msk [vmem:[%s4782_s7 + $0x138] sm:$0xff] %vm1794_vm2, %v2982_v18 }

// kernel: _lambda_.11
= control target key start
LH: loop header
LB: loop body
LE: loop exit
PB: predicated region body
PF: predicated region fallthrough
CT: control target
= control target key end

     0   :  { %s1560_s12 = smov 0   ;;  %s1562_s13 = smov 0   ;;  %s2010_s0 = inlined_call_operand.vmem [shape: f32[36,10240], index: 0, kind: input, shape index: {}]   ;;  %s2011_s1 = inlined_call_operand.vmem [shape: f32[4,36], index: 1, kind: input, shape index: {}]   ;;  %s2012_s2 = inlined_call_operand.vmem [shape: f32[4,1], index: 2, kind: input, shape index: {}]   ;;  %s2013_s3 = inlined_call_operand.vmem [shape: f32[4,10240], index: 3, kind: output, shape index: {}]  }
   0x1   :  { %s1564_s14 = smov 0  }
   0x2 LB: > { %s1405_s15 = sadd.s32 4294967295, %s1536_s14   ;;  %s1577_s16 = sadd.s32 1, %s1536_s14   ;;  %s1536_s14 = sphi %s1564_s14, %s2016_s14   ;;  %s1532_s13 = sphi %s1562_s13, %s2015_s13   ;;  %s1528_s12 = sphi %s1560_s12, %s2014_s12  }
   0x3   : > { %s17_s17 = ssub.s32 %s1536_s14, %s1577_s16  ;;  %s20_s18 = sadd.s32 1, %s1532_s13 }
   0x4   : > { %p18_p0 = scmp.eq.s32.totalorder %s17_s17, 0  ;;  %p27_p1 = scmp.ne.s32.totalorder %s1532_s13, %s1528_s12 }
   0x5   : > { %p28_p2 = scmp.eq.s32.totalorder %s1536_s14, 0  ;;  %p1408_p4 = scmp.ge.s32.totalorder %s1536_s14, 4 }
   0x6   : > { %s1586_s19 = scalar_select %p18_p0, %s1532_s13, %s20_s18  }
   0x7   : > { %p29_p3 = por %p28_p2, %p27_p1  ;;  %127 = sbr.rel (%p1408_p4) target bundleno = 67 (0x43), region = 24 }
   0xc   : > { %130 = sbr.rel (!%p29_p3) target bundleno = 67 (0x43), region = 28  ;;  %s132_s20 = sand.u32 (%p29_p3), 1, %s1532_s13  }
   0xd   : > { %s1444_s21 = smul.u32 (%p29_p3), 160, %s1536_s14 }
   0xe   : > { %s1445_s22 = smul.u32 (%p29_p3), 800, %s132_s20 }
   0xf   : > { %s1594_s25 = scalar_lea.vmem (%p29_p3), %s2010_s0, %s1444_s21 }
  0x10   : > { %v150_v0 = vld [vmem:[%s1594_s25] sm:$0xff] (%p29_p3)  ;;  %v152_v1 = vld [vmem:[%s1594_s25 + $0x8] sm:$0xff] (%p29_p3)  ;;  %v154_v2 = vld [vmem:[%s1594_s25 + $0x10] sm:$0xff] (%p29_p3)  ;;  %s1599_s26 = scalar_lea.vmem (%p29_p3), [#allocation2], %s1445_s22 }
  0x11   : > { %151 = vst [vmem:[%s1599_s26] sm:$0xff] %v150_v0  ;;  %153 = vst [vmem:[%s1599_s26 + $0x8] sm:$0xff] %v152_v1  ;;  %v156_v3 = vld [vmem:[%s1594_s25 + $0x18] sm:$0xff]  ;;  %v158_v4 = vld [vmem:[%s1594_s25 + $0x20] sm:$0xff] }
  0x12   : > { %155 = vst [vmem:[%s1599_s26 + $0x10] sm:$0xff] %v154_v2  ;;  %v160_v5 = vld [vmem:[%s1594_s25 + $0x28] sm:$0xff]  ;;  %157 = vst [vmem:[%s1599_s26 + $0x18] sm:$0xff] %v156_v3  ;;  %v162_v6 = vld [vmem:[%s1594_s25 + $0x30] sm:$0xff] }
  0x13   : > { %159 = vst [vmem:[%s1599_s26 + $0x20] sm:$0xff] %v158_v4  ;;  %161 = vst [vmem:[%s1599_s26 + $0x28] sm:$0xff] %v160_v5  ;;  %v164_v7 = vld [vmem:[%s1594_s25 + $0x38] sm:$0xff]  ;;  %v166_v8 = vld [vmem:[%s1594_s25 + $0x40] sm:$0xff] }
  0x14   : > { %163 = vst [vmem:[%s1599_s26 + $0x30] sm:$0xff] %v162_v6  ;;  %165 = vst [vmem:[%s1599_s26 + $0x38] sm:$0xff] %v164_v7  ;;  %v168_v9 = vld [vmem:[%s1594_s25 + $0x48] sm:$0xff]  ;;  %v170_v10 = vld [vmem:[%s1594_s25 + $0x50] sm:$0xff] }
  0x15   : > { %167 = vst [vmem:[%s1599_s26 + $0x40] sm:$0xff] %v166_v8  ;;  %v172_v11 = vld [vmem:[%s1594_s25 + $0x58] sm:$0xff]  ;;  %169 = vst [vmem:[%s1599_s26 + $0x48] sm:$0xff] %v168_v9  ;;  %v174_v12 = vld [vmem:[%s1594_s25 + $0x60] sm:$0xff] }
  0x16   : > { %171 = vst [vmem:[%s1599_s26 + $0x50] sm:$0xff] %v170_v10  ;;  %173 = vst [vmem:[%s1599_s26 + $0x58] sm:$0xff] %v172_v11  ;;  %v176_v13 = vld [vmem:[%s1594_s25 + $0x68] sm:$0xff]  ;;  %v178_v14 = vld [vmem:[%s1594_s25 + $0x70] sm:$0xff] }
  0x17   : > { %175 = vst [vmem:[%s1599_s26 + $0x60] sm:$0xff] %v174_v12  ;;  %177 = vst [vmem:[%s1599_s26 + $0x68] sm:$0xff] %v176_v13  ;;  %v180_v15 = vld [vmem:[%s1594_s25 + $0x78] sm:$0xff]  ;;  %v182_v16 = vld [vmem:[%s1594_s25 + $0x80] sm:$0xff] }
  0x18   : > { %179 = vst [vmem:[%s1599_s26 + $0x70] sm:$0xff] %v178_v14  ;;  %v184_v17 = vld [vmem:[%s1594_s25 + $0x88] sm:$0xff]  ;;  %181 = vst [vmem:[%s1599_s26 + $0x78] sm:$0xff] %v180_v15  ;;  %v186_v18 = vld [vmem:[%s1594_s25 + $0x90] sm:$0xff] }
  0x19   : > { %183 = vst [vmem:[%s1599_s26 + $0x80] sm:$0xff] %v182_v16  ;;  %185 = vst [vmem:[%s1599_s26 + $0x88] sm:$0xff] %v184_v17  ;;  %v188_v19 = vld [vmem:[%s1594_s25 + $0x98] sm:$0xff]  ;;  %v190_v20 = vld [vmem:[%s1594_s25 + $0x280] sm:$0xff] }
  0x1a   : > { %187 = vst [vmem:[%s1599_s26 + $0x90] sm:$0xff] %v186_v18  ;;  %189 = vst [vmem:[%s1599_s26 + $0x98] sm:$0xff] %v188_v19  ;;  %v192_v21 = vld [vmem:[%s1594_s25 + $0x288] sm:$0xff]  ;;  %v194_v22 = vld [vmem:[%s1594_s25 + $0x290] sm:$0xff] }
  0x1b   : > { %191 = vst [vmem:[%s1599_s26 + $0xa0] sm:$0xff] %v190_v20  ;;  %v196_v23 = vld [vmem:[%s1594_s25 + $0x298] sm:$0xff]  ;;  %193 = vst [vmem:[%s1599_s26 + $0xa8] sm:$0xff] %v192_v21  ;;  %v198_v24 = vld [vmem:[%s1594_s25 + $0x2a0] sm:$0xff] }
  0x1c   : > { %195 = vst [vmem:[%s1599_s26 + $0xb0] sm:$0xff] %v194_v22  ;;  %197 = vst [vmem:[%s1599_s26 + $0xb8] sm:$0xff] %v196_v23  ;;  %v200_v25 = vld [vmem:[%s1594_s25 + $0x2a8] sm:$0xff]  ;;  %v202_v26 = vld [vmem:[%s1594_s25 + $0x2b0] sm:$0xff] }
  0x1d   : > { %199 = vst [vmem:[%s1599_s26 + $0xc0] sm:$0xff] %v198_v24  ;;  %201 = vst [vmem:[%s1599_s26 + $0xc8] sm:$0xff] %v200_v25  ;;  %v204_v27 = vld [vmem:[%s1594_s25 + $0x2b8] sm:$0xff]  ;;  %v206_v28 = vld [vmem:[%s1594_s25 + $0x2c0] sm:$0xff] }
  0x1e   : > { %203 = vst [vmem:[%s1599_s26 + $0xd0] sm:$0xff] %v202_v26  ;;  %v208_v29 = vld [vmem:[%s1594_s25 + $0x2c8] sm:$0xff]  ;;  %205 = vst [vmem:[%s1599_s26 + $0xd8] sm:$0xff] %v204_v27  ;;  %v210_v30 = vld [vmem:[%s1594_s25 + $0x2d0] sm:$0xff] }
  0x1f   : > { %207 = vst [vmem:[%s1599_s26 + $0xe0] sm:$0xff] %v206_v28  ;;  %209 = vst [vmem:[%s1599_s26 + $0xe8] sm:$0xff] %v208_v29  ;;  %v212_v31 = vld [vmem:[%s1594_s25 + $0x2d8] sm:$0xff]  ;;  %v214_v32 = vld [vmem:[%s1594_s25 + $0x2e0] sm:$0xff] }
  0x20   : > { %211 = vst [vmem:[%s1599_s26 + $0xf0] sm:$0xff] %v210_v30  ;;  %213 = vst [vmem:[%s1599_s26 + $0xf8] sm:$0xff] %v212_v31  ;;  %v216_v33 = vld [vmem:[%s1594_s25 + $0x2e8] sm:$0xff]  ;;  %v218_v34 = vld [vmem:[%s1594_s25 + $0x2f0] sm:$0xff] }
  0x21   : > { %215 = vst [vmem:[%s1599_s26 + $0x100] sm:$0xff] %v214_v32  ;;  %v220_v35 = vld [vmem:[%s1594_s25 + $0x2f8] sm:$0xff]  ;;  %217 = vst [vmem:[%s1599_s26 + $0x108] sm:$0xff] %v216_v33  ;;  %v222_v36 = vld [vmem:[%s1594_s25 + $0x300] sm:$0xff] }
  0x22   : > { %219 = vst [vmem:[%s1599_s26 + $0x110] sm:$0xff] %v218_v34  ;;  %221 = vst [vmem:[%s1599_s26 + $0x118] sm:$0xff] %v220_v35  ;;  %v224_v37 = vld [vmem:[%s1594_s25 + $0x308] sm:$0xff]  ;;  %v226_v38 = vld [vmem:[%s1594_s25 + $0x310] sm:$0xff] }
  0x23   : > { %223 = vst [vmem:[%s1599_s26 + $0x120] sm:$0xff] %v222_v36  ;;  %225 = vst [vmem:[%s1599_s26 + $0x128] sm:$0xff] %v224_v37  ;;  %v228_v39 = vld [vmem:[%s1594_s25 + $0x318] sm:$0xff]  ;;  %v230_v40 = vld [vmem:[%s1594_s25 + $0x500] sm:$0xff] }
  0x24   : > { %227 = vst [vmem:[%s1599_s26 + $0x130] sm:$0xff] %v226_v38  ;;  %v232_v41 = vld [vmem:[%s1594_s25 + $0x508] sm:$0xff]  ;;  %229 = vst [vmem:[%s1599_s26 + $0x138] sm:$0xff] %v228_v39  ;;  %v234_v42 = vld [vmem:[%s1594_s25 + $0x510] sm:$0xff] }
  0x25   : > { %231 = vst [vmem:[%s1599_s26 + $0x140] sm:$0xff] %v230_v40  ;;  %233 = vst [vmem:[%s1599_s26 + $0x148] sm:$0xff] %v232_v41  ;;  %v236_v43 = vld [vmem:[%s1594_s25 + $0x518] sm:$0xff]  ;;  %v238_v44 = vld [vmem:[%s1594_s25 + $0x520] sm:$0xff] }
  0x26   : > { %235 = vst [vmem:[%s1599_s26 + $0x150] sm:$0xff] %v234_v42  ;;  %237 = vst [vmem:[%s1599_s26 + $0x158] sm:$0xff] %v236_v43  ;;  %v240_v45 = vld [vmem:[%s1594_s25 + $0x528] sm:$0xff]  ;;  %v242_v46 = vld [vmem:[%s1594_s25 + $0x530] sm:$0xff] }
  0x27   : > { %239 = vst [vmem:[%s1599_s26 + $0x160] sm:$0xff] %v238_v44  ;;  %v244_v47 = vld [vmem:[%s1594_s25 + $0x538] sm:$0xff]  ;;  %241 = vst [vmem:[%s1599_s26 + $0x168] sm:$0xff] %v240_v45  ;;  %v246_v48 = vld [vmem:[%s1594_s25 + $0x540] sm:$0xff] }
  0x28   : > { %243 = vst [vmem:[%s1599_s26 + $0x170] sm:$0xff] %v242_v46  ;;  %245 = vst [vmem:[%s1599_s26 + $0x178] sm:$0xff] %v244_v47  ;;  %v248_v49 = vld [vmem:[%s1594_s25 + $0x548] sm:$0xff]  ;;  %v250_v50 = vld [vmem:[%s1594_s25 + $0x550] sm:$0xff] }
  0x29   : > { %247 = vst [vmem:[%s1599_s26 + $0x180] sm:$0xff] %v246_v48  ;;  %249 = vst [vmem:[%s1599_s26 + $0x188] sm:$0xff] %v248_v49  ;;  %v252_v51 = vld [vmem:[%s1594_s25 + $0x558] sm:$0xff]  ;;  %v254_v52 = vld [vmem:[%s1594_s25 + $0x560] sm:$0xff] }
  0x2a   : > { %251 = vst [vmem:[%s1599_s26 + $0x190] sm:$0xff] %v250_v50  ;;  %v256_v53 = vld [vmem:[%s1594_s25 + $0x568] sm:$0xff]  ;;  %253 = vst [vmem:[%s1599_s26 + $0x198] sm:$0xff] %v252_v51  ;;  %v258_v54 = vld [vmem:[%s1594_s25 + $0x570] sm:$0xff] }
  0x2b   : > { %255 = vst [vmem:[%s1599_s26 + $0x1a0] sm:$0xff] %v254_v52  ;;  %257 = vst [vmem:[%s1599_s26 + $0x1a8] sm:$0xff] %v256_v53  ;;  %v260_v55 = vld [vmem:[%s1594_s25 + $0x578] sm:$0xff]  ;;  %v262_v56 = vld [vmem:[%s1594_s25 + $0x580] sm:$0xff] }
  0x2c   : > { %259 = vst [vmem:[%s1599_s26 + $0x1b0] sm:$0xff] %v258_v54  ;;  %261 = vst [vmem:[%s1599_s26 + $0x1b8] sm:$0xff] %v260_v55  ;;  %v264_v57 = vld [vmem:[%s1594_s25 + $0x588] sm:$0xff]  ;;  %v266_v58 = vld [vmem:[%s1594_s25 + $0x590] sm:$0xff] }
  0x2d   : > { %263 = vst [vmem:[%s1599_s26 + $0x1c0] sm:$0xff] %v262_v56  ;;  %v268_v59 = vld [vmem:[%s1594_s25 + $0x598] sm:$0xff]  ;;  %265 = vst [vmem:[%s1599_s26 + $0x1c8] sm:$0xff] %v264_v57  ;;  %v270_v60 = vld [vmem:[%s1594_s25 + $0x780] sm:$0xff] }
  0x2e   : > { %267 = vst [vmem:[%s1599_s26 + $0x1d0] sm:$0xff] %v266_v58  ;;  %269 = vst [vmem:[%s1599_s26 + $0x1d8] sm:$0xff] %v268_v59  ;;  %v272_v61 = vld [vmem:[%s1594_s25 + $0x788] sm:$0xff]  ;;  %v274_v62 = vld [vmem:[%s1594_s25 + $0x790] sm:$0xff] }
  0x2f   : > { %271 = vst [vmem:[%s1599_s26 + $0x1e0] sm:$0xff] %v270_v60  ;;  %273 = vst [vmem:[%s1599_s26 + $0x1e8] sm:$0xff] %v272_v61  ;;  %v276_v63 = vld [vmem:[%s1594_s25 + $0x798] sm:$0xff]  ;;  %v278_v0 = vld [vmem:[%s1594_s25 + $0x7a0] sm:$0xff] }
  0x30   : > { %275 = vst [vmem:[%s1599_s26 + $0x1f0] sm:$0xff] %v274_v62  ;;  %v280_v1 = vld [vmem:[%s1594_s25 + $0x7a8] sm:$0xff]  ;;  %277 = vst [vmem:[%s1599_s26 + $0x1f8] sm:$0xff] %v276_v63  ;;  %v282_v2 = vld [vmem:[%s1594_s25 + $0x7b0] sm:$0xff] }
  0x31   : > { %279 = vst [vmem:[%s1599_s26 + $0x200] sm:$0xff] %v278_v0  ;;  %281 = vst [vmem:[%s1599_s26 + $0x208] sm:$0xff] %v280_v1  ;;  %v284_v3 = vld [vmem:[%s1594_s25 + $0x7b8] sm:$0xff]  ;;  %v286_v4 = vld [vmem:[%s1594_s25 + $0x7c0] sm:$0xff] }
  0x32   : > { %283 = vst [vmem:[%s1599_s26 + $0x210] sm:$0xff] %v282_v2  ;;  %285 = vst [vmem:[%s1599_s26 + $0x218] sm:$0xff] %v284_v3  ;;  %v288_v5 = vld [vmem:[%s1594_s25 + $0x7c8] sm:$0xff]  ;;  %v290_v6 = vld [vmem:[%s1594_s25 + $0x7d0] sm:$0xff] }
  0x33   : > { %287 = vst [vmem:[%s1599_s26 + $0x220] sm:$0xff] %v286_v4  ;;  %v292_v7 = vld [vmem:[%s1594_s25 + $0x7d8] sm:$0xff]  ;;  %289 = vst [vmem:[%s1599_s26 + $0x228] sm:$0xff] %v288_v5  ;;  %v294_v8 = vld [vmem:[%s1594_s25 + $0x7e0] sm:$0xff] }
  0x34   : > { %291 = vst [vmem:[%s1599_s26 + $0x230] sm:$0xff] %v290_v6  ;;  %293 = vst [vmem:[%s1599_s26 + $0x238] sm:$0xff] %v292_v7  ;;  %v296_v9 = vld [vmem:[%s1594_s25 + $0x7e8] sm:$0xff]  ;;  %v298_v10 = vld [vmem:[%s1594_s25 + $0x7f0] sm:$0xff] }
  0x35   : > { %295 = vst [vmem:[%s1599_s26 + $0x240] sm:$0xff] %v294_v8  ;;  %297 = vst [vmem:[%s1599_s26 + $0x248] sm:$0xff] %v296_v9  ;;  %v300_v11 = vld [vmem:[%s1594_s25 + $0x7f8] sm:$0xff]  ;;  %v302_v12 = vld [vmem:[%s1594_s25 + $0x800] sm:$0xff] }
  0x36   : > { %299 = vst [vmem:[%s1599_s26 + $0x250] sm:$0xff] %v298_v10  ;;  %v304_v13 = vld [vmem:[%s1594_s25 + $0x808] sm:$0xff]  ;;  %301 = vst [vmem:[%s1599_s26 + $0x258] sm:$0xff] %v300_v11  ;;  %v306_v14 = vld [vmem:[%s1594_s25 + $0x810] sm:$0xff] }
  0x37   : > { %303 = vst [vmem:[%s1599_s26 + $0x260] sm:$0xff] %v302_v12  ;;  %305 = vst [vmem:[%s1599_s26 + $0x268] sm:$0xff] %v304_v13  ;;  %v308_v15 = vld [vmem:[%s1594_s25 + $0x818] sm:$0xff]  ;;  %v310_v16 = vld [vmem:[%s1594_s25 + $0xa00] sm:$0xff] }
  0x38   : > { %307 = vst [vmem:[%s1599_s26 + $0x270] sm:$0xff] %v306_v14  ;;  %309 = vst [vmem:[%s1599_s26 + $0x278] sm:$0xff] %v308_v15  ;;  %v312_v17 = vld [vmem:[%s1594_s25 + $0xa08] sm:$0xff]  ;;  %v314_v18 = vld [vmem:[%s1594_s25 + $0xa10] sm:$0xff] }
  0x39   : > { %311 = vst [vmem:[%s1599_s26 + $0x280] sm:$0xff] %v310_v16  ;;  %v316_v19 = vld [vmem:[%s1594_s25 + $0xa18] sm:$0xff]  ;;  %313 = vst [vmem:[%s1599_s26 + $0x288] sm:$0xff] %v312_v17  ;;  %v318_v20 = vld [vmem:[%s1594_s25 + $0xa20] sm:$0xff] }
  0x3a   : > { %315 = vst [vmem:[%s1599_s26 + $0x290] sm:$0xff] %v314_v18  ;;  %317 = vst [vmem:[%s1599_s26 + $0x298] sm:$0xff] %v316_v19  ;;  %v320_v21 = vld [vmem:[%s1594_s25 + $0xa28] sm:$0xff]  ;;  %v322_v22 = vld [vmem:[%s1594_s25 + $0xa30] sm:$0xff] }
  0x3b   : > { %319 = vst [vmem:[%s1599_s26 + $0x2a0] sm:$0xff] %v318_v20  ;;  %321 = vst [vmem:[%s1599_s26 + $0x2a8] sm:$0xff] %v320_v21  ;;  %v324_v23 = vld [vmem:[%s1594_s25 + $0xa38] sm:$0xff]  ;;  %v326_v24 = vld [vmem:[%s1594_s25 + $0xa40] sm:$0xff] }
  0x3c   : > { %323 = vst [vmem:[%s1599_s26 + $0x2b0] sm:$0xff] %v322_v22  ;;  %v328_v25 = vld [vmem:[%s1594_s25 + $0xa48] sm:$0xff]  ;;  %325 = vst [vmem:[%s1599_s26 + $0x2b8] sm:$0xff] %v324_v23  ;;  %v330_v26 = vld [vmem:[%s1594_s25 + $0xa50] sm:$0xff] }
  0x3d   : > { %327 = vst [vmem:[%s1599_s26 + $0x2c0] sm:$0xff] %v326_v24  ;;  %329 = vst [vmem:[%s1599_s26 + $0x2c8] sm:$0xff] %v328_v25  ;;  %v332_v27 = vld [vmem:[%s1594_s25 + $0xa58] sm:$0xff]  ;;  %v334_v28 = vld [vmem:[%s1594_s25 + $0xa60] sm:$0xff] }
  0x3e   : > { %331 = vst [vmem:[%s1599_s26 + $0x2d0] sm:$0xff] %v330_v26  ;;  %333 = vst [vmem:[%s1599_s26 + $0x2d8] sm:$0xff] %v332_v27  ;;  %v336_v29 = vld [vmem:[%s1594_s25 + $0xa68] sm:$0xff]  ;;  %v338_v30 = vld [vmem:[%s1594_s25 + $0xa70] sm:$0xff] }
  0x3f   : > { %335 = vst [vmem:[%s1599_s26 + $0x2e0] sm:$0xff] %v334_v28  ;;  %v340_v31 = vld [vmem:[%s1594_s25 + $0xa78] sm:$0xff]  ;;  %337 = vst [vmem:[%s1599_s26 + $0x2e8] sm:$0xff] %v336_v29  ;;  %v342_v32 = vld [vmem:[%s1594_s25 + $0xa80] sm:$0xff] }
  0x40   : > { %339 = vst [vmem:[%s1599_s26 + $0x2f0] sm:$0xff] %v338_v30  ;;  %341 = vst [vmem:[%s1599_s26 + $0x2f8] sm:$0xff] %v340_v31  ;;  %v344_v33 = vld [vmem:[%s1594_s25 + $0xa88] sm:$0xff]  ;;  %v346_v34 = vld [vmem:[%s1594_s25 + $0xa90] sm:$0xff] }
  0x41   : > { %343 = vst [vmem:[%s1599_s26 + $0x300] sm:$0xff] %v342_v32  ;;  %345 = vst [vmem:[%s1599_s26 + $0x308] sm:$0xff] %v344_v33  ;;  %v348_v35 = vld [vmem:[%s1594_s25 + $0xa98] sm:$0xff] }
  0x42   : > { %347 = vst [vmem:[%s1599_s26 + $0x310] sm:$0xff] %v346_v34  ;;  %349 = vst [vmem:[%s1599_s26 + $0x318] sm:$0xff] %v348_v35 }
  0x43 PF: > { %p1410_p5 = scmp.ge.s32.totalorder %s1536_s14, 1  ;;  %p354_p6 = scmp.lt.s32.totalorder %s1536_s14, 5 }
  0x45   : > { %p355_p7 = pnand %p1410_p5, %p354_p6 }
  0x46   : > { %s361_s27 = sand.u32 (!%p355_p7), 1, %s1528_s12   ;;  %s385_s7 = smul.u32 (!%p355_p7), 20, %s1405_s15 }
  0x47   : > { %358 = sbr.rel (%p355_p7) target bundleno = 352 (0x160), region = 51 }
  0x48   : > { %s1446_s28 = smul.u32 (!%p355_p7), 800, %s361_s27  ;;  %p386_p8 = scmp.lt.s32.totalorder (!%p355_p7), %s385_s7, 79 }
  0x4a   : > { %s1806_s4 = scalar_lea.vmem (!%p355_p7), [#allocation2], %s1446_s28 }
  0x4c   : > { %v1538_v36 = vmov 0.0   ;;  %v492_v37 = vld [vmem:[%s2012_s2] sm:$0xf]  ;;  %vm502_vm0 = vcmask 1043456   ;;  %v1539_v38 = vmov 0   ;;  %v453_v43 = vld [vmem:[%s1806_s4 + $0x1e8] sm:$0xff] }
  0x4d   : > { %627 = vmatprep.mubr.f32.mxu0 %v1538_v36  ;;  %698 = vmatprep.mubr.f32.mxu1 %v1538_v36  ;;  %v473_v39 = vld [vmem:[%s1806_s4 + $0x288] sm:$0xf]  ;;  %v475_v40 = vld [vmem:[%s1806_s4 + $0x298] sm:$0xf]  ;;  %v472_v41 = vld [vmem:[%s1806_s4 + $0x280] sm:$0xf] }
  0x4e   : > { %1473 = vset.pattern.permute.xlu0 %v1539_v38  ;;  %1412 = vmatprep.subr.msk.mxu0 %vm502_vm0, %v473_v39  ;;  %v474_v42 = vld [vmem:[%s1806_s4 + $0x290] sm:$0xf]  ;;  %v455_v44 = vld [vmem:[%s1806_s4 + $0x1f8] sm:$0xff]  ;;  %v452_v45 = vld [vmem:[%s1806_s4 + $0x1e0] sm:$0xff]  ;;  %vm498_vm1 = vcmask 293888   ;;  %s2018_s7 = smov (!%p386_p8, %s385_s7), 79 }
  0x4f   : > { %495 = vperm.xlu0 %1473, %v492_v37   ;;  %1415 = vmatprep.subr.msk.mxu1 %vm502_vm0, %v475_v40  ;;  %v454_v46 = vld [vmem:[%s1806_s4 + $0x1f0] sm:$0xff]  ;;  %v433_v47 = vld [vmem:[%s1806_s4 + $0x148] sm:$0xff]  ;;  %v435_v48 = vld [vmem:[%s1806_s4 + $0x158] sm:$0xff]  ;;  %s1411_s8 = sshll.u32 %s2018_s7, 2 }
  0x50   : > { %1413 = vmatpush1.msk.msra.mxu0 %vm502_vm0, %v472_v41  ;;  %1416 = vmatpush1.msk.msra.mxu1 %vm502_vm0, %v474_v42  ;;  %v432_v49 = vld [vmem:[%s1806_s4 + $0x140] sm:$0xff]  ;;  %v434_v50 = vld [vmem:[%s1806_s4 + $0x150] sm:$0xff]  ;;  %v413_v51 = vld [vmem:[%s1806_s4 + $0xa8] sm:$0xff]  ;;  %s1976_s11 = scalar_lea.vmem %s2013_s3, %s1411_s8 }
  0x51   : > { %587 = vmatprep.subr.mxu0 %v453_v43  ;;  %658 = vmatprep.subr.mxu1 %v455_v44  ;;  %v415_v52 = vld [vmem:[%s1806_s4 + $0xb8] sm:$0xff]  ;;  %v412_v53 = vld [vmem:[%s1806_s4 + $0xa0] sm:$0xff]  ;;  %v414_v54 = vld [vmem:[%s1806_s4 + $0xb0] sm:$0xff] }
  0x52   : > { %588 = vmatpush1.msra.mxu0 %v452_v45  ;;  %659 = vmatpush1.msra.mxu1 %v454_v46  ;;  %v393_v55 = vld [vmem:[%s1806_s4 + $0x8] sm:$0xff]  ;;  %v395_v56 = vld [vmem:[%s1806_s4 + $0x18] sm:$0xff]  ;;  %v392_v57 = vld [vmem:[%s1806_s4] sm:$0xff] }
  0x53   : > { %589 = vmatprep.subr.mxu0 %v433_v47  ;;  %660 = vmatprep.subr.mxu1 %v435_v48  ;;  %v394_v58 = vld [vmem:[%s1806_s4 + $0x10] sm:$0xff]  ;;  %v1835_v59 = vld [vmem:[%s2011_s1] sm:$0xf]  ;;  %v477_v60 = vld [vmem:[%s1806_s4 + $0x2a8] sm:$0xf] }
  0x54   : > { %590 = vmatpush1.msra.mxu0 %v432_v49  ;;  %661 = vmatpush1.msra.mxu1 %v434_v50  ;;  %v479_v61 = vld [vmem:[%s1806_s4 + $0x2b8] sm:$0xf]  ;;  %v476_v62 = vld [vmem:[%s1806_s4 + $0x2a0] sm:$0xf]  ;;  %v478_v63 = vld [vmem:[%s1806_s4 + $0x2b0] sm:$0xf] }
  0x55   : > { %591 = vmatprep.subr.mxu0 %v413_v51  ;;  %662 = vmatprep.subr.mxu1 %v415_v52  ;;  %v457_v0 = vld [vmem:[%s1806_s4 + $0x208] sm:$0xff]  ;;  %v459_v1 = vld [vmem:[%s1806_s4 + $0x218] sm:$0xff]  ;;  %v456_v2 = vld [vmem:[%s1806_s4 + $0x200] sm:$0xff] }
  0x56   : > { %592 = vmatpush1.msra.mxu0 %v412_v53  ;;  %663 = vmatpush1.msra.mxu1 %v414_v54  ;;  %v458_v3 = vld [vmem:[%s1806_s4 + $0x210] sm:$0xff]  ;;  %v437_v4 = vld [vmem:[%s1806_s4 + $0x168] sm:$0xff]  ;;  %v439_v5 = vld [vmem:[%s1806_s4 + $0x178] sm:$0xff] }
  0x57   : > { %593 = vmatprep.subr.mxu0 %v393_v55  ;;  %664 = vmatprep.subr.mxu1 %v395_v56  ;;  %v436_v6 = vld [vmem:[%s1806_s4 + $0x160] sm:$0xff]  ;;  %v438_v7 = vld [vmem:[%s1806_s4 + $0x170] sm:$0xff]  ;;  %v417_v8 = vld [vmem:[%s1806_s4 + $0xc8] sm:$0xff] }
  0x58   : > { %594 = vmatpush1.msra.mxu0 %v392_v57  ;;  %665 = vmatpush1.msra.mxu1 %v394_v58  ;;  %v419_v9 = vld [vmem:[%s1806_s4 + $0xd8] sm:$0xff]  ;;  %v416_v10 = vld [vmem:[%s1806_s4 + $0xc0] sm:$0xff]  ;;  %v418_v11 = vld [vmem:[%s1806_s4 + $0xd0] sm:$0xff] }
  0x59   : > { %1414 = vmatmul.mubr.msk.f32.vlgmr.msra.gmra.mxu0 %vm498_vm1, %v1835_v59  ;;  %1417 = vmatmul.mubr.msk.f32.vlgmr.msra.gmra.mxu1 %vm498_vm1, %v1835_v59  ;;  %v397_v12 = vld [vmem:[%s1806_s4 + $0x28] sm:$0xff]  ;;  %v399_v13 = vld [vmem:[%s1806_s4 + $0x38] sm:$0xff]  ;;  %v396_v14 = vld [vmem:[%s1806_s4 + $0x20] sm:$0xff] }
  0x5a   : > { %1418 = vmatprep.subr.msk.mxu0 %vm502_vm0, %v477_v60  ;;  %1421 = vmatprep.subr.msk.mxu1 %vm502_vm0, %v479_v61  ;;  %v398_v15 = vld [vmem:[%s1806_s4 + $0x30] sm:$0xff]  ;;  %v481_v16 = vld [vmem:[%s1806_s4 + $0x2c8] sm:$0xf]  ;;  %v483_v17 = vld [vmem:[%s1806_s4 + $0x2d8] sm:$0xf] }
  0x5b   : > { %1419 = vmatpush1.msk.msra.mxu0 %vm502_vm0, %v476_v62  ;;  %1422 = vmatpush1.msk.msra.mxu1 %vm502_vm0, %v478_v63  ;;  %v480_v18 = vld [vmem:[%s1806_s4 + $0x2c0] sm:$0xf]  ;;  %v482_v19 = vld [vmem:[%s1806_s4 + $0x2d0] sm:$0xf]  ;;  %v461_v20 = vld [vmem:[%s1806_s4 + $0x228] sm:$0xff] }
  0x5c   : > { %729 = vmatprep.subr.mxu0 %v457_v0  ;;  %800 = vmatprep.subr.mxu1 %v459_v1  ;;  %v463_v21 = vld [vmem:[%s1806_s4 + $0x238] sm:$0xff]  ;;  %v460_v22 = vld [vmem:[%s1806_s4 + $0x220] sm:$0xff]  ;;  %v462_v23 = vld [vmem:[%s1806_s4 + $0x230] sm:$0xff] }
  0x5d   : > { %730 = vmatpush1.msra.mxu0 %v456_v2  ;;  %801 = vmatpush1.msra.mxu1 %v458_v3  ;;  %v441_v24 = vld [vmem:[%s1806_s4 + $0x188] sm:$0xff]  ;;  %v443_v25 = vld [vmem:[%s1806_s4 + $0x198] sm:$0xff]  ;;  %v440_v26 = vld [vmem:[%s1806_s4 + $0x180] sm:$0xff] }
  0x5e   : > { %731 = vmatprep.subr.mxu0 %v437_v4  ;;  %802 = vmatprep.subr.mxu1 %v439_v5  ;;  %v442_v27 = vld [vmem:[%s1806_s4 + $0x190] sm:$0xff]  ;;  %v421_v28 = vld [vmem:[%s1806_s4 + $0xe8] sm:$0xff]  ;;  %v423_v29 = vld [vmem:[%s1806_s4 + $0xf8] sm:$0xff] }
  0x5f   : > { %732 = vmatpush1.msra.mxu0 %v436_v6  ;;  %803 = vmatpush1.msra.mxu1 %v438_v7  ;;  %v420_v30 = vld [vmem:[%s1806_s4 + $0xe0] sm:$0xff]  ;;  %v422_v31 = vld [vmem:[%s1806_s4 + $0xf0] sm:$0xff]  ;;  %v401_v32 = vld [vmem:[%s1806_s4 + $0x48] sm:$0xff] }
  0x60   : > { %733 = vmatprep.subr.mxu0 %v417_v8  ;;  %804 = vmatprep.subr.mxu1 %v419_v9  ;;  %v403_v33 = vld [vmem:[%s1806_s4 + $0x58] sm:$0xff]  ;;  %v400_v34 = vld [vmem:[%s1806_s4 + $0x40] sm:$0xff]  ;;  %v402_v35 = vld [vmem:[%s1806_s4 + $0x50] sm:$0xff] }
  0x61   : > { %734 = vmatpush1.msra.mxu0 %v416_v10  ;;  %805 = vmatpush1.msra.mxu1 %v418_v11  ;;  %v485_v37 = vld [vmem:[%s1806_s4 + $0x2e8] sm:$0xf]  ;;  %v487_v38 = vld [vmem:[%s1806_s4 + $0x2f8] sm:$0xf]  ;;  %v484_v39 = vld [vmem:[%s1806_s4 + $0x2e0] sm:$0xf] }
  0x62   : > { %735 = vmatprep.subr.mxu0 %v397_v12  ;;  %806 = vmatprep.subr.mxu1 %v399_v13  ;;  %v486_v40 = vld [vmem:[%s1806_s4 + $0x2f0] sm:$0xf]  ;;  %v465_v41 = vld [vmem:[%s1806_s4 + $0x248] sm:$0xff]  ;;  %v467_v42 = vld [vmem:[%s1806_s4 + $0x258] sm:$0xff] }
  0x63   : > { %736 = vmatpush1.msra.mxu0 %v396_v14  ;;  %769 = vmatprep.mubr.f32.mxu0 %v1538_v36  ;;  %v464_v43 = vld [vmem:[%s1806_s4 + $0x240] sm:$0xff]  ;;  %v466_v44 = vld [vmem:[%s1806_s4 + $0x250] sm:$0xff]  ;;  %v445_v45 = vld [vmem:[%s1806_s4 + $0x1a8] sm:$0xff] }
  0x64   : > { %807 = vmatpush1.msra.mxu1 %v398_v15  ;;  %840 = vmatprep.mubr.f32.mxu1 %v1538_v36  ;;  %v447_v46 = vld [vmem:[%s1806_s4 + $0x1b8] sm:$0xff]  ;;  %v444_v47 = vld [vmem:[%s1806_s4 + $0x1a0] sm:$0xff]  ;;  %v446_v48 = vld [vmem:[%s1806_s4 + $0x1b0] sm:$0xff] }
  0x65   : > { %1420 = vmatmul.mubr.msk.f32.vlgmr.msra.gmra.mxu0 %vm498_vm1, %v1835_v59  ;;  %1423 = vmatmul.mubr.msk.f32.vlgmr.msra.gmra.mxu1 %vm498_vm1, %v1835_v59  ;;  %v425_v49 = vld [vmem:[%s1806_s4 + $0x108] sm:$0xff]  ;;  %v427_v50 = vld [vmem:[%s1806_s4 + $0x118] sm:$0xff]  ;;  %v424_v51 = vld [vmem:[%s1806_s4 + $0x100] sm:$0xff] }
  0x66   : > { %1424 = vmatprep.subr.msk.mxu0 %vm502_vm0, %v481_v16  ;;  %1427 = vmatprep.subr.msk.mxu1 %vm502_vm0, %v483_v17  ;;  %v426_v52 = vld [vmem:[%s1806_s4 + $0x110] sm:$0xff]  ;;  %v405_v53 = vld [vmem:[%s1806_s4 + $0x68] sm:$0xff]  ;;  %v407_v54 = vld [vmem:[%s1806_s4 + $0x78] sm:$0xff] }
  0x67   : > { %1425 = vmatpush1.msk.msra.mxu0 %vm502_vm0, %v480_v18  ;;  %1428 = vmatpush1.msk.msra.mxu1 %vm502_vm0, %v482_v19  ;;  %v404_v55 = vld [vmem:[%s1806_s4 + $0x60] sm:$0xff]  ;;  %v406_v56 = vld [vmem:[%s1806_s4 + $0x70] sm:$0xff]  ;;  %v489_v57 = vld [vmem:[%s1806_s4 + $0x308] sm:$0xf] }
  0x68   : > { %871 = vmatprep.subr.mxu0 %v461_v20  ;;  %942 = vmatprep.subr.mxu1 %v463_v21  ;;  %v491_v58 = vld [vmem:[%s1806_s4 + $0x318] sm:$0xf]  ;;  %v488_v60 = vld [vmem:[%s1806_s4 + $0x300] sm:$0xf]  ;;  %v490_v61 = vld [vmem:[%s1806_s4 + $0x310] sm:$0xf] }
  0x69   : > { %872 = vmatpush1.msra.mxu0 %v460_v22  ;;  %943 = vmatpush1.msra.mxu1 %v462_v23  ;;  %v469_v62 = vld [vmem:[%s1806_s4 + $0x268] sm:$0xff]  ;;  %v471_v63 = vld [vmem:[%s1806_s4 + $0x278] sm:$0xff]  ;;  %v468_v0 = vld [vmem:[%s1806_s4 + $0x260] sm:$0xff] }
  0x6a   : > { %873 = vmatprep.subr.mxu0 %v441_v24  ;;  %944 = vmatprep.subr.mxu1 %v443_v25  ;;  %v470_v1 = vld [vmem:[%s1806_s4 + $0x270] sm:$0xff]  ;;  %v449_v2 = vld [vmem:[%s1806_s4 + $0x1c8] sm:$0xff]  ;;  %v451_v3 = vld [vmem:[%s1806_s4 + $0x1d8] sm:$0xff] }
  0x6b   : > { %874 = vmatpush1.msra.mxu0 %v440_v26  ;;  %945 = vmatpush1.msra.mxu1 %v442_v27  ;;  %v448_v4 = vld [vmem:[%s1806_s4 + $0x1c0] sm:$0xff]  ;;  %v450_v5 = vld [vmem:[%s1806_s4 + $0x1d0] sm:$0xff]  ;;  %v429_v6 = vld [vmem:[%s1806_s4 + $0x128] sm:$0xff] }
  0x6c   : > { %875 = vmatprep.subr.mxu0 %v421_v28  ;;  %946 = vmatprep.subr.mxu1 %v423_v29  ;;  %v431_v7 = vld [vmem:[%s1806_s4 + $0x138] sm:$0xff]  ;;  %v428_v8 = vld [vmem:[%s1806_s4 + $0x120] sm:$0xff]  ;;  %v430_v9 = vld [vmem:[%s1806_s4 + $0x130] sm:$0xff] }
  0x6d   : > { %876 = vmatpush1.msra.mxu0 %v420_v30  ;;  %947 = vmatpush1.msra.mxu1 %v422_v31  ;;  %v409_v10 = vld [vmem:[%s1806_s4 + $0x88] sm:$0xff]  ;;  %v411_v11 = vld [vmem:[%s1806_s4 + $0x98] sm:$0xff]  ;;  %v408_v12 = vld [vmem:[%s1806_s4 + $0x80] sm:$0xff] }
  0x6e   : > { %877 = vmatprep.subr.mxu0 %v401_v32  ;;  %948 = vmatprep.subr.mxu1 %v403_v33  ;;  %v410_v13 = vld [vmem:[%s1806_s4 + $0x90] sm:$0xff] }
  0x6f   : > { %878 = vmatpush1.msra.mxu0 %v400_v34  ;;  %911 = vmatprep.mubr.f32.mxu0 %v1538_v36 }
  0x70   : > { %949 = vmatpush1.msra.mxu1 %v402_v35  ;;  %982 = vmatprep.mubr.f32.mxu1 %v1538_v36 }
  0x71   : > { %1426 = vmatmul.mubr.msk.f32.vlgmr.msra.gmra.mxu0 %vm498_vm1, %v1835_v59  ;;  %1429 = vmatmul.mubr.msk.f32.vlgmr.msra.gmra.mxu1 %vm498_vm1, %v1835_v59 }
  0x72   : > { %1430 = vmatprep.subr.msk.mxu0 %vm502_vm0, %v485_v37  ;;  %1433 = vmatprep.subr.msk.mxu1 %vm502_vm0, %v487_v38 }
  0x73   : > { %1431 = vmatpush1.msk.msra.mxu0 %vm502_vm0, %v484_v39  ;;  %1434 = vmatpush1.msk.msra.mxu1 %vm502_vm0, %v486_v40 }
  0x74   : > { %1013 = vmatprep.subr.mxu0 %v465_v41  ;;  %1084 = vmatprep.subr.mxu1 %v467_v42 }
  0x75   : > { %1014 = vmatpush1.msra.mxu0 %v464_v43  ;;  %1085 = vmatpush1.msra.mxu1 %v466_v44 }
  0x76   : > { %1015 = vmatprep.subr.mxu0 %v445_v45  ;;  %1086 = vmatprep.subr.mxu1 %v447_v46 }
  0x77   : > { %1016 = vmatpush1.msra.mxu0 %v444_v47  ;;  %1087 = vmatpush1.msra.mxu1 %v446_v48 }
  0x78   : > { %1017 = vmatprep.subr.mxu0 %v425_v49  ;;  %1088 = vmatprep.subr.mxu1 %v427_v50 }
  0x79   : > { %1018 = vmatpush1.msra.mxu0 %v424_v51  ;;  %1089 = vmatpush1.msra.mxu1 %v426_v52 }
  0x7a   : > { %1019 = vmatprep.subr.mxu0 %v405_v53  ;;  %1090 = vmatprep.subr.mxu1 %v407_v54 }
  0x7b   : > { %1020 = vmatpush1.msra.mxu0 %v404_v55  ;;  %1053 = vmatprep.mubr.f32.mxu0 %v1538_v36 }
  0x7c   : > { %1091 = vmatpush1.msra.mxu1 %v406_v56  ;;  %1124 = vmatprep.mubr.f32.mxu1 %v1538_v36 }
  0x7d   : > { %1432 = vmatmul.mubr.msk.f32.vlgmr.msra.gmra.mxu0 %vm498_vm1, %v1835_v59  ;;  %1435 = vmatmul.mubr.msk.f32.vlgmr.msra.gmra.mxu1 %vm498_vm1, %v1835_v59 }
  0x7e   : > { %1436 = vmatprep.subr.msk.mxu0 %vm502_vm0, %v489_v57  ;;  %1439 = vmatprep.subr.msk.mxu1 %vm502_vm0, %v491_v58 }
  0x7f   : > { %1437 = vmatpush1.msk.msra.mxu0 %vm502_vm0, %v488_v60  ;;  %1440 = vmatpush1.msk.msra.mxu1 %vm502_vm0, %v490_v61 }
  0x80   : > { %1155 = vmatprep.subr.mxu0 %v469_v62  ;;  %1226 = vmatprep.subr.mxu1 %v471_v63 }
  0x81   : > { %1156 = vmatpush1.msra.mxu0 %v468_v0  ;;  %1227 = vmatpush1.msra.mxu1 %v470_v1 }
  0x82   : > { %1157 = vmatprep.subr.mxu0 %v449_v2  ;;  %1228 = vmatprep.subr.mxu1 %v451_v3 }
  0x83   : > { %1158 = vmatpush1.msra.mxu0 %v448_v4  ;;  %1229 = vmatpush1.msra.mxu1 %v450_v5 }
  0x84   : > { %1159 = vmatprep.subr.mxu0 %v429_v6  ;;  %1230 = vmatprep.subr.mxu1 %v431_v7 }
  0x85   : > { %1160 = vmatpush1.msra.mxu0 %v428_v8  ;;  %1231 = vmatpush1.msra.mxu1 %v430_v9 }
  0x86   : > { %1161 = vmatprep.subr.mxu0 %v409_v10  ;;  %1232 = vmatprep.subr.mxu1 %v411_v11 }
  0x87   : > { %1162 = vmatpush1.msra.mxu0 %v408_v12  ;;  %1195 = vmatprep.mubr.f32.mxu0 %v1538_v36 }
  0x88   : > { %1233 = vmatpush1.msra.mxu1 %v410_v13  ;;  %1266 = vmatprep.mubr.f32.mxu1 %v1538_v36 }
  0x89   : > { %1438 = vmatmul.mubr.msk.f32.vlgmr.msra.gmra.mxu0 %vm498_vm1, %v1835_v59  ;;  %1441 = vmatmul.mubr.msk.f32.vlgmr.msra.gmra.mxu1 %vm498_vm1, %v1835_v59 }
  0xca   : > { %v1961_v14 = vpop.permute.xlu0 %495 }
 0x119   : > { %v629_v15 = vpop.f32.mrf.mxu0  ;;  %v700_v16 = vpop.f32.mrf.mxu1 }
 0x11a   : > { %v630_v17 = vadd.f32 %v629_v15, %v1961_v14  ;;  %v701_v18 = vadd.f32 %v700_v16, %v1961_v14 }
 0x11b   : > { %v631_v19 = vpop.f32.mrf.mxu0  ;;  %v702_v20 = vpop.f32.mrf.mxu1 }
 0x11c   : > { %v632_v36 = vadd.f32 %v631_v19, %v1961_v14  ;;  %1474 = vtanh.f32 %v630_v17  ;;  %v703_v21 = vadd.f32 %v702_v20, %v1961_v14 }
 0x11d   : > { %1476 = vtanh.f32 %v701_v18 }
 0x11e   : > { %1478 = vtanh.f32 %v632_v36 }
 0x11f   : > { %1480 = vtanh.f32 %v703_v21 }
 0x125   : > { %v771_v59 = vpop.f32.mrf.mxu0  ;;  %v842_v22 = vpop.f32.mrf.mxu1 }
 0x126   : > { %v772_v23 = vadd.f32 %v771_v59, %v1961_v14  ;;  %v843_v24 = vadd.f32 %v842_v22, %v1961_v14 }
 0x127   : > { %v773_v25 = vpop.f32.mrf.mxu0  ;;  %v844_v26 = vpop.f32.mrf.mxu1 }
 0x128   : > { %1482 = vtanh.f32 %v772_v23  ;;  %v774_v27 = vadd.f32 %v773_v25, %v1961_v14  ;;  %v845_v28 = vadd.f32 %v844_v26, %v1961_v14 }
 0x129   : > { %v1475_v29 = vpop.eup %1474  ;;  %1484 = vtanh.f32 %v843_v24 }
 0x12a   : > { %v1477_v30 = vpop.eup %1476  ;;  %1486 = vtanh.f32 %v774_v27 }
 0x12b   : > { %v1479_v31 = vpop.eup %1478  ;;  %1488 = vtanh.f32 %v845_v28 }
 0x12c   : > { %v1481_v32 = vpop.eup %1480  ;;  %v1313_v33 = vcombine.low %v1475_v29, %v1479_v31 }
 0x12d   : > { %v1314_v34 = vcombine.low %v1477_v30, %v1481_v32 }
 0x12e   : > { %1333 = vst [vmem:[%s1976_s11] sm:$0xff] %v1313_v33 }
 0x12f   : > { %1334 = vst [vmem:[%s1976_s11 + $0x8] sm:$0xff] %v1314_v34 }
 0x131   : > { %v913_v35 = vpop.f32.mrf.mxu0  ;;  %v984_v37 = vpop.f32.mrf.mxu1 }
 0x132   : > { %v914_v38 = vadd.f32 %v913_v35, %v1961_v14  ;;  %v985_v39 = vadd.f32 %v984_v37, %v1961_v14 }
 0x133   : > { %v915_v40 = vpop.f32.mrf.mxu0  ;;  %v986_v41 = vpop.f32.mrf.mxu1 }
 0x134   : > { %1490 = vtanh.f32 %v914_v38  ;;  %v916_v42 = vadd.f32 %v915_v40, %v1961_v14  ;;  %v987_v43 = vadd.f32 %v986_v41, %v1961_v14 }
 0x135   : > { %v1483_v44 = vpop.eup %1482  ;;  %1492 = vtanh.f32 %v985_v39 }
 0x136   : > { %v1485_v45 = vpop.eup %1484  ;;  %1494 = vtanh.f32 %v916_v42 }
 0x137   : > { %v1487_v46 = vpop.eup %1486  ;;  %1496 = vtanh.f32 %v987_v43 }
 0x138   : > { %v1489_v47 = vpop.eup %1488  ;;  %v1315_v48 = vcombine.low %v1483_v44, %v1487_v46 }
 0x139   : > { %v1316_v49 = vcombine.low %v1485_v45, %v1489_v47 }
 0x13a   : > { %1335 = vst [vmem:[%s1976_s11 + $0x10] sm:$0xff] %v1315_v48 }
 0x13b   : > { %1336 = vst [vmem:[%s1976_s11 + $0x18] sm:$0xff] %v1316_v49 }
 0x13d   : > { %v1055_v50 = vpop.f32.mrf.mxu0  ;;  %v1126_v51 = vpop.f32.mrf.mxu1 }
 0x13e   : > { %v1056_v52 = vadd.f32 %v1055_v50, %v1961_v14  ;;  %v1127_v53 = vadd.f32 %v1126_v51, %v1961_v14 }
 0x13f   : > { %v1057_v54 = vpop.f32.mrf.mxu0  ;;  %v1128_v55 = vpop.f32.mrf.mxu1 }
 0x140   : > { %1498 = vtanh.f32 %v1056_v52  ;;  %v1058_v56 = vadd.f32 %v1057_v54, %v1961_v14  ;;  %v1129_v57 = vadd.f32 %v1128_v55, %v1961_v14 }
 0x141   : > { %v1491_v58 = vpop.eup %1490  ;;  %1500 = vtanh.f32 %v1127_v53 }
 0x142   : > { %v1493_v60 = vpop.eup %1492  ;;  %1502 = vtanh.f32 %v1058_v56 }
 0x143   : > { %v1495_v61 = vpop.eup %1494  ;;  %1504 = vtanh.f32 %v1129_v57 }
 0x144   : > { %v1497_v62 = vpop.eup %1496  ;;  %v1317_v63 = vcombine.low %v1491_v58, %v1495_v61 }
 0x145   : > { %v1318_v0 = vcombine.low %v1493_v60, %v1497_v62 }
 0x146   : > { %1337 = vst [vmem:[%s1976_s11 + $0x20] sm:$0xff] %v1317_v63 }
 0x147   : > { %1338 = vst [vmem:[%s1976_s11 + $0x28] sm:$0xff] %v1318_v0 }
 0x149   : > { %v1197_v1 = vpop.f32.mrf.mxu0  ;;  %v1268_v2 = vpop.f32.mrf.mxu1 }
 0x14a   : > { %v1198_v3 = vadd.f32 %v1197_v1, %v1961_v14  ;;  %v1269_v4 = vadd.f32 %v1268_v2, %v1961_v14 }
 0x14b   : > { %v1199_v5 = vpop.f32.mrf.mxu0  ;;  %v1270_v6 = vpop.f32.mrf.mxu1 }
 0x14c   : > { %1506 = vtanh.f32 %v1198_v3  ;;  %v1200_v7 = vadd.f32 %v1199_v5, %v1961_v14  ;;  %v1271_v8 = vadd.f32 %v1270_v6, %v1961_v14 }
 0x14d   : > { %v1499_v9 = vpop.eup %1498  ;;  %1508 = vtanh.f32 %v1269_v4 }
 0x14e   : > { %v1501_v10 = vpop.eup %1500  ;;  %1510 = vtanh.f32 %v1200_v7 }
 0x14f   : > { %v1503_v11 = vpop.eup %1502  ;;  %1512 = vtanh.f32 %v1271_v8 }
 0x150   : > { %v1505_v12 = vpop.eup %1504  ;;  %v1319_v13 = vcombine.low %v1499_v9, %v1503_v11 }
 0x151   : > { %v1320_v15 = vcombine.low %v1501_v10, %v1505_v12 }
 0x152   : > { %1339 = vst [vmem:[%s1976_s11 + $0x30] sm:$0xff] %v1319_v13 }
 0x153   : > { %1340 = vst [vmem:[%s1976_s11 + $0x38] sm:$0xff] %v1320_v15 }
 0x159   : > { %v1507_v16 = vpop.eup %1506 }
 0x15a   : > { %v1509_v17 = vpop.eup %1508 }
 0x15b   : > { %v1511_v18 = vpop.eup %1510 }
 0x15c   : > { %v1513_v19 = vpop.eup %1512  ;;  %v1321_v20 = vcombine.low %v1507_v16, %v1511_v18 }
 0x15d   : > { %v1322_v36 = vcombine.low %v1509_v17, %v1513_v19 }
 0x15e   : > { %1341 = vst [vmem:[%s1976_s11 + $0x40] sm:$0xff] %v1321_v20 }
 0x15f   : > { %1342 = vst [vmem:[%s1976_s11 + $0x48] sm:$0xff] %v1322_v36 }
 0x160 PF: > { %p10_p9 = scmp.ge.s32.totalorder %s1577_s16, 6   ;;  %s2014_s12 = smov %s1532_s13 }
 0x161   : > { %s2015_s13 = smov %s1586_s19  ;;  %s2016_s14 = smov %s1577_s16 }
 0x162   :  { %12 = sbr.rel (!%p10_p9) target bundleno = 2 (0x2), region = 90 }

</bundles_post_ra>
